<compile_context>
chip_gen: v7x
topology: tpu7x:2x2x1
jax: 0.10.0
libtpu: 0.0.40
codegen_flags: <defaults>
</compile_context>

<pallas_src>
import math
from functools import partial

import jax
import jax.numpy as jnp
from jax import lax
from jax.experimental import pallas as pl
from jax.experimental.pallas import tpu as pltpu


def _trans_moes_kernel(n_heads, L, H, R, layout, rays_ref, slab_ref, o_ref):
    d = H // n_heads
    GL = layout['amask'][1]            # rows per block-diag score group (=128)
    M = R * L                          # rows of the batched activation matrix
    B = M // GL                        # number of score groups per grid step
    f32 = jnp.float32

    def get(name):
        r0, nr, nc = layout[name]
        return slab_ref[r0:r0 + nr, :nc]

    # ---- per-task encoders: relu(ray * w + b), R rays stacked on sublanes.
    rays = rays_ref[...]                                        # (R, L, 1)
    x = jnp.maximum(rays * get('wte') + get('bte'), 0.0)        # (R, L, H)
    x = x.reshape(M, H)

    # ---- fused QKV projection (1/sqrt(d) pre-folded into the Q columns/bias).
    qkv = jnp.dot(x, get('wqkv'), preferred_element_type=f32) + get('bqkv')  # (M, 3H)

    # ---- attention: block-diagonal grouped scores + lane-dense softmax.
    wo = get('wo')                                              # (H, H)
    amask = get('amask')                                        # (GL, GL): 0 / -1e30
    attn = None
    for h in range(n_heads):                                    # small static unroll
        q = qkv[:, h * d:(h + 1) * d].reshape(B, GL, d)
        k = qkv[:, H + h * d:H + (h + 1) * d].reshape(B, GL, d)
        v = qkv[:, 2 * H + h * d:2 * H + (h + 1) * d].reshape(B, GL, d)
        # scores: contract last-vs-last (no transpose materialized)
        s = lax.dot_general(q, k, (((2,), (2,)), ((0,), (0,))),
                            preferred_element_type=f32)         # (B, GL, GL)
        s = s + amask                                           # kill cross-ray blocks
        s = s - jnp.max(s, axis=-1, keepdims=True)
        p = jnp.exp(s)
        p = p / jnp.sum(p, axis=-1, keepdims=True)              # exact divide
        ctx = lax.dot_general(p, v, (((2,), (1,)), ((0,), (0,))),
                              preferred_element_type=f32)       # (B, GL, d)
        part = jnp.dot(ctx.reshape(M, d), wo[h * d:(h + 1) * d, :],
                       preferred_element_type=f32)              # (M, H)
        attn = part if attn is None else attn + part
    x = attn + get('bo') + x                                    # residual 1

    # ---- FFN block with residual.
    x_res = x
    x = jnp.maximum(jnp.dot(x, get('f1w'), preferred_element_type=f32)
                    + get('f1b'), 0.0)
    x = jnp.dot(x, get('f2w'), preferred_element_type=f32) + get('f2b')
    x = x + x_res                                               # residual 2

    # ---- selected expert MLP (last layer applied after the per-ray task mean).
    x = jnp.maximum(jnp.dot(x, get('e1w'), preferred_element_type=f32)
                    + get('e1b'), 0.0)
    x = jnp.maximum(jnp.dot(x, get('e2w'), preferred_element_type=f32)
                    + get('e2b'), 0.0)                          # (M, E)
    E = x.shape[-1]
    xm = jnp.mean(x.reshape(R, L, E), axis=1)                   # (R, E) per-ray mean
    # lane-dense (R, 128) store (e3 weight/bias are zero-padded to 128 columns).
    o_ref[...] = jnp.dot(xm, get('e3w'), preferred_element_type=f32) + get('e3b')


def init_params(key, ray_hidden_dim, out_dim, expert_dim, n_experts, n_tasks):
    H = ray_hidden_dim
    keys = iter(jax.random.split(key, 64))
    p = {}
    p['wte'] = 0.1 * jax.random.normal(next(keys), (n_tasks, H), jnp.float32)
    p['bte'] = 0.1 * jax.random.normal(next(keys), (n_tasks, H), jnp.float32)
    p['in_proj_w'] = 0.1 * jax.random.normal(next(keys), (3 * H, H), jnp.float32)
    p['in_proj_b'] = 0.1 * jax.random.normal(next(keys), (3 * H,), jnp.float32)
    p['out_proj_w'] = 0.1 * jax.random.normal(next(keys), (H, H), jnp.float32)
    p['out_proj_b'] = 0.1 * jax.random.normal(next(keys), (H,), jnp.float32)
    p['ffn1_w'] = 0.1 * jax.random.normal(next(keys), (H, H), jnp.float32)
    p['ffn1_b'] = 0.1 * jax.random.normal(next(keys), (H,), jnp.float32)
    p['ffn2_w'] = 0.1 * jax.random.normal(next(keys), (H, H), jnp.float32)
    p['ffn2_b'] = 0.1 * jax.random.normal(next(keys), (H,), jnp.float32)
    experts = []
    for i in range(n_experts):
        E = expert_dim[i]
        w1 = 0.1 * jax.random.normal(next(keys), (E, H), jnp.float32)
        b1 = 0.1 * jax.random.normal(next(keys), (E,), jnp.float32)
        w2 = 0.1 * jax.random.normal(next(keys), (E, E), jnp.float32)
        b2 = 0.1 * jax.random.normal(next(keys), (E,), jnp.float32)
        w3 = 0.1 * jax.random.normal(next(keys), (out_dim, E), jnp.float32)
        b3 = 0.1 * jax.random.normal(next(keys), (out_dim,), jnp.float32)
        experts.append((w1, b1, w2, b2, w3, b3))
    p['experts'] = experts
    return p


def prepare_params(params, idx, n_heads):
    """One-time packing of all weights (expert `idx`) into a single VMEM slab.

    Weights are pre-transposed to (in_features, out_features); the attention
    scale 1/sqrt(d) is folded into the Q columns of the fused QKV weight/bias.
    The last expert layer is zero-padded to a 128-lane output (lane-dense store)
    and a block-diagonal -1e30 attention mask is precomputed.  Every piece starts
    at an 8-aligned row and is zero-padded to the common 128-lane slab width.
    """
    wte = params['wte']
    n_tasks, H = wte.shape
    assert H % n_heads == 0
    d = H // n_heads
    scale = 1.0 / math.sqrt(d)
    assert n_tasks <= 128 and 128 % n_tasks == 0
    GL = (128 // n_tasks) * n_tasks            # rows per block-diag score group

    inw, inb = params['in_proj_w'], params['in_proj_b']
    wqkv = jnp.concatenate([(inw[:H] * scale).T,          # Q columns (scaled)
                            inw[H:2 * H].T,               # K columns
                            inw[2 * H:].T], axis=1)       # V columns  -> (H, 3H)
    bqkv = jnp.concatenate([inb[:H] * scale, inb[H:2 * H], inb[2 * H:]]
                           ).reshape(1, 3 * H)

    e1w, e1b, e2w, e2b, e3w, e3b = params['experts'][idx]
    out_dim = e3w.shape[0]
    out_pad = ((out_dim + 127) // 128) * 128
    e3w_p = jnp.zeros((e3w.shape[1], out_pad), jnp.float32).at[:, :out_dim].set(e3w.T)
    e3b_p = jnp.zeros((1, out_pad), jnp.float32).at[0, :out_dim].set(e3b)

    # Block-diagonal additive mask: 0 within a ray's LxL block, -1e30 across rays.
    rows = jnp.arange(GL) // n_tasks
    amask = jnp.where(rows[:, None] == rows[None, :], 0.0, -1e30).astype(jnp.float32)

    pieces = [
        ('wte',  wte),
        ('bte',  params['bte']),
        ('wqkv', wqkv),
        ('bqkv', bqkv),
        ('wo',   params['out_proj_w'].T),
        ('bo',   params['out_proj_b'].reshape(1, H)),
        ('f1w',  params['ffn1_w'].T),
        ('f1b',  params['ffn1_b'].reshape(1, H)),
        ('f2w',  params['ffn2_w'].T),
        ('f2b',  params['ffn2_b'].reshape(1, H)),
        ('e1w',  e1w.T),
        ('e1b',  e1b.reshape(1, -1)),
        ('e2w',  e2w.T),
        ('e2b',  e2b.reshape(1, -1)),
        ('e3w',  e3w_p),
        ('e3b',  e3b_p),
        ('amask', amask),
    ]

    maxw = max(int(a.shape[1]) for _, a in pieces)
    C = ((maxw + 127) // 128) * 128                       # lane-padded slab width

    layout, blocks, r = {}, [], 0
    for name, arr in pieces:
        nr, nc = int(arr.shape[0]), int(arr.shape[1])
        pr = ((nr + 7) // 8) * 8                          # sublane-align each piece
        blk = jnp.zeros((pr, C), jnp.float32).at[:nr, :nc].set(arr.astype(jnp.float32))
        layout[name] = (r, nr, nc)
        blocks.append(blk)
        r += pr
    slab = jnp.concatenate(blocks, axis=0)                # (total_rows, C)

    meta = {'n_tasks': n_tasks, 'H': H, 'out_dim': out_dim, 'out_pad': out_pad,
            'n_heads': n_heads, 'group_rows': GL}
    return slab, layout, meta


def make_trans_moes_forward(layout, meta, block_rays=64):
    """Returns a jitted forward: (slab, rays) -> (num_rays, out_dim).

    `rays` may be a single ray of shape (n_tasks,) -- then a (1, out_dim) array
    is returned, matching the original module's forward(ray, idx) semantics --
    or a batch of shape (num_rays, n_tasks) (the fast path).
    """
    L, H, n_heads = meta['n_tasks'], meta['H'], meta['n_heads']
    out_dim, out_pad, GL = meta['out_dim'], meta['out_pad'], meta['group_rows']
    G = GL // L                                   # rays per block-diag score group
    R = max(G, (block_rays // G) * G)             # rays per grid step (multiple of G)

    @jax.jit
    def fwd(slab, rays):
        rays = rays.astype(jnp.float32)
        if rays.ndim == 1:
            rays = rays[None, :]
        n = rays.shape[0]
        n_pad = ((n + R - 1) // R) * R
        if n_pad != n:
            rays = jnp.pad(rays, ((0, n_pad - n), (0, 0)))
        rays3 = rays[:, :, None]                  # (n_pad, L, 1): layout plumbing in XLA

        out = pl.pallas_call(
            partial(_trans_moes_kernel, n_heads, L, H, R, layout),
            out_shape=jax.ShapeDtypeStruct((n_pad, out_pad), jnp.float32),
            grid=(n_pad // R,),
            in_specs=[
                pl.BlockSpec((R, L, 1), lambda r: (r, 0, 0)),   # per-step ray block
                pl.BlockSpec(slab.shape, lambda r: (0, 0)),     # VMEM-resident slab
            ],
            out_specs=pl.BlockSpec((R, out_pad), lambda r: (r, 0)),
            compiler_params=pltpu.CompilerParams(
                dimension_semantics=("parallel",)),             # both TCs on v7x
        )(rays3, slab)
        return out[:n, :out_dim]

    return fwd


def ref_forward(params, ray, idx, n_heads):
    """Pure-JAX reference of the PyTorch forward for validation."""
    H = params['wte'].shape[1]
    d = H // n_heads
    x = jax.nn.relu(ray[:, None] * params['wte'] + params['bte'])
    L = x.shape[0]
    qkv = x @ params['in_proj_w'].T + params['in_proj_b']
    q, k, v = qkv[:, :H], qkv[:, H:2 * H], qkv[:, 2 * H:]
    qh = q.reshape(L, n_heads, d).transpose(1, 0, 2)
    kh = k.reshape(L, n_heads, d).transpose(1, 0, 2)
    vh = v.reshape(L, n_heads, d).transpose(1, 0, 2)
    s = jnp.einsum('hld,hmd->hlm', qh, kh) / math.sqrt(d)
    p = jax.nn.softmax(s, axis=-1)
    heads = jnp.einsum('hlm,hmd->hld', p, vh).transpose(1, 0, 2).reshape(L, H)
    attn = heads @ params['out_proj_w'].T + params['out_proj_b']
    x = attn + x
    xr = x
    x = jax.nn.relu(x @ params['ffn1_w'].T + params['ffn1_b'])
    x = x @ params['ffn2_w'].T + params['ffn2_b']
    x = x + xr
    w1, b1, w2, b2, w3, b3 = params['experts'][idx]
    x = jax.nn.relu(x @ w1.T + b1)
    x = jax.nn.relu(x @ w2.T + b2)
    x = x @ w3.T + b3
    return jnp.mean(x, axis=0, keepdims=True)


if __name__ == "__main__":
    ray_hidden_dim = 32
    out_dim = 16
    n_tasks = 8
    n_heads = 2
    n_experts = 3
    expert_dim = [24, 40, 48]
    idx = 1  # static expert selection (matches getattr(self, f'experts_{idx}'))

    key = jax.random.PRNGKey(0)
    k_params, k_ray = jax.random.split(key)
    params = init_params(k_params, ray_hidden_dim, out_dim, expert_dim,
                         n_experts, n_tasks)

    # One-time parameter packing (hoisted out of the per-call path).
    slab, layout, meta = prepare_params(params, idx, n_heads)
    slab = jax.block_until_ready(slab)
    fwd = make_trans_moes_forward(layout, meta, block_rays=64)

    # --- batched path: many rays per call, 64 rays per grid step, parallel grid.
    num_rays = 256
    rays = jax.random.uniform(k_ray, (num_rays, n_tasks), jnp.float32)
    out = jax.block_until_ready(fwd(slab, rays))
    assert out.shape == (num_rays, out_dim)

    # Exact softmax divide is used in-kernel; remaining tolerance covers MXU f32
    # pass rounding vs. XLA's default-precision reference matmuls.
    for i in (0, 1, 63, 64, 200, 255):
        ref = ref_forward(params, rays[i], idx, n_heads)
        assert jnp.allclose(out[i:i + 1], ref, rtol=1e-2, atol=1e-2), (i, out[i], ref)

    # --- single-ray path (original module semantics: forward(ray, idx) -> (1, out)).
    single = jax.block_until_ready(fwd(slab, rays[0]))
    ref0 = ref_forward(params, rays[0], idx, n_heads)
    assert single.shape == (1, out_dim)
    assert jnp.allclose(single, ref0, rtol=1e-2, atol=1e-2), (single, ref0)

    print("KERNEL_OK")
</pallas_src>

<mosaic_0001>
module attributes {stable_mosaic.version = 11 : i64} {
  func.func @_trans_moes_kernel(%arg0: i32, %arg1: memref<64x8x1xf32, #tpu.memory_space<vmem>>, %arg2: memref<440x128xf32, #tpu.memory_space<vmem>>, %arg3: memref<64x128xf32, #tpu.memory_space<vmem>>) attributes {dimension_semantics = [#tpu.dimension_semantics<parallel>], iteration_bounds = array<i64: 4>, scalar_prefetch = 0 : i64, scratch_operands = 0 : i64, tpu.core_type = #tpu.core_type<tc>, window_params = [{transform_indices = @transform_0, window_bounds = array<i64: 64, 8, 1>}, {pipeline_mode = #tpu.pipeline_mode<synchronous>, transform_indices = @transform_1, window_bounds = array<i64: 440, 128>}, {transform_indices = @transform_2, window_bounds = array<i64: 64, 128>}]} {
    %c0 = arith.constant 0 : index
    %c0_0 = arith.constant 0 : index
    %c0_1 = arith.constant 0 : index
    %0 = vector.load %arg1[%c0, %c0_0, %c0_1] : memref<64x8x1xf32, #tpu.memory_space<vmem>>, vector<64x8x1xf32>
    %c0_2 = arith.constant 0 : index
    %c0_3 = arith.constant 0 : index
    %1 = vector.load %arg2[%c0_2, %c0_3] : memref<440x128xf32, #tpu.memory_space<vmem>>, vector<8x32xf32>
    %2 = vector.shape_cast %1 : vector<8x32xf32> to vector<1x8x32xf32>
    %3 = vector.broadcast %0 : vector<64x8x1xf32> to vector<64x8x32xf32>
    %4 = vector.broadcast %2 : vector<1x8x32xf32> to vector<64x8x32xf32>
    %5 = arith.mulf %3, %4 : vector<64x8x32xf32>
    %c8 = arith.constant 8 : index
    %c0_4 = arith.constant 0 : index
    %6 = vector.load %arg2[%c8, %c0_4] : memref<440x128xf32, #tpu.memory_space<vmem>>, vector<8x32xf32>
    %7 = vector.shape_cast %6 : vector<8x32xf32> to vector<1x8x32xf32>
    %8 = vector.broadcast %7 : vector<1x8x32xf32> to vector<64x8x32xf32>
    %9 = arith.addf %5, %8 : vector<64x8x32xf32>
    %cst = arith.constant 0.000000e+00 : f32
    %10 = vector.broadcast %cst : f32 to vector<64x8x32xf32>
    %11 = arith.maximumf %9, %10 : vector<64x8x32xf32>
    %12 = vector.shape_cast %11 : vector<64x8x32xf32> to vector<512x32xf32>
    %c16 = arith.constant 16 : index
    %c0_5 = arith.constant 0 : index
    %13 = vector.load %arg2[%c16, %c0_5] : memref<440x128xf32, #tpu.memory_space<vmem>>, vector<32x96xf32>
    %cst_6 = arith.constant dense<0.000000e+00> : vector<512x96xf32>
    %14 = tpu.matmul %12, %13, %cst_6 {dimension_numbers = #tpu.dot_dimension_numbers<[1], [0], [0], [1], [0, 0, 1, 1], [], []>} : vector<512x32xf32>, vector<32x96xf32>, vector<512x96xf32> -> vector<512x96xf32>
    %c48 = arith.constant 48 : index
    %c0_7 = arith.constant 0 : index
    %15 = vector.load %arg2[%c48, %c0_7] : memref<440x128xf32, #tpu.memory_space<vmem>>, vector<1x96xf32>
    %16 = vector.broadcast %15 : vector<1x96xf32> to vector<512x96xf32>
    %17 = arith.addf %14, %16 : vector<512x96xf32>
    %c56 = arith.constant 56 : index
    %c0_8 = arith.constant 0 : index
    %18 = vector.load %arg2[%c56, %c0_8] : memref<440x128xf32, #tpu.memory_space<vmem>>, vector<32x32xf32>
    %c312 = arith.constant 312 : index
    %c0_9 = arith.constant 0 : index
    %19 = vector.load %arg2[%c312, %c0_9] : memref<440x128xf32, #tpu.memory_space<vmem>>, vector<128x128xf32>
    %20 = vector.extract_strided_slice %17 {offsets = [0, 0], sizes = [512, 16], strides = [1, 1]} : vector<512x96xf32> to vector<512x16xf32>
    %21 = vector.shape_cast %20 : vector<512x16xf32> to vector<4x128x16xf32>
    %22 = vector.extract_strided_slice %17 {offsets = [0, 32], sizes = [512, 16], strides = [1, 1]} : vector<512x96xf32> to vector<512x16xf32>
    %23 = vector.shape_cast %22 : vector<512x16xf32> to vector<4x128x16xf32>
    %24 = vector.extract_strided_slice %17 {offsets = [0, 64], sizes = [512, 16], strides = [1, 1]} : vector<512x96xf32> to vector<512x16xf32>
    %25 = vector.shape_cast %24 : vector<512x16xf32> to vector<4x128x16xf32>
    %cst_10 = arith.constant dense<0.000000e+00> : vector<4x128x128xf32>
    %26 = tpu.matmul %21, %23, %cst_10 {dimension_numbers = #tpu.dot_dimension_numbers<[2], [2], [1], [1], [0, 0, 0, 1, 1, 1], [0], [0]>} : vector<4x128x16xf32>, vector<4x128x16xf32>, vector<4x128x128xf32> -> vector<4x128x128xf32>
    %27 = vector.shape_cast %19 : vector<128x128xf32> to vector<1x128x128xf32>
    %28 = vector.broadcast %27 : vector<1x128x128xf32> to vector<4x128x128xf32>
    %29 = arith.addf %26, %28 : vector<4x128x128xf32>
    %cst_11 = arith.constant dense<0xFF800000> : vector<4x128xf32>
    %30 = vector.multi_reduction <maximumf>, %29, %cst_11 [2] : vector<4x128x128xf32> to vector<4x128xf32>
    %31 = vector.shape_cast %30 : vector<4x128xf32> to vector<4x128x1xf32>
    %32 = vector.broadcast %31 : vector<4x128x1xf32> to vector<4x128x128xf32>
    %33 = arith.subf %29, %32 : vector<4x128x128xf32>
    %34 = math.exp %33 : vector<4x128x128xf32>
    %cst_12 = arith.constant dense<0.000000e+00> : vector<4x128xf32>
    %35 = vector.multi_reduction <add>, %34, %cst_12 [2] : vector<4x128x128xf32> to vector<4x128xf32>
    %36 = vector.shape_cast %35 : vector<4x128xf32> to vector<4x128x1xf32>
    %37 = vector.broadcast %36 : vector<4x128x1xf32> to vector<4x128x128xf32>
    %38 = arith.divf %34, %37 : vector<4x128x128xf32>
    %cst_13 = arith.constant dense<0.000000e+00> : vector<4x128x16xf32>
    %39 = tpu.matmul %38, %25, %cst_13 {dimension_numbers = #tpu.dot_dimension_numbers<[2], [1], [1], [2], [0, 0, 0, 1, 1, 2], [0], [0]>} : vector<4x128x128xf32>, vector<4x128x16xf32>, vector<4x128x16xf32> -> vector<4x128x16xf32>
    %40 = vector.shape_cast %39 : vector<4x128x16xf32> to vector<512x16xf32>
    %41 = vector.extract_strided_slice %18 {offsets = [0, 0], sizes = [16, 32], strides = [1, 1]} : vector<32x32xf32> to vector<16x32xf32>
    %cst_14 = arith.constant dense<0.000000e+00> : vector<512x32xf32>
    %42 = tpu.matmul %40, %41, %cst_14 {dimension_numbers = #tpu.dot_dimension_numbers<[1], [0], [0], [1], [0, 0, 1, 1], [], []>} : vector<512x16xf32>, vector<16x32xf32>, vector<512x32xf32> -> vector<512x32xf32>
    %43 = vector.extract_strided_slice %17 {offsets = [0, 16], sizes = [512, 16], strides = [1, 1]} : vector<512x96xf32> to vector<512x16xf32>
    %44 = vector.shape_cast %43 : vector<512x16xf32> to vector<4x128x16xf32>
    %45 = vector.extract_strided_slice %17 {offsets = [0, 48], sizes = [512, 16], strides = [1, 1]} : vector<512x96xf32> to vector<512x16xf32>
    %46 = vector.shape_cast %45 : vector<512x16xf32> to vector<4x128x16xf32>
    %47 = vector.extract_strided_slice %17 {offsets = [0, 80], sizes = [512, 16], strides = [1, 1]} : vector<512x96xf32> to vector<512x16xf32>
    %48 = vector.shape_cast %47 : vector<512x16xf32> to vector<4x128x16xf32>
    %cst_15 = arith.constant dense<0.000000e+00> : vector<4x128x128xf32>
    %49 = tpu.matmul %44, %46, %cst_15 {dimension_numbers = #tpu.dot_dimension_numbers<[2], [2], [1], [1], [0, 0, 0, 1, 1, 1], [0], [0]>} : vector<4x128x16xf32>, vector<4x128x16xf32>, vector<4x128x128xf32> -> vector<4x128x128xf32>
    %50 = vector.shape_cast %19 : vector<128x128xf32> to vector<1x128x128xf32>
    %51 = vector.broadcast %50 : vector<1x128x128xf32> to vector<4x128x128xf32>
    %52 = arith.addf %49, %51 : vector<4x128x128xf32>
    %cst_16 = arith.constant dense<0xFF800000> : vector<4x128xf32>
    %53 = vector.multi_reduction <maximumf>, %52, %cst_16 [2] : vector<4x128x128xf32> to vector<4x128xf32>
    %54 = vector.shape_cast %53 : vector<4x128xf32> to vector<4x128x1xf32>
    %55 = vector.broadcast %54 : vector<4x128x1xf32> to vector<4x128x128xf32>
    %56 = arith.subf %52, %55 : vector<4x128x128xf32>
    %57 = math.exp %56 : vector<4x128x128xf32>
    %cst_17 = arith.constant dense<0.000000e+00> : vector<4x128xf32>
    %58 = vector.multi_reduction <add>, %57, %cst_17 [2] : vector<4x128x128xf32> to vector<4x128xf32>
    %59 = vector.shape_cast %58 : vector<4x128xf32> to vector<4x128x1xf32>
    %60 = vector.broadcast %59 : vector<4x128x1xf32> to vector<4x128x128xf32>
    %61 = arith.divf %57, %60 : vector<4x128x128xf32>
    %cst_18 = arith.constant dense<0.000000e+00> : vector<4x128x16xf32>
    %62 = tpu.matmul %61, %48, %cst_18 {dimension_numbers = #tpu.dot_dimension_numbers<[2], [1], [1], [2], [0, 0, 0, 1, 1, 2], [0], [0]>} : vector<4x128x128xf32>, vector<4x128x16xf32>, vector<4x128x16xf32> -> vector<4x128x16xf32>
    %63 = vector.shape_cast %62 : vector<4x128x16xf32> to vector<512x16xf32>
    %64 = vector.extract_strided_slice %18 {offsets = [16, 0], sizes = [16, 32], strides = [1, 1]} : vector<32x32xf32> to vector<16x32xf32>
    %cst_19 = arith.constant dense<0.000000e+00> : vector<512x32xf32>
    %65 = tpu.matmul %63, %64, %cst_19 {dimension_numbers = #tpu.dot_dimension_numbers<[1], [0], [0], [1], [0, 0, 1, 1], [], []>} : vector<512x16xf32>, vector<16x32xf32>, vector<512x32xf32> -> vector<512x32xf32>
    %66 = arith.addf %42, %65 : vector<512x32xf32>
    %c88 = arith.constant 88 : index
    %c0_20 = arith.constant 0 : index
    %67 = vector.load %arg2[%c88, %c0_20] : memref<440x128xf32, #tpu.memory_space<vmem>>, vector<1x32xf32>
    %68 = vector.broadcast %67 : vector<1x32xf32> to vector<512x32xf32>
    %69 = arith.addf %66, %68 : vector<512x32xf32>
    %70 = arith.addf %69, %12 : vector<512x32xf32>
    %c96 = arith.constant 96 : index
    %c0_21 = arith.constant 0 : index
    %71 = vector.load %arg2[%c96, %c0_21] : memref<440x128xf32, #tpu.memory_space<vmem>>, vector<32x32xf32>
    %cst_22 = arith.constant dense<0.000000e+00> : vector<512x32xf32>
    %72 = tpu.matmul %70, %71, %cst_22 {dimension_numbers = #tpu.dot_dimension_numbers<[1], [0], [0], [1], [0, 0, 1, 1], [], []>} : vector<512x32xf32>, vector<32x32xf32>, vector<512x32xf32> -> vector<512x32xf32>
    %c128 = arith.constant 128 : index
    %c0_23 = arith.constant 0 : index
    %73 = vector.load %arg2[%c128, %c0_23] : memref<440x128xf32, #tpu.memory_space<vmem>>, vector<1x32xf32>
    %74 = vector.broadcast %73 : vector<1x32xf32> to vector<512x32xf32>
    %75 = arith.addf %72, %74 : vector<512x32xf32>
    %cst_24 = arith.constant 0.000000e+00 : f32
    %76 = vector.broadcast %cst_24 : f32 to vector<512x32xf32>
    %77 = arith.maximumf %75, %76 : vector<512x32xf32>
    %c136 = arith.constant 136 : index
    %c0_25 = arith.constant 0 : index
    %78 = vector.load %arg2[%c136, %c0_25] : memref<440x128xf32, #tpu.memory_space<vmem>>, vector<32x32xf32>
    %cst_26 = arith.constant dense<0.000000e+00> : vector<512x32xf32>
    %79 = tpu.matmul %77, %78, %cst_26 {dimension_numbers = #tpu.dot_dimension_numbers<[1], [0], [0], [1], [0, 0, 1, 1], [], []>} : vector<512x32xf32>, vector<32x32xf32>, vector<512x32xf32> -> vector<512x32xf32>
    %c168 = arith.constant 168 : index
    %c0_27 = arith.constant 0 : index
    %80 = vector.load %arg2[%c168, %c0_27] : memref<440x128xf32, #tpu.memory_space<vmem>>, vector<1x32xf32>
    %81 = vector.broadcast %80 : vector<1x32xf32> to vector<512x32xf32>
    %82 = arith.addf %79, %81 : vector<512x32xf32>
    %83 = arith.addf %82, %70 : vector<512x32xf32>
    %c176 = arith.constant 176 : index
    %c0_28 = arith.constant 0 : index
    %84 = vector.load %arg2[%c176, %c0_28] : memref<440x128xf32, #tpu.memory_space<vmem>>, vector<32x40xf32>
    %cst_29 = arith.constant dense<0.000000e+00> : vector<512x40xf32>
    %85 = tpu.matmul %83, %84, %cst_29 {dimension_numbers = #tpu.dot_dimension_numbers<[1], [0], [0], [1], [0, 0, 1, 1], [], []>} : vector<512x32xf32>, vector<32x40xf32>, vector<512x40xf32> -> vector<512x40xf32>
    %c208 = arith.constant 208 : index
    %c0_30 = arith.constant 0 : index
    %86 = vector.load %arg2[%c208, %c0_30] : memref<440x128xf32, #tpu.memory_space<vmem>>, vector<1x40xf32>
    %87 = vector.broadcast %86 : vector<1x40xf32> to vector<512x40xf32>
    %88 = arith.addf %85, %87 : vector<512x40xf32>
    %cst_31 = arith.constant 0.000000e+00 : f32
    %89 = vector.broadcast %cst_31 : f32 to vector<512x40xf32>
    %90 = arith.maximumf %88, %89 : vector<512x40xf32>
    %c216 = arith.constant 216 : index
    %c0_32 = arith.constant 0 : index
    %91 = vector.load %arg2[%c216, %c0_32] : memref<440x128xf32, #tpu.memory_space<vmem>>, vector<40x40xf32>
    %cst_33 = arith.constant dense<0.000000e+00> : vector<512x40xf32>
    %92 = tpu.matmul %90, %91, %cst_33 {dimension_numbers = #tpu.dot_dimension_numbers<[1], [0], [0], [1], [0, 0, 1, 1], [], []>} : vector<512x40xf32>, vector<40x40xf32>, vector<512x40xf32> -> vector<512x40xf32>
    %c256 = arith.constant 256 : index
    %c0_34 = arith.constant 0 : index
    %93 = vector.load %arg2[%c256, %c0_34] : memref<440x128xf32, #tpu.memory_space<vmem>>, vector<1x40xf32>
    %94 = vector.broadcast %93 : vector<1x40xf32> to vector<512x40xf32>
    %95 = arith.addf %92, %94 : vector<512x40xf32>
    %cst_35 = arith.constant 0.000000e+00 : f32
    %96 = vector.broadcast %cst_35 : f32 to vector<512x40xf32>
    %97 = arith.maximumf %95, %96 : vector<512x40xf32>
    %98 = vector.shape_cast %97 : vector<512x40xf32> to vector<64x8x40xf32>
    %cst_36 = arith.constant dense<0.000000e+00> : vector<64x40xf32>
    %99 = vector.multi_reduction <add>, %98, %cst_36 [1] : vector<64x8x40xf32> to vector<64x40xf32>
    %cst_37 = arith.constant 8.000000e+00 : f32
    %100 = vector.broadcast %cst_37 : f32 to vector<64x40xf32>
    %101 = arith.divf %99, %100 : vector<64x40xf32>
    %c264 = arith.constant 264 : index
    %c0_38 = arith.constant 0 : index
    %102 = vector.load %arg2[%c264, %c0_38] : memref<440x128xf32, #tpu.memory_space<vmem>>, vector<40x128xf32>
    %cst_39 = arith.constant dense<0.000000e+00> : vector<64x128xf32>
    %103 = tpu.matmul %101, %102, %cst_39 {dimension_numbers = #tpu.dot_dimension_numbers<[1], [0], [0], [1], [0, 0, 1, 1], [], []>} : vector<64x40xf32>, vector<40x128xf32>, vector<64x128xf32> -> vector<64x128xf32>
    %c304 = arith.constant 304 : index
    %c0_40 = arith.constant 0 : index
    %104 = vector.load %arg2[%c304, %c0_40] : memref<440x128xf32, #tpu.memory_space<vmem>>, vector<1x128xf32>
    %105 = vector.broadcast %104 : vector<1x128xf32> to vector<64x128xf32>
    %106 = arith.addf %103, %105 : vector<64x128xf32>
    %c0_41 = arith.constant 0 : index
    %c0_42 = arith.constant 0 : index
    %107 = vector.load %arg3[%c0_41, %c0_42] : memref<64x128xf32, #tpu.memory_space<vmem>>, vector<64x128xf32>
    tpu.vector_store %arg3[%c0_41, %c0_42], %106 {strides = array<i32>} : memref<64x128xf32, #tpu.memory_space<vmem>>, vector<64x128xf32>,
    return
  }
  func.func @transform_0(%arg0: i32) -> (i32, i32, i32) {
    %c0_i32 = arith.constant 0 : i32
    %c0_i32_0 = arith.constant 0 : i32
    %c0_i32_1 = arith.constant 0 : i32
    return %arg0, %c0_i32, %c0_i32_0 : i32, i32, i32
  }
  func.func @transform_1(%arg0: i32) -> (i32, i32) {
    %c0_i32 = arith.constant 0 : i32
    %c0_i32_0 = arith.constant 0 : i32
    %c0_i32_1 = arith.constant 0 : i32
    return %c0_i32, %c0_i32_0 : i32, i32
  }
  func.func @transform_2(%arg0: i32) -> (i32, i32) {
    %c0_i32 = arith.constant 0 : i32
    %c0_i32_0 = arith.constant 0 : i32
    return %arg0, %c0_i32 : i32, i32
  }
}

</mosaic_0001>

<bundles_post_ra>
// kernel: fwd.1
= control target key start
LH: loop header
LB: loop body
LE: loop exit
PB: predicated region body
PF: predicated region fallthrough
CT: control target
= control target key end

     0   :  { %s16221_s9 = smov 0   ;;  %s21622_s0 = inlined_call_operand.vmem [shape: f32[256,8,1], index: 0, kind: input, shape index: {}]   ;;  %s21623_s1 = inlined_call_operand.vmem [shape: f32[440,128], index: 1, kind: input, shape index: {}]   ;;  %s21624_s2 = inlined_call_operand.vmem [shape: f32[256,128], index: 2, kind: output, shape index: {}]  }
   0x1 LB: > { %s10873_s10 = sadd.s32 4294967295, %s16198_s9   ;;  %p10877_p0 = scmp.ge.s32.totalorder %s16198_s9, 1  ;;  %s16198_s9 = sphi %s16221_s9, %s12_s9  }
   0x2   : > { %p113_p1 = scmp.lt.s32.totalorder %s16198_s9, 5 }
   0x4   : > { %p114_p2 = pnand %p10877_p0, %p113_p1 }
   0x6   : > { %117 = sbr.rel (%p114_p2) target bundleno = 4849 (0x12f1), region = 28 }
   0xd   : > { %s10878_s11 = sshll.u32 %s10873_s10, 6  ;;  %v16200_v0 = vmov 0   ;;  %v725_v14 = vld [vmem:[%s21623_s1 + $0x10] sm:$0xff]  ;;  %v726_v15 = vld [vmem:[%s21623_s1 + $0x18] sm:$0xff]  ;;  %v727_v18 = vld [vmem:[%s21623_s1 + $0x20] sm:$0xff]  ;;  %vm734_vm0 = vcmask 261120  }
   0xe   : > { %15022 = vset.pattern.permute.xlu1 %v16200_v0  ;;  %15021 = vset.pattern.permute.xlu0 %v16200_v0  ;;  %p136_p3 = scmp.lt.s32.totalorder %s10878_s11, 255  ;;  %v14241_v17 = vpack.c.bf16 %v726_v15, %v725_v14  ;;  %v728_v19 = vld [vmem:[%s21623_s1 + $0x28] sm:$0xff]  ;;  %vm1380_vm1 = vcmask 130048   ;;  %s16201_s30 = smov 96   ;;  %vm9396_vm3 = vcmask 326656   ;;  %vm10625_vm4 = vcmask 1041409  }
   0xf   : > { %v14245_v20 = vpack.c.bf16 %v728_v19, %v727_v18  ;;  %s16202_s3 = smov 64   ;;  %vm17253_vm2 = vmpackc.low %vm1380_vm1, %vm1380_vm1  ;;  %s16203_s13 = smov 80   ;;  %vm10627_vm5 = vcmask 1042434   ;;  %vm10629_vm6 = vcmask 1043459   ;;  %vm10631_vm7 = vcmask 1044484  }
  0x10   : > { %s22893_s11 = smov (!%p136_p3, %s10878_s11), 255  ;;  %14242 = vmatprep.subr.bf16.mxu0 %v14241_v17  ;;  %s16205_s20 = smov 48   ;;  %vm10633_vm8 = vcmask 1045509   ;;  %vm10635_vm9 = vcmask 1046534   ;;  %vm10637_vm10 = vcmask 1047559  }
  0x11   : > { %s10879_s12 = sshll.u32 %s22893_s11, 3  ;;  %14244 = vmatpush3.bf16.msra.mxu0 %v14241_v17  ;;  %s10880_s6 = sshll.u32 %s10873_s10, 3 }
  0x12   : > { %s16234_s15 = scalar_lea.vmem %s21622_s0, %s10879_s12  ;;  %14246 = vmatprep.subr.bf16.mxu0 %v14245_v20  ;;  %p142_p4 = scmp.lt.s32.totalorder %s10880_s6, 31 }
  0x13   : > { %v149_v1 = vld [vmem:[%s16234_s15 + $0x10] sm:$0xff]  ;;  %v147_v2 = vld [vmem:[%s16234_s15] sm:$0xff]  ;;  %v150_v3 = vld [vmem:[%s16234_s15 + $0x18] sm:$0xff] }
  0x14   : > { %224 = vperm.xlu1 %15022, %v149_v1   ;;  %214 = vperm.xlu0 %15021, %v147_v2   ;;  %v148_v4 = vld [vmem:[%s16234_s15 + $0x8] sm:$0xff]  ;;  %v151_v6 = vld [vmem:[%s16234_s15 + $0x20] sm:$0xff]  ;;  %v154_v7 = vld [vmem:[%s16234_s15 + $0x38] sm:$0xff]  ;;  %s22895_s6 = smov (!%p142_p4, %s10880_s6), 31 }
  0x15   : > { %v152_v5 = vld [vmem:[%s16234_s15 + $0x28] sm:$0xff]  ;;  %v153_v8 = vld [vmem:[%s16234_s15 + $0x30] sm:$0xff]  ;;  %v155_v10 = vld [vmem:[%s16234_s15 + $0x40] sm:$0xff]  ;;  %14248 = vmatpush3.bf16.msra.mxu0 %v14245_v20  ;;  %s10881_s7 = sshll.u32 %s22895_s6, 3 }
  0x16   : > { %v156_v9 = vld [vmem:[%s16234_s15 + $0x48] sm:$0xff]  ;;  %v158_v11 = vld [vmem:[%s16234_s15 + $0x58] sm:$0xff]  ;;  %v157_v12 = vld [vmem:[%s16234_s15 + $0x50] sm:$0xff] }
  0x17   : > { %v160_v13 = vld [vmem:[%s16234_s15 + $0x68] sm:$0xff]  ;;  %v159_v16 = vld [vmem:[%s16234_s15 + $0x60] sm:$0xff]  ;;  %v162_v21 = vld [vmem:[%s16234_s15 + $0x78] sm:$0xff] }
  0x18   : > { %229 = vperm.xlu1 %15022, %v150_v3   ;;  %219 = vperm.xlu0 %15021, %v148_v4   ;;  %v161_v22 = vld [vmem:[%s16234_s15 + $0x70] sm:$0xff]  ;;  %v164_v23 = vld [vmem:[%s16234_s15 + $0x88] sm:$0xff]  ;;  %v163_v24 = vld [vmem:[%s16234_s15 + $0x80] sm:$0xff] }
  0x19   : > { %v166_v25 = vld [vmem:[%s16234_s15 + $0x98] sm:$0xff]  ;;  %v165_v26 = vld [vmem:[%s16234_s15 + $0x90] sm:$0xff]  ;;  %v168_v27 = vld [vmem:[%s16234_s15 + $0xa8] sm:$0xff] }
  0x1a   : > { %v167_v28 = vld [vmem:[%s16234_s15 + $0xa0] sm:$0xff]  ;;  %v170_v29 = vld [vmem:[%s16234_s15 + $0xb8] sm:$0xff]  ;;  %v169_v30 = vld [vmem:[%s16234_s15 + $0xb0] sm:$0xff] }
  0x1b   : > { %v172_v31 = vld [vmem:[%s16234_s15 + $0xc8] sm:$0xff]  ;;  %v171_v32 = vld [vmem:[%s16234_s15 + $0xc0] sm:$0xff]  ;;  %v174_v33 = vld [vmem:[%s16234_s15 + $0xd8] sm:$0xff] }
  0x1c   : > { %239 = vperm.xlu1 %15022, %v152_v5   ;;  %234 = vperm.xlu0 %15021, %v151_v6   ;;  %v173_v34 = vld [vmem:[%s16234_s15 + $0xd0] sm:$0xff]  ;;  %v176_v35 = vld [vmem:[%s16234_s15 + $0xe8] sm:$0xff]  ;;  %v175_v36 = vld [vmem:[%s16234_s15 + $0xe0] sm:$0xff] }
  0x1d   : > { %v178_v37 = vld [vmem:[%s16234_s15 + $0xf8] sm:$0xff]  ;;  %v177_v38 = vld [vmem:[%s16234_s15 + $0xf0] sm:$0xff]  ;;  %v180_v39 = vld [vmem:[%s16234_s15 + $0x108] sm:$0xff] }
  0x1e   : > { %v179_v40 = vld [vmem:[%s16234_s15 + $0x100] sm:$0xff]  ;;  %v182_v41 = vld [vmem:[%s16234_s15 + $0x118] sm:$0xff]  ;;  %v181_v42 = vld [vmem:[%s16234_s15 + $0x110] sm:$0xff] }
  0x1f   : > { %v184_v43 = vld [vmem:[%s16234_s15 + $0x128] sm:$0xff]  ;;  %v183_v44 = vld [vmem:[%s16234_s15 + $0x120] sm:$0xff]  ;;  %v186_v45 = vld [vmem:[%s16234_s15 + $0x138] sm:$0xff] }
  0x20   : > { %249 = vperm.xlu1 %15022, %v154_v7   ;;  %244 = vperm.xlu0 %15021, %v153_v8   ;;  %v185_v46 = vld [vmem:[%s16234_s15 + $0x130] sm:$0xff]  ;;  %v188_v47 = vld [vmem:[%s16234_s15 + $0x148] sm:$0xff]  ;;  %v187_v48 = vld [vmem:[%s16234_s15 + $0x140] sm:$0xff] }
  0x21   : > { %v190_v49 = vld [vmem:[%s16234_s15 + $0x158] sm:$0xff]  ;;  %v189_v50 = vld [vmem:[%s16234_s15 + $0x150] sm:$0xff]  ;;  %v192_v51 = vld [vmem:[%s16234_s15 + $0x168] sm:$0xff] }
  0x22   : > { %v191_v52 = vld [vmem:[%s16234_s15 + $0x160] sm:$0xff]  ;;  %v194_v53 = vld [vmem:[%s16234_s15 + $0x178] sm:$0xff]  ;;  %v193_v54 = vld [vmem:[%s16234_s15 + $0x170] sm:$0xff] }
  0x23   : > { %v196_v55 = vld [vmem:[%s16234_s15 + $0x188] sm:$0xff]  ;;  %v195_v56 = vld [vmem:[%s16234_s15 + $0x180] sm:$0xff]  ;;  %v198_v57 = vld [vmem:[%s16234_s15 + $0x198] sm:$0xff] }
  0x24   : > { %259 = vperm.xlu1 %15022, %v156_v9   ;;  %254 = vperm.xlu0 %15021, %v155_v10   ;;  %v197_v58 = vld [vmem:[%s16234_s15 + $0x190] sm:$0xff]  ;;  %v200_v59 = vld [vmem:[%s16234_s15 + $0x1a8] sm:$0xff]  ;;  %v199_v60 = vld [vmem:[%s16234_s15 + $0x1a0] sm:$0xff] }
  0x25   : > { %v202_v61 = vld [vmem:[%s16234_s15 + $0x1b8] sm:$0xff]  ;;  %v201_v62 = vld [vmem:[%s16234_s15 + $0x1b0] sm:$0xff]  ;;  %v204_v63 = vld [vmem:[%s16234_s15 + $0x1c8] sm:$0xff] }
  0x26   : > { %v203_v0 = vld [vmem:[%s16234_s15 + $0x1c0] sm:$0xff]  ;;  %v206_v1 = vld [vmem:[%s16234_s15 + $0x1d8] sm:$0xff]  ;;  %v205_v2 = vld [vmem:[%s16234_s15 + $0x1d0] sm:$0xff] }
  0x27   : > { %v208_v3 = vld [vmem:[%s16234_s15 + $0x1e8] sm:$0xff]  ;;  %v207_v4 = vld [vmem:[%s16234_s15 + $0x1e0] sm:$0xff]  ;;  %v210_v5 = vld [vmem:[%s16234_s15 + $0x1f8] sm:$0xff] }
  0x28   : > { %269 = vperm.xlu1 %15022, %v158_v11   ;;  %264 = vperm.xlu0 %15021, %v157_v12   ;;  %v209_v6 = vld [vmem:[%s16234_s15 + $0x1f0] sm:$0xff]  ;;  %v16315_v7 = vld [vmem:[%s21623_s1] sm:$0xff]  ;;  %v16320_v8 = vld [vmem:[%s21623_s1 + $0x8] sm:$0xff] }
  0x2c   : > { %279 = vperm.xlu1 %15022, %v160_v13   ;;  %274 = vperm.xlu0 %15021, %v159_v16  }
  0x30   : > { %289 = vperm.xlu1 %15022, %v162_v21   ;;  %284 = vperm.xlu0 %15021, %v161_v22  }
  0x34   : > { %299 = vperm.xlu1 %15022, %v164_v23   ;;  %294 = vperm.xlu0 %15021, %v163_v24  }
  0x38   : > { %309 = vperm.xlu1 %15022, %v166_v25   ;;  %304 = vperm.xlu0 %15021, %v165_v26  }
  0x3c   : > { %319 = vperm.xlu1 %15022, %v168_v27   ;;  %314 = vperm.xlu0 %15021, %v167_v28  }
  0x40   : > { %329 = vperm.xlu1 %15022, %v170_v29   ;;  %324 = vperm.xlu0 %15021, %v169_v30  }
  0x44   : > { %339 = vperm.xlu1 %15022, %v172_v31   ;;  %334 = vperm.xlu0 %15021, %v171_v32  }
  0x48   : > { %349 = vperm.xlu1 %15022, %v174_v33   ;;  %344 = vperm.xlu0 %15021, %v173_v34  }
  0x4c   : > { %359 = vperm.xlu1 %15022, %v176_v35   ;;  %354 = vperm.xlu0 %15021, %v175_v36  }
  0x50   : > { %369 = vperm.xlu1 %15022, %v178_v37   ;;  %364 = vperm.xlu0 %15021, %v177_v38  }
  0x54   : > { %379 = vperm.xlu1 %15022, %v180_v39   ;;  %374 = vperm.xlu0 %15021, %v179_v40  }
  0x58   : > { %389 = vperm.xlu1 %15022, %v182_v41   ;;  %384 = vperm.xlu0 %15021, %v181_v42  }
  0x5c   : > { %399 = vperm.xlu1 %15022, %v184_v43   ;;  %394 = vperm.xlu0 %15021, %v183_v44  }
  0x60   : > { %409 = vperm.xlu1 %15022, %v186_v45   ;;  %404 = vperm.xlu0 %15021, %v185_v46  }
  0x64   : > { %419 = vperm.xlu1 %15022, %v188_v47   ;;  %414 = vperm.xlu0 %15021, %v187_v48  }
  0x68   : > { %429 = vperm.xlu1 %15022, %v190_v49   ;;  %424 = vperm.xlu0 %15021, %v189_v50  }
  0x6c   : > { %439 = vperm.xlu1 %15022, %v192_v51   ;;  %434 = vperm.xlu0 %15021, %v191_v52  }
  0x70   : > { %449 = vperm.xlu1 %15022, %v194_v53   ;;  %444 = vperm.xlu0 %15021, %v193_v54  }
  0x74   : > { %459 = vperm.xlu1 %15022, %v196_v55   ;;  %454 = vperm.xlu0 %15021, %v195_v56  }
  0x78   : > { %469 = vperm.xlu1 %15022, %v198_v57   ;;  %464 = vperm.xlu0 %15021, %v197_v58  }
  0x7c   : > { %479 = vperm.xlu1 %15022, %v200_v59   ;;  %474 = vperm.xlu0 %15021, %v199_v60  }
  0x80   : > { %489 = vperm.xlu1 %15022, %v202_v61   ;;  %484 = vperm.xlu0 %15021, %v201_v62  }
  0x84   : > { %499 = vperm.xlu1 %15022, %v204_v63   ;;  %494 = vperm.xlu0 %15021, %v203_v0  }
  0x88   : > { %509 = vperm.xlu1 %15022, %v206_v1   ;;  %504 = vperm.xlu0 %15021, %v205_v2  }
  0x8c   : > { %519 = vperm.xlu1 %15022, %v208_v3   ;;  %514 = vperm.xlu0 %15021, %v207_v4  }
  0x90   : > { %529 = vperm.xlu1 %15022, %v210_v5   ;;  %524 = vperm.xlu0 %15021, %v209_v6  }
  0x93   : > { %v225_v9 = vpop.permute.xlu1 %224  ;;  %v215_v10 = vpop.permute.xlu0 %214 }
  0x94   : > { %v534_v11 = vmul.f32 %v225_v9, %v16315_v7  ;;  %v532_v12 = vmul.f32 %v215_v10, %v16315_v7 }
  0x96   : > { %v16325_v13 = vadd.f32 %v16320_v8, %v532_v12  ;;  %v16328_v14 = vadd.f32 %v16320_v8, %v534_v11 }
  0x97   : > { %v230_v15 = vpop.permute.xlu1 %229  ;;  %v220_v16 = vpop.permute.xlu0 %219 }
  0x98   : > { %22021 = vst [vmem:[#allocation2_spill] sm:$0xff] %v16325_v13  ;;  %22022 = vst [vmem:[#allocation3_spill] sm:$0xff] %v16328_v14  ;;  %v535_v17 = vmul.f32 %v230_v15, %v16315_v7  ;;  %v533_v18 = vmul.f32 %v220_v16, %v16315_v7  ;;  %v21671_v19 = vmax.f32 %v16325_v13, 0.0  ;;  %v21667_v22 = vmax.f32 %v16328_v14, 0.0 }
  0x9a   : > { %v16334_v20 = vadd.f32 %v16320_v8, %v535_v17  ;;  %v16337_v21 = vadd.f32 %v16320_v8, %v533_v18  ;;  %12609 = vmatprep.mubr.msk.f32.mxu0 %vm734_vm0, %v21671_v19 }
  0x9b   : > { %v240_v23 = vpop.permute.xlu1 %239  ;;  %v235_v24 = vpop.permute.xlu0 %234 }
  0x9c   : > { %22023 = vst [vmem:[#allocation4_spill] sm:$0xff] %v16334_v20  ;;  %22024 = vst [vmem:[#allocation5_spill] sm:$0xff] %v16337_v21  ;;  %v21670_v25 = vmax.f32 %v16337_v21, 0.0  ;;  %v537_v26 = vmul.f32 %v240_v23, %v16315_v7  ;;  %v536_v27 = vmul.f32 %v235_v24, %v16315_v7  ;;  %v21666_v28 = vmax.f32 %v16334_v20, 0.0 }
  0x9e   : > { %v16348_v29 = vadd.f32 %v16320_v8, %v536_v27  ;;  %12610 = vmatmul.mubr.msk.f32.vlgmr.msra.gmra.mrb[0].mxu0 %vm734_vm0, %v21670_v25  ;;  %v16357_v32 = vadd.f32 %v16320_v8, %v537_v26 }
  0x9f   : > { %v250_v30 = vpop.permute.xlu1 %249  ;;  %12612 = vmatprep.mubr.msk.f32.mxu0 %vm734_vm0, %v21667_v22  ;;  %v245_v31 = vpop.permute.xlu0 %244 }
  0xa0   : > { %22025 = vst [vmem:[#allocation6_spill] sm:$0xff] %v16348_v29  ;;  %22026 = vst [vmem:[#allocation7_spill] sm:$0xff] %v16357_v32  ;;  %v21663_v33 = vmax.f32 %v16348_v29, 0.0  ;;  %v539_v34 = vmul.f32 %v250_v30, %v16315_v7  ;;  %v538_v35 = vmul.f32 %v245_v31, %v16315_v7  ;;  %v21662_v40 = vmax.f32 %v16357_v32, 0.0 }
  0xa2   : > { %v16363_v36 = vadd.f32 %v16320_v8, %v538_v35  ;;  %12613 = vmatmul.mubr.msk.f32.gmra.mrb[2].mxu0 %vm734_vm0, %v21666_v28  ;;  %v16369_v37 = vadd.f32 %v16320_v8, %v539_v34 }
  0xa3   : > { %v260_v38 = vpop.permute.xlu1 %259  ;;  %12615 = vmatprep.mubr.msk.f32.mxu0 %vm734_vm0, %v21663_v33  ;;  %v255_v39 = vpop.permute.xlu0 %254 }
  0xa4   : > { %22027 = vst [vmem:[#allocation8_spill] sm:$0xff] %v16363_v36  ;;  %22028 = vst [vmem:[#allocation9_spill] sm:$0xff] %v16369_v37  ;;  %v21659_v41 = vmax.f32 %v16363_v36, 0.0  ;;  %v541_v42 = vmul.f32 %v260_v38, %v16315_v7  ;;  %v540_v43 = vmul.f32 %v255_v39, %v16315_v7  ;;  %v21658_v45 = vmax.f32 %v16369_v37, 0.0 }
  0xa6   : > { %v16379_v44 = vadd.f32 %v16320_v8, %v540_v43  ;;  %12616 = vmatmul.mubr.msk.f32.gmra.mrb[4].mxu0 %vm734_vm0, %v21662_v40  ;;  %v16389_v48 = vadd.f32 %v16320_v8, %v541_v42 }
  0xa7   : > { %v270_v46 = vpop.permute.xlu1 %269  ;;  %12618 = vmatprep.mubr.msk.f32.mxu0 %vm734_vm0, %v21659_v41  ;;  %v265_v47 = vpop.permute.xlu0 %264 }
  0xa8   : > { %22029 = vst [vmem:[#allocation10_spill] sm:$0xff] %v16379_v44  ;;  %22030 = vst [vmem:[#allocation11_spill] sm:$0xff] %v16389_v48  ;;  %v21655_v49 = vmax.f32 %v16379_v44, 0.0  ;;  %v543_v50 = vmul.f32 %v270_v46, %v16315_v7  ;;  %v542_v51 = vmul.f32 %v265_v47, %v16315_v7  ;;  %v21654_v56 = vmax.f32 %v16389_v48, 0.0 }
  0xaa   : > { %v16395_v52 = vadd.f32 %v16320_v8, %v542_v51  ;;  %12619 = vmatmul.mubr.msk.f32.gmra.mrb[6].mxu0 %vm734_vm0, %v21658_v45  ;;  %v16401_v53 = vadd.f32 %v16320_v8, %v543_v50 }
  0xab   : > { %v280_v54 = vpop.permute.xlu1 %279  ;;  %12621 = vmatprep.mubr.msk.f32.mxu0 %vm734_vm0, %v21655_v49  ;;  %v275_v55 = vpop.permute.xlu0 %274 }
  0xac   : > { %22031 = vst [vmem:[#allocation12_spill] sm:$0xff] %v16395_v52  ;;  %22032 = vst [vmem:[#allocation13_spill] sm:$0xff] %v16401_v53  ;;  %v21651_v57 = vmax.f32 %v16395_v52, 0.0  ;;  %v545_v58 = vmul.f32 %v280_v54, %v16315_v7  ;;  %v544_v59 = vmul.f32 %v275_v55, %v16315_v7  ;;  %v21650_v61 = vmax.f32 %v16401_v53, 0.0 }
  0xae   : > { %v16411_v60 = vadd.f32 %v16320_v8, %v544_v59  ;;  %12622 = vmatmul.mubr.msk.f32.gmra.mrb[8].mxu0 %vm734_vm0, %v21654_v56  ;;  %v16421_v0 = vadd.f32 %v16320_v8, %v545_v58 }
  0xaf   : > { %v290_v62 = vpop.permute.xlu1 %289  ;;  %12624 = vmatprep.mubr.msk.f32.mxu0 %vm734_vm0, %v21651_v57  ;;  %v285_v63 = vpop.permute.xlu0 %284 }
  0xb0   : > { %22033 = vst [vmem:[#allocation14_spill] sm:$0xff] %v16411_v60  ;;  %22034 = vst [vmem:[#allocation15_spill] sm:$0xff] %v16421_v0  ;;  %v21647_v1 = vmax.f32 %v16411_v60, 0.0  ;;  %v547_v2 = vmul.f32 %v290_v62, %v16315_v7  ;;  %v546_v3 = vmul.f32 %v285_v63, %v16315_v7  ;;  %v21646_v10 = vmax.f32 %v16421_v0, 0.0 }
  0xb2   : > { %v16427_v4 = vadd.f32 %v16320_v8, %v546_v3  ;;  %12625 = vmatmul.mubr.msk.f32.gmra.mrb[10].mxu0 %vm734_vm0, %v21650_v61  ;;  %v16433_v5 = vadd.f32 %v16320_v8, %v547_v2 }
  0xb3   : > { %v300_v6 = vpop.permute.xlu1 %299  ;;  %12627 = vmatprep.mubr.msk.f32.mxu0 %vm734_vm0, %v21647_v1  ;;  %v295_v9 = vpop.permute.xlu0 %294 }
  0xb4   : > { %22035 = vst [vmem:[#allocation16_spill] sm:$0xff] %v16427_v4  ;;  %22036 = vst [vmem:[#allocation17_spill] sm:$0xff] %v16433_v5  ;;  %v21643_v11 = vmax.f32 %v16427_v4, 0.0  ;;  %v549_v12 = vmul.f32 %v300_v6, %v16315_v7  ;;  %v548_v15 = vmul.f32 %v295_v9, %v16315_v7  ;;  %v21642_v17 = vmax.f32 %v16433_v5, 0.0 }
  0xb6   : > { %v16443_v16 = vadd.f32 %v16320_v8, %v548_v15  ;;  %12628 = vmatmul.mubr.msk.f32.gmra.mrb[12].mxu0 %vm734_vm0, %v21646_v10  ;;  %v16453_v24 = vadd.f32 %v16320_v8, %v549_v12 }
  0xb7   : > { %v310_v18 = vpop.permute.xlu1 %309  ;;  %12630 = vmatprep.mubr.msk.f32.mxu0 %vm734_vm0, %v21643_v11  ;;  %v305_v23 = vpop.permute.xlu0 %304 }
  0xb8   : > { %22037 = vst [vmem:[#allocation18_spill] sm:$0xff] %v16443_v16  ;;  %22038 = vst [vmem:[#allocation19_spill] sm:$0xff] %v16453_v24  ;;  %v21639_v26 = vmax.f32 %v16443_v16, 0.0  ;;  %v551_v27 = vmul.f32 %v310_v18, %v16315_v7  ;;  %v550_v30 = vmul.f32 %v305_v23, %v16315_v7  ;;  %v21638_v39 = vmax.f32 %v16453_v24, 0.0 }
  0xba   : > { %v16459_v31 = vadd.f32 %v16320_v8, %v550_v30  ;;  %12631 = vmatmul.mubr.msk.f32.gmra.mrb[14].mxu0 %vm734_vm0, %v21642_v17  ;;  %v16465_v34 = vadd.f32 %v16320_v8, %v551_v27 }
  0xbb   : > { %v320_v35 = vpop.permute.xlu1 %319  ;;  %12633 = vmatprep.mubr.msk.f32.mxu0 %vm734_vm0, %v21639_v26  ;;  %v315_v38 = vpop.permute.xlu0 %314 }
  0xbc   : > { %22039 = vst [vmem:[#allocation20_spill] sm:$0xff] %v16459_v31  ;;  %22040 = vst [vmem:[#allocation21_spill] sm:$0xff] %v16465_v34  ;;  %v21635_v42 = vmax.f32 %v16459_v31, 0.0  ;;  %v553_v43 = vmul.f32 %v320_v35, %v16315_v7  ;;  %v552_v46 = vmul.f32 %v315_v38, %v16315_v7  ;;  %v21634_v50 = vmax.f32 %v16465_v34, 0.0 }
  0xbe   : > { %v16475_v47 = vadd.f32 %v16320_v8, %v552_v46  ;;  %12634 = vmatmul.mubr.msk.f32.gmra.mrb[16].mxu0 %vm734_vm0, %v21638_v39  ;;  %v16485_v55 = vadd.f32 %v16320_v8, %v553_v43 }
  0xbf   : > { %v330_v51 = vpop.permute.xlu1 %329  ;;  %12636 = vmatprep.mubr.msk.f32.mxu0 %vm734_vm0, %v21635_v42  ;;  %v325_v54 = vpop.permute.xlu0 %324 }
  0xc0   : > { %22041 = vst [vmem:[#allocation22_spill] sm:$0xff] %v16475_v47  ;;  %22042 = vst [vmem:[#allocation23_spill] sm:$0xff] %v16485_v55  ;;  %v21631_v58 = vmax.f32 %v16475_v47, 0.0  ;;  %v555_v59 = vmul.f32 %v330_v51, %v16315_v7  ;;  %v554_v62 = vmul.f32 %v325_v54, %v16315_v7  ;;  %v21630_v9 = vmax.f32 %v16485_v55, 0.0 }
  0xc2   : > { %v16491_v63 = vadd.f32 %v16320_v8, %v554_v62  ;;  %12637 = vmatmul.mubr.msk.f32.gmra.mrb[18].mxu0 %vm734_vm0, %v21634_v50  ;;  %v16497_v2 = vadd.f32 %v16320_v8, %v555_v59 }
  0xc3   : > { %v340_v3 = vpop.permute.xlu1 %339  ;;  %12639 = vmatprep.mubr.msk.f32.mxu0 %vm734_vm0, %v21631_v58  ;;  %v335_v6 = vpop.permute.xlu0 %334 }
  0xc4   : > { %22043 = vst [vmem:[#allocation24_spill] sm:$0xff] %v16491_v63  ;;  %22044 = vst [vmem:[#allocation25_spill] sm:$0xff] %v16497_v2  ;;  %v21627_v12 = vmax.f32 %v16491_v63, 0.0  ;;  %v557_v15 = vmul.f32 %v340_v3, %v16315_v7  ;;  %v556_v18 = vmul.f32 %v335_v6, %v16315_v7  ;;  %v21626_v27 = vmax.f32 %v16497_v2, 0.0 }
  0xc6   : > { %v16507_v23 = vadd.f32 %v16320_v8, %v556_v18  ;;  %12640 = vmatmul.mubr.msk.f32.gmra.mrb[20].mxu0 %vm734_vm0, %v21630_v9  ;;  %v16517_v38 = vadd.f32 %v16320_v8, %v557_v15 }
  0xc7   : > { %v350_v30 = vpop.permute.xlu1 %349  ;;  %12642 = vmatprep.mubr.msk.f32.mxu0 %vm734_vm0, %v21627_v12  ;;  %v345_v35 = vpop.permute.xlu0 %344 }
  0xc8   : > { %22045 = vst [vmem:[#allocation26_spill] sm:$0xff] %v16507_v23  ;;  %22046 = vst [vmem:[#allocation27_spill] sm:$0xff] %v16517_v38  ;;  %v21625_v43 = vmax.f32 %v16507_v23, 0.0  ;;  %v559_v46 = vmul.f32 %v350_v30, %v16315_v7  ;;  %v558_v51 = vmul.f32 %v345_v35, %v16315_v7  ;;  %v21628_v6 = vmax.f32 %v16517_v38, 0.0 }
  0xca   : > { %v16523_v54 = vadd.f32 %v16320_v8, %v558_v51  ;;  %12643 = vmatmul.mubr.msk.f32.gmra.mrb[22].mxu0 %vm734_vm0, %v21626_v27  ;;  %v16529_v59 = vadd.f32 %v16320_v8, %v559_v46 }
  0xcb   : > { %v360_v62 = vpop.permute.xlu1 %359  ;;  %12645 = vmatprep.mubr.msk.f32.mxu0 %vm734_vm0, %v21625_v43  ;;  %v355_v3 = vpop.permute.xlu0 %354 }
  0xcc   : > { %22047 = vst [vmem:[#allocation28_spill] sm:$0xff] %v16523_v54  ;;  %22048 = vst [vmem:[#allocation29_spill] sm:$0xff] %v16529_v59  ;;  %v21629_v15 = vmax.f32 %v16523_v54, 0.0  ;;  %v561_v18 = vmul.f32 %v360_v62, %v16315_v7  ;;  %v560_v30 = vmul.f32 %v355_v3, %v16315_v7  ;;  %v21632_v46 = vmax.f32 %v16529_v59, 0.0 }
  0xce   : > { %v16539_v35 = vadd.f32 %v16320_v8, %v560_v30  ;;  %12646 = vmatmul.mubr.msk.f32.gmra.mrb[24].mxu0 %vm734_vm0, %v21628_v6  ;;  %v16549_v27 = vadd.f32 %v16320_v8, %v561_v18 }
  0xcf   : > { %v370_v51 = vpop.permute.xlu1 %369  ;;  %12648 = vmatprep.mubr.msk.f32.mxu0 %vm734_vm0, %v21629_v15  ;;  %v365_v43 = vpop.permute.xlu0 %364 }
  0xd0   : > { %22049 = vst [vmem:[#allocation30_spill] sm:$0xff] %v16539_v35  ;;  %22050 = vst [vmem:[#allocation31_spill] sm:$0xff] %v16549_v27  ;;  %v21633_v62 = vmax.f32 %v16539_v35, 0.0  ;;  %v563_v3 = vmul.f32 %v370_v51, %v16315_v7  ;;  %v562_v30 = vmul.f32 %v365_v43, %v16315_v7  ;;  %v21636_v51 = vmax.f32 %v16549_v27, 0.0 }
  0xd2   : > { %v16555_v12 = vadd.f32 %v16320_v8, %v562_v30  ;;  %12649 = vmatmul.mubr.msk.f32.gmra.mrb[26].mxu0 %vm734_vm0, %v21632_v46  ;;  %v16561_v6 = vadd.f32 %v16320_v8, %v563_v3 }
  0xd3   : > { %v380_v15 = vpop.permute.xlu1 %379  ;;  %12651 = vmatprep.mubr.msk.f32.mxu0 %vm734_vm0, %v21633_v62  ;;  %v375_v18 = vpop.permute.xlu0 %374 }
  0xd4   : > { %22051 = vst [vmem:[#allocation32_spill] sm:$0xff] %v16555_v12  ;;  %22052 = vst [vmem:[#allocation33_spill] sm:$0xff] %v16561_v6  ;;  %v21637_v43 = vmax.f32 %v16555_v12, 0.0  ;;  %v565_v30 = vmul.f32 %v380_v15, %v16315_v7  ;;  %v564_v9 = vmul.f32 %v375_v18, %v16315_v7  ;;  %v21640_v3 = vmax.f32 %v16561_v6, 0.0 }
  0xd6   : > { %v16571_v58 = vadd.f32 %v16320_v8, %v564_v9  ;;  %12652 = vmatmul.mubr.msk.f32.gmra.mrb[28].mxu0 %vm734_vm0, %v21636_v51  ;;  %v16581_v50 = vadd.f32 %v16320_v8, %v565_v30 }
  0xd7   : > { %v390_v46 = vpop.permute.xlu1 %389  ;;  %12654 = vmatprep.mubr.msk.f32.mxu0 %vm734_vm0, %v21637_v43  ;;  %v385_v62 = vpop.permute.xlu0 %384 }
  0xd8   : > { %22053 = vst [vmem:[#allocation34_spill] sm:$0xff] %v16571_v58  ;;  %22054 = vst [vmem:[#allocation35_spill] sm:$0xff] %v16581_v50  ;;  %v21641_v15 = vmax.f32 %v16571_v58, 0.0  ;;  %v567_v9 = vmul.f32 %v390_v46, %v16315_v7  ;;  %v566_v18 = vmul.f32 %v385_v62, %v16315_v7  ;;  %v21644_v46 = vmax.f32 %v16581_v50, 0.0 }
  0xda   : > { %v16587_v42 = vadd.f32 %v16320_v8, %v566_v18  ;;  %12655 = vmatmul.mubr.msk.f32.gmra.mrb[30].mxu0 %vm734_vm0, %v21640_v3  ;;  %v16593_v51 = vadd.f32 %v16320_v8, %v567_v9 }
  0xdb   : > { %v400_v43 = vpop.permute.xlu1 %399  ;;  %12657 = vmatprep.mubr.msk.f32.mxu0 %vm734_vm0, %v21641_v15  ;;  %v395_v30 = vpop.permute.xlu0 %394 }
  0xdc   : > { %22055 = vst [vmem:[#allocation36_spill] sm:$0xff] %v16587_v42  ;;  %22056 = vst [vmem:[#allocation37_spill] sm:$0xff] %v16593_v51  ;;  %v21645_v62 = vmax.f32 %v16587_v42, 0.0  ;;  %v569_v18 = vmul.f32 %v400_v43, %v16315_v7  ;;  %v568_v39 = vmul.f32 %v395_v30, %v16315_v7  ;;  %v21648_v9 = vmax.f32 %v16593_v51, 0.0 }
  0xde   : > { %v16603_v26 = vadd.f32 %v16320_v8, %v568_v39  ;;  %12658 = vmatmul.mubr.msk.f32.gmra.mrb[32].mxu0 %vm734_vm0, %v21644_v46  ;;  %v16613_v17 = vadd.f32 %v16320_v8, %v569_v18 }
  0xdf   : > { %v410_v3 = vpop.permute.xlu1 %409  ;;  %12660 = vmatprep.mubr.msk.f32.mxu0 %vm734_vm0, %v21645_v62  ;;  %v405_v15 = vpop.permute.xlu0 %404 }
  0xe0   : > { %22057 = vst [vmem:[#allocation38_spill] sm:$0xff] %v16603_v26  ;;  %22058 = vst [vmem:[#allocation39_spill] sm:$0xff] %v16613_v17  ;;  %v21649_v43 = vmax.f32 %v16603_v26, 0.0  ;;  %v571_v39 = vmul.f32 %v410_v3, %v16315_v7  ;;  %v570_v30 = vmul.f32 %v405_v15, %v16315_v7  ;;  %v21652_v3 = vmax.f32 %v16613_v17, 0.0 }
  0xe2   : > { %v16619_v11 = vadd.f32 %v16320_v8, %v570_v30  ;;  %12661 = vmatmul.mubr.msk.f32.gmra.mrb[34].mxu0 %vm734_vm0, %v21648_v9  ;;  %v16625_v46 = vadd.f32 %v16320_v8, %v571_v39 }
  0xe3   : > { %v420_v62 = vpop.permute.xlu1 %419  ;;  %12663 = vmatprep.mubr.msk.f32.mxu0 %vm734_vm0, %v21649_v43  ;;  %v415_v18 = vpop.permute.xlu0 %414 }
  0xe4   : > { %22059 = vst [vmem:[#allocation40_spill] sm:$0xff] %v16619_v11  ;;  %22060 = vst [vmem:[#allocation41_spill] sm:$0xff] %v16625_v46  ;;  %v21653_v15 = vmax.f32 %v16619_v11, 0.0  ;;  %v573_v30 = vmul.f32 %v420_v62, %v16315_v7  ;;  %v572_v10 = vmul.f32 %v415_v18, %v16315_v7  ;;  %v21656_v39 = vmax.f32 %v16625_v46, 0.0 }
  0xe6   : > { %v16635_v1 = vadd.f32 %v16320_v8, %v572_v10  ;;  %12664 = vmatmul.mubr.msk.f32.gmra.mrb[36].mxu0 %vm734_vm0, %v21652_v3  ;;  %v16645_v61 = vadd.f32 %v16320_v8, %v573_v30 }
  0xe7   : > { %v430_v9 = vpop.permute.xlu1 %429  ;;  %12666 = vmatprep.mubr.msk.f32.mxu0 %vm734_vm0, %v21653_v15  ;;  %v425_v43 = vpop.permute.xlu0 %424 }
  0xe8   : > { %22061 = vst [vmem:[#allocation42_spill] sm:$0xff] %v16635_v1  ;;  %22062 = vst [vmem:[#allocation43_spill] sm:$0xff] %v16645_v61  ;;  %v21657_v62 = vmax.f32 %v16635_v1, 0.0  ;;  %v575_v10 = vmul.f32 %v430_v9, %v16315_v7  ;;  %v574_v18 = vmul.f32 %v425_v43, %v16315_v7  ;;  %v21660_v9 = vmax.f32 %v16645_v61, 0.0 }
  0xea   : > { %v16651_v57 = vadd.f32 %v16320_v8, %v574_v18  ;;  %12667 = vmatmul.mubr.msk.f32.gmra.mrb[38].mxu0 %vm734_vm0, %v21656_v39  ;;  %v16657_v3 = vadd.f32 %v16320_v8, %v575_v10 }
  0xeb   : > { %v440_v15 = vpop.permute.xlu1 %439  ;;  %12669 = vmatprep.mubr.msk.f32.mxu0 %vm734_vm0, %v21657_v62  ;;  %v435_v30 = vpop.permute.xlu0 %434 }
  0xec   : > { %22063 = vst [vmem:[#allocation44_spill] sm:$0xff] %v16651_v57  ;;  %22064 = vst [vmem:[#allocation45_spill] sm:$0xff] %v16657_v3  ;;  %v21661_v43 = vmax.f32 %v16651_v57, 0.0  ;;  %v577_v18 = vmul.f32 %v440_v15, %v16315_v7  ;;  %v576_v56 = vmul.f32 %v435_v30, %v16315_v7  ;;  %v21664_v10 = vmax.f32 %v16657_v3, 0.0 }
  0xee   : > { %v16667_v49 = vadd.f32 %v16320_v8, %v576_v56  ;;  %12670 = vmatmul.mubr.msk.f32.gmra.mrb[40].mxu0 %vm734_vm0, %v21660_v9  ;;  %v16677_v45 = vadd.f32 %v16320_v8, %v577_v18 }
  0xef   : > { %v450_v39 = vpop.permute.xlu1 %449  ;;  %12672 = vmatprep.mubr.msk.f32.mxu0 %vm734_vm0, %v21661_v43  ;;  %v445_v62 = vpop.permute.xlu0 %444 }
  0xf0   : > { %22065 = vst [vmem:[#allocation46_spill] sm:$0xff] %v16667_v49  ;;  %22066 = vst [vmem:[#allocation47_spill] sm:$0xff] %v16677_v45  ;;  %v21665_v15 = vmax.f32 %v16667_v49, 0.0  ;;  %v579_v56 = vmul.f32 %v450_v39, %v16315_v7  ;;  %v578_v30 = vmul.f32 %v445_v62, %v16315_v7  ;;  %v21668_v39 = vmax.f32 %v16677_v45, 0.0 }
  0xf2   : > { %v16683_v41 = vadd.f32 %v16320_v8, %v578_v30  ;;  %12673 = vmatmul.mubr.msk.f32.gmra.mrb[42].mxu0 %vm734_vm0, %v21664_v10  ;;  %v16689_v9 = vadd.f32 %v16320_v8, %v579_v56 }
  0xf3   : > { %v460_v43 = vpop.permute.xlu1 %459  ;;  %12675 = vmatprep.mubr.msk.f32.mxu0 %vm734_vm0, %v21665_v15  ;;  %v455_v18 = vpop.permute.xlu0 %454 }
  0xf4   : > { %22067 = vst [vmem:[#allocation48_spill] sm:$0xff] %v16683_v41  ;;  %22068 = vst [vmem:[#allocation49_spill] sm:$0xff] %v16689_v9  ;;  %v21669_v62 = vmax.f32 %v16683_v41, 0.0  ;;  %v581_v30 = vmul.f32 %v460_v43, %v16315_v7  ;;  %v580_v40 = vmul.f32 %v455_v18, %v16315_v7  ;;  %v21672_v56 = vmax.f32 %v16689_v9, 0.0 }
  0xf6   : > { %v16699_v33 = vadd.f32 %v16320_v8, %v580_v40  ;;  %12676 = vmatmul.mubr.msk.f32.gmra.mrb[44].mxu0 %vm734_vm0, %v21668_v39  ;;  %v16709_v28 = vadd.f32 %v16320_v8, %v581_v30 }
  0xf7   : > { %v470_v10 = vpop.permute.xlu1 %469  ;;  %12678 = vmatprep.mubr.msk.f32.mxu0 %vm734_vm0, %v21669_v62  ;;  %v465_v15 = vpop.permute.xlu0 %464 }
  0xf8   : > { %22069 = vst [vmem:[#allocation50_spill] sm:$0xff] %v16699_v33  ;;  %22070 = vst [vmem:[#allocation51_spill] sm:$0xff] %v16709_v28  ;;  %v21673_v43 = vmax.f32 %v16699_v33, 0.0  ;;  %v583_v40 = vmul.f32 %v470_v10, %v16315_v7  ;;  %v582_v18 = vmul.f32 %v465_v15, %v16315_v7  ;;  %v21676_v10 = vmax.f32 %v16709_v28, 0.0 }
  0xfa   : > { %v16715_v22 = vadd.f32 %v16320_v8, %v582_v18  ;;  %12679 = vmatmul.mubr.msk.f32.gmra.mrb[46].mxu0 %vm734_vm0, %v21672_v56  ;;  %v16721_v39 = vadd.f32 %v16320_v8, %v583_v40 }
  0xfb   : > { %v480_v62 = vpop.permute.xlu1 %479  ;;  %12681 = vmatprep.mubr.msk.f32.mxu0 %vm734_vm0, %v21673_v43  ;;  %v475_v30 = vpop.permute.xlu0 %474 }
  0xfc   : > { %22071 = vst [vmem:[#allocation52_spill] sm:$0xff] %v16715_v22  ;;  %22072 = vst [vmem:[#allocation53_spill] sm:$0xff] %v16721_v39  ;;  %v21677_v15 = vmax.f32 %v16715_v22, 0.0  ;;  %v585_v18 = vmul.f32 %v480_v62, %v16315_v7  ;;  %v584_v25 = vmul.f32 %v475_v30, %v16315_v7  ;;  %v21680_v40 = vmax.f32 %v16721_v39, 0.0 }
  0xfe   : > { %v16731_v19 = vadd.f32 %v16320_v8, %v584_v25  ;;  %12682 = vmatmul.mubr.msk.f32.gmra.mrb[48].mxu0 %vm734_vm0, %v21676_v10  ;;  %v16741_v33 = vadd.f32 %v16320_v8, %v585_v18 }
  0xff   : > { %v490_v56 = vpop.permute.xlu1 %489  ;;  %12684 = vmatprep.mubr.msk.f32.mxu0 %vm734_vm0, %v21677_v15  ;;  %v485_v43 = vpop.permute.xlu0 %484 }
 0x100   : > { %22073 = vst [vmem:[#allocation54_spill] sm:$0xff] %v16731_v19  ;;  %22074 = vst [vmem:[#allocation55_spill] sm:$0xff] %v16741_v33  ;;  %v21681_v62 = vmax.f32 %v16731_v19, 0.0  ;;  %v587_v25 = vmul.f32 %v490_v56, %v16315_v7  ;;  %v586_v30 = vmul.f32 %v485_v43, %v16315_v7  ;;  %v21684_v56 = vmax.f32 %v16741_v33, 0.0 }
 0x102   : > { %v16747_v28 = vadd.f32 %v16320_v8, %v586_v30  ;;  %12685 = vmatmul.mubr.msk.f32.gmra.mrb[50].mxu0 %vm734_vm0, %v21680_v40  ;;  %v16753_v10 = vadd.f32 %v16320_v8, %v587_v25 }
 0x103   : > { %v500_v15 = vpop.permute.xlu1 %499  ;;  %12687 = vmatprep.mubr.msk.f32.mxu0 %vm734_vm0, %v21681_v62  ;;  %v495_v18 = vpop.permute.xlu0 %494 }
 0x104   : > { %22075 = vst [vmem:[#allocation56_spill] sm:$0xff] %v16747_v28  ;;  %22076 = vst [vmem:[#allocation57_spill] sm:$0xff] %v16753_v10  ;;  %v21685_v43 = vmax.f32 %v16747_v28, 0.0  ;;  %v589_v30 = vmul.f32 %v500_v15, %v16315_v7  ;;  %v588_v22 = vmul.f32 %v495_v18, %v16315_v7  ;;  %v21688_v25 = vmax.f32 %v16753_v10, 0.0 }
 0x106   : > { %v16763_v39 = vadd.f32 %v16320_v8, %v588_v22  ;;  %12688 = vmatmul.mubr.msk.f32.gmra.mrb[52].mxu0 %vm734_vm0, %v21684_v56  ;;  %v16773_v19 = vadd.f32 %v16320_v8, %v589_v30 }
 0x107   : > { %v510_v40 = vpop.permute.xlu1 %509  ;;  %12690 = vmatprep.mubr.msk.f32.mxu0 %vm734_vm0, %v21685_v43  ;;  %v505_v62 = vpop.permute.xlu0 %504 }
 0x108   : > { %22077 = vst [vmem:[#allocation58_spill] sm:$0xff] %v16763_v39  ;;  %22078 = vst [vmem:[#allocation59_spill] sm:$0xff] %v16773_v19  ;;  %v21689_v15 = vmax.f32 %v16763_v39, 0.0  ;;  %v591_v22 = vmul.f32 %v510_v40, %v16315_v7  ;;  %v590_v18 = vmul.f32 %v505_v62, %v16315_v7  ;;  %v21698_v40 = vmax.f32 %v16773_v19, 0.0 }
 0x10a   : > { %v16779_v33 = vadd.f32 %v16320_v8, %v590_v18  ;;  %12691 = vmatmul.mubr.msk.f32.gmra.mrb[54].mxu0 %vm734_vm0, %v21688_v25  ;;  %v16785_v56 = vadd.f32 %v16320_v8, %v591_v22 }
 0x10b   : > { %v520_v43 = vpop.permute.xlu1 %519  ;;  %12693 = vmatprep.mubr.msk.f32.mxu0 %vm734_vm0, %v21689_v15  ;;  %v515_v30 = vpop.permute.xlu0 %514 }
 0x10c   : > { %22079 = vst [vmem:[#allocation60_spill] sm:$0xff] %v16779_v33  ;;  %22080 = vst [vmem:[#allocation61_spill] sm:$0xff] %v16785_v56  ;;  %v21692_v62 = vmax.f32 %v16779_v33, 0.0  ;;  %v593_v18 = vmul.f32 %v520_v43, %v16315_v7  ;;  %v592_v28 = vmul.f32 %v515_v30, %v16315_v7  ;;  %v21697_v22 = vmax.f32 %v16785_v56, 0.0 }
 0x10e   : > { %v16795_v10 = vadd.f32 %v16320_v8, %v592_v28  ;;  %12694 = vmatmul.mubr.msk.f32.gmra.mrb[56].mxu0 %vm734_vm0, %v21698_v40  ;;  %v16805_v39 = vadd.f32 %v16320_v8, %v593_v18 }
 0x10f   : > { %v530_v25 = vpop.permute.xlu1 %529  ;;  %12696 = vmatprep.mubr.msk.f32.mxu0 %vm734_vm0, %v21692_v62  ;;  %v525_v15 = vpop.permute.xlu0 %524 }
 0x110   : > { %22081 = vst [vmem:[#allocation62_spill] sm:$0xff] %v16795_v10  ;;  %22082 = vst [vmem:[#allocation63_spill] sm:$0xff] %v16805_v39  ;;  %v21696_v43 = vmax.f32 %v16795_v10, 0.0  ;;  %v595_v28 = vmul.f32 %v530_v25, %v16315_v7  ;;  %v594_v30 = vmul.f32 %v525_v15, %v16315_v7  ;;  %v21693_v18 = vmax.f32 %v16805_v39, 0.0 }
 0x112   : > { %v16811_v19 = vadd.f32 %v16320_v8, %v594_v30  ;;  %12697 = vmatmul.mubr.msk.f32.gmra.mrb[58].mxu0 %vm734_vm0, %v21697_v22  ;;  %v16821_v62 = vadd.f32 %v16320_v8, %v595_v28  ;;  %v16837_v8 = vld [vmem:[%s21623_s1 + $0x30] ss:$0 sm:$0xff] }
 0x113   : > { %12699 = vmatprep.mubr.msk.f32.mxu0 %vm734_vm0, %v21696_v43 }
 0x114   : > { %22083 = vst [vmem:[#allocation64_spill] sm:$0xff] %v16811_v19  ;;  %22084 = vst [vmem:[#allocation65_spill] sm:$0xff] %v16821_v62  ;;  %v21694_v25 = vmax.f32 %v16811_v19, 0.0  ;;  %v21695_v7 = vmax.f32 %v16821_v62, 0.0 }
 0x116   : > { %12700 = vmatmul.mubr.msk.f32.gmra.mrb[60].mxu0 %vm734_vm0, %v21693_v18 }
 0x117   : > { %12702 = vmatprep.mubr.msk.f32.mxu0 %vm734_vm0, %v21694_v25 }
 0x11a   : > { %12703 = vmatmul.mubr.msk.f32.gmra.mrb[62].mxu0 %vm734_vm0, %v21695_v7 }
 0x171   : > { %v12611_v15 = vpop.f32.mrb[0].mxu0 }
 0x172   : > { %v16840_v28 = vadd.f32 %v12611_v15, %v16837_v8  ;;  %v993_v30 = vpop.f32.mrb[1].mxu0 }
 0x173   : > { %v16843_v18 = vadd.f32 %v16837_v8, %v993_v30 }
 0x174   : > { %22085 = vst [vmem:[#allocation66_spill] sm:$0xff] %v16840_v28 }
 0x175   : > { %22086 = vst [vmem:[#allocation67_spill] sm:$0xff] %v16843_v18  ;;  %v12614_v25 = vpop.f32.mrb[2].mxu0  ;;  %12737 = vmatprep.mubr.msk.f32.mxu1 %vm1380_vm1, %v16843_v18  ;;  %v16849_v7 = vpack.i.bf16 %v16840_v28, %v16843_v18 }
 0x176   : > { %v16852_v43 = vadd.f32 %v12614_v25, %v16837_v8  ;;  %v1003_v22 = vpop.f32.mrb[3].mxu0 }
 0x177   : > { %22087 = vst [vmem:[#allocation68_spill] sm:$0xff] %v16849_v7  ;;  %v16855_v15 = vadd.f32 %v16837_v8, %v1003_v22  ;;  %15024 = vrot.lane.b32.xlu0 %v16849_v7, %s16201_s30 }
 0x178   : > { %22088 = vst [vmem:[#allocation69_spill] sm:$0xff] %v16852_v43 }
 0x179   : > { %22089 = vst [vmem:[#allocation70_spill] sm:$0xff] %v16855_v15  ;;  %v12617_v30 = vpop.f32.mrb[4].mxu0  ;;  %v16861_v40 = vpack.i.bf16 %v16852_v43, %v16855_v15 }
 0x17a   : > { %v16864_v62 = vadd.f32 %v12617_v30, %v16837_v8  ;;  %v1013_v19 = vpop.f32.mrb[5].mxu0 }
 0x17b   : > { %22090 = vst [vmem:[#allocation71_spill] sm:$0xff] %v16861_v40  ;;  %v16867_v25 = vadd.f32 %v16837_v8, %v1013_v19  ;;  %15034 = vrot.lane.b32.xlu1 %v16861_v40, %s16201_s30  ;;  %15029 = vrot.lane.b32.xlu0 %v16849_v7, %s16202_s3 }
 0x17c   : > { %22091 = vst [vmem:[#allocation72_spill] sm:$0xff] %v16864_v62 }
 0x17d   : > { %22092 = vst [vmem:[#allocation73_spill] sm:$0xff] %v16867_v25  ;;  %v12620_v22 = vpop.f32.mrb[6].mxu0  ;;  %v16875_v39 = vpack.i.bf16 %v16864_v62, %v16867_v25 }
 0x17e   : > { %v16878_v10 = vadd.f32 %v12620_v22, %v16837_v8  ;;  %v1023_v30 = vpop.f32.mrb[7].mxu0 }
 0x17f   : > { %22093 = vst [vmem:[#allocation74_spill] sm:$0xff] %v16875_v39  ;;  %v16881_v56 = vadd.f32 %v16837_v8, %v1023_v30  ;;  %15039 = vrot.lane.b32.xlu1 %v16861_v40, %s16202_s3  ;;  %15044 = vrot.lane.b32.xlu0 %v16875_v39, %s16201_s30 }
 0x180   : > { %22094 = vst [vmem:[#allocation75_spill] sm:$0xff] %v16878_v10 }
 0x181   : > { %22095 = vst [vmem:[#allocation76_spill] sm:$0xff] %v16881_v56  ;;  %v12623_v19 = vpop.f32.mrb[8].mxu0  ;;  %v16889_v33 = vpack.i.bf16 %v16878_v10, %v16881_v56 }
 0x182   : > { %v16892_v9 = vadd.f32 %v12623_v19, %v16837_v8  ;;  %v1033_v22 = vpop.f32.mrb[9].mxu0 }
 0x183   : > { %22096 = vst [vmem:[#allocation77_spill] sm:$0xff] %v16889_v33  ;;  %v16895_v41 = vadd.f32 %v16837_v8, %v1033_v22  ;;  %15049 = vrot.lane.b32.xlu0 %v16875_v39, %s16202_s3  ;;  %15054 = vrot.lane.b32.xlu1 %v16889_v33, %s16201_s30 }
 0x184   : > { %22097 = vst [vmem:[#allocation78_spill] sm:$0xff] %v16892_v9 }
 0x185   : > { %22098 = vst [vmem:[#allocation79_spill] sm:$0xff] %v16895_v41  ;;  %v12626_v30 = vpop.f32.mrb[10].mxu0  ;;  %v16903_v45 = vpack.i.bf16 %v16892_v9, %v16895_v41 }
 0x186   : > { %v16906_v49 = vadd.f32 %v12626_v30, %v16837_v8  ;;  %v1043_v19 = vpop.f32.mrb[11].mxu0 }
 0x187   : > { %22099 = vst [vmem:[#allocation80_spill] sm:$0xff] %v16903_v45  ;;  %v16909_v3 = vadd.f32 %v16837_v8, %v1043_v19  ;;  %15059 = vrot.lane.b32.xlu1 %v16889_v33, %s16202_s3  ;;  %15064 = vrot.lane.b32.xlu0 %v16903_v45, %s16201_s30 }
 0x188   : > { %22100 = vst [vmem:[#allocation81_spill] sm:$0xff] %v16906_v49 }
 0x189   : > { %22101 = vst [vmem:[#allocation82_spill] sm:$0xff] %v16909_v3  ;;  %v12629_v22 = vpop.f32.mrb[12].mxu0  ;;  %v16917_v57 = vpack.i.bf16 %v16906_v49, %v16909_v3 }
 0x18a   : > { %v16920_v61 = vadd.f32 %v12629_v22, %v16837_v8  ;;  %v1053_v30 = vpop.f32.mrb[13].mxu0 }
 0x18b   : > { %22102 = vst [vmem:[#allocation83_spill] sm:$0xff] %v16917_v57  ;;  %v16923_v1 = vadd.f32 %v16837_v8, %v1053_v30  ;;  %15069 = vrot.lane.b32.xlu0 %v16903_v45, %s16202_s3  ;;  %15074 = vrot.lane.b32.xlu1 %v16917_v57, %s16201_s30 }
 0x18c   : > { %22103 = vst [vmem:[#allocation84_spill] sm:$0xff] %v16920_v61 }
 0x18d   : > { %22104 = vst [vmem:[#allocation85_spill] sm:$0xff] %v16923_v1  ;;  %v12632_v19 = vpop.f32.mrb[14].mxu0  ;;  %v16931_v46 = vpack.i.bf16 %v16920_v61, %v16923_v1 }
 0x18e   : > { %v16934_v11 = vadd.f32 %v12632_v19, %v16837_v8  ;;  %v1063_v22 = vpop.f32.mrb[15].mxu0 }
 0x18f   : > { %22105 = vst [vmem:[#allocation86_spill] sm:$0xff] %v16931_v46  ;;  %v16937_v17 = vadd.f32 %v16837_v8, %v1063_v22  ;;  %15079 = vrot.lane.b32.xlu1 %v16917_v57, %s16202_s3  ;;  %15084 = vrot.lane.b32.xlu0 %v16931_v46, %s16201_s30 }
 0x190   : > { %22106 = vst [vmem:[#allocation87_spill] sm:$0xff] %v16934_v11 }
 0x191   : > { %22107 = vst [vmem:[#allocation88_spill] sm:$0xff] %v16937_v17  ;;  %v12635_v30 = vpop.f32.mrb[16].mxu0  ;;  %v16945_v26 = vpack.i.bf16 %v16934_v11, %v16937_v17 }
 0x192   : > { %v16948_v51 = vadd.f32 %v12635_v30, %v16837_v8  ;;  %v1073_v19 = vpop.f32.mrb[17].mxu0 }
 0x193   : > { %22108 = vst [vmem:[#allocation89_spill] sm:$0xff] %v16945_v26  ;;  %v16951_v42 = vadd.f32 %v16837_v8, %v1073_v19  ;;  %15089 = vrot.lane.b32.xlu0 %v16931_v46, %s16202_s3  ;;  %15094 = vrot.lane.b32.xlu1 %v16945_v26, %s16201_s30 }
 0x194   : > { %22109 = vst [vmem:[#allocation90_spill] sm:$0xff] %v16948_v51 }
 0x195   : > { %22110 = vst [vmem:[#allocation91_spill] sm:$0xff] %v16951_v42  ;;  %v12638_v22 = vpop.f32.mrb[18].mxu0  ;;  %v16959_v50 = vpack.i.bf16 %v16948_v51, %v16951_v42 }
 0x196   : > { %v16962_v58 = vadd.f32 %v12638_v22, %v16837_v8  ;;  %v1083_v30 = vpop.f32.mrb[19].mxu0 }
 0x197   : > { %22111 = vst [vmem:[#allocation92_spill] sm:$0xff] %v16959_v50  ;;  %v16965_v6 = vadd.f32 %v16837_v8, %v1083_v30  ;;  %15099 = vrot.lane.b32.xlu1 %v16945_v26, %s16202_s3  ;;  %15104 = vrot.lane.b32.xlu0 %v16959_v50, %s16201_s30 }
 0x198   : > { %22112 = vst [vmem:[#allocation93_spill] sm:$0xff] %v16962_v58 }
 0x199   : > { %22113 = vst [vmem:[#allocation94_spill] sm:$0xff] %v16965_v6  ;;  %v12641_v19 = vpop.f32.mrb[20].mxu0  ;;  %v16973_v12 = vpack.i.bf16 %v16962_v58, %v16965_v6 }
 0x19a   : > { %v1093_v27 = vpop.f32.mrb[21].mxu0  ;;  %v16980_v22 = vadd.f32 %v12641_v19, %v16837_v8 }
 0x19b   : > { %22114 = vst [vmem:[#allocation95_spill] sm:$0xff] %v16973_v12  ;;  %15109 = vrot.lane.b32.xlu0 %v16959_v50, %s16202_s3  ;;  %15114 = vrot.lane.b32.xlu1 %v16973_v12, %s16201_s30  ;;  %v16983_v30 = vadd.f32 %v16837_v8, %v1093_v27 }
 0x19c   : > { %22115 = vst [vmem:[#allocation96_spill] sm:$0xff] %v16980_v22 }
 0x19d   : > { %22116 = vst [vmem:[#allocation97_spill] sm:$0xff] %v16983_v30  ;;  %v12644_v35 = vpop.f32.mrb[22].mxu0  ;;  %v16995_v2 = vpack.i.bf16 %v16980_v22, %v16983_v30 }
 0x19e   : > { %v16986_v59 = vadd.f32 %v12644_v35, %v16837_v8  ;;  %v1103_v54 = vpop.f32.mrb[23].mxu0 }
 0x19f   : > { %v16989_v38 = vadd.f32 %v16837_v8, %v1103_v54  ;;  %15119 = vrot.lane.b32.xlu0 %v16973_v12, %s16202_s3  ;;  %22119 = vst [vmem:[#allocation100_spill] sm:$0xff] %v16995_v2 }
 0x1a0   : > { %22117 = vst [vmem:[#allocation98_spill] sm:$0xff] %v16986_v59 }
 0x1a1   : > { %22118 = vst [vmem:[#allocation99_spill] sm:$0xff] %v16989_v38  ;;  %v12647_v23 = vpop.f32.mrb[24].mxu0  ;;  %v16999_v27 = vpack.i.bf16 %v16986_v59, %v16989_v38 }
 0x1a2   : > { %v1113_v19 = vpop.f32.mrb[25].mxu0  ;;  %v17006_v54 = vadd.f32 %v12647_v23, %v16837_v8 }
 0x1a3   : > { %22120 = vst [vmem:[#allocation101_spill] sm:$0xff] %v16999_v27  ;;  %15124 = vrot.lane.b32.xlu0 %v16995_v2, %s16201_s30  ;;  %15134 = vrot.lane.b32.xlu1 %v16999_v27, %s16201_s30  ;;  %v17009_v35 = vadd.f32 %v16837_v8, %v1113_v19 }
 0x1a4   : > { %22121 = vst [vmem:[#allocation102_spill] sm:$0xff] %v17006_v54 }
 0x1a5   : > { %22122 = vst [vmem:[#allocation103_spill] sm:$0xff] %v17009_v35  ;;  %v12650_v63 = vpop.f32.mrb[26].mxu0  ;;  %v17023_v23 = vpack.i.bf16 %v17006_v54, %v17009_v35 }
 0x1a6   : > { %v1123_v55 = vpop.f32.mrb[27].mxu0  ;;  %v17016_v47 = vadd.f32 %v12650_v63, %v16837_v8 }
 0x1a7   : > { %15129 = vrot.lane.b32.xlu0 %v16995_v2, %s16202_s3  ;;  %15139 = vrot.lane.b32.xlu1 %v16999_v27, %s16202_s3  ;;  %v17019_v34 = vadd.f32 %v16837_v8, %v1123_v55  ;;  %22125 = vst [vmem:[#allocation106_spill] sm:$0xff] %v17023_v23 }
 0x1a8   : > { %22123 = vst [vmem:[#allocation104_spill] sm:$0xff] %v17016_v47 }
 0x1a9   : > { %22124 = vst [vmem:[#allocation105_spill] sm:$0xff] %v17019_v34  ;;  %v12653_v31 = vpop.f32.mrb[28].mxu0  ;;  %v17031_v63 = vpack.i.bf16 %v17016_v47, %v17019_v34 }
 0x1aa   : > { %v1133_v19 = vpop.f32.mrb[29].mxu0  ;;  %v17036_v55 = vadd.f32 %v12653_v31, %v16837_v8 }
 0x1ab   : > { %15149 = vrot.lane.b32.xlu1 %v17023_v23, %s16202_s3  ;;  %15144 = vrot.lane.b32.xlu0 %v17023_v23, %s16201_s30  ;;  %22126 = vst [vmem:[#allocation107_spill] sm:$0xff] %v17031_v63  ;;  %v17039_v5 = vadd.f32 %v16837_v8, %v1133_v19 }
 0x1ac   : > { %22127 = vst [vmem:[#allocation108_spill] sm:$0xff] %v17036_v55 }
 0x1ad   : > { %v12656_v24 = vpop.f32.mrb[30].mxu0  ;;  %22128 = vst [vmem:[#allocation109_spill] sm:$0xff] %v17039_v5  ;;  %v17053_v31 = vpack.i.bf16 %v17036_v55, %v17039_v5 }
 0x1ae   : > { %v1143_v16 = vpop.f32.mrb[31].mxu0 }
 0x1af   : > { %15154 = vrot.lane.b32.xlu0 %v17031_v63, %s16201_s30  ;;  %22131 = vst [vmem:[#allocation112_spill] sm:$0xff] %v17053_v31  ;;  %v17067_v48 = vadd.f32 %v16837_v8, %v1143_v16 }
 0x1b1   : > { %v12659_v4 = vpop.f32.mrb[32].mxu0  ;;  %22134 = vst [vmem:[#allocation115_spill] sm:$0xff] %v17067_v48 }
 0x1b2   : > { %v17042_v0 = vadd.f32 %v12659_v4, %v16837_v8  ;;  %v1153_v60 = vpop.f32.mrb[33].mxu0 }
 0x1b3   : > { %v17045_v53 = vadd.f32 %v16837_v8, %v1153_v60  ;;  %15159 = vrot.lane.b32.xlu0 %v17031_v63, %s16202_s3  ;;  %v17064_v60 = vadd.f32 %v12656_v24, %v16837_v8 }
 0x1b4   : > { %22129 = vst [vmem:[#allocation110_spill] sm:$0xff] %v17042_v0 }
 0x1b5   : > { %22130 = vst [vmem:[#allocation111_spill] sm:$0xff] %v17045_v53  ;;  %v12662_v52 = vpop.f32.mrb[34].mxu0  ;;  %12849 = vmatprep.mubr.msk.f32.mxu0 %vm1380_vm1, %v17045_v53  ;;  %v17057_v19 = vpack.i.bf16 %v17042_v0, %v17045_v53  ;;  %22133 = vst [vmem:[#allocation114_spill] sm:$0xff] %v17064_v60  ;;  %v17081_v24 = vpack.i.bf16 %v17064_v60, %v17067_v48 }
 0x1b6   : > { %v1163_v4 = vpop.f32.mrb[35].mxu0  ;;  %v17070_v44 = vadd.f32 %v12662_v52, %v16837_v8 }
 0x1b7   : > { %22132 = vst [vmem:[#allocation113_spill] sm:$0xff] %v17057_v19  ;;  %15164 = vrot.lane.b32.xlu0 %v17053_v31, %s16201_s30  ;;  %15184 = vrot.lane.b32.xlu1 %v17057_v19, %s16201_s30  ;;  %v17073_v37 = vadd.f32 %v16837_v8, %v1163_v4  ;;  %22137 = vst [vmem:[#allocation118_spill] sm:$0xff] %v17081_v24 }
 0x1b8   : > { %22135 = vst [vmem:[#allocation116_spill] sm:$0xff] %v17070_v44 }
 0x1b9   : > { %22136 = vst [vmem:[#allocation117_spill] sm:$0xff] %v17073_v37  ;;  %v12665_v36 = vpop.f32.mrb[36].mxu0  ;;  %v17085_v52 = vpack.i.bf16 %v17070_v44, %v17073_v37 }
 0x1ba   : > { %v1173_v32 = vpop.f32.mrb[37].mxu0  ;;  %v17092_v4 = vadd.f32 %v12665_v36, %v16837_v8 }
 0x1bb   : > { %15169 = vrot.lane.b32.xlu0 %v17053_v31, %s16202_s3  ;;  %15189 = vrot.lane.b32.xlu1 %v17057_v19, %s16202_s3  ;;  %22138 = vst [vmem:[#allocation119_spill] sm:$0xff] %v17085_v52  ;;  %v17095_v20 = vadd.f32 %v16837_v8, %v1173_v32 }
 0x1bc   : > { %22139 = vst [vmem:[#allocation120_spill] sm:$0xff] %v17092_v4 }
 0x1bd   : > { %v12668_v29 = vpop.f32.mrb[38].mxu0  ;;  %22140 = vst [vmem:[#allocation121_spill] sm:$0xff] %v17095_v20 }
 0x1be   : > { %v1183_v16 = vpop.f32.mrb[39].mxu0  ;;  %v17098_v14 = vadd.f32 %v12668_v29, %v16837_v8  ;;  %v17115_v29 = vpack.i.bf16 %v17092_v4, %v17095_v20 }
 0x1bf   : > { %15174 = vrot.lane.b32.xlu0 %v17081_v24, %s16201_s30  ;;  %15194 = vrot.lane.b32.xlu1 %v17085_v52, %s16201_s30  ;;  %v17101_v21 = vadd.f32 %v16837_v8, %v1183_v16 }
 0x1c0   : > { %22141 = vst [vmem:[#allocation122_spill] sm:$0xff] %v17098_v14  ;;  %22145 = vst [vmem:[#allocation126_spill] sm:$0xff] %v17115_v29 }
 0x1c1   : > { %22142 = vst [vmem:[#allocation123_spill] sm:$0xff] %v17101_v21  ;;  %v12671_v13 = vpop.f32.mrb[40].mxu0  ;;  %v17119_v16 = vpack.i.bf16 %v17098_v14, %v17101_v21 }
 0x1c2   : > { %v1193_v53 = vpop.f32.mrb[41].mxu0  ;;  %v17108_v36 = vadd.f32 %v12671_v13, %v16837_v8 }
 0x1c3   : > { %15179 = vrot.lane.b32.xlu0 %v17081_v24, %s16202_s3  ;;  %15199 = vrot.lane.b32.xlu1 %v17085_v52, %s16202_s3  ;;  %v17111_v32 = vadd.f32 %v16837_v8, %v1193_v53  ;;  %22146 = vst [vmem:[#allocation127_spill] sm:$0xff] %v17119_v16 }
 0x1c4   : > { %22143 = vst [vmem:[#allocation124_spill] sm:$0xff] %v17108_v36 }
 0x1c5   : > { %22144 = vst [vmem:[#allocation125_spill] sm:$0xff] %v17111_v32  ;;  %v12674_v31 = vpop.f32.mrb[42].mxu0  ;;  %v17127_v53 = vpack.i.bf16 %v17108_v36, %v17111_v32 }
 0x1c6   : > { %v1203_v63 = vpop.f32.mrb[43].mxu0  ;;  %v17134_v52 = vadd.f32 %v12674_v31, %v16837_v8 }
 0x1c7   : > { %15204 = vrot.lane.b32.xlu1 %v17115_v29, %s16201_s30  ;;  %15219 = vrot.lane.b32.xlu0 %v17119_v16, %s16202_s3  ;;  %22147 = vst [vmem:[#allocation128_spill] sm:$0xff] %v17127_v53  ;;  %v17137_v19 = vadd.f32 %v16837_v8, %v1203_v63 }
 0x1c8   : > { %22148 = vst [vmem:[#allocation129_spill] sm:$0xff] %v17134_v52 }
 0x1c9   : > { %v12677_v13 = vpop.f32.mrb[44].mxu0  ;;  %22149 = vst [vmem:[#allocation130_spill] sm:$0xff] %v17137_v19  ;;  %v17151_v31 = vpack.i.bf16 %v17134_v52, %v17137_v19 }
 0x1ca   : > { %v1213_v24 = vpop.f32.mrb[45].mxu0  ;;  %v17144_v26 = vadd.f32 %v12677_v13, %v16837_v8 }
 0x1cb   : > { %15209 = vrot.lane.b32.xlu1 %v17115_v29, %s16202_s3  ;;  %15224 = vrot.lane.b32.xlu0 %v17127_v53, %s16201_s30  ;;  %v17147_v29 = vadd.f32 %v16837_v8, %v1213_v24  ;;  %22152 = vst [vmem:[#allocation133_spill] sm:$0xff] %v17151_v31 }
 0x1cc   : > { %22150 = vst [vmem:[#allocation131_spill] sm:$0xff] %v17144_v26 }
 0x1cd   : > { %v12680_v18 = vpop.f32.mrb[46].mxu0  ;;  %22151 = vst [vmem:[#allocation132_spill] sm:$0xff] %v17147_v29 }
 0x1ce   : > { %v1223_v23 = vpop.f32.mrb[47].mxu0 }
 0x1cf   : > { %15214 = vrot.lane.b32.xlu1 %v17119_v16, %s16201_s30  ;;  %15229 = vrot.lane.b32.xlu0 %v17127_v53, %s16202_s3  ;;  %v17158_v53 = vadd.f32 %v12680_v18, %v16837_v8  ;;  %v17161_v13 = vadd.f32 %v16837_v8, %v1223_v23  ;;  %v17165_v16 = vpack.i.bf16 %v17144_v26, %v17147_v29 }
 0x1d1   : > { %v12683_v27 = vpop.f32.mrb[48].mxu0  ;;  %22153 = vst [vmem:[#allocation134_spill] sm:$0xff] %v17158_v53  ;;  %22154 = vst [vmem:[#allocation135_spill] sm:$0xff] %v17161_v13  ;;  %v17179_v46 = vpack.i.bf16 %v17158_v53, %v17161_v13 }
 0x1d2   : > { %v1233_v63 = vpop.f32.mrb[49].mxu0  ;;  %22155 = vst [vmem:[#allocation136_spill] sm:$0xff] %v17165_v16 }
 0x1d3   : > { %15239 = vrot.lane.b32.xlu1 %v17151_v31, %s16202_s3  ;;  %15234 = vrot.lane.b32.xlu0 %v17151_v31, %s16201_s30  ;;  %v17172_v31 = vadd.f32 %v12683_v27, %v16837_v8  ;;  %v17175_v18 = vadd.f32 %v16837_v8, %v1233_v63  ;;  %22158 = vst [vmem:[#allocation139_spill] sm:$0xff] %v17179_v46 }
 0x1d5   : > { %v12686_v24 = vpop.f32.mrb[50].mxu0  ;;  %22156 = vst [vmem:[#allocation137_spill] sm:$0xff] %v17172_v31  ;;  %22157 = vst [vmem:[#allocation138_spill] sm:$0xff] %v17175_v18  ;;  %v17193_v57 = vpack.i.bf16 %v17172_v31, %v17175_v18 }
 0x1d6   : > { %v1243_v2 = vpop.f32.mrb[51].mxu0 }
 0x1d7   : > { %15249 = vrot.lane.b32.xlu1 %v17165_v16, %s16202_s3  ;;  %15244 = vrot.lane.b32.xlu0 %v17165_v16, %s16201_s30  ;;  %v17186_v16 = vadd.f32 %v12686_v24, %v16837_v8  ;;  %v17189_v27 = vadd.f32 %v16837_v8, %v1243_v2  ;;  %22161 = vst [vmem:[#allocation142_spill] sm:$0xff] %v17193_v57 }
 0x1d9   : > { %v12689_v23 = vpop.f32.mrb[52].mxu0  ;;  %22159 = vst [vmem:[#allocation140_spill] sm:$0xff] %v17186_v16  ;;  %22160 = vst [vmem:[#allocation141_spill] sm:$0xff] %v17189_v27  ;;  %v17205_v2 = vpack.i.bf16 %v17186_v16, %v17189_v27 }
 0x1da   : > { %v1253_v12 = vpop.f32.mrb[53].mxu0  ;;  %v17198_v45 = vadd.f32 %v12689_v23, %v16837_v8 }
 0x1db   : > { %15259 = vrot.lane.b32.xlu1 %v17179_v46, %s16202_s3  ;;  %15254 = vrot.lane.b32.xlu0 %v17179_v46, %s16201_s30  ;;  %v17201_v46 = vadd.f32 %v16837_v8, %v1253_v12  ;;  %22164 = vst [vmem:[#allocation145_spill] sm:$0xff] %v17205_v2 }
 0x1dc   : > { %22162 = vst [vmem:[#allocation143_spill] sm:$0xff] %v17198_v45 }
 0x1dd   : > { %v12692_v63 = vpop.f32.mrb[54].mxu0  ;;  %22163 = vst [vmem:[#allocation144_spill] sm:$0xff] %v17201_v46 }
 0x1de   : > { %v1263_v50 = vpop.f32.mrb[55].mxu0  ;;  %v17216_v23 = vadd.f32 %v12692_v63, %v16837_v8 }
 0x1df   : > { %15264 = vrot.lane.b32.xlu1 %v17193_v57, %s16201_s30  ;;  %v17219_v12 = vadd.f32 %v16837_v8, %v1263_v50  ;;  %v17223_v57 = vpack.i.bf16 %v17198_v45, %v17201_v46 }
 0x1e0   : > { %22167 = vst [vmem:[#allocation148_spill] sm:$0xff] %v17216_v23 }
 0x1e1   : > { %v12695_v24 = vpop.f32.mrb[56].mxu0  ;;  %22168 = vst [vmem:[#allocation149_spill] sm:$0xff] %v17219_v12  ;;  %22169 = vst [vmem:[#allocation150_spill] sm:$0xff] %v17223_v57  ;;  %v17241_v46 = vpack.i.bf16 %v17216_v23, %v17219_v12 }
 0x1e2   : > { %v17208_v33 = vadd.f32 %v12695_v24, %v16837_v8  ;;  %v1273_v39 = vpop.f32.mrb[57].mxu0 }
 0x1e3   : > { %v17211_v40 = vadd.f32 %v16837_v8, %v1273_v39  ;;  %15269 = vrot.lane.b32.xlu1 %v17205_v2, %s16201_s30  ;;  %22173 = vst [vmem:[#allocation154_spill] sm:$0xff] %v17241_v46 }
 0x1e4   : > { %22165 = vst [vmem:[#allocation146_spill] sm:$0xff] %v17208_v33 }
 0x1e5   : > { %22166 = vst [vmem:[#allocation147_spill] sm:$0xff] %v17211_v40  ;;  %v12698_v7 = vpop.f32.mrb[58].mxu0  ;;  %v17227_v24 = vpack.i.bf16 %v17208_v33, %v17211_v40 }
 0x1e6   : > { %v1283_v39 = vpop.f32.mrb[59].mxu0  ;;  %v17234_v63 = vadd.f32 %v12698_v7, %v16837_v8  ;;  %v22176_v7 = vmov 0 }
 0x1e7   : > { %22170 = vst [vmem:[#allocation151_spill] sm:$0xff] %v17227_v24  ;;  %15274 = vrot.lane.b32.xlu1 %v17223_v57, %s16201_s30  ;;  %15284 = vrot.lane.b32.xlu0 %v17227_v24, %s16201_s30  ;;  %v17237_v50 = vadd.f32 %v16837_v8, %v1283_v39  ;;  %v22177_v7 = vsel %vm17253_vm2, 4294967295, %v22176_v7 }
 0x1e8   : > { %22171 = vst [vmem:[#allocation152_spill] sm:$0xff] %v17234_v63  ;;  %22178 = vst [vmem:[#allocation157_spill] sm:$0xff] %v22177_v7 }
 0x1e9   : > { %22172 = vst [vmem:[#allocation153_spill] sm:$0xff] %v17237_v50  ;;  %v12701_v2 = vpop.f32.mrb[60].mxu0  ;;  %v15025_v45 = vpop.permute.xlu0 %15024 }
 0x1ea   : > { %v17244_v33 = vadd.f32 %v12701_v2, %v16837_v8  ;;  %v1293_v40 = vpop.f32.mrb[61].mxu0  ;;  %v15027_v57 = vunpack.i.h.bf16 %v15025_v45  ;;  %v15026_v16 = vunpack.i.l.bf16 %v15025_v45  ;;  %v17259_v2 = vpack.i.bf16 %v17234_v63, %v17237_v50 }
 0x1eb   : > { %v17247_v24 = vadd.f32 %v16837_v8, %v1293_v40  ;;  %15279 = vrot.lane.b32.xlu1 %v17241_v46, %s16201_s30 }
 0x1ec   : > { %22174 = vst [vmem:[#allocation155_spill] sm:$0xff] %v17244_v33  ;;  %v14249_v39 = vpack.c.bf16 %v15027_v57, %v15026_v16  ;;  %22179 = vst [vmem:[#allocation158_spill] sm:$0xff] %v17259_v2 }
 0x1ed   : > { %22175 = vst [vmem:[#allocation156_spill] sm:$0xff] %v17247_v24  ;;  %v15035_v23 = vpop.permute.xlu1 %15034  ;;  %v12704_v12 = vpop.f32.mrb[62].mxu0  ;;  %v17263_v45 = vpack.i.bf16 %v17244_v33, %v17247_v24 }
 0x1ee   : > { %v15037_v40 = vunpack.i.h.bf16 %v15035_v23  ;;  %v15036_v27 = vunpack.i.l.bf16 %v15035_v23  ;;  %v17266_v46 = vadd.f32 %v12704_v12, %v16837_v8  ;;  %v17268_v31 = vpop.permute.xlu0 %15029  ;;  %v1303_v18 = vpop.f32.mrb[63].mxu0  ;;  %14251 = vmatprep.subr.msk.bf16.mxu1 %vm17253_vm2, %v14249_v39 }
 0x1ef   : > { %22180 = vst [vmem:[#allocation159_spill] sm:$0xff] %v17263_v45  ;;  %v17273_v57 = vadd.f32 %v16837_v8, %v1303_v18  ;;  %15289 = vrot.lane.b32.xlu1 %v17259_v2, %s16201_s30  ;;  %15294 = vrot.lane.b32.xlu0 %v17263_v45, %s16201_s30 }
 0x1f0   : > { %22181 = vst [vmem:[#allocation160_spill] sm:$0xff] %v17266_v46  ;;  %v14255_v16 = vpack.c.bf16 %v15037_v40, %v15036_v27  ;;  %14254 = vmatpush3.bf16.xpose.msk.msra.mxu1 %vm17253_vm2, %v14249_v39 }
 0x1f1   : > { %22182 = vst [vmem:[#allocation161_spill] sm:$0xff] %v17273_v57  ;;  %v17281_v23 = vpop.permute.xlu1 %15039  ;;  %v17285_v12 = vpack.i.bf16 %v17266_v46, %v17273_v57 }
 0x1f2   : > { %v15045_v33 = vpop.permute.xlu0 %15044  ;;  %14257 = vmatprep.subr.msk.bf16.mxu1 %vm17253_vm2, %v14255_v16 }
 0x1f3   : > { %22183 = vst [vmem:[#allocation162_spill] sm:$0xff] %v17285_v12  ;;  %v15047_v8 = vunpack.i.h.bf16 %v15045_v33  ;;  %v15046_v18 = vunpack.i.l.bf16 %v15045_v33  ;;  %15299 = vrot.lane.b32.xlu1 %v17285_v12, %s16201_s30 }
 0x1f5   : > { %v15055_v45 = vpop.permute.xlu1 %15054  ;;  %v14261_v40 = vpack.c.bf16 %v15047_v8, %v15046_v18 }
 0x1f6   : > { %v17291_v27 = vpop.permute.xlu0 %15049  ;;  %v15057_v46 = vunpack.i.h.bf16 %v15055_v45  ;;  %v15056_v57 = vunpack.i.l.bf16 %v15055_v45 }
 0x1f8   : > { %14260 = vmatpush3.bf16.xpose.msk.msra.mxu1 %vm17253_vm2, %v14255_v16  ;;  %v14267_v63 = vpack.c.bf16 %v15057_v46, %v15056_v57 }
 0x1f9   : > { %14263 = vmatprep.subr.msk.bf16.mxu1 %vm17253_vm2, %v14261_v40  ;;  %v17297_v39 = vpop.permute.xlu1 %15059 }
 0x1fa   : > { %v15065_v2 = vpop.permute.xlu0 %15064 }
 0x1fb   : > { %v15067_v16 = vunpack.i.h.bf16 %v15065_v2  ;;  %v15066_v18 = vunpack.i.l.bf16 %v15065_v2 }
 0x1fd   : > { %v15075_v24 = vpop.permute.xlu1 %15074  ;;  %v14273_v60 = vpack.c.bf16 %v15067_v16, %v15066_v18 }
 0x1fe   : > { %v17299_v33 = vpop.permute.xlu0 %15069  ;;  %v15077_v57 = vunpack.i.h.bf16 %v15075_v24 }
 0x200   : > { %14266 = vmatpush3.bf16.xpose.msk.msra.mxu1 %vm17253_vm2, %v14261_v40  ;;  %v15076_v40 = vunpack.i.l.bf16 %v15075_v24 }
 0x201   : > { %14269 = vmatprep.subr.msk.bf16.mxu1 %vm17253_vm2, %v14267_v63  ;;  %v17305_v12 = vpop.permute.xlu1 %15079 }
 0x202   : > { %v15085_v8 = vpop.permute.xlu0 %15084  ;;  %v14279_v48 = vpack.c.bf16 %v15077_v57, %v15076_v40 }
 0x203   : > { %v15086_v16 = vunpack.i.l.bf16 %v15085_v8 }
 0x205   : > { %v15095_v45 = vpop.permute.xlu1 %15094 }
 0x206   : > { %v17307_v50 = vpop.permute.xlu0 %15089  ;;  %v15096_v40 = vunpack.i.l.bf16 %v15095_v45 }
 0x208   : > { %14272 = vmatpush3.bf16.xpose.msk.msra.mxu1 %vm17253_vm2, %v14267_v63  ;;  %v15087_v63 = vunpack.i.h.bf16 %v15085_v8 }
 0x209   : > { %14275 = vmatprep.subr.msk.bf16.mxu1 %vm17253_vm2, %v14273_v60  ;;  %v17315_v13 = vpop.permute.xlu1 %15099 }
 0x20a   : > { %v15105_v46 = vpop.permute.xlu0 %15104  ;;  %22185 = vst [vmem:[#allocation164_spill] sm:$0xff] %v17315_v13  ;;  %v14285_v26 = vpack.c.bf16 %v15087_v63, %v15086_v16 }
 0x20b   : > { %v15107_v8 = vunpack.i.h.bf16 %v15105_v46  ;;  %v15106_v63 = vunpack.i.l.bf16 %v15105_v46 }
 0x20d   : > { %v15115_v18 = vpop.permute.xlu1 %15114 }
 0x20e   : > { %v17313_v53 = vpop.permute.xlu0 %15109  ;;  %v15117_v13 = vunpack.i.h.bf16 %v15115_v18  ;;  %v15116_v29 = vunpack.i.l.bf16 %v15115_v18 }
 0x20f   : > { %22184 = vst [vmem:[#allocation163_spill] sm:$0xff] %v17313_v53 }
 0x210   : > { %14278 = vmatpush3.bf16.xpose.msk.msra.mxu1 %vm17253_vm2, %v14273_v60  ;;  %v15097_v60 = vunpack.i.h.bf16 %v15095_v45  ;;  %v14297_v45 = vpack.c.bf16 %v15107_v8, %v15106_v63  ;;  %v14303_v8 = vpack.c.bf16 %v15117_v13, %v15116_v29 }
 0x211   : > { %14281 = vmatprep.subr.msk.bf16.mxu1 %vm17253_vm2, %v14279_v48 }
 0x212   : > { %v17321_v2 = vpop.permute.xlu0 %15119 }
 0x213   : > { %22186 = vst [vmem:[#allocation165_spill] sm:$0xff] %v17321_v2  ;;  %v14291_v2 = vpack.c.bf16 %v15097_v60, %v15096_v40 }
 0x215   : > { %v17325_v24 = vpop.permute.xlu1 %15134 }
 0x216   : > { %v15125_v55 = vpop.permute.xlu0 %15124 }
 0x217   : > { %v15127_v29 = vunpack.i.h.bf16 %v15125_v55  ;;  %v15126_v13 = vunpack.i.l.bf16 %v15125_v55 }
 0x218   : > { %14284 = vmatpush3.bf16.xpose.msk.msra.mxu1 %vm17253_vm2, %v14279_v48 }
 0x219   : > { %14287 = vmatprep.subr.msk.bf16.mxu1 %vm17253_vm2, %v14285_v26  ;;  %v17333_v5 = vpop.permute.xlu1 %15139 }
 0x21a   : > { %v17329_v57 = vpop.permute.xlu0 %15129  ;;  %22188 = vst [vmem:[#allocation167_spill] sm:$0xff] %v17333_v5 }
 0x21b   : > { %22187 = vst [vmem:[#allocation166_spill] sm:$0xff] %v17329_v57 }
 0x21d   : > { %v17341_v16 = vpop.permute.xlu1 %15149 }
 0x21e   : > { %v17331_v53 = vpop.permute.xlu0 %15144  ;;  %22189 = vst [vmem:[#allocation168_spill] sm:$0xff] %v17341_v16 }
 0x220   : > { %14290 = vmatpush3.bf16.xpose.msk.msra.mxu1 %vm17253_vm2, %v14285_v26 }
 0x221   : > { %14293 = vmatprep.subr.msk.bf16.mxu1 %vm17253_vm2, %v14291_v2 }
 0x222   : > { %v17339_v48 = vpop.permute.xlu0 %15154 }
 0x226   : > { %v17343_v57 = vpop.permute.xlu0 %15159 }
 0x227   : > { %22190 = vst [vmem:[#allocation169_spill] sm:$0xff] %v17343_v57 }
 0x228   : > { %14296 = vmatpush3.bf16.xpose.msk.msra.mxu1 %vm17253_vm2, %v14291_v2 }
 0x229   : > { %14299 = vmatprep.subr.msk.bf16.mxu1 %vm17253_vm2, %v14297_v45  ;;  %v15185_v60 = vpop.permute.xlu1 %15184 }
 0x22a   : > { %v15187_v26 = vunpack.i.h.bf16 %v15185_v60  ;;  %v15186_v40 = vunpack.i.l.bf16 %v15185_v60  ;;  %v17349_v5 = vpop.permute.xlu0 %15164 }
 0x22c   : > { %v14345_v47 = vpack.c.bf16 %v15187_v26, %v15186_v40  ;;  %v14309_v40 = vpack.c.bf16 %v15127_v29, %v15126_v13  ;;  %v15137_v29 = vunpack.i.h.bf16 %v17325_v24  ;;  %v15136_v13 = vunpack.i.l.bf16 %v17325_v24 }
 0x22d   : > { %v17351_v46 = vpop.permute.xlu1 %15189 }
 0x22e   : > { %v17353_v16 = vpop.permute.xlu0 %15169  ;;  %14347 = vmatprep.subr.msk.bf16.mxu0 %vm17253_vm2, %v14345_v47 }
 0x22f   : > { %22191 = vst [vmem:[#allocation170_spill] sm:$0xff] %v17353_v16  ;;  %12738 = vmatmul.mubr.msk.f32.vlgmr.msra.gmra.mrb[0].mxu1 %vm1380_vm1, %v16840_v28  ;;  %14350 = vmatpush3.bf16.xpose.msk.msra.mxu0 %vm17253_vm2, %v14345_v47 }
 0x230   : > { %12740 = vmatprep.mubr.msk.f32.mxu1 %vm1380_vm1, %v16855_v15  ;;  %14302 = vmatpush3.bf16.xpose.msk.msra.mxu1 %vm17253_vm2, %v14297_v45 }
 0x231   : > { %14305 = vmatprep.subr.msk.bf16.mxu1 %vm17253_vm2, %v14303_v8  ;;  %v15195_v2 = vpop.permute.xlu1 %15194 }
 0x232   : > { %v15197_v18 = vunpack.i.h.bf16 %v15195_v2  ;;  %v15196_v63 = vunpack.i.l.bf16 %v15195_v2  ;;  %v17367_v60 = vpop.permute.xlu0 %15174 }
 0x233   : > { %12741 = vmatmul.mubr.msk.f32.gmra.mrb[2].mxu1 %vm1380_vm1, %v16852_v43 }
 0x234   : > { %v14351_v47 = vpack.c.bf16 %v15197_v18, %v15196_v63  ;;  %12743 = vmatprep.mubr.msk.f32.mxu1 %vm1380_vm1, %v16867_v25 }
 0x235   : > { %v17373_v26 = vpop.permute.xlu1 %15199 }
 0x236   : > { %v17375_v45 = vpop.permute.xlu0 %15179  ;;  %14353 = vmatprep.subr.msk.bf16.mxu0 %vm17253_vm2, %v14351_v47 }
 0x237   : > { %22192 = vst [vmem:[#allocation171_spill] sm:$0xff] %v17375_v45  ;;  %12744 = vmatmul.mubr.msk.f32.gmra.mrb[4].mxu1 %vm1380_vm1, %v16864_v62  ;;  %14356 = vmatpush3.bf16.xpose.msk.msra.mxu0 %vm17253_vm2, %v14351_v47 }
 0x238   : > { %12746 = vmatprep.mubr.msk.f32.mxu1 %vm1380_vm1, %v16881_v56  ;;  %14308 = vmatpush3.bf16.xpose.msk.msra.mxu1 %vm17253_vm2, %v14303_v8 }
 0x239   : > { %14311 = vmatprep.subr.msk.bf16.mxu1 %vm17253_vm2, %v14309_v40  ;;  %v15205_v55 = vpop.permute.xlu1 %15204 }
 0x23a   : > { %v15207_v2 = vunpack.i.h.bf16 %v15205_v55  ;;  %v15206_v18 = vunpack.i.l.bf16 %v15205_v55  ;;  %v17389_v63 = vpop.permute.xlu0 %15219  ;;  %v14315_v55 = vpack.c.bf16 %v15137_v29, %v15136_v13  ;;  %v15147_v29 = vunpack.i.h.bf16 %v17331_v53 }
 0x23b   : > { %12747 = vmatmul.mubr.msk.f32.gmra.mrb[6].mxu1 %vm1380_vm1, %v16878_v10  ;;  %v15146_v13 = vunpack.i.l.bf16 %v17331_v53  ;;  %v15157_v53 = vunpack.i.h.bf16 %v17339_v48 }
 0x23c   : > { %v14357_v47 = vpack.c.bf16 %v15207_v2, %v15206_v18  ;;  %12749 = vmatprep.mubr.msk.f32.mxu1 %vm1380_vm1, %v16895_v41 }
 0x23d   : > { %v17397_v8 = vpop.permute.xlu1 %15209 }
 0x23e   : > { %v15225_v56 = vpop.permute.xlu0 %15224  ;;  %14359 = vmatprep.subr.msk.bf16.mxu0 %vm17253_vm2, %v14357_v47 }
 0x23f   : > { %12750 = vmatmul.mubr.msk.f32.gmra.mrb[8].mxu1 %vm1380_vm1, %v16892_v9  ;;  %14362 = vmatpush3.bf16.xpose.msk.msra.mxu0 %vm17253_vm2, %v14357_v47  ;;  %v15227_v9 = vunpack.i.h.bf16 %v15225_v56  ;;  %v15226_v47 = vunpack.i.l.bf16 %v15225_v56 }
 0x240   : > { %12752 = vmatprep.mubr.msk.f32.mxu1 %vm1380_vm1, %v16909_v3  ;;  %14314 = vmatpush3.bf16.xpose.msk.msra.mxu1 %vm17253_vm2, %v14309_v40  ;;  %v14321_v40 = vpack.c.bf16 %v15147_v29, %v15146_v13  ;;  %v15167_v13 = vunpack.i.h.bf16 %v17349_v5 }
 0x241   : > { %14317 = vmatprep.subr.msk.bf16.mxu1 %vm17253_vm2, %v14315_v55  ;;  %v15215_v24 = vpop.permute.xlu1 %15214 }
 0x242   : > { %v15217_v2 = vunpack.i.h.bf16 %v15215_v24  ;;  %v15216_v18 = vunpack.i.l.bf16 %v15215_v24  ;;  %v17411_v41 = vpop.permute.xlu0 %15229  ;;  %v14369_v24 = vpack.c.bf16 %v15227_v9, %v15226_v47  ;;  %v15166_v47 = vunpack.i.l.bf16 %v17349_v5 }
 0x243   : > { %12753 = vmatmul.mubr.msk.f32.gmra.mrb[10].mxu1 %vm1380_vm1, %v16906_v49 }
 0x244   : > { %v14363_v3 = vpack.c.bf16 %v15217_v2, %v15216_v18  ;;  %12755 = vmatprep.mubr.msk.f32.mxu1 %vm1380_vm1, %v16923_v1  ;;  %v15156_v2 = vunpack.i.l.bf16 %v17339_v48 }
 0x246   : > { %14365 = vmatprep.subr.msk.bf16.mxu0 %vm17253_vm2, %v14363_v3  ;;  %v15235_v25 = vpop.permute.xlu0 %15234  ;;  %v14327_v18 = vpack.c.bf16 %v15157_v53, %v15156_v2  ;;  %v14333_v53 = vpack.c.bf16 %v15167_v13, %v15166_v47  ;;  %v15031_v47 = vunpack.i.l.bf16 %v17268_v31 }
 0x247   : > { %12756 = vmatmul.mubr.msk.f32.gmra.mrb[12].mxu1 %vm1380_vm1, %v16920_v61  ;;  %14368 = vmatpush3.bf16.xpose.msk.msra.mxu0 %vm17253_vm2, %v14363_v3  ;;  %v15237_v9 = vunpack.i.h.bf16 %v15235_v25  ;;  %v15236_v56 = vunpack.i.l.bf16 %v15235_v25  ;;  %v17439_v3 = vpop.permute.xlu1 %15239 }
 0x248   : > { %12758 = vmatprep.mubr.msk.f32.mxu1 %vm1380_vm1, %v16937_v17  ;;  %14320 = vmatpush3.bf16.xpose.msk.msra.mxu1 %vm17253_vm2, %v14315_v55 }
 0x249   : > { %14323 = vmatprep.subr.msk.bf16.mxu1 %vm17253_vm2, %v14321_v40  ;;  %14371 = vmatprep.subr.msk.bf16.mxu0 %vm17253_vm2, %v14369_v24  ;;  %v14375_v55 = vpack.c.bf16 %v15237_v9, %v15236_v56 }
 0x24a   : > { %v15245_v29 = vpop.permute.xlu0 %15244 }
 0x24b   : > { %12759 = vmatmul.mubr.msk.f32.gmra.mrb[14].mxu1 %vm1380_vm1, %v16934_v11  ;;  %v15247_v25 = vunpack.i.h.bf16 %v15245_v29  ;;  %v15246_v48 = vunpack.i.l.bf16 %v15245_v29  ;;  %v17451_v9 = vpop.permute.xlu1 %15249  ;;  %v15177_v29 = vunpack.i.h.bf16 %v17367_v60 }
 0x24c   : > { %12793 = vmatprep.mubr.msk.f32.mxu1 %vm1380_vm1, %v16951_v42 }
 0x24d   : > { %v14381_v56 = vpack.c.bf16 %v15247_v25, %v15246_v48  ;;  %v15176_v25 = vunpack.i.l.bf16 %v17367_v60 }
 0x24f   : > { %14374 = vmatpush3.bf16.xpose.msk.msra.mxu0 %vm17253_vm2, %v14369_v24  ;;  %v15255_v24 = vpop.permute.xlu0 %15254  ;;  %v14339_v13 = vpack.c.bf16 %v15177_v29, %v15176_v25  ;;  %v15042_v25 = vunpack.i.h.bf16 %v17281_v23 }
 0x250   : > { %14326 = vmatpush3.bf16.xpose.msk.msra.mxu1 %vm17253_vm2, %v14321_v40  ;;  %14377 = vmatprep.subr.msk.bf16.mxu0 %vm17253_vm2, %v14375_v55  ;;  %v17461_v40 = vpop.permute.xlu1 %15259  ;;  %v15257_v5 = vunpack.i.h.bf16 %v15255_v24  ;;  %v15256_v2 = vunpack.i.l.bf16 %v15255_v24 }
 0x251   : > { %14329 = vmatprep.subr.msk.bf16.mxu1 %vm17253_vm2, %v14327_v18 }
 0x252   : > { %v14387_v48 = vpack.c.bf16 %v15257_v5, %v15256_v2 }
 0x257   : > { %14380 = vmatpush3.bf16.xpose.msk.msra.mxu0 %vm17253_vm2, %v14375_v55  ;;  %v15265_v55 = vpop.permute.xlu1 %15264 }
 0x258   : > { %14332 = vmatpush3.bf16.xpose.msk.msra.mxu1 %vm17253_vm2, %v14327_v18  ;;  %14383 = vmatprep.subr.msk.bf16.mxu0 %vm17253_vm2, %v14381_v56  ;;  %v15032_v18 = vunpack.i.h.bf16 %v17268_v31  ;;  %v15267_v60 = vunpack.i.h.bf16 %v15265_v55  ;;  %v15266_v24 = vunpack.i.l.bf16 %v15265_v55  ;;  %v15041_v31 = vunpack.i.l.bf16 %v17281_v23 }
 0x259   : > { %14335 = vmatprep.subr.msk.bf16.mxu1 %vm17253_vm2, %v14333_v53 }
 0x25a   : > { %v14441_v5 = vpack.c.bf16 %v15032_v18, %v15031_v47  ;;  %v14393_v2 = vpack.c.bf16 %v15267_v60, %v15266_v24  ;;  %v14445_v23 = vpack.c.bf16 %v15042_v25, %v15041_v31  ;;  %v15061_v24 = vunpack.i.l.bf16 %v17297_v39 }
 0x25f   : > { %14386 = vmatpush3.bf16.xpose.msk.msra.mxu0 %vm17253_vm2, %v14381_v56  ;;  %v15270_v56 = vpop.permute.xlu1 %15269 }
 0x260   : > { %14338 = vmatpush3.bf16.xpose.msk.msra.mxu1 %vm17253_vm2, %v14333_v53  ;;  %14389 = vmatprep.subr.msk.bf16.mxu0 %vm17253_vm2, %v14387_v48  ;;  %v15272_v53 = vunpack.i.h.bf16 %v15270_v56  ;;  %v15271_v29 = vunpack.i.l.bf16 %v15270_v56  ;;  %v15072_v56 = vunpack.i.h.bf16 %v17299_v33 }
 0x261   : > { %14341 = vmatprep.subr.msk.bf16.mxu1 %vm17253_vm2, %v14339_v13 }
 0x262   : > { %v14399_v55 = vpack.c.bf16 %v15272_v53, %v15271_v29 }
 0x263   : > { %v15275_v18 = vpop.permute.xlu1 %15274 }
 0x264   : > { %v15277_v47 = vunpack.i.h.bf16 %v15275_v18  ;;  %v15276_v60 = vunpack.i.l.bf16 %v15275_v18  ;;  %v15092_v18 = vunpack.i.h.bf16 %v17307_v50 }
 0x267   : > { %14392 = vmatpush3.bf16.xpose.msk.msra.mxu0 %vm17253_vm2, %v14387_v48  ;;  %v15052_v48 = vunpack.i.h.bf16 %v17291_v27  ;;  %v15280_v53 = vpop.permute.xlu1 %15279 }
 0x268   : > { %14344 = vmatpush3.bf16.xpose.msk.msra.mxu1 %vm17253_vm2, %v14339_v13  ;;  %14442 = vmatprep.subr.bf16.mxu0 %v14441_v5  ;;  %v15051_v13 = vunpack.i.l.bf16 %v17291_v27  ;;  %v15062_v27 = vunpack.i.h.bf16 %v17297_v39  ;;  %v15071_v39 = vunpack.i.l.bf16 %v17299_v33  ;;  %v15282_v25 = vunpack.i.h.bf16 %v15280_v53 }
 0x269   : > { %14395 = vmatprep.subr.msk.bf16.mxu1 %vm17253_vm2, %v14393_v2  ;;  %v15281_v31 = vunpack.i.l.bf16 %v15280_v53  ;;  %v15082_v33 = vunpack.i.h.bf16 %v17305_v12 }
 0x26a   : > { %v14453_v29 = vpack.c.bf16 %v15062_v27, %v15061_v24  ;;  %v22193_v24 = vld [vmem:[#allocation104_spill] sm:$0xff] }
 0x26e   : > { %12850 = vmatmul.mubr.msk.f32.vlgmr.msra.gmra.mrb[64].mxu0 %vm1380_vm1, %v17042_v0 }
 0x26f   : > { %12794 = vmatmul.mubr.msk.f32.vlgmr.msra.gmra.mrb[16].mxu1 %vm1380_vm1, %v16948_v51  ;;  %12852 = vmatprep.mubr.msk.f32.mxu0 %vm1380_vm1, %v17073_v37 }
 0x270   : > { %12796 = vmatprep.mubr.msk.f32.mxu1 %vm1380_vm1, %v16965_v6  ;;  %14398 = vmatpush3.bf16.xpose.msk.msra.mxu1 %vm17253_vm2, %v14393_v2  ;;  %v14405_v2 = vpack.c.bf16 %v15277_v47, %v15276_v60 }
 0x271   : > { %14444 = vmatpush3.bf16.msra.mxu0 %v14441_v5  ;;  %14401 = vmatprep.subr.msk.bf16.mxu1 %vm17253_vm2, %v14399_v55  ;;  %v14449_v5 = vpack.c.bf16 %v15052_v48, %v15051_v13  ;;  %v14457_v48 = vpack.c.bf16 %v15072_v56, %v15071_v39  ;;  %v14411_v13 = vpack.c.bf16 %v15282_v25, %v15281_v31  ;;  %v22196_v39 = vld [vmem:[#allocation109_spill] sm:$0xff]  ;;  %v22198_v31 = vld [vmem:[#allocation108_spill] sm:$0xff] }
 0x272   : > { %14446 = vmatprep.subr.bf16.mxu0 %v14445_v23  ;;  %12853 = vmatmul.mubr.msk.f32.gmra.mrb[66].mxu0 %vm1380_vm1, %v17070_v44  ;;  %v17756_v44 = vld [vmem:[%s21623_s1 + $0x1a0] sm:$0xff] }
 0x273   : > { %12797 = vmatmul.mubr.msk.f32.gmra.mrb[18].mxu1 %vm1380_vm1, %v16962_v58  ;;  %12855 = vmatprep.mubr.msk.f32.mxu0 %vm1380_vm1, %v17095_v20 }
 0x274   : > { %12799 = vmatprep.mubr.msk.f32.mxu1 %vm1380_vm1, %v16983_v30 }
 0x275   : > { %14448 = vmatpush3.bf16.msra.mxu0 %v14445_v23  ;;  %v15285_v23 = vpop.permute.xlu0 %15284 }
 0x276   : > { %14450 = vmatprep.subr.bf16.mxu0 %v14449_v5  ;;  %12856 = vmatmul.mubr.msk.f32.gmra.mrb[68].mxu0 %vm1380_vm1, %v17092_v4  ;;  %v15287_v60 = vunpack.i.h.bf16 %v15285_v23  ;;  %v15286_v27 = vunpack.i.l.bf16 %v15285_v23  ;;  %v17761_v4 = vld [vmem:[%s21623_s1 + $0x1a8] sm:$0xff] }
 0x277   : > { %12800 = vmatmul.mubr.msk.f32.gmra.mrb[20].mxu1 %vm1380_vm1, %v16980_v22  ;;  %12858 = vmatprep.mubr.msk.f32.mxu0 %vm1380_vm1, %v17101_v21  ;;  %v17738_v21 = vld [vmem:[%s21623_s1 + $0x190] sm:$0xff] }
 0x278   : > { %12802 = vmatprep.mubr.msk.f32.mxu1 %vm1380_vm1, %v16989_v38  ;;  %14404 = vmatpush3.bf16.xpose.msk.msra.mxu1 %vm17253_vm2, %v14399_v55  ;;  %v15081_v55 = vunpack.i.l.bf16 %v17305_v12  ;;  %v15091_v12 = vunpack.i.l.bf16 %v17307_v50  ;;  %v22194_v50 = vld [vmem:[#allocation132_spill] sm:$0xff]  ;;  %v14417_v25 = vpack.c.bf16 %v15287_v60, %v15286_v27  ;;  %v22203_v27 = vld [vmem:[#allocation114_spill] sm:$0xff] }
 0x279   : > { %14452 = vmatpush3.bf16.msra.mxu0 %v14449_v5  ;;  %14407 = vmatprep.subr.msk.bf16.mxu1 %vm17253_vm2, %v14405_v2  ;;  %v22195_v5 = vld [vmem:[#allocation164_spill] sm:$0xff] }
 0x27a   : > { %14454 = vmatprep.subr.bf16.mxu0 %v14453_v29  ;;  %12859 = vmatmul.mubr.msk.f32.gmra.mrb[70].mxu0 %vm1380_vm1, %v17098_v14  ;;  %v14461_v47 = vpack.c.bf16 %v15082_v33, %v15081_v55  ;;  %v15102_v56 = vunpack.i.h.bf16 %v22195_v5  ;;  %v14465_v53 = vpack.c.bf16 %v15092_v18, %v15091_v12  ;;  %v22199_v33 = vld [vmem:[#allocation135_spill] sm:$0xff]  ;;  %v22202_v12 = vld [vmem:[#allocation134_spill] sm:$0xff] }
 0x27b   : > { %12803 = vmatmul.mubr.msk.f32.gmra.mrb[22].mxu1 %vm1380_vm1, %v16986_v59  ;;  %12861 = vmatprep.mubr.msk.f32.mxu0 %vm1380_vm1, %v17111_v32  ;;  %v22200_v55 = vld [vmem:[#allocation163_spill] sm:$0xff]  ;;  %v17743_v32 = vld [vmem:[%s21623_s1 + $0x198] sm:$0xff] }
 0x27c   : > { %12805 = vmatprep.mubr.msk.f32.mxu1 %vm1380_vm1, %v17009_v35  ;;  %v15111_v23 = vunpack.i.l.bf16 %v22200_v55 }
 0x27d   : > { %14456 = vmatpush3.bf16.msra.mxu0 %v14453_v29  ;;  %v22197_v29 = vld [vmem:[#allocation131_spill] sm:$0xff] }
 0x27e   : > { %14458 = vmatprep.subr.bf16.mxu0 %v14457_v48  ;;  %12862 = vmatmul.mubr.msk.f32.gmra.mrb[72].mxu0 %vm1380_vm1, %v17108_v36 }
 0x27f   : > { %12806 = vmatmul.mubr.msk.f32.gmra.mrb[24].mxu1 %vm1380_vm1, %v17006_v54  ;;  %12864 = vmatprep.mubr.msk.f32.mxu0 %vm1380_vm1, %v17137_v19 }
 0x280   : > { %12808 = vmatprep.mubr.msk.f32.mxu1 %vm1380_vm1, %v17019_v34  ;;  %14410 = vmatpush3.bf16.xpose.msk.msra.mxu1 %vm17253_vm2, %v14405_v2  ;;  %v15101_v2 = vunpack.i.l.bf16 %v22195_v5  ;;  %v15290_v5 = vpop.permute.xlu1 %15289 }
 0x281   : > { %14460 = vmatpush3.bf16.msra.mxu0 %v14457_v48  ;;  %14413 = vmatprep.subr.msk.bf16.mxu1 %vm17253_vm2, %v14411_v13  ;;  %v15112_v48 = vunpack.i.h.bf16 %v22200_v55  ;;  %v15291_v60 = vunpack.i.l.bf16 %v15290_v5  ;;  %v22204_v55 = vld [vmem:[#allocation138_spill] sm:$0xff] }
 0x282   : > { %14462 = vmatprep.subr.bf16.mxu0 %v14461_v47  ;;  %12865 = vmatmul.mubr.msk.f32.gmra.mrb[74].mxu0 %vm1380_vm1, %v17134_v52  ;;  %v14469_v18 = vpack.c.bf16 %v15102_v56, %v15101_v2  ;;  %v15295_v56 = vpop.permute.xlu0 %15294  ;;  %v17720_v52 = vld [vmem:[%s21623_s1 + $0x180] sm:$0xff] }
 0x283   : > { %12809 = vmatmul.mubr.msk.f32.gmra.mrb[26].mxu1 %vm1380_vm1, %v22193_v24  ;;  %12867 = vmatprep.mubr.msk.f32.mxu0 %vm1380_vm1, %v22194_v50  ;;  %v22201_v50 = vld [vmem:[#allocation115_spill] sm:$0xff]  ;;  %v15297_v2 = vunpack.i.h.bf16 %v15295_v56 }
 0x284   : > { %12811 = vmatprep.mubr.msk.f32.mxu1 %vm1380_vm1, %v22196_v39 }
 0x285   : > { %14464 = vmatpush3.bf16.msra.mxu0 %v14461_v47  ;;  %v15292_v47 = vunpack.i.h.bf16 %v15290_v5 }
 0x286   : > { %14466 = vmatprep.subr.bf16.mxu0 %v14465_v53  ;;  %12868 = vmatmul.mubr.msk.f32.gmra.mrb[76].mxu0 %vm1380_vm1, %v22197_v29  ;;  %v17725_v29 = vld [vmem:[%s21623_s1 + $0x188] sm:$0xff] }
 0x287   : > { %12812 = vmatmul.mubr.msk.f32.gmra.mrb[28].mxu1 %vm1380_vm1, %v22198_v31  ;;  %12870 = vmatprep.mubr.msk.f32.mxu0 %vm1380_vm1, %v22199_v33  ;;  %v17575_v33 = vpack.c.bf16 %v15112_v48, %v15111_v23 }
 0x288   : > { %12814 = vmatprep.mubr.msk.f32.mxu1 %vm1380_vm1, %v22201_v50  ;;  %14416 = vmatpush3.bf16.xpose.msk.msra.mxu1 %vm17253_vm2, %v14411_v13  ;;  %v14423_v13 = vpack.c.bf16 %v15292_v47, %v15291_v60  ;;  %v15191_v47 = vunpack.i.l.bf16 %v17351_v46  ;;  %v17774_v50 = vld [vmem:[%s21623_s1 + $0x1b0] sm:$0xff] }
 0x289   : > { %14468 = vmatpush3.bf16.msra.mxu0 %v14465_v53  ;;  %14419 = vmatprep.subr.msk.bf16.mxu1 %vm17253_vm2, %v14417_v25  ;;  %22205 = vst [vmem:[#allocation164_spill] sm:$0xff] %v17575_v33  ;;  %v15296_v53 = vunpack.i.l.bf16 %v15295_v56  ;;  %v15212_v56 = vunpack.i.h.bf16 %v17397_v8 }
 0x28a   : > { %14470 = vmatprep.subr.bf16.mxu0 %v14469_v18  ;;  %12871 = vmatmul.mubr.msk.f32.gmra.mrb[78].mxu0 %vm1380_vm1, %v22202_v12  ;;  %v15300_v12 = vpop.permute.xlu1 %15299 }
 0x28b   : > { %12815 = vmatmul.mubr.msk.f32.gmra.mrb[30].mxu1 %vm1380_vm1, %v22203_v27  ;;  %v14429_v5 = vpack.c.bf16 %v15297_v2, %v15296_v53  ;;  %v15302_v48 = vunpack.i.h.bf16 %v15300_v12  ;;  %v15301_v23 = vunpack.i.l.bf16 %v15300_v12  ;;  %v15201_v12 = vunpack.i.l.bf16 %v17373_v26  ;;  %v22206_v53 = vld [vmem:[#allocation137_spill] sm:$0xff] }
 0x28c   : > { %12905 = vmatprep.mubr.msk.f32.mxu1 %vm1380_vm1, %v22204_v55  ;;  %v15211_v2 = vunpack.i.l.bf16 %v17397_v8  ;;  %v15232_v8 = vunpack.i.h.bf16 %v17411_v41  ;;  %v17707_v55 = vld [vmem:[%s21623_s1 + $0x178] sm:$0xff] }
 0x28d   : > { %14472 = vmatpush3.bf16.msra.mxu0 %v14469_v18  ;;  %v14435_v18 = vpack.c.bf16 %v15302_v48, %v15301_v23  ;;  %v22207_v48 = vld [vmem:[#allocation141_spill] sm:$0xff]  ;;  %v15221_v23 = vunpack.i.l.bf16 %v17389_v63 }
 0x28e   : > { %14474 = vmatprep.subr.bf16.mxu0 %v17575_v33 }
 0x290   : > { %14422 = vmatpush3.bf16.xpose.msk.msra.mxu1 %vm17253_vm2, %v14417_v25  ;;  %v15192_v25 = vunpack.i.h.bf16 %v17351_v46  ;;  %v15222_v46 = vunpack.i.h.bf16 %v17389_v63  ;;  %v15242_v63 = vunpack.i.h.bf16 %v17439_v3 }
 0x291   : > { %14425 = vmatprep.subr.msk.bf16.mxu1 %vm17253_vm2, %v14423_v13 }
 0x292   : > { %v14505_v60 = vpack.c.bf16 %v15192_v25, %v15191_v47  ;;  %v22209_v25 = vld [vmem:[#allocation144_spill] sm:$0xff]  ;;  %v15231_v47 = vunpack.i.l.bf16 %v17411_v41  ;;  %v15252_v41 = vunpack.i.h.bf16 %v17451_v9 }
 0x298   : > { %14428 = vmatpush3.bf16.xpose.msk.msra.mxu1 %vm17253_vm2, %v14423_v13  ;;  %v15202_v13 = vunpack.i.h.bf16 %v17373_v26  ;;  %v14513_v26 = vpack.c.bf16 %v15212_v56, %v15211_v2  ;;  %v15241_v56 = vunpack.i.l.bf16 %v17439_v3  ;;  %v22212_v2 = vld [vmem:[#allocation148_spill] sm:$0xff]  ;;  %v15262_v3 = vunpack.i.h.bf16 %v17461_v40 }
 0x299   : > { %14431 = vmatprep.subr.msk.bf16.mxu1 %vm17253_vm2, %v14429_v5 }
 0x2a0   : > { %14434 = vmatpush3.bf16.xpose.msk.msra.mxu1 %vm17253_vm2, %v14429_v5  ;;  %v14509_v5 = vpack.c.bf16 %v15202_v13, %v15201_v12  ;;  %v22210_v13 = vld [vmem:[#allocation143_spill] sm:$0xff]  ;;  %v22211_v12 = vld [vmem:[#allocation149_spill] sm:$0xff] }
 0x2a1   : > { %14437 = vmatprep.subr.msk.bf16.mxu1 %vm17253_vm2, %v14435_v18 }
 0x2a8   : > { %14440 = vmatpush3.bf16.xpose.msk.msra.mxu1 %vm17253_vm2, %v14435_v18  ;;  %v22208_v18 = vld [vmem:[#allocation140_spill] sm:$0xff] }
 0x2a9   : > { %14506 = vmatprep.subr.bf16.mxu1 %v14505_v60 }
 0x2af   : > { %12906 = vmatmul.mubr.msk.f32.vlgmr.msra.gmra.mrb[32].mxu1 %vm1380_vm1, %v22206_v53 }
 0x2b0   : > { %12908 = vmatprep.mubr.msk.f32.mxu1 %vm1380_vm1, %v22207_v48  ;;  %14508 = vmatpush3.bf16.msra.mxu1 %v14505_v60  ;;  %v14517_v60 = vpack.c.bf16 %v15222_v46, %v15221_v23  ;;  %v15251_v46 = vunpack.i.l.bf16 %v17451_v9  ;;  %v22214_v23 = vld [vmem:[#allocation146_spill] sm:$0xff]  ;;  %v22218_v9 = vld [vmem:[#allocation155_spill] sm:$0xff] }
 0x2b1   : > { %14510 = vmatprep.subr.bf16.mxu1 %v14509_v5 }
 0x2b3   : > { %12909 = vmatmul.mubr.msk.f32.gmra.mrb[34].mxu1 %vm1380_vm1, %v22208_v18 }
 0x2b4   : > { %12911 = vmatprep.mubr.msk.f32.mxu1 %vm1380_vm1, %v22209_v25  ;;  %14512 = vmatpush3.bf16.msra.mxu1 %v14509_v5  ;;  %v14521_v5 = vpack.c.bf16 %v15232_v8, %v15231_v47  ;;  %v22213_v25 = vld [vmem:[#allocation147_spill] sm:$0xff]  ;;  %v15261_v8 = vunpack.i.l.bf16 %v17461_v40  ;;  %v22216_v47 = vld [vmem:[#allocation152_spill] sm:$0xff]  ;;  %v17641_v40 = vld [vmem:[%s21623_s1 + $0x140] sm:$0xff] }
 0x2b5   : > { %14514 = vmatprep.subr.bf16.mxu1 %v14513_v26 }
 0x2b7   : > { %12912 = vmatmul.mubr.msk.f32.gmra.mrb[36].mxu1 %vm1380_vm1, %v22210_v13  ;;  %v17702_v13 = vld [vmem:[%s21623_s1 + $0x170] sm:$0xff] }
 0x2b8   : > { %12914 = vmatprep.mubr.msk.f32.mxu1 %vm1380_vm1, %v22211_v12  ;;  %14516 = vmatpush3.bf16.msra.mxu1 %v14513_v26  ;;  %v14525_v26 = vpack.c.bf16 %v15242_v63, %v15241_v56  ;;  %v22215_v12 = vld [vmem:[#allocation153_spill] sm:$0xff]  ;;  %v14533_v63 = vpack.c.bf16 %v15262_v3, %v15261_v8 }
 0x2b9   : > { %14518 = vmatprep.subr.bf16.mxu1 %v14517_v60  ;;  %v22219_v56 = vld [vmem:[#allocation161_spill] sm:$0xff] }
 0x2bb   : > { %12915 = vmatmul.mubr.msk.f32.gmra.mrb[38].mxu1 %vm1380_vm1, %v22212_v2 }
 0x2bc   : > { %12917 = vmatprep.mubr.msk.f32.mxu1 %vm1380_vm1, %v22213_v25  ;;  %14520 = vmatpush3.bf16.msra.mxu1 %v14517_v60  ;;  %v14529_v60 = vpack.c.bf16 %v15252_v41, %v15251_v46  ;;  %v22217_v25 = vld [vmem:[#allocation156_spill] sm:$0xff]  ;;  %v17646_v41 = vld [vmem:[%s21623_s1 + $0x138] sm:$0xff] }
 0x2bd   : > { %14522 = vmatprep.subr.bf16.mxu1 %v14521_v5 }
 0x2bf   : > { %12918 = vmatmul.mubr.msk.f32.gmra.mrb[40].mxu1 %vm1380_vm1, %v22214_v23  ;;  %v17689_v23 = vld [vmem:[%s21623_s1 + $0x168] sm:$0xff] }
 0x2c0   : > { %12920 = vmatprep.mubr.msk.f32.mxu1 %vm1380_vm1, %v22215_v12  ;;  %14524 = vmatpush3.bf16.msra.mxu1 %v14521_v5  ;;  %v22220_v5 = vld [vmem:[#allocation160_spill] sm:$0xff] }
 0x2c1   : > { %14526 = vmatprep.subr.bf16.mxu1 %v14525_v26 }
 0x2c3   : > { %12921 = vmatmul.mubr.msk.f32.gmra.mrb[42].mxu1 %vm1380_vm1, %v22216_v47  ;;  %v17684_v47 = vld [vmem:[%s21623_s1 + $0x160] sm:$0xff] }
 0x2c4   : > { %12923 = vmatprep.mubr.msk.f32.mxu1 %vm1380_vm1, %v22217_v25  ;;  %14528 = vmatpush3.bf16.msra.mxu1 %v14525_v26 }
 0x2c5   : > { %14530 = vmatprep.subr.bf16.mxu1 %v14529_v60 }
 0x2c7   : > { %12924 = vmatmul.mubr.msk.f32.gmra.mrb[44].mxu1 %vm1380_vm1, %v22218_v9 }
 0x2c8   : > { %12926 = vmatprep.mubr.msk.f32.mxu1 %vm1380_vm1, %v22219_v56  ;;  %14532 = vmatpush3.bf16.msra.mxu1 %v14529_v60  ;;  %v17657_v60 = vld [vmem:[%s21623_s1 + $0x150] sm:$0xff] }
 0x2c9   : > { %14534 = vmatprep.subr.bf16.mxu1 %v14533_v63 }
 0x2cb   : > { %12927 = vmatmul.mubr.msk.f32.gmra.mrb[46].mxu1 %vm1380_vm1, %v22220_v5 }
 0x2cc   : > { %14536 = vmatpush3.bf16.msra.mxu1 %v14533_v63 }
 0x302   : > { %v12739_v46 = vpop.f32.mrb[0].mxu1 }
 0x303   : > { %v17649_v26 = vadd.f32 %v12739_v46, %v17641_v40  ;;  %v1511_v3 = vpop.f32.mrb[1].mxu1  ;;  %v17667_v46 = vld [vmem:[%s21623_s1 + $0x148] sm:$0xff] }
 0x304   : > { %v17652_v8 = vadd.f32 %v1511_v3, %v17646_v41  ;;  %v17672_v3 = vld [vmem:[%s21623_s1 + $0x158] sm:$0xff] }
 0x305   : > { %2363 = vmax.xlane.f32.xlu1 %v17649_v26 }
 0x306   : > { %v12742_v63 = vpop.f32.mrb[2].mxu1  ;;  %2361 = vmax.xlane.f32.xlu0 %v17652_v8 }
 0x307   : > { %v17662_v56 = vadd.f32 %v12742_v63, %v17657_v60  ;;  %v1521_v25 = vpop.f32.mrb[3].mxu1 }
 0x308   : > { %v17676_v9 = vadd.f32 %v1521_v25, %v17667_v46 }
 0x30a   : > { %v12745_v5 = vpop.f32.mrb[4].mxu1  ;;  %2367 = vmax.xlane.f32.xlu0 %v17662_v56 }
 0x30b   : > { %v1531_v12 = vpop.f32.mrb[5].mxu1  ;;  %v17694_v48 = vadd.f32 %v12745_v5, %v17684_v47 }
 0x30c   : > { %v17679_v63 = vadd.f32 %v1531_v12, %v17672_v3 }
 0x30e   : > { %v12748_v2 = vpop.f32.mrb[6].mxu1  ;;  %2369 = vmax.xlane.f32.xlu1 %v17679_v63  ;;  %2365 = vmax.xlane.f32.xlu0 %v17676_v9 }
 0x30f   : > { %v1541_v25 = vpop.f32.mrb[7].mxu1  ;;  %v17712_v53 = vadd.f32 %v12748_v2, %v17702_v13 }
 0x310   : > { %v17697_v12 = vadd.f32 %v1541_v25, %v17689_v23 }
 0x312   : > { %v12751_v18 = vpop.f32.mrb[8].mxu1  ;;  %2373 = vmax.xlane.f32.xlu1 %v17697_v12  ;;  %2371 = vmax.xlane.f32.xlu0 %v17694_v48 }
 0x313   : > { %v1551_v5 = vpop.f32.mrb[9].mxu1  ;;  %v17730_v19 = vadd.f32 %v12751_v18, %v17720_v52 }
 0x314   : > { %v17715_v25 = vadd.f32 %v1551_v5, %v17707_v55 }
 0x316   : > { %v12754_v36 = vpop.f32.mrb[10].mxu1  ;;  %2377 = vmax.xlane.f32.xlu1 %v17715_v25  ;;  %2375 = vmax.xlane.f32.xlu0 %v17712_v53 }
 0x317   : > { %v1561_v2 = vpop.f32.mrb[11].mxu1  ;;  %v17748_v14 = vadd.f32 %v12754_v36, %v17738_v21 }
 0x318   : > { %v17733_v5 = vadd.f32 %v1561_v2, %v17725_v29 }
 0x31a   : > { %v12757_v20 = vpop.f32.mrb[12].mxu1  ;;  %2381 = vmax.xlane.f32.xlu1 %v17733_v5  ;;  %2379 = vmax.xlane.f32.xlu0 %v17730_v19 }
 0x31b   : > { %v1571_v18 = vpop.f32.mrb[13].mxu1  ;;  %v17766_v37 = vadd.f32 %v12757_v20, %v17756_v44 }
 0x31c   : > { %v17751_v2 = vadd.f32 %v1571_v18, %v17743_v32 }
 0x31e   : > { %v12760_v0 = vpop.f32.mrb[14].mxu1  ;;  %2385 = vmax.xlane.f32.xlu1 %v17751_v2  ;;  %2383 = vmax.xlane.f32.xlu0 %v17748_v14 }
 0x31f   : > { %v1581_v36 = vpop.f32.mrb[15].mxu1  ;;  %v17779_v39 = vadd.f32 %v12760_v0, %v17774_v50 }
 0x320   : > { %v17769_v18 = vadd.f32 %v1581_v36, %v17761_v4 }
 0x322   : > { %2389 = vmax.xlane.f32.xlu1 %v17769_v18  ;;  %2387 = vmax.xlane.f32.xlu0 %v17766_v37 }
 0x326   : > { %2391 = vmax.xlane.f32.xlu0 %v17779_v39 }
 0x341   : > { %v12851_v27 = vpop.f32.mrb[64].mxu0 }
 0x342   : > { %v12795_v20 = vpop.f32.mrb[16].mxu1  ;;  %v2025_v31 = vpop.f32.mrb[65].mxu0  ;;  %v17791_v38 = vadd.f32 %v12851_v27, %v17641_v40 }
 0x343   : > { %v17783_v36 = vadd.f32 %v12795_v20, %v17641_v40  ;;  %v1768_v34 = vpop.f32.mrb[17].mxu1  ;;  %v17794_v59 = vadd.f32 %v2025_v31, %v17646_v41 }
 0x344   : > { %v17786_v35 = vadd.f32 %v1768_v34, %v17646_v41 }
 0x345   : > { %2395 = vmax.xlane.f32.xlu0 %v17783_v36  ;;  %v12854_v24 = vpop.f32.mrb[66].mxu0 }
 0x346   : > { %v12798_v54 = vpop.f32.mrb[18].mxu1  ;;  %2393 = vmax.xlane.f32.xlu1 %v17786_v35  ;;  %v2035_v0 = vpop.f32.mrb[67].mxu0  ;;  %v17807_v17 = vadd.f32 %v12854_v24, %v17657_v60 }
 0x347   : > { %v1778_v30 = vpop.f32.mrb[19].mxu1  ;;  %v17799_v6 = vadd.f32 %v12798_v54, %v17657_v60  ;;  %v17810_v11 = vadd.f32 %v2035_v0, %v17667_v46 }
 0x348   : > { %v17802_v58 = vadd.f32 %v1778_v30, %v17667_v46  ;;  %22221 = vst [vmem:[#allocation163_spill] sm:$0xff] %v17807_v17 }
 0x349   : > { %2427 = vmax.xlane.f32.xlu0 %v17791_v38  ;;  %v12857_v20 = vpop.f32.mrb[68].mxu0  ;;  %22222 = vst [vmem:[#allocation172_spill] sm:$0xff] %v17810_v11 }
 0x34a   : > { %v12801_v22 = vpop.f32.mrb[20].mxu1  ;;  %2425 = vmax.xlane.f32.xlu1 %v17794_v59  ;;  %v2045_v34 = vpop.f32.mrb[69].mxu0  ;;  %v17823_v15 = vadd.f32 %v12857_v20, %v17684_v47 }
 0x34b   : > { %v1788_v42 = vpop.f32.mrb[21].mxu1  ;;  %v17815_v49 = vadd.f32 %v12801_v22, %v17684_v47  ;;  %v17826_v7 = vadd.f32 %v2045_v34, %v17672_v3 }
 0x34c   : > { %v17818_v43 = vadd.f32 %v1788_v42, %v17672_v3  ;;  %22223 = vst [vmem:[#allocation173_spill] sm:$0xff] %v17823_v15 }
 0x34d   : > { %2399 = vmax.xlane.f32.xlu0 %v17799_v6  ;;  %v12860_v27 = vpop.f32.mrb[70].mxu0  ;;  %22224 = vst [vmem:[#allocation174_spill] sm:$0xff] %v17826_v7 }
 0x34e   : > { %v12804_v51 = vpop.f32.mrb[22].mxu1  ;;  %2397 = vmax.xlane.f32.xlu1 %v17802_v58  ;;  %v2055_v31 = vpop.f32.mrb[71].mxu0  ;;  %v17834_v16 = vadd.f32 %v12860_v27, %v17702_v13 }
 0x34f   : > { %v1798_v1 = vpop.f32.mrb[23].mxu1  ;;  %v17850_v27 = vadd.f32 %v2055_v31, %v17689_v23 }
 0x351   : > { %2431 = vmax.xlane.f32.xlu0 %v17807_v17  ;;  %v12863_v54 = vpop.f32.mrb[72].mxu0  ;;  %v17831_v17 = vadd.f32 %v12804_v51, %v17702_v13 }
 0x352   : > { %v12807_v61 = vpop.f32.mrb[24].mxu1  ;;  %2429 = vmax.xlane.f32.xlu1 %v17810_v11  ;;  %v2065_v30 = vpop.f32.mrb[73].mxu0  ;;  %v17847_v51 = vadd.f32 %v12863_v54, %v17720_v52 }
 0x353   : > { %v1808_v10 = vpop.f32.mrb[25].mxu1  ;;  %v17866_v31 = vadd.f32 %v2065_v30, %v17707_v55 }
 0x354   : > { %22225 = vst [vmem:[#allocation175_spill] sm:$0xff] %v17847_v51 }
 0x355   : > { %2403 = vmax.xlane.f32.xlu0 %v17815_v49  ;;  %v12866_v24 = vpop.f32.mrb[74].mxu0  ;;  %22227 = vst [vmem:[#allocation177_spill] sm:$0xff] %v17866_v31 }
 0x356   : > { %v12810_v62 = vpop.f32.mrb[26].mxu1  ;;  %2401 = vmax.xlane.f32.xlu1 %v17818_v43  ;;  %v2075_v0 = vpop.f32.mrb[75].mxu0 }
 0x357   : > { %v1818_v28 = vpop.f32.mrb[27].mxu1  ;;  %v17863_v54 = vadd.f32 %v2075_v0, %v17725_v29 }
 0x358   : > { %v17882_v30 = vadd.f32 %v1818_v28, %v17725_v29 }
 0x359   : > { %2435 = vmax.xlane.f32.xlu0 %v17823_v15  ;;  %v12869_v22 = vpop.f32.mrb[76].mxu0  ;;  %v17839_v15 = vadd.f32 %v12807_v61, %v17720_v52  ;;  %v17855_v61 = vadd.f32 %v12810_v62, %v17738_v21  ;;  %22226 = vst [vmem:[#allocation176_spill] sm:$0xff] %v17863_v54 }
 0x35a   : > { %v12813_v11 = vpop.f32.mrb[28].mxu1  ;;  %2433 = vmax.xlane.f32.xlu1 %v17826_v7  ;;  %v2085_v42 = vpop.f32.mrb[77].mxu0  ;;  %v17842_v7 = vadd.f32 %v1798_v1, %v17689_v23  ;;  %v17858_v1 = vadd.f32 %v1808_v10, %v17707_v55  ;;  %v17874_v10 = vadd.f32 %v12866_v24, %v17738_v21  ;;  %v17879_v0 = vadd.f32 %v12869_v22, %v17756_v44 }
 0x35b   : > { %v1828_v45 = vpop.f32.mrb[29].mxu1  ;;  %v17871_v62 = vadd.f32 %v12813_v11, %v17756_v44  ;;  %v17898_v28 = vadd.f32 %v2085_v42, %v17743_v32 }
 0x35c   : > { %22228 = vst [vmem:[#allocation178_spill] sm:$0xff] %v17874_v10  ;;  %22229 = vst [vmem:[#allocation179_spill] sm:$0xff] %v17879_v0  ;;  %v17890_v24 = vadd.f32 %v1828_v45, %v17743_v32 }
 0x35d   : > { %2407 = vmax.xlane.f32.xlu0 %v17831_v17  ;;  %v12872_v20 = vpop.f32.mrb[78].mxu0  ;;  %22231 = vst [vmem:[#allocation181_spill] sm:$0xff] %v17898_v28 }
 0x35e   : > { %v12816_v57 = vpop.f32.mrb[30].mxu1  ;;  %2439 = vmax.xlane.f32.xlu1 %v17834_v16  ;;  %v2095_v34 = vpop.f32.mrb[79].mxu0 }
 0x35f   : > { %v1838_v33 = vpop.f32.mrb[31].mxu1  ;;  %v17887_v11 = vadd.f32 %v12816_v57, %v17774_v50  ;;  %v17895_v22 = vadd.f32 %v2095_v34, %v17761_v4  ;;  %v17903_v57 = vadd.f32 %v12872_v20, %v17774_v50 }
 0x360   : > { %v17910_v34 = vadd.f32 %v1838_v33, %v17761_v4 }
 0x361   : > { %2411 = vmax.xlane.f32.xlu0 %v17839_v15  ;;  %22230 = vst [vmem:[#allocation180_spill] sm:$0xff] %v17895_v22  ;;  %22232 = vst [vmem:[#allocation182_spill] sm:$0xff] %v17903_v57 }
 0x362   : > { %2405 = vmax.xlane.f32.xlu1 %v17842_v7 }
 0x365   : > { %2443 = vmax.xlane.f32.xlu0 %v17847_v51 }
 0x366   : > { %2437 = vmax.xlane.f32.xlu1 %v17850_v27 }
 0x369   : > { %2415 = vmax.xlane.f32.xlu0 %v17855_v61 }
 0x36a   : > { %2409 = vmax.xlane.f32.xlu1 %v17858_v1 }
 0x36d   : > { %2445 = vmax.xlane.f32.xlu0 %v17863_v54 }
 0x36e   : > { %2441 = vmax.xlane.f32.xlu1 %v17866_v31 }
 0x371   : > { %2419 = vmax.xlane.f32.xlu0 %v17871_v62 }
 0x372   : > { %2447 = vmax.xlane.f32.xlu1 %v17874_v10 }
 0x375   : > { %2451 = vmax.xlane.f32.xlu0 %v17879_v0 }
 0x376   : > { %2413 = vmax.xlane.f32.xlu1 %v17882_v30 }
 0x379   : > { %2423 = vmax.xlane.f32.xlu0 %v17887_v11 }
 0x37a   : > { %2417 = vmax.xlane.f32.xlu1 %v17890_v24 }
 0x37d   : > { %2453 = vmax.xlane.f32.xlu0 %v17895_v22 }
 0x37e   : > { %2449 = vmax.xlane.f32.xlu1 %v17898_v28 }
 0x382   : > { %v12907_v54 = vpop.f32.mrb[32].mxu1  ;;  %2455 = vmax.xlane.f32.xlu1 %v17903_v57 }
 0x383   : > { %v17907_v45 = vadd.f32 %v12907_v54, %v17641_v40  ;;  %v2282_v0 = vpop.f32.mrb[33].mxu1 }
 0x384   : > { %v17915_v28 = vadd.f32 %v2282_v0, %v17646_v41 }
 0x385   : > { %2459 = vmax.xlane.f32.xlu0 %v17907_v45 }
 0x386   : > { %v12910_v42 = vpop.f32.mrb[34].mxu1  ;;  %2421 = vmax.xlane.f32.xlu1 %v17910_v34 }
 0x387   : > { %v2292_v22 = vpop.f32.mrb[35].mxu1  ;;  %v17919_v40 = vadd.f32 %v12910_v42, %v17657_v60 }
 0x388   : > { %v17930_v0 = vadd.f32 %v2292_v22, %v17667_v46 }
 0x389   : > { %22233 = vst [vmem:[#allocation183_spill] sm:$0xff] %v17919_v40 }
 0x38a   : > { %v12913_v20 = vpop.f32.mrb[36].mxu1  ;;  %2457 = vmax.xlane.f32.xlu1 %v17915_v28  ;;  %22236 = vst [vmem:[#allocation186_spill] sm:$0xff] %v17930_v0 }
 0x38b   : > { %v2302_v57 = vpop.f32.mrb[37].mxu1 }
 0x38c   : > { %v17922_v54 = vadd.f32 %v2302_v57, %v17672_v3  ;;  %v17935_v57 = vadd.f32 %v12913_v20, %v17684_v47 }
 0x38e   : > { %22234 = vst [vmem:[#allocation184_spill] sm:$0xff] %v17922_v54  ;;  %v12916_v33 = vpop.f32.mrb[38].mxu1  ;;  %2463 = vmax.xlane.f32.xlu1 %v17919_v40  ;;  %2465 = vmax.xlane.f32.xlu0 %v17922_v54  ;;  %22237 = vst [vmem:[#allocation187_spill] sm:$0xff] %v17935_v57 }
 0x38f   : > { %v17927_v10 = vadd.f32 %v12916_v33, %v17702_v13  ;;  %v2312_v41 = vpop.f32.mrb[39].mxu1 }
 0x390   : > { %v17938_v42 = vadd.f32 %v2312_v41, %v17689_v23 }
 0x391   : > { %22235 = vst [vmem:[#allocation185_spill] sm:$0xff] %v17927_v10 }
 0x392   : > { %v2364_v31 = vpop.xlane.xlu1 %2363  ;;  %v12919_v51 = vpop.f32.mrb[40].mxu1  ;;  %2461 = vmax.xlane.f32.xlu1 %v17930_v0  ;;  %2471 = vmax.xlane.f32.xlu0 %v17927_v10  ;;  %22238 = vst [vmem:[#allocation188_spill] sm:$0xff] %v17938_v42 }
 0x393   : > { %v2322_v60 = vpop.f32.mrb[41].mxu1  ;;  %v2362_v3 = vpop.xlane.xlu0 %2361  ;;  %v2490_v13 = vsub.f32 %v17649_v26, %v2364_v31  ;;  %v17948_v47 = vadd.f32 %v12919_v51, %v17720_v52 }
 0x394   : > { %v2489_v46 = vsub.f32 %v17652_v8, %v2362_v3  ;;  %v17957_v3 = vadd.f32 %v2322_v60, %v17707_v55 }
 0x395   : > { %22240 = vst [vmem:[#allocation190_spill] sm:$0xff] %v17948_v47  ;;  %v2555_v20 = vmul.f32 1.442695, %v2490_v13 }
 0x396   : > { %v12922_v33 = vpop.f32.mrb[42].mxu1  ;;  %2467 = vmax.xlane.f32.xlu1 %v17935_v57  ;;  %2469 = vmax.xlane.f32.xlu0 %v17938_v42  ;;  %v2553_v26 = vmul.f32 1.442695, %v2489_v46  ;;  %22242 = vst [vmem:[#allocation192_spill] sm:$0xff] %v17957_v3 }
 0x397   : > { %v17945_v22 = vadd.f32 %v12922_v33, %v17738_v21  ;;  %v2332_v10 = vpop.f32.mrb[43].mxu1  ;;  %v2368_v40 = vpop.xlane.xlu0 %2367  ;;  %15663 = vpow2.f32 %v2555_v20 }
 0x398   : > { %v2492_v31 = vsub.f32 %v17662_v56, %v2368_v40  ;;  %15665 = vpow2.f32 %v2553_v26  ;;  %v17966_v46 = vadd.f32 %v2332_v10, %v17725_v29 }
 0x399   : > { %22239 = vst [vmem:[#allocation189_spill] sm:$0xff] %v17945_v22 }
 0x39a   : > { %v12925_v23 = vpop.f32.mrb[44].mxu1  ;;  %2479 = vmax.xlane.f32.xlu1 %v17945_v22  ;;  %2475 = vmax.xlane.f32.xlu0 %v17948_v47  ;;  %v2559_v51 = vmul.f32 1.442695, %v2492_v31  ;;  %22244 = vst [vmem:[#allocation194_spill] sm:$0xff] %v17966_v46 }
 0x39b   : > { %v17954_v41 = vadd.f32 %v12925_v23, %v17756_v44  ;;  %v2342_v8 = vpop.f32.mrb[45].mxu1  ;;  %v2370_v21 = vpop.xlane.xlu1 %2369 }
 0x39c   : > { %v2366_v33 = vpop.xlane.xlu0 %2365  ;;  %15667 = vpow2.f32 %v2559_v51  ;;  %v2493_v20 = vsub.f32 %v17679_v63, %v2370_v21 }
 0x39d   : > { %22241 = vst [vmem:[#allocation191_spill] sm:$0xff] %v17954_v41  ;;  %v2491_v13 = vsub.f32 %v17676_v9, %v2366_v33 }
 0x39e   : > { %v12928_v52 = vpop.f32.mrb[46].mxu1  ;;  %2483 = vmax.xlane.f32.xlu1 %v17954_v41  ;;  %2473 = vmax.xlane.f32.xlu0 %v17957_v3 }
 0x39f   : > { %v17963_v56 = vadd.f32 %v12928_v52, %v17774_v50  ;;  %v2352_v44 = vpop.f32.mrb[47].mxu1  ;;  %v2374_v40 = vpop.xlane.xlu1 %2373  ;;  %v2557_v23 = vmul.f32 1.442695, %v2491_v13  ;;  %v17973_v50 = vadd.f32 %v2342_v8, %v17743_v32 }
 0x3a0   : > { %v2372_v55 = vpop.xlane.xlu0 %2371  ;;  %v17976_v31 = vadd.f32 %v2352_v44, %v17761_v4  ;;  %v2495_v8 = vsub.f32 %v17697_v12, %v2374_v40 }
 0x3a1   : > { %22243 = vst [vmem:[#allocation193_spill] sm:$0xff] %v17963_v56  ;;  %v2494_v60 = vsub.f32 %v17694_v48, %v2372_v55  ;;  %22245 = vst [vmem:[#allocation195_spill] sm:$0xff] %v17973_v50  ;;  %v2561_v48 = vmul.f32 1.442695, %v2493_v20  ;;  %v17981_v63 = vpop.eup %15663 }
 0x3a2   : > { %2487 = vmax.xlane.f32.xlu1 %v17963_v56  ;;  %2477 = vmax.xlane.f32.xlu0 %v17966_v46  ;;  %22246 = vst [vmem:[#allocation196_spill] sm:$0xff] %v17976_v31  ;;  %v17983_v52 = vpop.eup %15665 }
 0x3a3   : > { %v2563_v9 = vmul.f32 1.442695, %v2494_v60  ;;  %v2378_v26 = vpop.xlane.xlu1 %2377 }
 0x3a4   : > { %v2376_v29 = vpop.xlane.xlu0 %2375  ;;  %v2497_v32 = vsub.f32 %v17715_v25, %v2378_v26 }
 0x3a5   : > { %15669 = vpow2.f32 %v2563_v9  ;;  %v2496_v10 = vsub.f32 %v17712_v53, %v2376_v29 }
 0x3a6   : > { %2485 = vmax.xlane.f32.xlu1 %v17976_v31  ;;  %2481 = vmax.xlane.f32.xlu0 %v17973_v50  ;;  %15671 = vpow2.f32 %v2557_v23  ;;  %v17990_v44 = vpop.eup %15667  ;;  %v2569_v55 = vmul.f32 1.442695, %v2497_v32 }
 0x3a7   : > { %v2382_v21 = vpop.xlane.xlu1 %2381  ;;  %15673 = vpow2.f32 %v2561_v48  ;;  %v2567_v51 = vmul.f32 1.442695, %v2496_v10 }
 0x3a8   : > { %v2380_v33 = vpop.xlane.xlu0 %2379  ;;  %v2499_v26 = vsub.f32 %v17733_v5, %v2382_v21 }
 0x3a9   : > { %v2498_v4 = vsub.f32 %v17730_v19, %v2380_v33  ;;  %v2565_v19 = vmul.f32 1.442695, %v2495_v8 }
 0x3aa   : > { %2683 = vadd.xlane.f32.xlu0 %v17981_v63  ;;  %2681 = vadd.xlane.f32.xlu1 %v17983_v52 }
 0x3ab   : > { %v2571_v13 = vmul.f32 1.442695, %v2498_v4  ;;  %v2386_v60 = vpop.xlane.xlu1 %2385 }
 0x3ac   : > { %v2384_v53 = vpop.xlane.xlu0 %2383  ;;  %v2501_v40 = vsub.f32 %v17751_v2, %v2386_v60 }
 0x3ad   : > { %15675 = vpow2.f32 %v2571_v13  ;;  %v2500_v20 = vsub.f32 %v17748_v14, %v2384_v53 }
 0x3ae   : > { %2687 = vadd.xlane.f32.xlu1 %v17990_v44  ;;  %15677 = vpow2.f32 %v2567_v51  ;;  %v2577_v32 = vmul.f32 1.442695, %v2501_v40 }
 0x3af   : > { %v17993_v25 = vpop.eup %15669  ;;  %15679 = vpow2.f32 %v2569_v55  ;;  %v2575_v29 = vmul.f32 1.442695, %v2500_v20  ;;  %v2390_v10 = vpop.xlane.xlu1 %2389 }
 0x3b0   : > { %2691 = vadd.xlane.f32.xlu0 %v17993_v25  ;;  %v2388_v23 = vpop.xlane.xlu0 %2387  ;;  %v17997_v12 = vpop.eup %15671  ;;  %15681 = vpow2.f32 %v2565_v19  ;;  %v2503_v8 = vsub.f32 %v17769_v18, %v2390_v10 }
 0x3b1   : > { %v2502_v9 = vsub.f32 %v17766_v37, %v2388_v23  ;;  %v18003_v14 = vpop.eup %15673  ;;  %v2573_v37 = vmul.f32 1.442695, %v2499_v26 }
 0x3b2   : > { %2685 = vadd.xlane.f32.xlu1 %v17997_v12 }
 0x3b3   : > { %v2579_v48 = vmul.f32 1.442695, %v2502_v9 }
 0x3b4   : > { %v2392_v33 = vpop.xlane.xlu0 %2391 }
 0x3b5   : > { %15683 = vpow2.f32 %v2579_v48  ;;  %v2504_v4 = vsub.f32 %v17779_v39, %v2392_v33  ;;  %v2581_v39 = vmul.f32 1.442695, %v2503_v8 }
 0x3b6   : > { %2689 = vadd.xlane.f32.xlu1 %v18003_v14  ;;  %15685 = vpow2.f32 %v2575_v29 }
 0x3b7   : > { %v18007_v2 = vpop.eup %15675  ;;  %15687 = vpow2.f32 %v2577_v32  ;;  %v2583_v21 = vmul.f32 1.442695, %v2504_v4 }
 0x3b8   : > { %2699 = vadd.xlane.f32.xlu0 %v18007_v2  ;;  %v18011_v5 = vpop.eup %15677  ;;  %15689 = vpow2.f32 %v2573_v37 }
 0x3b9   : > { %v18014_v51 = vpop.eup %15679  ;;  %15691 = vpow2.f32 %v2583_v21 }
 0x3ba   : > { %2695 = vadd.xlane.f32.xlu1 %v18011_v5  ;;  %v18017_v13 = vpop.eup %15681  ;;  %15693 = vpow2.f32 %v2581_v39 }
 0x3bc   : > { %2697 = vadd.xlane.f32.xlu0 %v18014_v51 }
 0x3be   : > { %2693 = vadd.xlane.f32.xlu1 %v18017_v13 }
 0x3bf   : > { %v18020_v18 = vpop.eup %15683 }
 0x3c0   : > { %2707 = vadd.xlane.f32.xlu0 %v18020_v18  ;;  %v18023_v53 = vpop.eup %15685 }
 0x3c1   : > { %v18026_v55 = vpop.eup %15687 }
 0x3c2   : > { %2703 = vadd.xlane.f32.xlu1 %v18023_v53  ;;  %v18029_v60 = vpop.eup %15689 }
 0x3c3   : > { %v18032_v19 = vpop.eup %15691 }
 0x3c4   : > { %2705 = vadd.xlane.f32.xlu0 %v18026_v55  ;;  %v18035_v20 = vpop.eup %15693 }
 0x3c6   : > { %2701 = vadd.xlane.f32.xlu1 %v18029_v60 }
 0x3c8   : > { %2711 = vadd.xlane.f32.xlu0 %v18032_v19 }
 0x3ca   : > { %2709 = vadd.xlane.f32.xlu1 %v18035_v20 }
 0x3d2   : > { %v2396_v23 = vpop.xlane.xlu0 %2395 }
 0x3d3   : > { %v2506_v40 = vsub.f32 %v17783_v36, %v2396_v23  ;;  %v2394_v9 = vpop.xlane.xlu1 %2393 }
 0x3d4   : > { %v2505_v26 = vsub.f32 %v17786_v35, %v2394_v9 }
 0x3d5   : > { %v2587_v29 = vmul.f32 1.442695, %v2506_v40 }
 0x3d6   : > { %v2585_v48 = vmul.f32 1.442695, %v2505_v26  ;;  %v2428_v10 = vpop.xlane.xlu0 %2427 }
 0x3d7   : > { %15695 = vpow2.f32 %v2587_v29  ;;  %v2522_v33 = vsub.f32 %v17791_v38, %v2428_v10  ;;  %v2426_v32 = vpop.xlane.xlu1 %2425 }
 0x3d8   : > { %15697 = vpow2.f32 %v2585_v48  ;;  %v2521_v4 = vsub.f32 %v17794_v59, %v2426_v32 }
 0x3d9   : > { %v2619_v37 = vmul.f32 1.442695, %v2522_v33 }
 0x3da   : > { %v2400_v8 = vpop.xlane.xlu0 %2399  ;;  %v2617_v21 = vmul.f32 1.442695, %v2521_v4 }
 0x3db   : > { %15699 = vpow2.f32 %v2619_v37  ;;  %v2508_v39 = vsub.f32 %v17799_v6, %v2400_v8  ;;  %v2398_v36 = vpop.xlane.xlu1 %2397 }
 0x3dc   : > { %v2507_v23 = vsub.f32 %v17802_v58, %v2398_v36  ;;  %15701 = vpow2.f32 %v2617_v21 }
 0x3dd   : > { %v2591_v40 = vmul.f32 1.442695, %v2508_v39 }
 0x3de   : > { %v18044_v35 = vpop.xlane.xlu0 %2431  ;;  %v2589_v59 = vmul.f32 1.442695, %v2507_v23 }
 0x3df   : > { %v18046_v9 = vpop.xlane.xlu1 %2429  ;;  %15703 = vpow2.f32 %v2591_v40 }
 0x3e0   : > { %15705 = vpow2.f32 %v2589_v59 }
 0x3e1   : > { %v18048_v38 = vpop.eup %15695 }
 0x3e2   : > { %v18050_v26 = vpop.eup %15697  ;;  %2715 = vadd.xlane.f32.xlu0 %v18048_v38  ;;  %v2404_v29 = vpop.xlane.xlu0 %2403 }
 0x3e3   : > { %v2510_v6 = vsub.f32 %v17815_v49, %v2404_v29  ;;  %v2402_v48 = vpop.xlane.xlu1 %2401  ;;  %2713 = vadd.xlane.f32.xlu1 %v18050_v26 }
 0x3e4   : > { %v2509_v58 = vsub.f32 %v17818_v43, %v2402_v48 }
 0x3e5   : > { %v18056_v10 = vpop.eup %15699  ;;  %v2595_v33 = vmul.f32 1.442695, %v2510_v6 }
 0x3e6   : > { %2747 = vadd.xlane.f32.xlu0 %v18056_v10  ;;  %v18059_v32 = vpop.xlane.xlu0 %2435  ;;  %v2593_v4 = vmul.f32 1.442695, %v2509_v58  ;;  %v18063_v8 = vpop.eup %15701 }
 0x3e7   : > { %15707 = vpow2.f32 %v2595_v33  ;;  %v18061_v37 = vpop.xlane.xlu1 %2433 }
 0x3e8   : > { %15709 = vpow2.f32 %v2593_v4 }
 0x3e9   : > { %v18069_v39 = vpop.eup %15703 }
 0x3ea   : > { %2745 = vadd.xlane.f32.xlu0 %v18063_v8  ;;  %v2408_v49 = vpop.xlane.xlu0 %2407  ;;  %v18073_v29 = vpop.eup %15705 }
 0x3eb   : > { %v2512_v43 = vsub.f32 %v17831_v17, %v2408_v49  ;;  %v18067_v21 = vpop.xlane.xlu1 %2439 }
 0x3ed   : > { %v2599_v36 = vmul.f32 1.442695, %v2512_v43 }
 0x3ee   : > { %2719 = vadd.xlane.f32.xlu0 %v18069_v39  ;;  %v2412_v23 = vpop.xlane.xlu0 %2411 }
 0x3ef   : > { %15711 = vpow2.f32 %v2599_v36  ;;  %v2514_v40 = vsub.f32 %v17839_v15, %v2412_v23  ;;  %v2406_v59 = vpop.xlane.xlu1 %2405 }
 0x3f0   : > { %v2511_v6 = vsub.f32 %v17842_v7, %v2406_v59 }
 0x3f1   : > { %v18076_v48 = vpop.eup %15707  ;;  %v2603_v58 = vmul.f32 1.442695, %v2514_v40 }
 0x3f2   : > { %v2597_v17 = vmul.f32 1.442695, %v2511_v6  ;;  %2717 = vadd.xlane.f32.xlu0 %v18073_v29  ;;  %2723 = vadd.xlane.f32.xlu1 %v18076_v48  ;;  %v18080_v33 = vpop.xlane.xlu0 %2443  ;;  %v18084_v15 = vpop.eup %15709 }
 0x3f3   : > { %15713 = vpow2.f32 %v2603_v58  ;;  %v18082_v4 = vpop.xlane.xlu1 %2437 }
 0x3f4   : > { %15715 = vpow2.f32 %v2597_v17 }
 0x3f6   : > { %2721 = vadd.xlane.f32.xlu1 %v18084_v15  ;;  %v2416_v49 = vpop.xlane.xlu0 %2415 }
 0x3f7   : > { %v2516_v7 = vsub.f32 %v17855_v61, %v2416_v49  ;;  %v2410_v43 = vpop.xlane.xlu1 %2409 }
 0x3f8   : > { %v2513_v36 = vsub.f32 %v17858_v1, %v2410_v43 }
 0x3f9   : > { %v18089_v23 = vpop.eup %15711  ;;  %v2607_v40 = vmul.f32 1.442695, %v2516_v7 }
 0x3fa   : > { %v2601_v59 = vmul.f32 1.442695, %v2513_v36  ;;  %2727 = vadd.xlane.f32.xlu1 %v18089_v23  ;;  %v18092_v6 = vpop.xlane.xlu0 %2445 }
 0x3fb   : > { %15717 = vpow2.f32 %v2607_v40  ;;  %22247 = vst [vmem:[#allocation197_spill] sm:$0xff] %v18092_v6  ;;  %v18094_v58 = vpop.xlane.xlu1 %2441  ;;  %v22261_v6 = vld [vmem:[#allocation142_spill] sm:$0xff] }
 0x3fc   : > { %15719 = vpow2.f32 %v2601_v59 }
 0x3fd   : > { %v18096_v17 = vpop.eup %15713 }
 0x3fe   : > { %v18098_v56 = vpop.eup %15715  ;;  %2731 = vadd.xlane.f32.xlu1 %v18096_v17  ;;  %v2420_v1 = vpop.xlane.xlu0 %2419 }
 0x3ff   : > { %v18101_v61 = vpop.xlane.xlu1 %2447  ;;  %2725 = vadd.xlane.f32.xlu0 %v18098_v56 }
 0x402   : > { %v18110_v59 = vpop.xlane.xlu0 %2451 }
 0x403   : > { %v2414_v49 = vpop.xlane.xlu1 %2413  ;;  %22248 = vst [vmem:[#allocation198_spill] sm:$0xff] %v18110_v59 }
 0x404   : > { %v2515_v7 = vsub.f32 %v17882_v30, %v2414_v49 }
 0x405   : > { %v18105_v43 = vpop.eup %15717 }
 0x406   : > { %v18107_v36 = vpop.eup %15719  ;;  %v2605_v40 = vmul.f32 1.442695, %v2515_v7  ;;  %2735 = vadd.xlane.f32.xlu1 %v18105_v43  ;;  %v2424_v30 = vpop.xlane.xlu0 %2423 }
 0x407   : > { %v2418_v31 = vpop.xlane.xlu1 %2417  ;;  %2729 = vadd.xlane.f32.xlu0 %v18107_v36 }
 0x408   : > { %15721 = vpow2.f32 %v2605_v40  ;;  %v2517_v41 = vsub.f32 %v17890_v24, %v2418_v31 }
 0x40a   : > { %v2609_v50 = vmul.f32 1.442695, %v2517_v41  ;;  %v18120_v7 = vpop.xlane.xlu0 %2453 }
 0x40b   : > { %v18114_v46 = vpop.xlane.xlu1 %2449  ;;  %22251 = vst [vmem:[#allocation201_spill] sm:$0xff] %v18120_v7  ;;  %v22260_v7 = vld [vmem:[#allocation145_spill] sm:$0xff] }
 0x40c   : > { %22249 = vst [vmem:[#allocation199_spill] sm:$0xff] %v18114_v46  ;;  %15723 = vpow2.f32 %v2609_v50 }
 0x40f   : > { %v18116_v49 = vpop.xlane.xlu1 %2455 }
 0x410   : > { %22250 = vst [vmem:[#allocation200_spill] sm:$0xff] %v18116_v49 }
 0x412   : > { %v18118_v22 = vpop.eup %15721  ;;  %v18125_v42 = vpop.xlane.xlu0 %2459 }
 0x413   : > { %v2422_v47 = vpop.xlane.xlu1 %2421  ;;  %2733 = vadd.xlane.f32.xlu0 %v18118_v22 }
 0x416   : > { %v18123_v3 = vpop.eup %15723 }
 0x417   : > { %v2458_v40 = vpop.xlane.xlu1 %2457  ;;  %2737 = vadd.xlane.f32.xlu1 %v18123_v3 }
 0x41b   : > { %v18128_v24 = vpop.xlane.xlu1 %2463  ;;  %v18130_v41 = vpop.xlane.xlu0 %2465 }
 0x41c   : > { %22252 = vst [vmem:[#allocation202_spill] sm:$0xff] %v18128_v24  ;;  %22253 = vst [vmem:[#allocation203_spill] sm:$0xff] %v18130_v41 }
 0x41f   : > { %v18132_v50 = vpop.xlane.xlu1 %2461  ;;  %v18134_v31 = vpop.xlane.xlu0 %2471 }
 0x420   : > { %22254 = vst [vmem:[#allocation204_spill] sm:$0xff] %v18132_v50  ;;  %22255 = vst [vmem:[#allocation205_spill] sm:$0xff] %v18134_v31  ;;  %v22264_v31 = vld [vmem:[#allocation68_spill] sm:$0xff] }
 0x423   : > { %v18136_v57 = vpop.xlane.xlu1 %2467  ;;  %v18138_v54 = vpop.xlane.xlu0 %2469 }
 0x424   : > { %22256 = vst [vmem:[#allocation206_spill] sm:$0xff] %v18136_v57  ;;  %22257 = vst [vmem:[#allocation207_spill] sm:$0xff] %v18138_v54 }
 0x427   : > { %v18140_v0 = vpop.xlane.xlu1 %2479  ;;  %v18142_v49 = vpop.xlane.xlu0 %2475 }
 0x428   : > { %22258 = vst [vmem:[#allocation208_spill] sm:$0xff] %v18140_v0  ;;  %22259 = vst [vmem:[#allocation209_spill] sm:$0xff] %v18142_v49  ;;  %15309 = vrot.lane.b32.xlu1 %v22260_v7, %s16202_s3  ;;  %v2518_v7 = vsub.f32 %v17871_v62, %v2420_v1  ;;  %v22269_v62 = vld [vmem:[#allocation165_spill] sm:$0xff] }
 0x429   : > { %15304 = vrot.lane.b32.xlu0 %v22261_v6, %s16202_s3  ;;  %v15122_v1 = vunpack.i.h.bf16 %v22269_v62 }
 0x42a   : > { %v2611_v59 = vmul.f32 1.442695, %v2518_v7  ;;  %v15121_v7 = vunpack.i.l.bf16 %v22269_v62 }
 0x42b   : > { %v18148_v24 = vpop.xlane.xlu1 %2483  ;;  %v18150_v41 = vpop.xlane.xlu0 %2473 }
 0x42c   : > { %22262 = vst [vmem:[#allocation210_spill] sm:$0xff] %v18148_v24  ;;  %22263 = vst [vmem:[#allocation211_spill] sm:$0xff] %v18150_v41  ;;  %15314 = vrot.lane.b32.xlu1 %v22264_v31, %s16203_s13  ;;  %v2519_v41 = vsub.f32 %v17910_v34, %v2422_v47  ;;  %v2537_v34 = vsub.f32 %v17915_v28, %v2458_v40 }
 0x42e   : > { %v2649_v28 = vmul.f32 1.442695, %v2537_v34 }
 0x42f   : > { %v18154_v57 = vpop.xlane.xlu1 %2487  ;;  %v18156_v54 = vpop.xlane.xlu0 %2477 }
 0x430   : > { %22265 = vst [vmem:[#allocation212_spill] sm:$0xff] %v18154_v57  ;;  %22266 = vst [vmem:[#allocation213_spill] sm:$0xff] %v18156_v54  ;;  %v2520_v54 = vsub.f32 %v17887_v11, %v2424_v30  ;;  %v22270_v30 = vld [vmem:[#allocation166_spill] sm:$0xff] }
 0x433   : > { %v18158_v0 = vpop.xlane.xlu1 %2485  ;;  %v18160_v49 = vpop.xlane.xlu0 %2481 }
 0x434   : > { %22267 = vst [vmem:[#allocation214_spill] sm:$0xff] %v18158_v0  ;;  %22268 = vst [vmem:[#allocation215_spill] sm:$0xff] %v18160_v49  ;;  %v2613_v0 = vmul.f32 1.442695, %v2519_v41  ;;  %v15132_v41 = vunpack.i.h.bf16 %v22270_v30 }
 0x437   : > { %v2682_v50 = vpop.xlane.xlu1 %2681  ;;  %v2684_v6 = vpop.xlane.xlu0 %2683 }
 0x438   : > { %15725 = vrcp.f32 %v2682_v50  ;;  %v2615_v50 = vmul.f32 1.442695, %v2520_v54 }
 0x439   : > { %15727 = vrcp.f32 %v2684_v6 }
 0x43a   : > { %15729 = vpow2.f32 %v2611_v59 }
 0x43b   : > { %v2688_v24 = vpop.xlane.xlu1 %2687 }
 0x43c   : > { %15731 = vrcp.f32 %v2688_v24 }
 0x43d   : > { %v2692_v57 = vpop.xlane.xlu0 %2691 }
 0x43f   : > { %v2686_v31 = vpop.xlane.xlu1 %2685 }
 0x440   : > { %15733 = vrcp.f32 %v2686_v31  ;;  %v15131_v31 = vunpack.i.l.bf16 %v22270_v30 }
 0x441   : > { %15735 = vrcp.f32 %v2692_v57 }
 0x442   : > { %v15726_v46 = vpop.eup %15725 }
 0x443   : > { %v2690_v49 = vpop.xlane.xlu1 %2689  ;;  %v15728_v6 = vpop.eup %15727  ;;  %v2810_v59 = vmul.f32 %v15726_v46, %v17983_v52 }
 0x444   : > { %15737 = vrcp.f32 %v2690_v49  ;;  %v2812_v24 = vmul.f32 %v15728_v6, %v17981_v63  ;;  %v18170_v11 = vpop.eup %15729  ;;  %v14477_v49 = vpack.c.bf16 %v15122_v1, %v15121_v7  ;;  %v22272_v63 = vld [vmem:[#allocation167_spill] sm:$0xff]  ;;  %v14481_v1 = vpack.c.bf16 %v15132_v41, %v15131_v31 }
 0x445   : > { %15739 = vpow2.f32 %v2613_v0  ;;  %v2700_v47 = vpop.xlane.xlu0 %2699  ;;  %12961 = vmatprep.mubr.f32.mxu0 %v2810_v59  ;;  %v22271_v0 = vld [vmem:[#allocation164_spill] sm:$0xff]  ;;  %v15142_v40 = vunpack.i.h.bf16 %v22272_v63  ;;  %v15141_v62 = vunpack.i.l.bf16 %v22272_v63 }
 0x446   : > { %12962 = vmatmul.mubr.f32.vlgmr.msra.gmra.mrb[80].mxu0 %v2812_v24  ;;  %v15732_v54 = vpop.eup %15731  ;;  %15741 = vpow2.f32 %v2615_v50  ;;  %v22273_v63 = vld [vmem:[#allocation168_spill] sm:$0xff] }
 0x447   : > { %v2696_v57 = vpop.xlane.xlu1 %2695  ;;  %14476 = vmatpush3.bf16.msra.mxu0 %v22271_v0  ;;  %v2816_v7 = vmul.f32 %v15732_v54, %v17990_v44  ;;  %v14485_v0 = vpack.c.bf16 %v15142_v40, %v15141_v62  ;;  %v15151_v41 = vunpack.i.l.bf16 %v22273_v63  ;;  %v22274_v54 = vld [vmem:[#allocation169_spill] sm:$0xff] }
 0x448   : > { %2739 = vadd.xlane.f32.xlu0 %v18170_v11  ;;  %15743 = vrcp.f32 %v2696_v57  ;;  %14478 = vmatprep.subr.bf16.mxu0 %v14477_v49 }
 0x449   : > { %v2698_v46 = vpop.xlane.xlu0 %2697 }
 0x44a   : > { %v15734_v52 = vpop.eup %15733  ;;  %15745 = vrcp.f32 %v2698_v46 }
 0x44b   : > { %v2694_v6 = vpop.xlane.xlu1 %2693  ;;  %v2814_v59 = vmul.f32 %v15734_v52, %v17997_v12  ;;  %v15736_v50 = vpop.eup %15735  ;;  %14480 = vmatpush3.bf16.msra.mxu0 %v14477_v49  ;;  %v15152_v12 = vunpack.i.h.bf16 %v22273_v63 }
 0x44c   : > { %15747 = vrcp.f32 %v2694_v6  ;;  %14482 = vmatprep.subr.bf16.mxu0 %v14481_v1  ;;  %v2820_v44 = vmul.f32 %v15736_v50, %v17993_v25  ;;  %v22275_v50 = vld [vmem:[#allocation170_spill] sm:$0xff] }
 0x44d   : > { %15749 = vpow2.f32 %v2649_v28  ;;  %v2708_v34 = vpop.xlane.xlu0 %2707  ;;  %12964 = vmatprep.mubr.f32.mxu0 %v2814_v59  ;;  %v15162_v28 = vunpack.i.h.bf16 %v22274_v54 }
 0x44e   : > { %v15738_v24 = vpop.eup %15737  ;;  %12965 = vmatmul.mubr.f32.gmra.mrb[82].mxu0 %v2816_v7  ;;  %15751 = vrcp.f32 %v2700_v47  ;;  %v14489_v47 = vpack.c.bf16 %v15152_v12, %v15151_v41 }
 0x44f   : > { %v18180_v57 = vpop.eup %15739  ;;  %v2704_v30 = vpop.xlane.xlu1 %2703  ;;  %v2818_v46 = vmul.f32 %v15738_v24, %v18003_v14  ;;  %14484 = vmatpush3.bf16.msra.mxu0 %v14481_v1  ;;  %v15161_v14 = vunpack.i.l.bf16 %v22274_v54  ;;  %v15172_v24 = vunpack.i.h.bf16 %v22275_v50 }
 0x450   : > { %2741 = vadd.xlane.f32.xlu1 %v18180_v57  ;;  %14486 = vmatprep.subr.bf16.mxu0 %v14485_v0  ;;  %v18187_v49 = vpop.eup %15741  ;;  %15753 = vrcp.f32 %v2704_v30  ;;  %v15171_v30 = vunpack.i.l.bf16 %v22275_v50  ;;  %v22280_v50 = vld [vmem:[#allocation163_spill] sm:$0xff] }
 0x451   : > { %12967 = vmatprep.mubr.f32.mxu0 %v2818_v46  ;;  %v2706_v31 = vpop.xlane.xlu0 %2705  ;;  %v14493_v1 = vpack.c.bf16 %v15162_v28, %v15161_v14  ;;  %v22277_v28 = vld [vmem:[#allocation150_spill] sm:$0xff] }
 0x452   : > { %12968 = vmatmul.mubr.f32.gmra.mrb[84].mxu0 %v2820_v44  ;;  %v15744_v40 = vpop.eup %15743 }
 0x453   : > { %v2702_v52 = vpop.xlane.xlu1 %2701  ;;  %14488 = vmatpush3.bf16.msra.mxu0 %v14485_v0  ;;  %v2824_v46 = vmul.f32 %v15744_v40, %v18011_v5 }
 0x454   : > { %15755 = vrcp.f32 %v2702_v52  ;;  %2743 = vadd.xlane.f32.xlu1 %v18187_v49  ;;  %v15746_v62 = vpop.eup %15745  ;;  %14490 = vmatprep.subr.bf16.mxu0 %v14489_v47 }
 0x455   : > { %15757 = vrcp.f32 %v2706_v31  ;;  %v2712_v63 = vpop.xlane.xlu0 %2711  ;;  %v2826_v0 = vmul.f32 %v15746_v62, %v18014_v51 }
 0x456   : > { %v15748_v25 = vpop.eup %15747  ;;  %15759 = vrcp.f32 %v2708_v34  ;;  %v14497_v34 = vpack.c.bf16 %v15172_v24, %v15171_v30 }
 0x457   : > { %v18192_v6 = vpop.eup %15749  ;;  %v2710_v59 = vpop.xlane.xlu1 %2709  ;;  %v2822_v7 = vmul.f32 %v15748_v25, %v18017_v13  ;;  %14492 = vmatpush3.bf16.msra.mxu0 %v14489_v47  ;;  %v22276_v13 = vld [vmem:[#allocation171_spill] sm:$0xff] }
 0x458   : > { %2777 = vadd.xlane.f32.xlu1 %v18192_v6  ;;  %15761 = vrcp.f32 %v2710_v59  ;;  %v15752_v12 = vpop.eup %15751  ;;  %14494 = vmatprep.subr.bf16.mxu0 %v14493_v1  ;;  %v15182_v41 = vunpack.i.h.bf16 %v22276_v13  ;;  %v15181_v44 = vunpack.i.l.bf16 %v22276_v13 }
 0x459   : > { %12970 = vmatprep.mubr.f32.mxu0 %v2822_v7  ;;  %15763 = vrcp.f32 %v2712_v63  ;;  %v2828_v5 = vmul.f32 %v15752_v12, %v18007_v2  ;;  %v2538_v7 = vsub.f32 %v17907_v45, %v18125_v42 }
 0x45a   : > { %12971 = vmatmul.mubr.f32.gmra.mrb[86].mxu0 %v2824_v46  ;;  %v15754_v31 = vpop.eup %15753  ;;  %v14501_v52 = vpack.c.bf16 %v15182_v41, %v15181_v44  ;;  %v22281_v41 = vld [vmem:[#allocation172_spill] sm:$0xff] }
 0x45b   : > { %12973 = vmatprep.mubr.f32.mxu0 %v2826_v0  ;;  %14496 = vmatpush3.bf16.msra.mxu0 %v14493_v1  ;;  %v2832_v40 = vmul.f32 %v15754_v31, %v18023_v53  ;;  %v2651_v24 = vmul.f32 1.442695, %v2538_v7  ;;  %v2523_v44 = vsub.f32 %v22281_v41, %v18046_v9 }
 0x45c   : > { %14498 = vmatprep.subr.bf16.mxu0 %v14497_v34 }
 0x45e   : > { %v15756_v54 = vpop.eup %15755  ;;  %15319 = vrot.lane.b32.xlu0 %v22277_v28, %s16202_s3  ;;  %12974 = vmatmul.mubr.f32.gmra.mrb[88].mxu0 %v2828_v5 }
 0x45f   : > { %v15758_v51 = vpop.eup %15757  ;;  %v2830_v14 = vmul.f32 %v15756_v54, %v18029_v60  ;;  %14500 = vmatpush3.bf16.msra.mxu0 %v14497_v34  ;;  %v22278_v60 = vld [vmem:[#allocation154_spill] sm:$0xff] }
 0x460   : > { %v15760_v47 = vpop.eup %15759  ;;  %14502 = vmatprep.subr.bf16.mxu0 %v14501_v52  ;;  %v2834_v62 = vmul.f32 %v15758_v51, %v18026_v55  ;;  %v22279_v55 = vld [vmem:[#allocation71_spill] sm:$0xff] }
 0x461   : > { %12976 = vmatprep.mubr.f32.mxu0 %v2830_v14  ;;  %v2836_v2 = vmul.f32 %v15760_v47, %v18020_v18  ;;  %v2524_v18 = vsub.f32 %v22280_v50, %v18044_v35  ;;  %v22282_v14 = vld [vmem:[#allocation174_spill] sm:$0xff] }
 0x462   : > { %v15762_v25 = vpop.eup %15761  ;;  %12977 = vmatmul.mubr.f32.gmra.mrb[90].mxu0 %v2832_v40 }
 0x463   : > { %12979 = vmatprep.mubr.f32.mxu0 %v2834_v62  ;;  %14504 = vmatpush3.bf16.msra.mxu0 %v14501_v52  ;;  %v15764_v59 = vpop.eup %15763  ;;  %v2838_v1 = vmul.f32 %v15762_v25, %v18035_v20  ;;  %v2623_v46 = vmul.f32 1.442695, %v2524_v18  ;;  %v2525_v52 = vsub.f32 %v22282_v14, %v18061_v37 }
 0x464   : > { %v2840_v53 = vmul.f32 %v15764_v59, %v18032_v19 }
 0x465   : > { %v2625_v47 = vmul.f32 1.442695, %v2525_v52 }
 0x466   : > { %12980 = vmatmul.mubr.f32.gmra.mrb[92].mxu0 %v2836_v2 }
 0x467   : > { %12982 = vmatprep.mubr.f32.mxu0 %v2838_v1 }
 0x469   : > { %15324 = vrot.lane.b32.xlu1 %v22278_v60, %s16202_s3 }
 0x46a   : > { %12983 = vmatmul.mubr.f32.gmra.mrb[94].mxu0 %v2840_v53 }
 0x46d   : > { %15329 = vrot.lane.b32.xlu1 %v22279_v55, %s16203_s13 }
 0x46f   : > { %v2716_v30 = vpop.xlane.xlu0 %2715 }
 0x470   : > { %15765 = vrcp.f32 %v2716_v30  ;;  %v2714_v20 = vpop.xlane.xlu1 %2713 }
 0x471   : > { %15767 = vrcp.f32 %v2714_v20 }
 0x472   : > { %15769 = vpow2.f32 %v2651_v24 }
 0x473   : > { %v2748_v63 = vpop.xlane.xlu0 %2747  ;;  %15771 = vpow2.f32 %v2623_v46 }
 0x474   : > { %15773 = vrcp.f32 %v2748_v63 }
 0x477   : > { %v2746_v19 = vpop.xlane.xlu0 %2745 }
 0x478   : > { %15775 = vrcp.f32 %v2746_v19 }
 0x47a   : > { %v15766_v45 = vpop.eup %15765 }
 0x47b   : > { %v15768_v42 = vpop.eup %15767  ;;  %v2720_v0 = vpop.xlane.xlu0 %2719  ;;  %v2844_v35 = vmul.f32 %v15766_v45, %v18048_v38 }
 0x47c   : > { %v18219_v12 = vpop.eup %15769  ;;  %v2842_v13 = vmul.f32 %v15768_v42, %v18050_v26  ;;  %15777 = vrcp.f32 %v2720_v0  ;;  %v2621_v26 = vmul.f32 1.442695, %v2523_v44 }
 0x47d   : > { %2779 = vadd.xlane.f32.xlu0 %v18219_v12  ;;  %v18226_v5 = vpop.eup %15771 }
 0x47e   : > { %13017 = vmatprep.mubr.f32.mxu0 %v2842_v13  ;;  %v15774_v54 = vpop.eup %15773  ;;  %v22284_v13 = vld [vmem:[#allocation173_spill] sm:$0xff] }
 0x47f   : > { %v2724_v34 = vpop.xlane.xlu1 %2723  ;;  %13018 = vmatmul.mubr.f32.vlgmr.msra.gmra.mrb[96].mxu0 %v2844_v35  ;;  %v2718_v31 = vpop.xlane.xlu0 %2717  ;;  %v2876_v40 = vmul.f32 %v15774_v54, %v18056_v10  ;;  %v2526_v35 = vsub.f32 %v22284_v13, %v18059_v32  ;;  %v22286_v32 = vld [vmem:[#allocation74_spill] sm:$0xff] }
 0x480   : > { %15779 = vrcp.f32 %v2718_v31 }
 0x481   : > { %2751 = vadd.xlane.f32.xlu0 %v18226_v5  ;;  %15781 = vrcp.f32 %v2724_v34  ;;  %v22285_v34 = vld [vmem:[#allocation158_spill] sm:$0xff]  ;;  %v2627_v31 = vmul.f32 1.442695, %v2526_v35 }
 0x482   : > { %v15776_v51 = vpop.eup %15775  ;;  %v22292_v35 = vld [vmem:[#allocation162_spill] sm:$0xff] }
 0x483   : > { %v2722_v38 = vpop.xlane.xlu1 %2721  ;;  %v2874_v9 = vmul.f32 %v15776_v51, %v18063_v8 }
 0x484   : > { %15783 = vrcp.f32 %v2722_v38 }
 0x485   : > { %13073 = vmatprep.mubr.f32.mxu1 %v2874_v9  ;;  %15785 = vpow2.f32 %v2621_v26 }
 0x486   : > { %13074 = vmatmul.mubr.f32.vlgmr.msra.gmra.mrb[48].mxu1 %v2876_v40  ;;  %v15778_v25 = vpop.eup %15777  ;;  %15787 = vpow2.f32 %v2625_v47 }
 0x487   : > { %v2728_v62 = vpop.xlane.xlu1 %2727  ;;  %v2848_v53 = vmul.f32 %v15778_v25, %v18069_v39 }
 0x488   : > { %15789 = vrcp.f32 %v2728_v62 }
 0x48a   : > { %v15780_v2 = vpop.eup %15779 }
 0x48b   : > { %v2846_v1 = vmul.f32 %v15780_v2, %v18073_v29  ;;  %v15782_v37 = vpop.eup %15781  ;;  %v2732_v50 = vpop.xlane.xlu1 %2731 }
 0x48c   : > { %v2726_v59 = vpop.xlane.xlu0 %2725  ;;  %v2852_v18 = vmul.f32 %v15782_v37, %v18076_v48  ;;  %v2527_v37 = vsub.f32 %v17850_v27, %v18082_v4 }
 0x48d   : > { %15791 = vrcp.f32 %v2726_v59  ;;  %13020 = vmatprep.mubr.f32.mxu0 %v2846_v1 }
 0x48e   : > { %v15784_v8 = vpop.eup %15783  ;;  %13021 = vmatmul.mubr.f32.gmra.mrb[98].mxu0 %v2848_v53  ;;  %15793 = vrcp.f32 %v2732_v50 }
 0x48f   : > { %v2850_v10 = vmul.f32 %v15784_v8, %v18084_v15  ;;  %v18236_v7 = vpop.eup %15785  ;;  %v22283_v15 = vld [vmem:[#allocation151_spill] sm:$0xff]  ;;  %v2629_v8 = vmul.f32 1.442695, %v2527_v37 }
 0x490   : > { %v18240_v24 = vpop.eup %15787 }
 0x491   : > { %2749 = vadd.xlane.f32.xlu1 %v18236_v7  ;;  %13023 = vmatprep.mubr.f32.mxu0 %v2850_v10 }
 0x492   : > { %13024 = vmatmul.mubr.f32.gmra.mrb[100].mxu0 %v2852_v18  ;;  %v15790_v39 = vpop.eup %15789  ;;  %v22289_v18 = vld [vmem:[#allocation159_spill] sm:$0xff] }
 0x493   : > { %v2856_v46 = vmul.f32 %v15790_v39, %v18089_v23  ;;  %v2736_v48 = vpop.xlane.xlu1 %2735 }
 0x494   : > { %v2730_v29 = vpop.xlane.xlu0 %2729 }
 0x495   : > { %15795 = vrcp.f32 %v2730_v29  ;;  %2753 = vadd.xlane.f32.xlu1 %v18240_v24 }
 0x496   : > { %15797 = vrcp.f32 %v2736_v48 }
 0x497   : > { %v15792_v30 = vpop.eup %15791  ;;  %15334 = vrot.lane.b32.xlu0 %v22283_v15, %s16202_s3 }
 0x498   : > { %v2854_v20 = vmul.f32 %v15792_v30, %v18098_v56  ;;  %v15794_v63 = vpop.eup %15793  ;;  %v22290_v30 = vld [vmem:[#allocation177_spill] sm:$0xff] }
 0x499   : > { %v2860_v0 = vmul.f32 %v15794_v63, %v18096_v17 }
 0x49a   : > { %13026 = vmatprep.mubr.f32.mxu0 %v2854_v20  ;;  %v2529_v20 = vsub.f32 %v22290_v30, %v18094_v58 }
 0x49b   : > { %13027 = vmatmul.mubr.f32.gmra.mrb[102].mxu0 %v2856_v46 }
 0x49f   : > { %v15796_v19 = vpop.eup %15795 }
 0x4a0   : > { %v2734_v45 = vpop.xlane.xlu0 %2733  ;;  %v2858_v42 = vmul.f32 %v15796_v19, %v18107_v36  ;;  %v2528_v36 = vsub.f32 %v17834_v16, %v18067_v21  ;;  %v15798_v14 = vpop.eup %15797  ;;  %v2633_v19 = vmul.f32 1.442695, %v2529_v20 }
 0x4a1   : > { %15799 = vrcp.f32 %v2734_v45  ;;  %v2864_v16 = vmul.f32 %v15798_v14, %v18105_v43  ;;  %v22291_v45 = vld [vmem:[#allocation178_spill] sm:$0xff] }
 0x4a2   : > { %13029 = vmatprep.mubr.f32.mxu0 %v2858_v42  ;;  %v2631_v38 = vmul.f32 1.442695, %v2528_v36  ;;  %v2532_v42 = vsub.f32 %v22291_v45, %v18101_v61  ;;  %v22296_v61 = vld [vmem:[#allocation198_spill] sm:$0xff]  ;;  %v22303_v45 = vld [vmem:[#allocation92_spill] sm:$0xff] }
 0x4a3   : > { %13030 = vmatmul.mubr.f32.gmra.mrb[104].mxu0 %v2860_v0 }
 0x4a4   : > { %v2738_v56 = vpop.xlane.xlu1 %2737  ;;  %v15305_v41 = vpop.permute.xlu0 %15304  ;;  %v2639_v58 = vmul.f32 1.442695, %v2532_v42  ;;  %v22304_v42 = vld [vmem:[#allocation201_spill] sm:$0xff] }
 0x4a5   : > { %15801 = vrcp.f32 %v2738_v56  ;;  %v15307_v23 = vunpack.i.h.bf16 %v15305_v41  ;;  %v15306_v44 = vunpack.i.l.bf16 %v15305_v41  ;;  %v22293_v56 = vld [vmem:[#allocation199_spill] sm:$0xff]  ;;  %v22294_v41 = vld [vmem:[#allocation181_spill] sm:$0xff] }
 0x4a6   : > { %15339 = vrot.lane.b32.xlu1 %v22285_v34, %s16202_s3  ;;  %15803 = vpow2.f32 %v2627_v31  ;;  %v22295_v31 = vld [vmem:[#allocation77_spill] sm:$0xff] }
 0x4a7   : > { %v14537_v54 = vpack.c.bf16 %v15307_v23, %v15306_v44  ;;  %15805 = vpow2.f32 %v2631_v38  ;;  %v2533_v23 = vsub.f32 %v22294_v41, %v22293_v56 }
 0x4a8   : > { %v15310_v51 = vpop.permute.xlu1 %15309  ;;  %15807 = vpow2.f32 %v2629_v8 }
 0x4a9   : > { %v15312_v17 = vunpack.i.h.bf16 %v15310_v51  ;;  %v15311_v26 = vunpack.i.l.bf16 %v15310_v51  ;;  %14538 = vmatprep.subr.bf16.mxu0 %v14537_v54  ;;  %v2641_v51 = vmul.f32 1.442695, %v2533_v23 }
 0x4aa   : > { %15344 = vrot.lane.b32.xlu1 %v22286_v32, %s16203_s13  ;;  %14540 = vmatpush3.bf16.msra.mxu0 %v14537_v54  ;;  %v22297_v54 = vld [vmem:[#allocation179_spill] sm:$0xff] }
 0x4ab   : > { %v15800_v52 = vpop.eup %15799  ;;  %v14541_v9 = vpack.c.bf16 %v15312_v17, %v15311_v26 }
 0x4ac   : > { %v15315_v40 = vpop.permute.xlu1 %15314  ;;  %v2862_v47 = vmul.f32 %v15800_v52, %v18118_v22 }
 0x4ad   : > { %v15317_v62 = vunpack.i.h.bf16 %v15315_v40  ;;  %v15316_v25 = vunpack.i.l.bf16 %v15315_v40  ;;  %14542 = vmatprep.subr.bf16.mxu0 %v14541_v9 }
 0x4ae   : > { %13032 = vmatprep.mubr.f32.mxu0 %v2862_v47  ;;  %14544 = vmatpush3.bf16.msra.mxu0 %v14541_v9 }
 0x4af   : > { %v15802_v21 = vpop.eup %15801  ;;  %v14569_v2 = vpack.c.bf16 %v15317_v62, %v15316_v25  ;;  %13033 = vmatmul.mubr.f32.gmra.mrb[106].mxu0 %v2864_v16 }
 0x4b0   : > { %v2866_v59 = vmul.f32 %v15802_v21, %v18123_v3  ;;  %v18264_v22 = vpop.eup %15803  ;;  %v22288_v3 = vld [vmem:[#allocation175_spill] sm:$0xff] }
 0x4b1   : > { %14571 = vmatprep.subr.msk.bf16.mxu1 %vm17253_vm2, %v14569_v2  ;;  %v18267_v43 = vpop.eup %15805  ;;  %v2530_v53 = vsub.f32 %v22288_v3, %v18080_v33  ;;  %v22298_v3 = vld [vmem:[#allocation197_spill] sm:$0xff] }
 0x4b2   : > { %13035 = vmatprep.mubr.f32.mxu0 %v2866_v59  ;;  %14574 = vmatpush3.bf16.xpose.msk.msra.mxu1 %vm17253_vm2, %v14569_v2  ;;  %v18274_v50 = vpop.eup %15807 }
 0x4b3   : > { %v2635_v10 = vmul.f32 1.442695, %v2530_v53  ;;  %v22299_v53 = vld [vmem:[#allocation176_spill] sm:$0xff] }
 0x4b4   : > { %v2531_v8 = vsub.f32 %v22299_v53, %v22298_v3 }
 0x4b5   : > { %15809 = vpow2.f32 %v2635_v10 }
 0x4b6   : > { %2755 = vadd.xlane.f32.xlu0 %v18264_v22 }
 0x4ba   : > { %2759 = vadd.xlane.f32.xlu0 %v18267_v43 }
 0x4bf   : > { %v18279_v29 = vpop.eup %15809 }
 0x4ce   : > { %2757 = vadd.xlane.f32.xlu1 %v18274_v50 }
 0x4d0   : > { %15349 = vrot.lane.b32.xlu0 %v22289_v18, %s16202_s3 }
 0x4d2   : > { %2763 = vadd.xlane.f32.xlu1 %v18279_v29 }
 0x4d5   : > { %v2740_v39 = vpop.xlane.xlu0 %2739 }
 0x4d6   : > { %15811 = vrcp.f32 %v2740_v39 }
 0x4d9   : > { %v15320_v27 = vpop.permute.xlu0 %15319 }
 0x4da   : > { %v15322_v4 = vunpack.i.h.bf16 %v15320_v27  ;;  %v15321_v33 = vunpack.i.l.bf16 %v15320_v27 }
 0x4dc   : > { %v14545_v46 = vpack.c.bf16 %v15322_v4, %v15321_v33  ;;  %v22300_v33 = vld [vmem:[#allocation80_spill] sm:$0xff] }
 0x4dd   : > { %v2742_v48 = vpop.xlane.xlu1 %2741 }
 0x4de   : > { %15813 = vrcp.f32 %v2742_v48  ;;  %14546 = vmatprep.subr.bf16.mxu0 %v14545_v46 }
 0x4df   : > { %14548 = vmatpush3.bf16.msra.mxu0 %v14545_v46 }
 0x4e0   : > { %v15812_v63 = vpop.eup %15811 }
 0x4e1   : > { %v2744_v0 = vpop.xlane.xlu1 %2743  ;;  %v2868_v13 = vmul.f32 %v15812_v63, %v18170_v11  ;;  %v2534_v11 = vsub.f32 %v22297_v54, %v22296_v61 }
 0x4e2   : > { %15815 = vrcp.f32 %v2744_v0  ;;  %v22305_v0 = vld [vmem:[#allocation180_spill] sm:$0xff] }
 0x4e3   : > { %15354 = vrot.lane.b32.xlu1 %v22292_v35, %s16202_s3  ;;  %13036 = vmatmul.mubr.f32.gmra.mrb[108].mxu0 %v2868_v13  ;;  %15817 = vpow2.f32 %v2633_v19  ;;  %v2643_v9 = vmul.f32 1.442695, %v2534_v11  ;;  %v2535_v13 = vsub.f32 %v22305_v0, %v22304_v42  ;;  %s16204_s3 = smov 112  }
 0x4e5   : > { %v2778_v44 = vpop.xlane.xlu1 %2777  ;;  %v2645_v56 = vmul.f32 1.442695, %v2535_v13  ;;  %v22322_v13 = vld [vmem:[#allocation83_spill] sm:$0xff] }
 0x4e6   : > { %15819 = vrcp.f32 %v2778_v44 }
 0x4e7   : > { %15359 = vrot.lane.b32.xlu1 %v22295_v31, %s16203_s13  ;;  %15821 = vpow2.f32 %v2639_v58 }
 0x4e8   : > { %v15814_v36 = vpop.eup %15813  ;;  %15823 = vpow2.f32 %v2641_v51 }
 0x4e9   : > { %v15325_v17 = vpop.permute.xlu1 %15324  ;;  %v2870_v26 = vmul.f32 %v15814_v36, %v18180_v57  ;;  %15825 = vpow2.f32 %v2643_v9 }
 0x4ea   : > { %v15327_v14 = vunpack.i.h.bf16 %v15325_v17  ;;  %v15326_v52 = vunpack.i.l.bf16 %v15325_v17 }
 0x4eb   : > { %13038 = vmatprep.mubr.f32.mxu0 %v2870_v26 }
 0x4ec   : > { %v15816_v38 = vpop.eup %15815  ;;  %v14549_v40 = vpack.c.bf16 %v15327_v14, %v15326_v52 }
 0x4ed   : > { %v15330_v47 = vpop.permute.xlu1 %15329  ;;  %v2872_v62 = vmul.f32 %v15816_v38, %v18187_v49  ;;  %v18297_v25 = vpop.eup %15817 }
 0x4ee   : > { %v15332_v16 = vunpack.i.h.bf16 %v15330_v47  ;;  %v15331_v21 = vunpack.i.l.bf16 %v15330_v47  ;;  %14550 = vmatprep.subr.bf16.mxu0 %v14549_v40 }
 0x4ef   : > { %2761 = vadd.xlane.f32.xlu0 %v18297_v25  ;;  %13039 = vmatmul.mubr.f32.gmra.mrb[110].mxu0 %v2872_v62 }
 0x4f0   : > { %v15820_v2 = vpop.eup %15819  ;;  %v14575_v57 = vpack.c.bf16 %v15332_v16, %v15331_v21  ;;  %14552 = vmatpush3.bf16.msra.mxu0 %v14549_v40  ;;  %v22310_v16 = vld [vmem:[#allocation200_spill] sm:$0xff]  ;;  %v22311_v21 = vld [vmem:[#allocation182_spill] sm:$0xff] }
 0x4f1   : > { %v2906_v59 = vmul.f32 %v15820_v2, %v18192_v6  ;;  %v18301_v37 = vpop.eup %15821  ;;  %v2637_v6 = vmul.f32 1.442695, %v2531_v8  ;;  %v2536_v2 = vsub.f32 %v22311_v21, %v22310_v16 }
 0x4f2   : > { %14577 = vmatprep.subr.msk.bf16.mxu1 %vm17253_vm2, %v14575_v57  ;;  %v18308_v49 = vpop.eup %15823 }
 0x4f3   : > { %2767 = vadd.xlane.f32.xlu0 %v18301_v37  ;;  %13129 = vmatprep.mubr.f32.mxu0 %v2906_v59  ;;  %v18313_v10 = vpop.eup %15825  ;;  %15827 = vpow2.f32 %v2637_v6 }
 0x4f4   : > { %14580 = vmatpush3.bf16.xpose.msk.msra.mxu1 %vm17253_vm2, %v14575_v57 }
 0x4f7   : > { %2769 = vadd.xlane.f32.xlu0 %v18308_v49 }
 0x4fb   : > { %2771 = vadd.xlane.f32.xlu0 %v18313_v10 }
 0x4fd   : > { %v18316_v39 = vpop.eup %15827 }
 0x50a   : > { %v18318_v27 = vpop.xlane.xlu0 %2779 }
 0x50b   : > { %2765 = vadd.xlane.f32.xlu1 %v18316_v39 }
 0x50e   : > { %v2752_v4 = vpop.xlane.xlu0 %2751 }
 0x50f   : > { %15829 = vrcp.f32 %v2752_v4 }
 0x511   : > { %15364 = vrot.lane.b32.xlu0 %v22300_v33, %s16203_s13 }
 0x512   : > { %v15335_v30 = vpop.permute.xlu0 %15334 }
 0x513   : > { %v15337_v20 = vunpack.i.h.bf16 %v15335_v30  ;;  %v15336_v46 = vunpack.i.l.bf16 %v15335_v30 }
 0x515   : > { %v14553_v48 = vpack.c.bf16 %v15337_v20, %v15336_v46 }
 0x517   : > { %14554 = vmatprep.subr.bf16.mxu0 %v14553_v48 }
 0x518   : > { %14556 = vmatpush3.bf16.msra.mxu0 %v14553_v48 }
 0x519   : > { %v18323_v63 = vpop.f32.mrb[80].mxu0  ;;  %v15830_v17 = vpop.eup %15829 }
 0x51a   : > { %22301 = vst [vmem:[#allocation165_spill] sm:$0xff] %v18323_v63  ;;  %v18325_v19 = vpop.f32.mrb[81].mxu0  ;;  %v2880_v47 = vmul.f32 %v15830_v17, %v18226_v5  ;;  %v2647_v5 = vmul.f32 1.442695, %v2536_v2  ;;  %v19056_v63 = vld [vmem:[%s21623_s1 + $0x1b0] sm:$0xff] }
 0x51b   : > { %22302 = vst [vmem:[#allocation166_spill] sm:$0xff] %v18325_v19 }
 0x51c   : > { %15369 = vrot.lane.b32.xlu1 %v22303_v45, %s16203_s13 }
 0x51e   : > { %v2750_v58 = vpop.xlane.xlu1 %2749 }
 0x51f   : > { %15831 = vrcp.f32 %v2750_v58 }
 0x521   : > { %v18331_v41 = vpop.f32.mrb[82].mxu0 }
 0x522   : > { %22306 = vst [vmem:[#allocation164_spill] sm:$0xff] %v18331_v41  ;;  %v2754_v23 = vpop.xlane.xlu1 %2753  ;;  %v18333_v44 = vpop.f32.mrb[83].mxu0  ;;  %v19046_v41 = vld [vmem:[%s21623_s1 + $0x198] sm:$0xff] }
 0x523   : > { %22307 = vst [vmem:[#allocation167_spill] sm:$0xff] %v18333_v44  ;;  %15833 = vrcp.f32 %v2754_v23 }
 0x524   : > { %15835 = vpow2.f32 %v2645_v56 }
 0x525   : > { %v18335_v36 = vpop.f32.mrb[84].mxu0  ;;  %15837 = vpow2.f32 %v2647_v5 }
 0x526   : > { %22308 = vst [vmem:[#allocation168_spill] sm:$0xff] %v18335_v36  ;;  %v15340_v61 = vpop.permute.xlu1 %15339  ;;  %v18337_v54 = vpop.f32.mrb[85].mxu0  ;;  %v19038_v36 = vld [vmem:[%s21623_s1 + $0x1a0] sm:$0xff] }
 0x527   : > { %22309 = vst [vmem:[#allocation169_spill] sm:$0xff] %v18337_v54  ;;  %v15342_v11 = vunpack.i.h.bf16 %v15340_v61  ;;  %v15341_v51 = vunpack.i.l.bf16 %v15340_v61 }
 0x529   : > { %v15832_v26 = vpop.eup %15831  ;;  %v14557_v14 = vpack.c.bf16 %v15342_v11, %v15341_v51 }
 0x52a   : > { %v15345_v52 = vpop.permute.xlu1 %15344  ;;  %v2878_v38 = vmul.f32 %v15832_v26, %v18236_v7  ;;  %v22323_v26 = vld [vmem:[#allocation95_spill] sm:$0xff] }
 0x52b   : > { %v15347_v9 = vunpack.i.h.bf16 %v15345_v52  ;;  %v15346_v40 = vunpack.i.l.bf16 %v15345_v52  ;;  %14558 = vmatprep.subr.bf16.mxu0 %v14557_v14  ;;  %v22325_v52 = vld [vmem:[#allocation186_spill] sm:$0xff] }
 0x52c   : > { %13076 = vmatprep.mubr.f32.mxu1 %v2878_v38  ;;  %14560 = vmatpush3.bf16.msra.mxu0 %v14557_v14  ;;  %v22324_v14 = vld [vmem:[#allocation204_spill] sm:$0xff] }
 0x52d   : > { %v15834_v62 = vpop.eup %15833  ;;  %v14581_v57 = vpack.c.bf16 %v15347_v9, %v15346_v40  ;;  %v18343_v59 = vpop.f32.mrb[86].mxu0  ;;  %13077 = vmatmul.mubr.f32.gmra.mrb[50].mxu1 %v2880_v47  ;;  %v2539_v38 = vsub.f32 %v22325_v52, %v22324_v14  ;;  %v22328_v47 = vld [vmem:[#allocation203_spill] sm:$0xff] }
 0x52e   : > { %22312 = vst [vmem:[#allocation170_spill] sm:$0xff] %v18343_v59  ;;  %v18345_v3 = vpop.f32.mrb[87].mxu0  ;;  %v2882_v53 = vmul.f32 %v15834_v62, %v18240_v24  ;;  %v18348_v7 = vpop.eup %15835  ;;  %v22329_v62 = vld [vmem:[#allocation184_spill] sm:$0xff]  ;;  %v19028_v59 = vld [vmem:[%s21623_s1 + $0x188] sm:$0xff] }
 0x52f   : > { %22313 = vst [vmem:[#allocation171_spill] sm:$0xff] %v18345_v3  ;;  %14583 = vmatprep.subr.msk.bf16.mxu1 %vm17253_vm2, %v14581_v57  ;;  %v18369_v48 = vpop.eup %15837  ;;  %v2541_v16 = vsub.f32 %v22329_v62, %v22328_v47  ;;  %v2653_v21 = vmul.f32 1.442695, %v2539_v38 }
 0x530   : > { %2773 = vadd.xlane.f32.xlu0 %v18348_v7  ;;  %13079 = vmatprep.mubr.f32.mxu1 %v2882_v53  ;;  %v22332_v53 = vld [vmem:[#allocation187_spill] sm:$0xff] }
 0x531   : > { %14586 = vmatpush3.bf16.xpose.msk.msra.mxu1 %vm17253_vm2, %v14581_v57  ;;  %v18355_v8 = vpop.f32.mrb[88].mxu0  ;;  %v2657_v2 = vmul.f32 1.442695, %v2541_v16 }
 0x532   : > { %22314 = vst [vmem:[#allocation71_spill] sm:$0xff] %v18355_v8  ;;  %v18357_v6 = vpop.f32.mrb[89].mxu0  ;;  %v19020_v8 = vld [vmem:[%s21623_s1 + $0x190] sm:$0xff] }
 0x533   : > { %22315 = vst [vmem:[#allocation163_spill] sm:$0xff] %v18357_v6 }
 0x535   : > { %v18359_v4 = vpop.f32.mrb[90].mxu0 }
 0x536   : > { %22316 = vst [vmem:[#allocation172_spill] sm:$0xff] %v18359_v4  ;;  %v18361_v24 = vpop.f32.mrb[91].mxu0  ;;  %v19010_v4 = vld [vmem:[%s21623_s1 + $0x178] sm:$0xff] }
 0x537   : > { %22317 = vst [vmem:[#allocation174_spill] sm:$0xff] %v18361_v24 }
 0x539   : > { %v18363_v30 = vpop.f32.mrb[92].mxu0 }
 0x53a   : > { %22318 = vst [vmem:[#allocation173_spill] sm:$0xff] %v18363_v30  ;;  %v18365_v20 = vpop.f32.mrb[93].mxu0 }
 0x53b   : > { %22319 = vst [vmem:[#allocation74_spill] sm:$0xff] %v18365_v20 }
 0x53d   : > { %v18367_v46 = vpop.f32.mrb[94].mxu0 }
 0x53e   : > { %22320 = vst [vmem:[#allocation157_spill] sm:$0xff] %v18367_v46  ;;  %v18371_v42 = vpop.f32.mrb[95].mxu0 }
 0x53f   : > { %22321 = vst [vmem:[#allocation175_spill] sm:$0xff] %v18371_v42 }
 0x540   : > { %2775 = vadd.xlane.f32.xlu1 %v18369_v48 }
 0x543   : > { %v2756_v0 = vpop.xlane.xlu0 %2755 }
 0x544   : > { %15839 = vrcp.f32 %v2756_v0 }
 0x545   : > { %15841 = vpow2.f32 %v2653_v21 }
 0x546   : > { %15374 = vrot.lane.b32.xlu0 %v22322_v13, %s16203_s13 }
 0x547   : > { %v2760_v58 = vpop.xlane.xlu0 %2759 }
 0x548   : > { %15843 = vrcp.f32 %v2760_v58 }
 0x54b   : > { %v15350_v56 = vpop.permute.xlu0 %15349 }
 0x54c   : > { %v15352_v23 = vunpack.i.h.bf16 %v15350_v56  ;;  %v15351_v61 = vunpack.i.l.bf16 %v15350_v56 }
 0x54e   : > { %v15840_v11 = vpop.eup %15839  ;;  %v14561_v51 = vpack.c.bf16 %v15352_v23, %v15351_v61 }
 0x54f   : > { %v2884_v17 = vmul.f32 %v15840_v11, %v18264_v22  ;;  %v22331_v22 = vld [vmem:[#allocation206_spill] sm:$0xff]  ;;  %v18400_v47 = vpop.eup %15841 }
 0x550   : > { %14562 = vmatprep.subr.bf16.mxu0 %v14561_v51  ;;  %v2542_v5 = vsub.f32 %v22332_v53, %v22331_v22  ;;  %v22334_v11 = vld [vmem:[#allocation202_spill] sm:$0xff] }
 0x551   : > { %15379 = vrot.lane.b32.xlu1 %v22323_v26, %s16203_s13  ;;  %13080 = vmatmul.mubr.f32.gmra.mrb[52].mxu1 %v2884_v17 }
 0x552   : > { %14564 = vmatpush3.bf16.msra.mxu0 %v14561_v51  ;;  %v18381_v9 = vpop.f32.mrb[96].mxu0  ;;  %v2659_v23 = vmul.f32 1.442695, %v2542_v5  ;;  %v22335_v51 = vld [vmem:[#allocation183_spill] sm:$0xff]  ;;  %v15844_v16 = vpop.eup %15843 }
 0x553   : > { %22326 = vst [vmem:[#allocation177_spill] sm:$0xff] %v18381_v9  ;;  %v18383_v40 = vpop.f32.mrb[97].mxu0  ;;  %v2540_v17 = vsub.f32 %v22335_v51, %v22334_v11 }
 0x554   : > { %22327 = vst [vmem:[#allocation178_spill] sm:$0xff] %v18383_v40 }
 0x559   : > { %v18387_v57 = vpop.f32.mrb[48].mxu1 }
 0x55a   : > { %22330 = vst [vmem:[#allocation199_spill] sm:$0xff] %v18387_v57  ;;  %v18391_v0 = vpop.f32.mrb[49].mxu1 }
 0x55b   : > { %22333 = vst [vmem:[#allocation181_spill] sm:$0xff] %v18391_v0  ;;  %v2758_v56 = vpop.xlane.xlu1 %2757 }
 0x55c   : > { %15845 = vrcp.f32 %v2758_v56 }
 0x55d   : > { %15847 = vpow2.f32 %v2657_v2  ;;  %v2655_v2 = vmul.f32 1.442695, %v2540_v17 }
 0x55e   : > { %15849 = vrcp.f32 %v18318_v27 }
 0x55f   : > { %v2764_v61 = vpop.xlane.xlu1 %2763  ;;  %15851 = vpow2.f32 %v2659_v23 }
 0x560   : > { %15853 = vpow2.f32 %v2655_v2 }
 0x561   : > { %v18396_v14 = vpop.f32.mrb[98].mxu0  ;;  %15855 = vrcp.f32 %v2764_v61 }
 0x562   : > { %22336 = vst [vmem:[#allocation77_spill] sm:$0xff] %v18396_v14  ;;  %v18398_v52 = vpop.f32.mrb[99].mxu0 }
 0x563   : > { %22337 = vst [vmem:[#allocation198_spill] sm:$0xff] %v18398_v52  ;;  %v15355_v38 = vpop.permute.xlu1 %15354 }
 0x564   : > { %v15357_v62 = vunpack.i.h.bf16 %v15355_v38  ;;  %v15356_v58 = vunpack.i.l.bf16 %v15355_v38  ;;  %v2888_v38 = vmul.f32 %v15844_v16, %v18267_v43 }
 0x565   : > { %2781 = vadd.xlane.f32.xlu0 %v18400_v47  ;;  %v18403_v27 = vpop.f32.mrb[100].mxu0 }
 0x566   : > { %v15846_v21 = vpop.eup %15845  ;;  %22338 = vst [vmem:[#allocation179_spill] sm:$0xff] %v18403_v27  ;;  %v14565_v22 = vpack.c.bf16 %v15357_v62, %v15356_v58  ;;  %v18407_v5 = vpop.f32.mrb[101].mxu0 }
 0x567   : > { %v18405_v53 = vpop.eup %15847  ;;  %22339 = vst [vmem:[#allocation197_spill] sm:$0xff] %v18407_v5  ;;  %v15360_v56 = vpop.permute.xlu1 %15359  ;;  %v2886_v23 = vmul.f32 %v15846_v21, %v18274_v50  ;;  %v22350_v5 = vld [vmem:[#allocation211_spill] sm:$0xff] }
 0x568   : > { %v15850_v11 = vpop.eup %15849  ;;  %v15362_v51 = vunpack.i.h.bf16 %v15360_v56  ;;  %v15361_v57 = vunpack.i.l.bf16 %v15360_v56  ;;  %14566 = vmatprep.subr.bf16.mxu0 %v14565_v22  ;;  %v22345_v56 = vld [vmem:[#allocation86_spill] sm:$0xff] }
 0x569   : > { %2785 = vadd.xlane.f32.xlu0 %v18405_v53  ;;  %13082 = vmatprep.mubr.f32.mxu1 %v2886_v23  ;;  %v2908_v62 = vmul.f32 %v15850_v11, %v18219_v12  ;;  %v18413_v58 = vpop.eup %15851 }
 0x56a   : > { %v14587_v17 = vpack.c.bf16 %v15362_v51, %v15361_v57  ;;  %14568 = vmatpush3.bf16.msra.mxu0 %v14565_v22  ;;  %13083 = vmatmul.mubr.f32.gmra.mrb[54].mxu1 %v2888_v38  ;;  %v18424_v57 = vpop.eup %15853  ;;  %v22347_v38 = vld [vmem:[#allocation100_spill] sm:$0xff] }
 0x56b   : > { %v15856_v51 = vpop.eup %15855 }
 0x56c   : > { %14589 = vmatprep.subr.msk.bf16.mxu1 %vm17253_vm2, %v14587_v17  ;;  %v2892_v61 = vmul.f32 %v15856_v51, %v18279_v29  ;;  %v22352_v29 = vld [vmem:[#allocation205_spill] sm:$0xff] }
 0x56d   : > { %13130 = vmatmul.mubr.f32.vlgmr.msra.gmra.mrb[112].mxu0 %v2908_v62  ;;  %2787 = vadd.xlane.f32.xlu0 %v18413_v58 }
 0x56e   : > { %14592 = vmatpush3.bf16.xpose.msk.msra.mxu1 %vm17253_vm2, %v14587_v17  ;;  %v18420_v43 = vpop.f32.mrb[102].mxu0 }
 0x56f   : > { %22340 = vst [vmem:[#allocation176_spill] sm:$0xff] %v18420_v43  ;;  %v18422_v50 = vpop.f32.mrb[103].mxu0  ;;  %v22349_v43 = vld [vmem:[#allocation188_spill] sm:$0xff] }
 0x570   : > { %22341 = vst [vmem:[#allocation80_spill] sm:$0xff] %v18422_v50 }
 0x575   : > { %2783 = vadd.xlane.f32.xlu1 %v18424_v57 }
 0x576   : > { %v18427_v12 = vpop.f32.mrb[104].mxu0 }
 0x577   : > { %22342 = vst [vmem:[#allocation92_spill] sm:$0xff] %v18427_v12  ;;  %v18429_v16 = vpop.f32.mrb[105].mxu0 }
 0x578   : > { %22343 = vst [vmem:[#allocation201_spill] sm:$0xff] %v18429_v16  ;;  %v22348_v16 = vld [vmem:[#allocation207_spill] sm:$0xff] }
 0x579   : > { %v2543_v50 = vsub.f32 %v22349_v43, %v22348_v16 }
 0x57b   : > { %v2661_v27 = vmul.f32 1.442695, %v2543_v50 }
 0x57c   : > { %v2762_v21 = vpop.xlane.xlu0 %2761 }
 0x57d   : > { %15857 = vrcp.f32 %v2762_v21 }
 0x57e   : > { %15859 = vpow2.f32 %v2661_v27 }
 0x580   : > { %v2768_v2 = vpop.xlane.xlu0 %2767 }
 0x581   : > { %15861 = vrcp.f32 %v2768_v2 }
 0x582   : > { %v18431_v22 = vpop.f32.mrb[106].mxu0 }
 0x583   : > { %22344 = vst [vmem:[#allocation180_spill] sm:$0xff] %v18431_v22  ;;  %15384 = vrot.lane.b32.xlu0 %v22345_v56, %s16203_s13  ;;  %v18435_v23 = vpop.f32.mrb[107].mxu0 }
 0x584   : > { %22346 = vst [vmem:[#allocation200_spill] sm:$0xff] %v18435_v23  ;;  %v2770_v11 = vpop.xlane.xlu0 %2769 }
 0x585   : > { %15863 = vrcp.f32 %v2770_v11 }
 0x586   : > { %15389 = vrot.lane.b32.xlu1 %v22347_v38, %s16203_s13 }
 0x587   : > { %v15858_v17 = vpop.eup %15857 }
 0x588   : > { %v2772_v62 = vpop.xlane.xlu0 %2771  ;;  %v2890_v0 = vmul.f32 %v15858_v17, %v18297_v25  ;;  %v22351_v25 = vld [vmem:[#allocation192_spill] sm:$0xff] }
 0x589   : > { %v2545_v17 = vsub.f32 %v22351_v25, %v22350_v5  ;;  %v18453_v25 = vpop.eup %15859 }
 0x58a   : > { %13085 = vmatprep.mubr.f32.mxu1 %v2890_v0  ;;  %v22353_v0 = vld [vmem:[#allocation185_spill] sm:$0xff] }
 0x58b   : > { %13086 = vmatmul.mubr.f32.gmra.mrb[56].mxu1 %v2892_v61  ;;  %v2544_v51 = vsub.f32 %v22353_v0, %v22352_v29  ;;  %v22354_v61 = vld [vmem:[#allocation209_spill] sm:$0xff]  ;;  %v2665_v52 = vmul.f32 1.442695, %v2545_v17  ;;  %v15862_v27 = vpop.eup %15861 }
 0x58c   : > { %v15365_v21 = vpop.permute.xlu0 %15364 }
 0x58d   : > { %v15367_v22 = vunpack.i.h.bf16 %v15365_v21  ;;  %v15366_v12 = vunpack.i.l.bf16 %v15365_v21  ;;  %v22355_v21 = vld [vmem:[#allocation190_spill] sm:$0xff] }
 0x58e   : > { %v2546_v14 = vsub.f32 %v22355_v21, %v22354_v61  ;;  %v22358_v21 = vld [vmem:[#allocation101_spill] sm:$0xff] }
 0x58f   : > { %v14593_v23 = vpack.c.bf16 %v15367_v22, %v15366_v12  ;;  %v2663_v12 = vmul.f32 1.442695, %v2544_v51  ;;  %v15864_v2 = vpop.eup %15863 }
 0x590   : > { %v2667_v50 = vmul.f32 1.442695, %v2546_v14  ;;  %v2898_v29 = vmul.f32 %v15864_v2, %v18308_v49  ;;  %v22362_v2 = vld [vmem:[#allocation208_spill] sm:$0xff] }
 0x591   : > { %14595 = vmatprep.subr.msk.bf16.mxu1 %vm17253_vm2, %v14593_v23 }
 0x592   : > { %14598 = vmatpush3.bf16.xpose.msk.msra.mxu1 %vm17253_vm2, %v14593_v23 }
 0x598   : > { %v2766_v43 = vpop.xlane.xlu1 %2765 }
 0x599   : > { %15865 = vrcp.f32 %v2766_v43  ;;  %v22359_v43 = vld [vmem:[#allocation89_spill] sm:$0xff] }
 0x59a   : > { %15867 = vpow2.f32 %v2665_v52 }
 0x59b   : > { %15869 = vrcp.f32 %v2772_v62  ;;  %v2896_v62 = vmul.f32 %v15862_v27, %v18301_v37 }
 0x59c   : > { %v15370_v16 = vpop.permute.xlu1 %15369  ;;  %15871 = vpow2.f32 %v2663_v12 }
 0x59d   : > { %v15372_v22 = vunpack.i.h.bf16 %v15370_v16  ;;  %v15371_v23 = vunpack.i.l.bf16 %v15370_v16  ;;  %15873 = vpow2.f32 %v2667_v50 }
 0x59f   : > { %v14617_v5 = vpack.c.bf16 %v15372_v22, %v15371_v23 }
 0x5a1   : > { %14619 = vmatprep.subr.msk.bf16.mxu0 %vm17253_vm2, %v14617_v5 }
 0x5a2   : > { %2789 = vadd.xlane.f32.xlu0 %v18453_v25  ;;  %14622 = vmatpush3.bf16.xpose.msk.msra.mxu0 %vm17253_vm2, %v14617_v5 }
 0x5a3   : > { %v15866_v14 = vpop.eup %15865 }
 0x5a4   : > { %v2894_v52 = vmul.f32 %v15866_v14, %v18316_v39  ;;  %v18461_v11 = vpop.eup %15867  ;;  %v22363_v14 = vld [vmem:[#allocation189_spill] sm:$0xff] }
 0x5a5   : > { %v15870_v17 = vpop.eup %15869 }
 0x5a6   : > { %2793 = vadd.xlane.f32.xlu0 %v18461_v11  ;;  %13088 = vmatprep.mubr.f32.mxu1 %v2894_v52  ;;  %v18466_v0 = vpop.eup %15871  ;;  %v2900_v61 = vmul.f32 %v15870_v17, %v18313_v10  ;;  %v2548_v52 = vsub.f32 %v22363_v14, %v22362_v2  ;;  %v22365_v17 = vld [vmem:[#allocation194_spill] sm:$0xff] }
 0x5a7   : > { %13089 = vmatmul.mubr.f32.gmra.mrb[58].mxu1 %v2896_v62  ;;  %v18468_v51 = vpop.eup %15873  ;;  %v22364_v62 = vld [vmem:[#allocation213_spill] sm:$0xff] }
 0x5a8   : > { %13091 = vmatprep.mubr.f32.mxu1 %v2898_v29  ;;  %v2547_v29 = vsub.f32 %v22365_v17, %v22364_v62 }
 0x5aa   : > { %2791 = vadd.xlane.f32.xlu1 %v18466_v0  ;;  %2795 = vadd.xlane.f32.xlu0 %v18468_v51 }
 0x5ab   : > { %13092 = vmatmul.mubr.f32.gmra.mrb[60].mxu1 %v2900_v61 }
 0x5b6   : > { %v18473_v37 = vpop.f32.mrb[108].mxu0 }
 0x5b7   : > { %22356 = vst [vmem:[#allocation182_spill] sm:$0xff] %v18473_v37  ;;  %v18475_v39 = vpop.f32.mrb[109].mxu0 }
 0x5b8   : > { %22357 = vst [vmem:[#allocation83_spill] sm:$0xff] %v18475_v39  ;;  %v22368_v39 = vld [vmem:[#allocation210_spill] sm:$0xff] }
 0x5bb   : > { %15399 = vrot.lane.b32.xlu1 %v22358_v21, %s16203_s13 }
 0x5bd   : > { %v2774_v49 = vpop.xlane.xlu0 %2773 }
 0x5be   : > { %15875 = vrcp.f32 %v2774_v49  ;;  %v2671_v49 = vmul.f32 1.442695, %v2548_v52 }
 0x5c0   : > { %15394 = vrot.lane.b32.xlu0 %v22359_v43, %s16203_s13 }
 0x5c1   : > { %v15375_v12 = vpop.permute.xlu0 %15374 }
 0x5c2   : > { %v15377_v50 = vunpack.i.h.bf16 %v15375_v12  ;;  %v15376_v10 = vunpack.i.l.bf16 %v15375_v12  ;;  %v18481_v16 = vpop.f32.mrb[110].mxu0  ;;  %v2669_v12 = vmul.f32 1.442695, %v2547_v29  ;;  %v22371_v29 = vld [vmem:[#allocation67_spill] sm:$0xff] }
 0x5c3   : > { %22360 = vst [vmem:[#allocation204_spill] sm:$0xff] %v18481_v16  ;;  %v18483_v22 = vpop.f32.mrb[111].mxu0 }
 0x5c4   : > { %22361 = vst [vmem:[#allocation186_spill] sm:$0xff] %v18483_v22  ;;  %v14599_v23 = vpack.c.bf16 %v15377_v50, %v15376_v10  ;;  %v22366_v50 = vld [vmem:[#allocation215_spill] sm:$0xff] }
 0x5c5   : > { %v22367_v10 = vld [vmem:[#allocation195_spill] sm:$0xff] }
 0x5c6   : > { %14601 = vmatprep.subr.msk.bf16.mxu1 %vm17253_vm2, %v14599_v23  ;;  %v2549_v16 = vsub.f32 %v22367_v10, %v22366_v50  ;;  %v22372_v50 = vld [vmem:[#allocation113_spill] sm:$0xff] }
 0x5c7   : > { %14604 = vmatpush3.bf16.xpose.msk.msra.mxu1 %vm17253_vm2, %v14599_v23 }
 0x5c8   : > { %v15876_v5 = vpop.eup %15875  ;;  %v2673_v2 = vmul.f32 1.442695, %v2549_v16 }
 0x5c9   : > { %v2902_v27 = vmul.f32 %v15876_v5, %v18348_v7  ;;  %v22369_v7 = vld [vmem:[#allocation191_spill] sm:$0xff] }
 0x5ca   : > { %v2550_v5 = vsub.f32 %v22369_v7, %v22368_v39 }
 0x5cb   : > { %13094 = vmatprep.mubr.f32.mxu1 %v2902_v27 }
 0x5cc   : > { %v2675_v52 = vmul.f32 1.442695, %v2550_v5 }
 0x5cd   : > { %v2776_v61 = vpop.xlane.xlu1 %2775 }
 0x5ce   : > { %15877 = vrcp.f32 %v2776_v61 }
 0x5cf   : > { %15879 = vpow2.f32 %v2671_v49 }
 0x5d0   : > { %15881 = vpow2.f32 %v2669_v12 }
 0x5d1   : > { %v15380_v22 = vpop.permute.xlu1 %15379  ;;  %15883 = vpow2.f32 %v2673_v2 }
 0x5d2   : > { %v15382_v37 = vunpack.i.h.bf16 %v15380_v22  ;;  %v15381_v23 = vunpack.i.l.bf16 %v15380_v22  ;;  %15885 = vpow2.f32 %v2675_v52 }
 0x5d4   : > { %v14623_v27 = vpack.c.bf16 %v15382_v37, %v15381_v23 }
 0x5d6   : > { %14625 = vmatprep.subr.msk.bf16.mxu0 %vm17253_vm2, %v14623_v27 }
 0x5d7   : > { %14628 = vmatpush3.bf16.xpose.msk.msra.mxu0 %vm17253_vm2, %v14623_v27 }
 0x5d8   : > { %v15878_v14 = vpop.eup %15877 }
 0x5d9   : > { %v2904_v62 = vmul.f32 %v15878_v14, %v18369_v48  ;;  %v18503_v22 = vpop.eup %15879  ;;  %v22370_v48 = vld [vmem:[#allocation106_spill] sm:$0xff] }
 0x5da   : > { %v18505_v17 = vpop.eup %15881  ;;  %v22374_v14 = vld [vmem:[#allocation66_spill] sm:$0xff] }
 0x5db   : > { %13095 = vmatmul.mubr.f32.gmra.mrb[62].mxu1 %v2904_v62  ;;  %v18509_v37 = vpop.eup %15883 }
 0x5dc   : > { %v18512_v39 = vpop.eup %15885 }
 0x5df   : > { %2799 = vadd.xlane.f32.xlu1 %v18503_v22  ;;  %2797 = vadd.xlane.f32.xlu0 %v18505_v17 }
 0x5e3   : > { %2801 = vadd.xlane.f32.xlu0 %v18509_v37 }
 0x5e7   : > { %2803 = vadd.xlane.f32.xlu0 %v18512_v39 }
 0x5f0   : > { %15404 = vrot.lane.b32.xlu1 %v22370_v48, %s16203_s13 }
 0x5f2   : > { %v2782_v16 = vpop.xlane.xlu0 %2781 }
 0x5f3   : > { %15887 = vrcp.f32 %v2782_v16  ;;  %v22377_v16 = vld [vmem:[#allocation196_spill] sm:$0xff] }
 0x5f4   : > { %3709 = vrot.lane.b32.xlu1 %v22371_v29, %s16204_s3 }
 0x5f6   : > { %v2786_v61 = vpop.xlane.xlu0 %2785 }
 0x5f7   : > { %15889 = vrcp.f32 %v2786_v61 }
 0x5fa   : > { %v2788_v49 = vpop.xlane.xlu0 %2787 }
 0x5fd   : > { %v15888_v12 = vpop.eup %15887  ;;  %15409 = vrot.lane.b32.xlu0 %v22372_v50, %s16203_s13 }
 0x5fe   : > { %v15385_v10 = vpop.permute.xlu0 %15384  ;;  %v2910_v23 = vmul.f32 %v15888_v12, %v18400_v47  ;;  %v22376_v47 = vld [vmem:[#allocation214_spill] sm:$0xff] }
 0x5ff   : > { %v15387_v7 = vunpack.i.h.bf16 %v15385_v10  ;;  %v15386_v5 = vunpack.i.l.bf16 %v15385_v10  ;;  %v2551_v29 = vsub.f32 %v22377_v16, %v22376_v47 }
 0x600   : > { %v18522_v2 = vpop.f32.mrb[50].mxu1  ;;  %13132 = vmatprep.mubr.f32.mxu0 %v2910_v23 }
 0x601   : > { %22373 = vst [vmem:[#allocation203_spill] sm:$0xff] %v18522_v2  ;;  %v14605_v27 = vpack.c.bf16 %v15387_v7, %v15386_v5  ;;  %3711 = vrot.lane.b32.xlu0 %v22374_v14, %s16204_s3  ;;  %v18526_v52 = vpop.f32.mrb[51].mxu1  ;;  %v2677_v7 = vmul.f32 1.442695, %v2551_v29  ;;  %v15890_v61 = vpop.eup %15889  ;;  %v22379_v2 = vld [vmem:[#allocation193_spill] sm:$0xff] }
 0x602   : > { %22375 = vst [vmem:[#allocation184_spill] sm:$0xff] %v18526_v52  ;;  %v2784_v62 = vpop.xlane.xlu1 %2783  ;;  %v2914_v16 = vmul.f32 %v15890_v61, %v18405_v53  ;;  %v22382_v53 = vld [vmem:[#allocation70_spill] sm:$0xff] }
 0x603   : > { %15891 = vrcp.f32 %v2784_v62  ;;  %14607 = vmatprep.subr.msk.bf16.mxu1 %vm17253_vm2, %v14605_v27  ;;  %v22378_v62 = vld [vmem:[#allocation212_spill] sm:$0xff]  ;;  %22482 = vst [vmem:[#allocation70_spill] sm:$0xff] %v19010_v4 }
 0x604   : > { %14610 = vmatpush3.bf16.xpose.msk.msra.mxu1 %vm17253_vm2, %v14605_v27  ;;  %15893 = vrcp.f32 %v2788_v49  ;;  %v2552_v27 = vsub.f32 %v22379_v2, %v22378_v62  ;;  %v22386_v62 = vld [vmem:[#allocation69_spill] sm:$0xff] }
 0x605   : > { %15895 = vpow2.f32 %v2677_v7  ;;  %v22383_v7 = vld [vmem:[#allocation107_spill] sm:$0xff]  ;;  %22484 = vst [vmem:[#allocation69_spill] sm:$0xff] %v19028_v59 }
 0x606   : > { %v15390_v12 = vpop.permute.xlu1 %15389  ;;  %v2679_v29 = vmul.f32 1.442695, %v2552_v27 }
 0x607   : > { %v15392_v10 = vunpack.i.h.bf16 %v15390_v12  ;;  %v15391_v23 = vunpack.i.l.bf16 %v15390_v12 }
 0x608   : > { %15897 = vpow2.f32 %v2679_v29  ;;  %v22388_v29 = vld [vmem:[#allocation73_spill] sm:$0xff] }
 0x609   : > { %v14629_v5 = vpack.c.bf16 %v15392_v10, %v15391_v23 }
 0x60b   : > { %14631 = vmatprep.subr.msk.bf16.mxu0 %vm17253_vm2, %v14629_v5 }
 0x60c   : > { %14634 = vmatpush3.bf16.xpose.msk.msra.mxu0 %vm17253_vm2, %v14629_v5  ;;  %v22384_v5 = vld [vmem:[#allocation119_spill] sm:$0xff] }
 0x60d   : > { %v15892_v14 = vpop.eup %15891 }
 0x60e   : > { %v2912_v47 = vmul.f32 %v15892_v14, %v18424_v57  ;;  %v15894_v49 = vpop.eup %15893  ;;  %v22385_v14 = vld [vmem:[#allocation72_spill] sm:$0xff] }
 0x60f   : > { %v2916_v12 = vmul.f32 %v15894_v49, %v18413_v58  ;;  %v18543_v10 = vpop.eup %15895  ;;  %v22387_v49 = vld [vmem:[#allocation75_spill] sm:$0xff]  ;;  %22483 = vst [vmem:[#allocation72_spill] sm:$0xff] %v19020_v8 }
 0x610   : > { %13133 = vmatmul.mubr.f32.gmra.mrb[114].mxu0 %v2912_v47  ;;  %22485 = vst [vmem:[#allocation75_spill] sm:$0xff] %v19056_v63 }
 0x611   : > { %13135 = vmatprep.mubr.f32.mxu0 %v2914_v16 }
 0x612   : > { %v18546_v23 = vpop.eup %15897 }
 0x614   : > { %13136 = vmatmul.mubr.f32.gmra.mrb[116].mxu0 %v2916_v12 }
 0x618   : > { %2805 = vadd.xlane.f32.xlu1 %v18543_v10 }
 0x620   : > { %2807 = vadd.xlane.f32.xlu0 %v18546_v23 }
 0x624   : > { %v18549_v2 = vpop.f32.mrb[52].mxu1 }
 0x625   : > { %22380 = vst [vmem:[#allocation206_spill] sm:$0xff] %v18549_v2  ;;  %v18551_v57 = vpop.f32.mrb[53].mxu1 }
 0x626   : > { %22381 = vst [vmem:[#allocation187_spill] sm:$0xff] %v18551_v57 }
 0x629   : > { %3713 = vrot.lane.b32.xlu1 %v22382_v53, %s16204_s3 }
 0x62d   : > { %15414 = vrot.lane.b32.xlu1 %v22383_v7, %s16203_s13 }
 0x62f   : > { %v2790_v58 = vpop.xlane.xlu0 %2789 }
 0x630   : > { %15899 = vrcp.f32 %v2790_v58 }
 0x631   : > { %15419 = vrot.lane.b32.xlu1 %v22384_v5, %s16203_s13 }
 0x633   : > { %v2794_v61 = vpop.xlane.xlu0 %2793 }
 0x634   : > { %15901 = vrcp.f32 %v2794_v61  ;;  %v22389_v61 = vld [vmem:[#allocation126_spill] sm:$0xff] }
 0x635   : > { %3719 = vrot.lane.b32.xlu1 %v22385_v14, %s16204_s3 }
 0x636   : > { %3715 = vrot.lane.b32.xlu0 %v22386_v62, %s16204_s3 }
 0x637   : > { %v2792_v27 = vpop.xlane.xlu1 %2791  ;;  %v2796_v47 = vpop.xlane.xlu0 %2795 }
 0x638   : > { %15903 = vrcp.f32 %v2792_v27 }
 0x639   : > { %3723 = vrot.lane.b32.xlu1 %v22387_v49, %s16204_s3  ;;  %15905 = vrcp.f32 %v2796_v47  ;;  %v22391_v47 = vld [vmem:[#allocation76_spill] sm:$0xff] }
 0x63a   : > { %v15900_v16 = vpop.eup %15899  ;;  %3717 = vrot.lane.b32.xlu0 %v22388_v29, %s16204_s3 }
 0x63b   : > { %v15400_v12 = vpop.permute.xlu1 %15399  ;;  %v15395_v53 = vpop.permute.xlu0 %15394  ;;  %v2918_v58 = vmul.f32 %v15900_v16, %v18453_v25 }
 0x63c   : > { %v15402_v14 = vunpack.i.h.bf16 %v15400_v12  ;;  %v15401_v2 = vunpack.i.l.bf16 %v15400_v12  ;;  %v15397_v57 = vunpack.i.h.bf16 %v15395_v53  ;;  %v15396_v62 = vunpack.i.l.bf16 %v15395_v53  ;;  %v22395_v12 = vld [vmem:[#allocation78_spill] sm:$0xff] }
 0x63d   : > { %15429 = vrot.lane.b32.xlu1 %v22389_v61, %s16203_s13  ;;  %v18570_v27 = vpop.f32.mrb[54].mxu1  ;;  %13138 = vmatprep.mubr.f32.mxu0 %v2918_v58 }
 0x63e   : > { %22390 = vst [vmem:[#allocation202_spill] sm:$0xff] %v18570_v27  ;;  %v14635_v49 = vpack.c.bf16 %v15402_v14, %v15401_v2  ;;  %v14611_v52 = vpack.c.bf16 %v15397_v57, %v15396_v62  ;;  %3721 = vrot.lane.b32.xlu0 %v22391_v47, %s16204_s3  ;;  %v18574_v29 = vpop.f32.mrb[55].mxu1  ;;  %v15902_v25 = vpop.eup %15901  ;;  %v22396_v57 = vld [vmem:[#allocation112_spill] sm:$0xff]  ;;  %v22397_v62 = vld [vmem:[#allocation81_spill] sm:$0xff]  ;;  %v22398_v47 = vld [vmem:[#allocation79_spill] sm:$0xff] }
 0x63f   : > { %22392 = vst [vmem:[#allocation183_spill] sm:$0xff] %v18574_v29  ;;  %v2922_v14 = vmul.f32 %v15902_v25, %v18461_v11  ;;  %v22402_v11 = vld [vmem:[#allocation118_spill] sm:$0xff]  ;;  %v22403_v25 = vld [vmem:[#allocation87_spill] sm:$0xff] }
 0x640   : > { %v18576_v9 = vpop.f32.mrb[112].mxu0  ;;  %14613 = vmatprep.subr.msk.bf16.mxu1 %vm17253_vm2, %v14611_v52  ;;  %14637 = vmatprep.subr.msk.bf16.mxu0 %vm17253_vm2, %v14635_v49 }
 0x641   : > { %22393 = vst [vmem:[#allocation86_spill] sm:$0xff] %v18576_v9  ;;  %v18582_v16 = vpop.f32.mrb[113].mxu0  ;;  %3727 = vrot.lane.b32.xlu1 %v22395_v12, %s16204_s3  ;;  %14616 = vmatpush3.bf16.xpose.msk.msra.mxu1 %vm17253_vm2, %v14611_v52  ;;  %v22400_v12 = vld [vmem:[#allocation82_spill] sm:$0xff] }
 0x642   : > { %22394 = vst [vmem:[#allocation207_spill] sm:$0xff] %v18582_v16  ;;  %v15904_v2 = vpop.eup %15903  ;;  %14640 = vmatpush3.bf16.xpose.msk.msra.mxu0 %vm17253_vm2, %v14635_v49  ;;  %15424 = vrot.lane.b32.xlu0 %v22396_v57, %s16203_s13  ;;  %v22399_v49 = vld [vmem:[#allocation127_spill] sm:$0xff] }
 0x643   : > { %v2920_v53 = vmul.f32 %v15904_v2, %v18466_v0  ;;  %v15906_v58 = vpop.eup %15905  ;;  %v22401_v0 = vld [vmem:[#allocation84_spill] sm:$0xff]  ;;  %v22404_v2 = vld [vmem:[#allocation85_spill] sm:$0xff] }
 0x644   : > { %v2924_v52 = vmul.f32 %v15906_v58, %v18468_v51  ;;  %v22405_v51 = vld [vmem:[#allocation142_spill] sm:$0xff] }
 0x645   : > { %3731 = vrot.lane.b32.xlu1 %v22397_v62, %s16204_s3  ;;  %13139 = vmatmul.mubr.f32.gmra.mrb[118].mxu0 %v2920_v53  ;;  %v22406_v53 = vld [vmem:[#allocation88_spill] sm:$0xff]  ;;  %v22407_v58 = vld [vmem:[#allocation90_spill] sm:$0xff]  ;;  %v22409_v62 = vld [vmem:[#allocation93_spill] sm:$0xff] }
 0x646   : > { %3725 = vrot.lane.b32.xlu0 %v22398_v47, %s16204_s3  ;;  %13141 = vmatprep.mubr.f32.mxu0 %v2922_v14  ;;  %v22408_v14 = vld [vmem:[#allocation128_spill] sm:$0xff]  ;;  %v22410_v47 = vld [vmem:[#allocation91_spill] sm:$0xff] }
 0x649   : > { %15439 = vrot.lane.b32.xlu1 %v22399_v49, %s16203_s13  ;;  %13142 = vmatmul.mubr.f32.gmra.mrb[120].mxu0 %v2924_v52 }
 0x64a   : > { %3729 = vrot.lane.b32.xlu0 %v22400_v12, %s16204_s3 }
 0x64d   : > { %3735 = vrot.lane.b32.xlu1 %v22401_v0, %s16204_s3  ;;  %v22413_v0 = vld [vmem:[#allocation145_spill] sm:$0xff] }
 0x64e   : > { %15434 = vrot.lane.b32.xlu0 %v22402_v11, %s16203_s13 }
 0x651   : > { %3739 = vrot.lane.b32.xlu1 %v22403_v25, %s16204_s3  ;;  %v22414_v25 = vld [vmem:[#allocation94_spill] sm:$0xff] }
 0x652   : > { %3733 = vrot.lane.b32.xlu0 %v22404_v2, %s16204_s3  ;;  %v22415_v2 = vld [vmem:[#allocation96_spill] sm:$0xff] }
 0x655   : > { %15449 = vrot.lane.b32.xlu1 %v22405_v51, %s16203_s13 }
 0x656   : > { %3737 = vrot.lane.b32.xlu0 %v22406_v53, %s16204_s3  ;;  %v22416_v53 = vld [vmem:[#allocation133_spill] sm:$0xff] }
 0x659   : > { %3984 = vrot.lane.b32.xlu1 %v22407_v58, %s16204_s3  ;;  %v22417_v58 = vld [vmem:[#allocation98_spill] sm:$0xff] }
 0x65a   : > { %15444 = vrot.lane.b32.xlu0 %v22408_v14, %s16203_s13 }
 0x65d   : > { %3988 = vrot.lane.b32.xlu1 %v22409_v62, %s16204_s3  ;;  %v22418_v62 = vld [vmem:[#allocation97_spill] sm:$0xff] }
 0x65e   : > { %3982 = vrot.lane.b32.xlu0 %v22410_v47, %s16204_s3  ;;  %v18623_v52 = vpop.f32.mrb[56].mxu1 }
 0x65f   : > { %22411 = vst [vmem:[#allocation188_spill] sm:$0xff] %v18623_v52  ;;  %v18625_v12 = vpop.f32.mrb[57].mxu1 }
 0x660   : > { %22412 = vst [vmem:[#allocation211_spill] sm:$0xff] %v18625_v12 }
 0x661   : > { %15459 = vrot.lane.b32.xlu1 %v22413_v0, %s16203_s13 }
 0x662   : > { %3986 = vrot.lane.b32.xlu0 %v22414_v25, %s16204_s3  ;;  %v22419_v25 = vld [vmem:[#allocation99_spill] sm:$0xff] }
 0x665   : > { %3992 = vrot.lane.b32.xlu1 %v22415_v2, %s16204_s3 }
 0x666   : > { %15454 = vrot.lane.b32.xlu0 %v22416_v53, %s16203_s13 }
 0x669   : > { %3996 = vrot.lane.b32.xlu1 %v22417_v58, %s16204_s3  ;;  %v22420_v58 = vld [vmem:[#allocation102_spill] sm:$0xff] }
 0x66a   : > { %3990 = vrot.lane.b32.xlu0 %v22418_v62, %s16204_s3  ;;  %v22421_v62 = vld [vmem:[#allocation136_spill] sm:$0xff] }
 0x66c   : > { %v2800_v47 = vpop.xlane.xlu1 %2799  ;;  %v2798_v9 = vpop.xlane.xlu0 %2797 }
 0x66d   : > { %15907 = vrcp.f32 %v2800_v47  ;;  %15469 = vrot.lane.b32.xlu1 %v22277_v28, %s16203_s13 }
 0x66e   : > { %15909 = vrcp.f32 %v2798_v9  ;;  %3994 = vrot.lane.b32.xlu0 %v22419_v25, %s16204_s3  ;;  %v22422_v9 = vld [vmem:[#allocation104_spill] sm:$0xff] }
 0x670   : > { %v15405_v2 = vpop.permute.xlu1 %15404  ;;  %v2802_v16 = vpop.xlane.xlu0 %2801 }
 0x671   : > { %v15407_v52 = vunpack.i.h.bf16 %v15405_v2  ;;  %v15406_v12 = vunpack.i.l.bf16 %v15405_v2  ;;  %15911 = vrcp.f32 %v2802_v16  ;;  %4000 = vrot.lane.b32.xlu1 %v22420_v58, %s16204_s3  ;;  %v22423_v16 = vld [vmem:[#allocation103_spill] sm:$0xff] }
 0x672   : > { %15464 = vrot.lane.b32.xlu0 %v22421_v62, %s16203_s13 }
 0x673   : > { %v14641_v27 = vpack.c.bf16 %v15407_v52, %v15406_v12 }
 0x674   : > { %v3710_v47 = vpop.permute.xlu1 %3709  ;;  %v2804_v29 = vpop.xlane.xlu0 %2803 }
 0x675   : > { %15913 = vrcp.f32 %v2804_v29  ;;  %4004 = vrot.lane.b32.xlu1 %v22422_v9, %s16204_s3  ;;  %13185 = vmatprep.mubr.msk.f32.mxu1 %vm1380_vm1, %v3710_v47  ;;  %v22424_v9 = vld [vmem:[#allocation105_spill] sm:$0xff] }
 0x676   : > { %14643 = vmatprep.subr.msk.bf16.mxu0 %vm17253_vm2, %v14641_v27  ;;  %3998 = vrot.lane.b32.xlu0 %v22423_v16, %s16204_s3 }
 0x677   : > { %v15908_v25 = vpop.eup %15907  ;;  %14646 = vmatpush3.bf16.xpose.msk.msra.mxu0 %vm17253_vm2, %v14641_v27 }
 0x678   : > { %v15910_v2 = vpop.eup %15909  ;;  %v15410_v52 = vpop.permute.xlu0 %15409  ;;  %v2928_v12 = vmul.f32 %v15908_v25, %v18503_v22  ;;  %v22427_v25 = vld [vmem:[#allocation108_spill] sm:$0xff] }
 0x679   : > { %v15412_v29 = vunpack.i.h.bf16 %v15410_v52  ;;  %v15411_v58 = vunpack.i.l.bf16 %v15410_v52  ;;  %15479 = vrot.lane.b32.xlu1 %v22278_v60, %s16203_s13  ;;  %v2926_v47 = vmul.f32 %v15910_v2, %v18505_v17  ;;  %v22428_v17 = vld [vmem:[#allocation139_spill] sm:$0xff] }
 0x67a   : > { %4002 = vrot.lane.b32.xlu0 %v22424_v9, %s16204_s3  ;;  %v18662_v40 = vpop.f32.mrb[58].mxu1  ;;  %v22435_v9 = vld [vmem:[#allocation117_spill] sm:$0xff] }
 0x67b   : > { %22425 = vst [vmem:[#allocation192_spill] sm:$0xff] %v18662_v40  ;;  %v15912_v16 = vpop.eup %15911  ;;  %v14665_v46 = vpack.c.bf16 %v15412_v29, %v15411_v58  ;;  %13144 = vmatprep.mubr.f32.mxu0 %v2926_v47  ;;  %v18664_v27 = vpop.f32.mrb[59].mxu1  ;;  %v22431_v29 = vld [vmem:[#allocation114_spill] sm:$0xff]  ;;  %v22433_v58 = vld [vmem:[#allocation111_spill] sm:$0xff] }
 0x67c   : > { %22426 = vst [vmem:[#allocation205_spill] sm:$0xff] %v18664_v27  ;;  %13145 = vmatmul.mubr.f32.gmra.mrb[122].mxu0 %v2928_v12  ;;  %v3712_v42 = vpop.permute.xlu0 %3711  ;;  %v2930_v22 = vmul.f32 %v15912_v16, %v18509_v37  ;;  %v22434_v47 = vld [vmem:[#allocation115_spill] sm:$0xff]  ;;  %v22438_v16 = vld [vmem:[#allocation116_spill] sm:$0xff] }
 0x67d   : > { %4008 = vrot.lane.b32.xlu1 %v22427_v25, %s16204_s3  ;;  %13186 = vmatmul.mubr.msk.f32.vlgmr.msra.gmra.mrb[64].mxu1 %vm1380_vm1, %v3712_v42  ;;  %v22432_v42 = vld [vmem:[#allocation109_spill] sm:$0xff] }
 0x67e   : > { %14667 = vmatprep.subr.msk.bf16.mxu1 %vm17253_vm2, %v14665_v46  ;;  %15474 = vrot.lane.b32.xlu0 %v22428_v17, %s16203_s13  ;;  %v18674_v2 = vpop.f32.mrb[60].mxu1  ;;  %v22440_v25 = vld [vmem:[#allocation121_spill] sm:$0xff] }
 0x67f   : > { %22429 = vst [vmem:[#allocation185_spill] sm:$0xff] %v18674_v2  ;;  %v15914_v52 = vpop.eup %15913  ;;  %13147 = vmatprep.mubr.f32.mxu0 %v2930_v22  ;;  %14670 = vmatpush3.bf16.xpose.msk.msra.mxu1 %vm17253_vm2, %v14665_v46  ;;  %v18678_v12 = vpop.f32.mrb[61].mxu1  ;;  %v22436_v46 = vld [vmem:[#allocation110_spill] sm:$0xff] }
 0x680   : > { %22430 = vst [vmem:[#allocation209_spill] sm:$0xff] %v18678_v12  ;;  %v2932_v37 = vmul.f32 %v15914_v52, %v18512_v39  ;;  %v22437_v39 = vld [vmem:[#allocation120_spill] sm:$0xff]  ;;  %v22439_v22 = vld [vmem:[#allocation122_spill] sm:$0xff]  ;;  %v22441_v52 = vld [vmem:[#allocation125_spill] sm:$0xff] }
 0x681   : > { %4012 = vrot.lane.b32.xlu1 %v22431_v29, %s16204_s3  ;;  %v22443_v29 = vld [vmem:[#allocation130_spill] sm:$0xff] }
 0x682   : > { %4006 = vrot.lane.b32.xlu0 %v22432_v42, %s16204_s3  ;;  %13148 = vmatmul.mubr.f32.gmra.mrb[124].mxu0 %v2932_v37  ;;  %v22442_v37 = vld [vmem:[#allocation123_spill] sm:$0xff]  ;;  %v22444_v42 = vld [vmem:[#allocation124_spill] sm:$0xff] }
 0x685   : > { %4255 = vrot.lane.b32.xlu1 %v22433_v58, %s16204_s3  ;;  %v22445_v58 = vld [vmem:[#allocation131_spill] sm:$0xff] }
 0x686   : > { %4010 = vrot.lane.b32.xlu0 %v22434_v47, %s16204_s3 }
 0x689   : > { %4259 = vrot.lane.b32.xlu1 %v22435_v9, %s16204_s3  ;;  %v22446_v9 = vld [vmem:[#allocation129_spill] sm:$0xff] }
 0x68a   : > { %15484 = vrot.lane.b32.xlu0 %v22283_v15, %s16203_s13 }
 0x68d   : > { %15489 = vrot.lane.b32.xlu1 %v22285_v34, %s16203_s13 }
 0x68e   : > { %4257 = vrot.lane.b32.xlu0 %v22436_v46, %s16204_s3  ;;  %v22447_v46 = vld [vmem:[#allocation134_spill] sm:$0xff] }
 0x691   : > { %4265 = vrot.lane.b32.xlu1 %v22437_v39, %s16204_s3 }
 0x692   : > { %4261 = vrot.lane.b32.xlu0 %v22438_v16, %s16204_s3  ;;  %v22448_v16 = vld [vmem:[#allocation132_spill] sm:$0xff] }
 0x695   : > { %4269 = vrot.lane.b32.xlu1 %v22439_v22, %s16204_s3  ;;  %v22449_v22 = vld [vmem:[#allocation137_spill] sm:$0xff] }
 0x696   : > { %4263 = vrot.lane.b32.xlu0 %v22440_v25, %s16204_s3 }
 0x699   : > { %4271 = vrot.lane.b32.xlu1 %v22441_v52, %s16204_s3 }
 0x69a   : > { %4267 = vrot.lane.b32.xlu0 %v22442_v37, %s16204_s3 }
 0x69d   : > { %4275 = vrot.lane.b32.xlu1 %v22443_v29, %s16204_s3 }
 0x69e   : > { %15494 = vrot.lane.b32.xlu0 %v22289_v18, %s16203_s13 }
 0x6a1   : > { %15499 = vrot.lane.b32.xlu1 %v22292_v35, %s16203_s13  ;;  %v19064_v35 = vld [vmem:[%s21623_s1 + $0x1a8] sm:$0xff] }
 0x6a2   : > { %4273 = vrot.lane.b32.xlu0 %v22444_v42, %s16204_s3  ;;  %v22450_v42 = vld [vmem:[#allocation135_spill] sm:$0xff] }
 0x6a5   : > { %4281 = vrot.lane.b32.xlu1 %v22445_v58, %s16204_s3  ;;  %v2806_v47 = vpop.xlane.xlu1 %2805 }
 0x6a6   : > { %15915 = vrcp.f32 %v2806_v47  ;;  %4277 = vrot.lane.b32.xlu0 %v22446_v9, %s16204_s3 }
 0x6a9   : > { %4285 = vrot.lane.b32.xlu1 %v22447_v46, %s16204_s3  ;;  %v3714_v39 = vpop.permute.xlu1 %3713 }
 0x6aa   : > { %4279 = vrot.lane.b32.xlu0 %v22448_v16, %s16204_s3  ;;  %13188 = vmatprep.mubr.msk.f32.mxu1 %vm1380_vm1, %v3714_v39  ;;  %v22453_v16 = vld [vmem:[#allocation140_spill] sm:$0xff] }
 0x6ad   : > { %4530 = vrot.lane.b32.xlu1 %v22449_v22, %s16204_s3  ;;  %v15415_v25 = vpop.permute.xlu1 %15414  ;;  %v2808_v52 = vpop.xlane.xlu0 %2807 }
 0x6ae   : > { %v15417_v37 = vunpack.i.h.bf16 %v15415_v25  ;;  %v15416_v29 = vunpack.i.l.bf16 %v15415_v25  ;;  %15917 = vrcp.f32 %v2808_v52  ;;  %4283 = vrot.lane.b32.xlu0 %v22450_v42, %s16204_s3  ;;  %v18730_v58 = vpop.f32.mrb[62].mxu1  ;;  %v22454_v25 = vld [vmem:[#allocation138_spill] sm:$0xff]  ;;  %v22456_v42 = vld [vmem:[#allocation141_spill] sm:$0xff] }
 0x6af   : > { %22451 = vst [vmem:[#allocation190_spill] sm:$0xff] %v18730_v58  ;;  %v18732_v47 = vpop.f32.mrb[63].mxu1 }
 0x6b0   : > { %22452 = vst [vmem:[#allocation89_spill] sm:$0xff] %v18732_v47  ;;  %v15916_v9 = vpop.eup %15915  ;;  %v14647_v46 = vpack.c.bf16 %v15417_v37, %v15416_v29  ;;  %v22455_v37 = vld [vmem:[#allocation143_spill] sm:$0xff] }
 0x6b1   : > { %4534 = vrot.lane.b32.xlu1 %v22453_v16, %s16204_s3  ;;  %v15420_v39 = vpop.permute.xlu1 %15419  ;;  %v3716_v2 = vpop.permute.xlu0 %3715  ;;  %v2934_v22 = vmul.f32 %v15916_v9, %v18543_v10  ;;  %v22458_v16 = vld [vmem:[#allocation144_spill] sm:$0xff] }
 0x6b2   : > { %v15422_v12 = vunpack.i.h.bf16 %v15420_v39  ;;  %v15421_v40 = vunpack.i.l.bf16 %v15420_v39  ;;  %4528 = vrot.lane.b32.xlu0 %v22454_v25, %s16204_s3  ;;  %13189 = vmatmul.mubr.msk.f32.gmra.mrb[66].mxu1 %vm1380_vm1, %v3716_v2  ;;  %v22459_v39 = vld [vmem:[#allocation146_spill] sm:$0xff] }
 0x6b3   : > { %14649 = vmatprep.subr.msk.bf16.mxu0 %vm17253_vm2, %v14647_v46  ;;  %13150 = vmatprep.mubr.f32.mxu0 %v2934_v22 }
 0x6b4   : > { %v14671_v52 = vpack.c.bf16 %v15422_v12, %v15421_v40  ;;  %14652 = vmatpush3.bf16.xpose.msk.msra.mxu0 %vm17253_vm2, %v14647_v46  ;;  %v22457_v40 = vld [vmem:[#allocation148_spill] sm:$0xff] }
 0x6b5   : > { %4538 = vrot.lane.b32.xlu1 %v22455_v37, %s16204_s3  ;;  %v3720_v29 = vpop.permute.xlu1 %3719  ;;  %v3718_v10 = vpop.permute.xlu0 %3717 }
 0x6b6   : > { %4532 = vrot.lane.b32.xlu0 %v22456_v42, %s16204_s3  ;;  %13191 = vmatprep.mubr.msk.f32.mxu1 %vm1380_vm1, %v3718_v10  ;;  %v22460_v42 = vld [vmem:[#allocation149_spill] sm:$0xff] }
 0x6b7   : > { %14673 = vmatprep.subr.msk.bf16.mxu1 %vm17253_vm2, %v14671_v52  ;;  %13192 = vmatmul.mubr.msk.f32.gmra.mrb[68].mxu1 %vm1380_vm1, %v3720_v29 }
 0x6b8   : > { %v15918_v2 = vpop.eup %15917  ;;  %14676 = vmatpush3.bf16.xpose.msk.msra.mxu1 %vm17253_vm2, %v14671_v52 }
 0x6b9   : > { %4542 = vrot.lane.b32.xlu1 %v22457_v40, %s16204_s3  ;;  %v3724_v12 = vpop.permute.xlu1 %3723  ;;  %v3722_v9 = vpop.permute.xlu0 %3721  ;;  %v2936_v46 = vmul.f32 %v15918_v2, %v18546_v23  ;;  %v22461_v40 = vld [vmem:[#allocation152_spill] sm:$0xff] }
 0x6ba   : > { %4536 = vrot.lane.b32.xlu0 %v22458_v16, %s16204_s3  ;;  %13194 = vmatprep.mubr.msk.f32.mxu1 %vm1380_vm1, %v3722_v9  ;;  %v22463_v16 = vld [vmem:[#allocation155_spill] sm:$0xff] }
 0x6bb   : > { %13151 = vmatmul.mubr.f32.gmra.mrb[126].mxu0 %v2936_v46  ;;  %13195 = vmatmul.mubr.msk.f32.gmra.mrb[70].mxu1 %vm1380_vm1, %v3724_v12  ;;  %v22462_v12 = vld [vmem:[#allocation147_spill] sm:$0xff] }
 0x6bd   : > { %4546 = vrot.lane.b32.xlu1 %v22459_v39, %s16204_s3  ;;  %v15430_v22 = vpop.permute.xlu1 %15429  ;;  %v15425_v25 = vpop.permute.xlu0 %15424 }
 0x6be   : > { %v15432_v52 = vunpack.i.h.bf16 %v15430_v22  ;;  %v15431_v37 = vunpack.i.l.bf16 %v15430_v22  ;;  %v15427_v29 = vunpack.i.h.bf16 %v15425_v25  ;;  %v15426_v10 = vunpack.i.l.bf16 %v15425_v25  ;;  %4540 = vrot.lane.b32.xlu0 %v22460_v42, %s16204_s3  ;;  %v22464_v25 = vld [vmem:[#allocation153_spill] sm:$0xff] }
 0x6c0   : > { %v14677_v23 = vpack.c.bf16 %v15432_v52, %v15431_v37  ;;  %v14653_v2 = vpack.c.bf16 %v15427_v29, %v15426_v10  ;;  %v22465_v52 = vld [vmem:[#allocation160_spill] sm:$0xff] }
 0x6c1   : > { %4550 = vrot.lane.b32.xlu1 %v22461_v40, %s16204_s3  ;;  %v3728_v9 = vpop.permute.xlu1 %3727  ;;  %v3726_v46 = vpop.permute.xlu0 %3725  ;;  %v22466_v40 = vld [vmem:[#allocation156_spill] sm:$0xff] }
 0x6c2   : > { %4544 = vrot.lane.b32.xlu0 %v22462_v12, %s16204_s3  ;;  %13197 = vmatprep.mubr.msk.f32.mxu1 %vm1380_vm1, %v3726_v46 }
 0x6c3   : > { %14655 = vmatprep.subr.msk.bf16.mxu0 %vm17253_vm2, %v14653_v2  ;;  %14679 = vmatprep.subr.msk.bf16.mxu1 %vm17253_vm2, %v14677_v23 }
 0x6c4   : > { %13198 = vmatmul.mubr.msk.f32.gmra.mrb[72].mxu1 %vm1380_vm1, %v3728_v9  ;;  %14658 = vmatpush3.bf16.xpose.msk.msra.mxu0 %vm17253_vm2, %v14653_v2 }
 0x6c5   : > { %14682 = vmatpush3.bf16.xpose.msk.msra.mxu1 %vm17253_vm2, %v14677_v23  ;;  %4554 = vrot.lane.b32.xlu1 %v22463_v16, %s16204_s3  ;;  %v3732_v39 = vpop.permute.xlu1 %3731  ;;  %v3730_v22 = vpop.permute.xlu0 %3729 }
 0x6c6   : > { %4548 = vrot.lane.b32.xlu0 %v22464_v25, %s16204_s3  ;;  %13200 = vmatprep.mubr.msk.f32.mxu1 %vm1380_vm1, %v3730_v22  ;;  %v22467_v22 = vld [vmem:[#allocation161_spill] sm:$0xff] }
 0x6c8   : > { %13201 = vmatmul.mubr.msk.f32.gmra.mrb[74].mxu1 %vm1380_vm1, %v3732_v39 }
 0x6c9   : > { %4558 = vrot.lane.b32.xlu1 %v22465_v52, %s16204_s3  ;;  %v15440_v37 = vpop.permute.xlu1 %15439  ;;  %v15435_v29 = vpop.permute.xlu0 %15434 }
 0x6ca   : > { %v15442_v10 = vunpack.i.h.bf16 %v15440_v37  ;;  %v15441_v42 = vunpack.i.l.bf16 %v15440_v37  ;;  %v15437_v23 = vunpack.i.h.bf16 %v15435_v29  ;;  %v15436_v2 = vunpack.i.l.bf16 %v15435_v29  ;;  %4552 = vrot.lane.b32.xlu0 %v22466_v40, %s16204_s3 }
 0x6cc   : > { %v14683_v9 = vpack.c.bf16 %v15442_v10, %v15441_v42  ;;  %v14659_v46 = vpack.c.bf16 %v15437_v23, %v15436_v2 }
 0x6cd   : > { %v3736_v12 = vpop.permute.xlu1 %3735  ;;  %v3734_v16 = vpop.permute.xlu0 %3733 }
 0x6ce   : > { %4556 = vrot.lane.b32.xlu0 %v22467_v22, %s16204_s3  ;;  %13203 = vmatprep.mubr.msk.f32.mxu1 %vm1380_vm1, %v3734_v16  ;;  %s145_s3 = scalar_lea.vmem %s21624_s2, %s10881_s7 }
 0x6cf   : > { %14661 = vmatprep.subr.msk.bf16.mxu0 %vm17253_vm2, %v14659_v46  ;;  %14685 = vmatprep.subr.msk.bf16.mxu1 %vm17253_vm2, %v14683_v9 }
 0x6d0   : > { %13204 = vmatmul.mubr.msk.f32.gmra.mrb[76].mxu1 %vm1380_vm1, %v3736_v12  ;;  %14664 = vmatpush3.bf16.xpose.msk.msra.mxu0 %vm17253_vm2, %v14659_v46 }
 0x6d1   : > { %14688 = vmatpush3.bf16.xpose.msk.msra.mxu1 %vm17253_vm2, %v14683_v9  ;;  %v3740_v39 = vpop.permute.xlu1 %3739  ;;  %v3738_v25 = vpop.permute.xlu0 %3737 }
 0x6d2   : > { %13206 = vmatprep.mubr.msk.f32.mxu1 %vm1380_vm1, %v3738_v25 }
 0x6d4   : > { %13207 = vmatmul.mubr.msk.f32.gmra.mrb[78].mxu1 %vm1380_vm1, %v3740_v39 }
 0x6d5   : > { %v15450_v52 = vpop.permute.xlu1 %15449  ;;  %v15445_v37 = vpop.permute.xlu0 %15444 }
 0x6d6   : > { %v15452_v29 = vunpack.i.h.bf16 %v15450_v52  ;;  %v15451_v10 = vunpack.i.l.bf16 %v15450_v52  ;;  %v15447_v42 = vunpack.i.h.bf16 %v15445_v37  ;;  %v15446_v23 = vunpack.i.l.bf16 %v15445_v37 }
 0x6d8   : > { %v14713_v2 = vpack.c.bf16 %v15452_v29, %v15451_v10  ;;  %v14689_v40 = vpack.c.bf16 %v15447_v42, %v15446_v23 }
 0x6d9   : > { %v3985_v12 = vpop.permute.xlu1 %3984  ;;  %v3983_v16 = vpop.permute.xlu0 %3982 }
 0x6da   : > { %13241 = vmatprep.mubr.msk.f32.mxu0 %vm1380_vm1, %v3983_v16  ;;  %14691 = vmatprep.subr.msk.bf16.mxu1 %vm17253_vm2, %v14689_v40 }
 0x6db   : > { %14715 = vmatprep.subr.msk.bf16.mxu0 %vm17253_vm2, %v14713_v2  ;;  %13242 = vmatmul.mubr.msk.f32.vlgmr.msra.gmra.mrb[128].mxu0 %vm1380_vm1, %v3985_v12 }
 0x6dc   : > { %14694 = vmatpush3.bf16.xpose.msk.msra.mxu1 %vm17253_vm2, %v14689_v40  ;;  %14718 = vmatpush3.bf16.xpose.msk.msra.mxu0 %vm17253_vm2, %v14713_v2 }
 0x6dd   : > { %v3989_v9 = vpop.permute.xlu1 %3988  ;;  %v3987_v46 = vpop.permute.xlu0 %3986 }
 0x6de   : > { %13244 = vmatprep.mubr.msk.f32.mxu0 %vm1380_vm1, %v3987_v46 }
 0x6df   : > { %13245 = vmatmul.mubr.msk.f32.gmra.mrb[130].mxu0 %vm1380_vm1, %v3989_v9 }
 0x6e1   : > { %v15460_v22 = vpop.permute.xlu1 %15459  ;;  %v15455_v39 = vpop.permute.xlu0 %15454 }
 0x6e2   : > { %v15462_v25 = vunpack.i.h.bf16 %v15460_v22  ;;  %v15461_v52 = vunpack.i.l.bf16 %v15460_v22  ;;  %v15457_v37 = vunpack.i.h.bf16 %v15455_v39  ;;  %v15456_v29 = vunpack.i.l.bf16 %v15455_v39 }
 0x6e3   : > { %v18815_v10 = vpop.f32.mrb[114].mxu0 }
 0x6e4   : > { %22468 = vst [vmem:[#allocation208_spill] sm:$0xff] %v18815_v10  ;;  %v14719_v42 = vpack.c.bf16 %v15462_v25, %v15461_v52  ;;  %v14695_v23 = vpack.c.bf16 %v15457_v37, %v15456_v29  ;;  %v18817_v40 = vpop.f32.mrb[115].mxu0 }
 0x6e5   : > { %22469 = vst [vmem:[#allocation189_spill] sm:$0xff] %v18817_v40  ;;  %v3993_v12 = vpop.permute.xlu1 %3992  ;;  %v3991_v2 = vpop.permute.xlu0 %3990 }
 0x6e6   : > { %13247 = vmatprep.mubr.msk.f32.mxu0 %vm1380_vm1, %v3991_v2  ;;  %14697 = vmatprep.subr.msk.bf16.mxu1 %vm17253_vm2, %v14695_v23 }
 0x6e7   : > { %14721 = vmatprep.subr.msk.bf16.mxu0 %vm17253_vm2, %v14719_v42  ;;  %v18824_v16 = vpop.f32.mrb[116].mxu0  ;;  %13248 = vmatmul.mubr.msk.f32.gmra.mrb[132].mxu0 %vm1380_vm1, %v3993_v12 }
 0x6e8   : > { %22470 = vst [vmem:[#allocation213_spill] sm:$0xff] %v18824_v16  ;;  %14700 = vmatpush3.bf16.xpose.msk.msra.mxu1 %vm17253_vm2, %v14695_v23  ;;  %14724 = vmatpush3.bf16.xpose.msk.msra.mxu0 %vm17253_vm2, %v14719_v42  ;;  %v18831_v9 = vpop.f32.mrb[117].mxu0 }
 0x6e9   : > { %22471 = vst [vmem:[#allocation194_spill] sm:$0xff] %v18831_v9  ;;  %v3997_v46 = vpop.permute.xlu1 %3996  ;;  %v3995_v22 = vpop.permute.xlu0 %3994 }
 0x6ea   : > { %13250 = vmatprep.mubr.msk.f32.mxu0 %vm1380_vm1, %v3995_v22 }
 0x6eb   : > { %13251 = vmatmul.mubr.msk.f32.gmra.mrb[134].mxu0 %vm1380_vm1, %v3997_v46 }
 0x6ed   : > { %v15470_v39 = vpop.permute.xlu1 %15469  ;;  %v15465_v25 = vpop.permute.xlu0 %15464 }
 0x6ee   : > { %v15472_v52 = vunpack.i.h.bf16 %v15470_v39  ;;  %v15471_v37 = vunpack.i.l.bf16 %v15470_v39  ;;  %v15467_v29 = vunpack.i.h.bf16 %v15465_v25  ;;  %v15466_v12 = vunpack.i.l.bf16 %v15465_v25 }
 0x6f0   : > { %v14725_v2 = vpack.c.bf16 %v15472_v52, %v15471_v37  ;;  %v14701_v16 = vpack.c.bf16 %v15467_v29, %v15466_v12 }
 0x6f1   : > { %v4001_v23 = vpop.permute.xlu1 %4000  ;;  %v3999_v10 = vpop.permute.xlu0 %3998 }
 0x6f2   : > { %13253 = vmatprep.mubr.msk.f32.mxu0 %vm1380_vm1, %v3999_v10  ;;  %14703 = vmatprep.subr.msk.bf16.mxu1 %vm17253_vm2, %v14701_v16 }
 0x6f3   : > { %14727 = vmatprep.subr.msk.bf16.mxu0 %vm17253_vm2, %v14725_v2  ;;  %13254 = vmatmul.mubr.msk.f32.gmra.mrb[136].mxu0 %vm1380_vm1, %v4001_v23 }
 0x6f4   : > { %14706 = vmatpush3.bf16.xpose.msk.msra.mxu1 %vm17253_vm2, %v14701_v16  ;;  %14730 = vmatpush3.bf16.xpose.msk.msra.mxu0 %vm17253_vm2, %v14725_v2 }
 0x6f5   : > { %v4005_v42 = vpop.permute.xlu1 %4004  ;;  %v4003_v46 = vpop.permute.xlu0 %4002 }
 0x6f6   : > { %13256 = vmatprep.mubr.msk.f32.mxu0 %vm1380_vm1, %v4003_v46 }
 0x6f7   : > { %13257 = vmatmul.mubr.msk.f32.gmra.mrb[138].mxu0 %vm1380_vm1, %v4005_v42 }
 0x6f9   : > { %v15480_v10 = vpop.permute.xlu1 %15479  ;;  %v15475_v22 = vpop.permute.xlu0 %15474 }
 0x6fa   : > { %v15482_v39 = vunpack.i.h.bf16 %v15480_v10  ;;  %v15481_v25 = vunpack.i.l.bf16 %v15480_v10  ;;  %v15477_v52 = vunpack.i.h.bf16 %v15475_v22  ;;  %v15476_v37 = vunpack.i.l.bf16 %v15475_v22 }
 0x6fc   : > { %v14731_v29 = vpack.c.bf16 %v15482_v39, %v15481_v25  ;;  %v14707_v12 = vpack.c.bf16 %v15477_v52, %v15476_v37 }
 0x6fd   : > { %v4009_v23 = vpop.permute.xlu1 %4008  ;;  %v4007_v9 = vpop.permute.xlu0 %4006 }
 0x6fe   : > { %13259 = vmatprep.mubr.msk.f32.mxu0 %vm1380_vm1, %v4007_v9  ;;  %14709 = vmatprep.subr.msk.bf16.mxu1 %vm17253_vm2, %v14707_v12 }
 0x6ff   : > { %14733 = vmatprep.subr.msk.bf16.mxu0 %vm17253_vm2, %v14731_v29  ;;  %13260 = vmatmul.mubr.msk.f32.gmra.mrb[140].mxu0 %vm1380_vm1, %v4009_v23 }
 0x700   : > { %14712 = vmatpush3.bf16.xpose.msk.msra.mxu1 %vm17253_vm2, %v14707_v12  ;;  %14736 = vmatpush3.bf16.xpose.msk.msra.mxu0 %vm17253_vm2, %v14731_v29 }
 0x701   : > { %v4013_v16 = vpop.permute.xlu1 %4012  ;;  %v4011_v2 = vpop.permute.xlu0 %4010 }
 0x702   : > { %13262 = vmatprep.mubr.msk.f32.mxu0 %vm1380_vm1, %v4011_v2 }
 0x703   : > { %13263 = vmatmul.mubr.msk.f32.gmra.mrb[142].mxu0 %vm1380_vm1, %v4013_v16 }
 0x705   : > { %v4256_v9 = vpop.permute.xlu1 %4255  ;;  %v15485_v42 = vpop.permute.xlu0 %15484 }
 0x706   : > { %v15487_v46 = vunpack.i.h.bf16 %v15485_v42  ;;  %v15486_v10 = vunpack.i.l.bf16 %v15485_v42  ;;  %13297 = vmatprep.mubr.msk.f32.mxu1 %vm1380_vm1, %v4256_v9 }
 0x708   : > { %v14737_v22 = vpack.c.bf16 %v15487_v46, %v15486_v10 }
 0x709   : > { %v4260_v39 = vpop.permute.xlu1 %4259  ;;  %v4258_v25 = vpop.permute.xlu0 %4257 }
 0x70a   : > { %13298 = vmatmul.mubr.msk.f32.vlgmr.msra.gmra.mrb[80].mxu1 %vm1380_vm1, %v4258_v25  ;;  %14739 = vmatprep.subr.msk.bf16.mxu0 %vm17253_vm2, %v14737_v22 }
 0x70b   : > { %13300 = vmatprep.mubr.msk.f32.mxu1 %vm1380_vm1, %v4260_v39  ;;  %14742 = vmatpush3.bf16.xpose.msk.msra.mxu0 %vm17253_vm2, %v14737_v22 }
 0x70d   : > { %v15490_v52 = vpop.permute.xlu1 %15489  ;;  %v4262_v37 = vpop.permute.xlu0 %4261 }
 0x70e   : > { %v15492_v29 = vunpack.i.h.bf16 %v15490_v52  ;;  %v15491_v12 = vunpack.i.l.bf16 %v15490_v52  ;;  %13301 = vmatmul.mubr.msk.f32.gmra.mrb[82].mxu1 %vm1380_vm1, %v4262_v37 }
 0x710   : > { %v14743_v23 = vpack.c.bf16 %v15492_v29, %v15491_v12 }
 0x711   : > { %v4266_v16 = vpop.permute.xlu1 %4265  ;;  %v4264_v2 = vpop.permute.xlu0 %4263 }
 0x712   : > { %13303 = vmatprep.mubr.msk.f32.mxu1 %vm1380_vm1, %v4264_v2  ;;  %14745 = vmatprep.subr.msk.bf16.mxu0 %vm17253_vm2, %v14743_v23 }
 0x713   : > { %13304 = vmatmul.mubr.msk.f32.gmra.mrb[84].mxu1 %vm1380_vm1, %v4266_v16  ;;  %14748 = vmatpush3.bf16.xpose.msk.msra.mxu0 %vm17253_vm2, %v14743_v23 }
 0x715   : > { %v4270_v9 = vpop.permute.xlu1 %4269  ;;  %v4268_v42 = vpop.permute.xlu0 %4267 }
 0x716   : > { %13306 = vmatprep.mubr.msk.f32.mxu1 %vm1380_vm1, %v4268_v42 }
 0x717   : > { %13307 = vmatmul.mubr.msk.f32.gmra.mrb[86].mxu1 %vm1380_vm1, %v4270_v9 }
 0x718   : > { %v18875_v46 = vpop.f32.mrb[118].mxu0 }
 0x719   : > { %22472 = vst [vmem:[#allocation215_spill] sm:$0xff] %v18875_v46  ;;  %v4272_v10 = vpop.permute.xlu1 %4271  ;;  %v15495_v22 = vpop.permute.xlu0 %15494 }
 0x71a   : > { %v15497_v39 = vunpack.i.h.bf16 %v15495_v22  ;;  %v15496_v25 = vunpack.i.l.bf16 %v15495_v22  ;;  %v18877_v52 = vpop.f32.mrb[119].mxu0  ;;  %13309 = vmatprep.mubr.msk.f32.mxu1 %vm1380_vm1, %v4272_v10 }
 0x71b   : > { %22473 = vst [vmem:[#allocation195_spill] sm:$0xff] %v18877_v52 }
 0x71c   : > { %v14749_v37 = vpack.c.bf16 %v15497_v39, %v15496_v25  ;;  %v18880_v29 = vpop.f32.mrb[120].mxu0 }
 0x71d   : > { %22474 = vst [vmem:[#allocation210_spill] sm:$0xff] %v18880_v29  ;;  %v4276_v12 = vpop.permute.xlu1 %4275  ;;  %v4274_v23 = vpop.permute.xlu0 %4273  ;;  %v18953_v29 = vld [vmem:[%s21623_s1 + $0x150] sm:$0xff] }
 0x71e   : > { %v18882_v16 = vpop.f32.mrb[121].mxu0  ;;  %13310 = vmatmul.mubr.msk.f32.gmra.mrb[88].mxu1 %vm1380_vm1, %v4274_v23  ;;  %14751 = vmatprep.subr.msk.bf16.mxu0 %vm17253_vm2, %v14749_v37 }
 0x71f   : > { %22475 = vst [vmem:[#allocation191_spill] sm:$0xff] %v18882_v16  ;;  %13312 = vmatprep.mubr.msk.f32.mxu1 %vm1380_vm1, %v4276_v12  ;;  %14754 = vmatpush3.bf16.xpose.msk.msra.mxu0 %vm17253_vm2, %v14749_v37  ;;  %v18961_v16 = vld [vmem:[%s21623_s1 + $0x158] sm:$0xff] }
 0x721   : > { %v15500_v2 = vpop.permute.xlu1 %15499  ;;  %v4278_v9 = vpop.permute.xlu0 %4277 }
 0x722   : > { %v15502_v42 = vunpack.i.h.bf16 %v15500_v2  ;;  %v15501_v10 = vunpack.i.l.bf16 %v15500_v2  ;;  %13313 = vmatmul.mubr.msk.f32.gmra.mrb[90].mxu1 %vm1380_vm1, %v4278_v9 }
 0x724   : > { %v14755_v22 = vpack.c.bf16 %v15502_v42, %v15501_v10 }
 0x725   : > { %v4282_v39 = vpop.permute.xlu1 %4281  ;;  %v4280_v25 = vpop.permute.xlu0 %4279 }
 0x726   : > { %13315 = vmatprep.mubr.msk.f32.mxu1 %vm1380_vm1, %v4280_v25  ;;  %14757 = vmatprep.subr.msk.bf16.mxu0 %vm17253_vm2, %v14755_v22 }
 0x727   : > { %13316 = vmatmul.mubr.msk.f32.gmra.mrb[92].mxu1 %vm1380_vm1, %v4282_v39  ;;  %14760 = vmatpush3.bf16.xpose.msk.msra.mxu0 %vm17253_vm2, %v14755_v22 }
 0x729   : > { %v4286_v37 = vpop.permute.xlu1 %4285  ;;  %v4284_v12 = vpop.permute.xlu0 %4283 }
 0x72a   : > { %13318 = vmatprep.mubr.msk.f32.mxu1 %vm1380_vm1, %v4284_v12 }
 0x72b   : > { %13319 = vmatmul.mubr.msk.f32.gmra.mrb[94].mxu1 %vm1380_vm1, %v4286_v37 }
 0x72d   : > { %v4531_v23 = vpop.permute.xlu1 %4530  ;;  %v4529_v2 = vpop.permute.xlu0 %4528 }
 0x72e   : > { %13353 = vmatprep.mubr.msk.f32.mxu0 %vm1380_vm1, %v4529_v2 }
 0x72f   : > { %13354 = vmatmul.mubr.msk.f32.vlgmr.msra.gmra.mrb[144].mxu0 %vm1380_vm1, %v4531_v23 }
 0x731   : > { %v4535_v9 = vpop.permute.xlu1 %4534  ;;  %v4533_v42 = vpop.permute.xlu0 %4532 }
 0x732   : > { %13356 = vmatprep.mubr.msk.f32.mxu0 %vm1380_vm1, %v4533_v42 }
 0x733   : > { %13357 = vmatmul.mubr.msk.f32.gmra.mrb[146].mxu0 %vm1380_vm1, %v4535_v9 }
 0x735   : > { %v4539_v1 = vpop.permute.xlu1 %4538  ;;  %v4537_v10 = vpop.permute.xlu0 %4536 }
 0x736   : > { %13359 = vmatprep.mubr.msk.f32.mxu0 %vm1380_vm1, %v4537_v10 }
 0x737   : > { %13360 = vmatmul.mubr.msk.f32.gmra.mrb[148].mxu0 %vm1380_vm1, %v4539_v1 }
 0x739   : > { %v4543_v22 = vpop.permute.xlu1 %4542  ;;  %v4541_v39 = vpop.permute.xlu0 %4540 }
 0x73a   : > { %13362 = vmatprep.mubr.msk.f32.mxu0 %vm1380_vm1, %v4541_v39 }
 0x73b   : > { %13363 = vmatmul.mubr.msk.f32.gmra.mrb[150].mxu0 %vm1380_vm1, %v4543_v22 }
 0x73d   : > { %v4547_v25 = vpop.permute.xlu1 %4546  ;;  %v4545_v37 = vpop.permute.xlu0 %4544 }
 0x73e   : > { %13365 = vmatprep.mubr.msk.f32.mxu0 %vm1380_vm1, %v4545_v37 }
 0x73f   : > { %13366 = vmatmul.mubr.msk.f32.gmra.mrb[152].mxu0 %vm1380_vm1, %v4547_v25  ;;  %v18922_v25 = vld [vmem:[%s21623_s1 + $0x140] sm:$0xff] }
 0x741   : > { %v4551_v12 = vpop.permute.xlu1 %4550  ;;  %v4549_v23 = vpop.permute.xlu0 %4548 }
 0x742   : > { %13368 = vmatprep.mubr.msk.f32.mxu0 %vm1380_vm1, %v4549_v23  ;;  %v18930_v23 = vld [vmem:[%s21623_s1 + $0x138] sm:$0xff] }
 0x743   : > { %13369 = vmatmul.mubr.msk.f32.gmra.mrb[154].mxu0 %vm1380_vm1, %v4551_v12 }
 0x745   : > { %v4555_v2 = vpop.permute.xlu1 %4554  ;;  %v4553_v9 = vpop.permute.xlu0 %4552 }
 0x746   : > { %13371 = vmatprep.mubr.msk.f32.mxu0 %vm1380_vm1, %v4553_v9 }
 0x747   : > { %13372 = vmatmul.mubr.msk.f32.gmra.mrb[156].mxu0 %vm1380_vm1, %v4555_v2 }
 0x749   : > { %v4559_v42 = vpop.permute.xlu1 %4558  ;;  %v4557_v1 = vpop.permute.xlu0 %4556 }
 0x74a   : > { %13374 = vmatprep.mubr.msk.f32.mxu0 %vm1380_vm1, %v4557_v1 }
 0x74b   : > { %13375 = vmatmul.mubr.msk.f32.gmra.mrb[158].mxu0 %vm1380_vm1, %v4559_v42 }
 0x74f   : > { %v18915_v10 = vpop.f32.mrb[122].mxu0 }
 0x750   : > { %22476 = vst [vmem:[#allocation67_spill] sm:$0xff] %v18915_v10  ;;  %v18917_v22 = vpop.f32.mrb[123].mxu0  ;;  %v13187_v39 = vpop.f32.mrb[64].mxu1  ;;  %v18944_v10 = vld [vmem:[%s21623_s1 + $0x148] sm:$0xff] }
 0x751   : > { %22477 = vst [vmem:[#allocation66_spill] sm:$0xff] %v18917_v22  ;;  %v18925_v37 = vadd.f32 %v18922_v25, %v13187_v39  ;;  %v3903_v12 = vpop.f32.mrb[65].mxu1 }
 0x752   : > { %v18933_v2 = vadd.f32 %v18930_v23, %v3903_v12 }
 0x753   : > { %4803 = vmax.xlane.f32.xlu1 %v18925_v37 }
 0x754   : > { %4801 = vmax.xlane.f32.xlu0 %v18933_v2 }
 0x755   : > { %v18937_v9 = vpop.f32.mrb[124].mxu0 }
 0x756   : > { %22478 = vst [vmem:[#allocation214_spill] sm:$0xff] %v18937_v9  ;;  %v18939_v42 = vpop.f32.mrb[125].mxu0 }
 0x757   : > { %22479 = vst [vmem:[#allocation196_spill] sm:$0xff] %v18939_v42 }
 0x785   : > { %v13190_v1 = vpop.f32.mrb[66].mxu1 }
 0x786   : > { %v3913_v39 = vpop.f32.mrb[67].mxu1  ;;  %v18956_v9 = vadd.f32 %v18953_v29, %v13190_v1  ;;  %v18973_v1 = vld [vmem:[%s21623_s1 + $0x160] sm:$0xff] }
 0x787   : > { %v18947_v22 = vadd.f32 %v18944_v10, %v3913_v39 }
 0x789   : > { %4805 = vmax.xlane.f32.xlu0 %v18947_v22 }
 0x78a   : > { %v13193_v12 = vpop.f32.mrb[68].mxu1 }
 0x78b   : > { %v3923_v42 = vpop.f32.mrb[69].mxu1  ;;  %v18976_v40 = vadd.f32 %v18973_v1, %v13193_v12  ;;  %v18993_v12 = vld [vmem:[%s21623_s1 + $0x170] sm:$0xff] }
 0x78c   : > { %v18964_v39 = vadd.f32 %v18961_v16, %v3923_v42  ;;  %v18983_v42 = vld [vmem:[%s21623_s1 + $0x168] sm:$0xff] }
 0x78d   : > { %4807 = vmax.xlane.f32.xlu0 %v18956_v9 }
 0x78e   : > { %v13196_v46 = vpop.f32.mrb[70].mxu1  ;;  %4809 = vmax.xlane.f32.xlu1 %v18964_v39  ;;  %v18968_v52 = vpop.f32.mrb[126].mxu0 }
 0x78f   : > { %22480 = vst [vmem:[#allocation212_spill] sm:$0xff] %v18968_v52  ;;  %v18978_v58 = vpop.f32.mrb[127].mxu0  ;;  %v3933_v47 = vpop.f32.mrb[71].mxu1  ;;  %v18996_v52 = vadd.f32 %v18993_v12, %v13196_v46 }
 0x790   : > { %22481 = vst [vmem:[#allocation193_spill] sm:$0xff] %v18978_v58  ;;  %v18986_v27 = vadd.f32 %v18983_v42, %v3933_v47  ;;  %v19002_v47 = vld [vmem:[%s21623_s1 + $0x180] sm:$0xff] }
 0x791   : > { %4811 = vmax.xlane.f32.xlu0 %v18976_v40 }
 0x792   : > { %4813 = vmax.xlane.f32.xlu1 %v18986_v27 }
 0x795   : > { %4815 = vmax.xlane.f32.xlu0 %v18996_v52 }
 0x797   : > { %v13199_v58 = vpop.f32.mrb[72].mxu1 }
 0x798   : > { %v19005_v30 = vadd.f32 %v19002_v47, %v13199_v58  ;;  %v3943_v20 = vpop.f32.mrb[73].mxu1 }
 0x799   : > { %v19013_v46 = vadd.f32 %v19010_v4, %v3943_v20 }
 0x79a   : > { %4819 = vmax.xlane.f32.xlu0 %v19005_v30 }
 0x79b   : > { %v13202_v24 = vpop.f32.mrb[74].mxu1  ;;  %4817 = vmax.xlane.f32.xlu1 %v19013_v46 }
 0x79c   : > { %v19023_v58 = vadd.f32 %v19020_v8, %v13202_v24  ;;  %v3953_v6 = vpop.f32.mrb[75].mxu1 }
 0x79d   : > { %v19031_v20 = vadd.f32 %v19028_v59, %v3953_v6 }
 0x79e   : > { %4823 = vmax.xlane.f32.xlu0 %v19023_v58 }
 0x79f   : > { %4821 = vmax.xlane.f32.xlu1 %v19031_v20 }
 0x7a3   : > { %v13205_v3 = vpop.f32.mrb[76].mxu1 }
 0x7a4   : > { %v19041_v24 = vadd.f32 %v19038_v36, %v13205_v3  ;;  %v3963_v54 = vpop.f32.mrb[77].mxu1 }
 0x7a5   : > { %v19049_v6 = vadd.f32 %v19046_v41, %v3963_v54 }
 0x7a6   : > { %4827 = vmax.xlane.f32.xlu0 %v19041_v24 }
 0x7a7   : > { %v13208_v44 = vpop.f32.mrb[78].mxu1  ;;  %4825 = vmax.xlane.f32.xlu1 %v19049_v6 }
 0x7a8   : > { %v19059_v3 = vadd.f32 %v19056_v63, %v13208_v44  ;;  %v3973_v19 = vpop.f32.mrb[79].mxu1 }
 0x7a9   : > { %v19067_v54 = vadd.f32 %v19064_v35, %v3973_v19 }
 0x7aa   : > { %4831 = vmax.xlane.f32.xlu0 %v19059_v3 }
 0x7ab   : > { %22486 = vst [vmem:[#allocation73_spill] sm:$0xff] %v19067_v54  ;;  %4829 = vmax.xlane.f32.xlu1 %v19067_v54 }
 0x7ae   : > { %v13243_v18 = vpop.f32.mrb[128].mxu0 }
 0x7af   : > { %v19072_v34 = vadd.f32 %v18922_v25, %v13243_v18  ;;  %v4176_v15 = vpop.f32.mrb[129].mxu0 }
 0x7b0   : > { %v19075_v44 = vadd.f32 %v18930_v23, %v4176_v15 }
 0x7b1   : > { %22487 = vst [vmem:[#allocation76_spill] sm:$0xff] %v19072_v34  ;;  %4835 = vmax.xlane.f32.xlu0 %v19072_v34 }
 0x7b2   : > { %22488 = vst [vmem:[#allocation78_spill] sm:$0xff] %v19075_v44  ;;  %v13246_v60 = vpop.f32.mrb[130].mxu0  ;;  %4833 = vmax.xlane.f32.xlu1 %v19075_v44 }
 0x7b3   : > { %v19080_v19 = vadd.f32 %v18953_v29, %v13246_v60  ;;  %v4186_v28 = vpop.f32.mrb[131].mxu0 }
 0x7b4   : > { %v19083_v0 = vadd.f32 %v18944_v10, %v4186_v28 }
 0x7b5   : > { %22489 = vst [vmem:[#allocation81_spill] sm:$0xff] %v19080_v19  ;;  %4839 = vmax.xlane.f32.xlu0 %v19080_v19 }
 0x7b6   : > { %22490 = vst [vmem:[#allocation79_spill] sm:$0xff] %v19083_v0  ;;  %4837 = vmax.xlane.f32.xlu1 %v19083_v0 }
 0x7ba   : > { %v13249_v18 = vpop.f32.mrb[132].mxu0 }
 0x7bb   : > { %v19088_v15 = vadd.f32 %v18973_v1, %v13249_v18  ;;  %v4196_v51 = vpop.f32.mrb[133].mxu0 }
 0x7bc   : > { %v19091_v17 = vadd.f32 %v18961_v16, %v4196_v51 }
 0x7bd   : > { %22491 = vst [vmem:[#allocation82_spill] sm:$0xff] %v19088_v15  ;;  %4843 = vmax.xlane.f32.xlu0 %v19088_v15 }
 0x7be   : > { %22492 = vst [vmem:[#allocation84_spill] sm:$0xff] %v19091_v17  ;;  %v13252_v60 = vpop.f32.mrb[134].mxu0  ;;  %4841 = vmax.xlane.f32.xlu1 %v19091_v17 }
 0x7bf   : > { %v19096_v28 = vadd.f32 %v18993_v12, %v13252_v60  ;;  %v4206_v62 = vpop.f32.mrb[135].mxu0 }
 0x7c0   : > { %v19099_v53 = vadd.f32 %v18983_v42, %v4206_v62 }
 0x7c1   : > { %22493 = vst [vmem:[#allocation87_spill] sm:$0xff] %v19096_v28  ;;  %4847 = vmax.xlane.f32.xlu0 %v19096_v28 }
 0x7c2   : > { %22494 = vst [vmem:[#allocation85_spill] sm:$0xff] %v19099_v53  ;;  %4845 = vmax.xlane.f32.xlu1 %v19099_v53 }
 0x7c6   : > { %v13255_v18 = vpop.f32.mrb[136].mxu0 }
 0x7c7   : > { %v19104_v51 = vadd.f32 %v19002_v47, %v13255_v18  ;;  %v4216_v14 = vpop.f32.mrb[137].mxu0 }
 0x7c8   : > { %v19107_v49 = vadd.f32 %v19010_v4, %v4216_v14 }
 0x7c9   : > { %22495 = vst [vmem:[#allocation88_spill] sm:$0xff] %v19104_v51  ;;  %4851 = vmax.xlane.f32.xlu0 %v19104_v51 }
 0x7ca   : > { %22496 = vst [vmem:[#allocation90_spill] sm:$0xff] %v19107_v49  ;;  %v13258_v60 = vpop.f32.mrb[138].mxu0  ;;  %4849 = vmax.xlane.f32.xlu1 %v19107_v49 }
 0x7cb   : > { %v19112_v62 = vadd.f32 %v19020_v8, %v13258_v60  ;;  %v4226_v61 = vpop.f32.mrb[139].mxu0 }
 0x7cc   : > { %v19115_v5 = vadd.f32 %v19028_v59, %v4226_v61 }
 0x7cd   : > { %22497 = vst [vmem:[#allocation93_spill] sm:$0xff] %v19112_v62  ;;  %4855 = vmax.xlane.f32.xlu0 %v19112_v62 }
 0x7ce   : > { %22498 = vst [vmem:[#allocation91_spill] sm:$0xff] %v19115_v5  ;;  %4853 = vmax.xlane.f32.xlu1 %v19115_v5 }
 0x7d2   : > { %v13261_v18 = vpop.f32.mrb[140].mxu0 }
 0x7d3   : > { %v19120_v14 = vadd.f32 %v19038_v36, %v13261_v18  ;;  %v4236_v50 = vpop.f32.mrb[141].mxu0 }
 0x7d4   : > { %v19123_v11 = vadd.f32 %v19046_v41, %v4236_v50 }
 0x7d5   : > { %22499 = vst [vmem:[#allocation94_spill] sm:$0xff] %v19120_v14  ;;  %4859 = vmax.xlane.f32.xlu0 %v19120_v14 }
 0x7d6   : > { %22500 = vst [vmem:[#allocation96_spill] sm:$0xff] %v19123_v11  ;;  %v13264_v60 = vpop.f32.mrb[142].mxu0  ;;  %4857 = vmax.xlane.f32.xlu1 %v19123_v11 }
 0x7d7   : > { %v19128_v61 = vadd.f32 %v19056_v63, %v13264_v60  ;;  %v4246_v57 = vpop.f32.mrb[143].mxu0 }
 0x7d8   : > { %v19131_v62 = vadd.f32 %v19064_v35, %v4246_v57 }
 0x7d9   : > { %22501 = vst [vmem:[#allocation98_spill] sm:$0xff] %v19128_v61  ;;  %4863 = vmax.xlane.f32.xlu0 %v19128_v61 }
 0x7da   : > { %22502 = vst [vmem:[#allocation97_spill] sm:$0xff] %v19131_v62  ;;  %4861 = vmax.xlane.f32.xlu1 %v19131_v62 }
 0x7dd   : > { %v13299_v18 = vpop.f32.mrb[80].mxu1 }
 0x7de   : > { %v19136_v50 = vadd.f32 %v18922_v25, %v13299_v18  ;;  %v4449_v5 = vpop.f32.mrb[81].mxu1 }
 0x7df   : > { %v19139_v14 = vadd.f32 %v18930_v23, %v4449_v5 }
 0x7e0   : > { %22503 = vst [vmem:[#allocation99_spill] sm:$0xff] %v19136_v50  ;;  %4867 = vmax.xlane.f32.xlu0 %v19136_v50  ;;  %v4804_v0 = vpop.xlane.xlu1 %4803 }
 0x7e1   : > { %22504 = vst [vmem:[#allocation102_spill] sm:$0xff] %v19139_v14  ;;  %v13302_v60 = vpop.f32.mrb[82].mxu1  ;;  %4865 = vmax.xlane.f32.xlu1 %v19139_v14  ;;  %v4802_v15 = vpop.xlane.xlu0 %4801  ;;  %v4930_v26 = vsub.f32 %v18925_v37, %v4804_v0 }
 0x7e2   : > { %v19144_v57 = vadd.f32 %v18953_v29, %v13302_v60  ;;  %v4459_v11 = vpop.f32.mrb[83].mxu1 }
 0x7e3   : > { %v19147_v61 = vadd.f32 %v18944_v10, %v4459_v11 }
 0x7e4   : > { %22505 = vst [vmem:[#allocation104_spill] sm:$0xff] %v19144_v57  ;;  %4871 = vmax.xlane.f32.xlu0 %v19144_v57 }
 0x7e5   : > { %22506 = vst [vmem:[#allocation103_spill] sm:$0xff] %v19147_v61  ;;  %4869 = vmax.xlane.f32.xlu1 %v19147_v61 }
 0x7e6   : > { %v13305_v18 = vpop.f32.mrb[84].mxu1 }
 0x7e7   : > { %v19152_v5 = vadd.f32 %v18973_v1, %v13305_v18  ;;  %v4469_v62 = vpop.f32.mrb[85].mxu1 }
 0x7e8   : > { %v19155_v50 = vadd.f32 %v18961_v16, %v4469_v62 }
 0x7e9   : > { %22507 = vst [vmem:[#allocation105_spill] sm:$0xff] %v19152_v5  ;;  %4875 = vmax.xlane.f32.xlu0 %v19152_v5 }
 0x7ea   : > { %22508 = vst [vmem:[#allocation108_spill] sm:$0xff] %v19155_v50  ;;  %v13308_v60 = vpop.f32.mrb[86].mxu1  ;;  %4873 = vmax.xlane.f32.xlu1 %v19155_v50 }
 0x7eb   : > { %v19160_v11 = vadd.f32 %v18993_v12, %v13308_v60  ;;  %v4479_v14 = vpop.f32.mrb[87].mxu1 }
 0x7ec   : > { %v19163_v57 = vadd.f32 %v18983_v42, %v4479_v14 }
 0x7ed   : > { %22509 = vst [vmem:[#allocation114_spill] sm:$0xff] %v19160_v11  ;;  %4879 = vmax.xlane.f32.xlu0 %v19160_v11 }
 0x7ee   : > { %22510 = vst [vmem:[#allocation109_spill] sm:$0xff] %v19163_v57  ;;  %4877 = vmax.xlane.f32.xlu1 %v19163_v57 }
 0x7f1   : > { %v13311_v18 = vpop.f32.mrb[88].mxu1 }
 0x7f2   : > { %v19168_v62 = vadd.f32 %v19002_v47, %v13311_v18  ;;  %v4489_v61 = vpop.f32.mrb[89].mxu1 }
 0x7f3   : > { %v19171_v5 = vadd.f32 %v19010_v4, %v4489_v61 }
 0x7f4   : > { %22511 = vst [vmem:[#allocation111_spill] sm:$0xff] %v19168_v62  ;;  %4883 = vmax.xlane.f32.xlu0 %v19168_v62 }
 0x7f5   : > { %22512 = vst [vmem:[#allocation115_spill] sm:$0xff] %v19171_v5  ;;  %v13314_v60 = vpop.f32.mrb[90].mxu1  ;;  %4881 = vmax.xlane.f32.xlu1 %v19171_v5 }
 0x7f6   : > { %v4499_v50 = vpop.f32.mrb[91].mxu1  ;;  %v19180_v11 = vadd.f32 %v19020_v8, %v13314_v60 }
 0x7f7   : > { %v19176_v14 = vadd.f32 %v19028_v59, %v4499_v50  ;;  %v22515_v50 = vld [vmem:[#allocation68_spill] sm:$0xff] }
 0x7f8   : > { %22514 = vst [vmem:[#allocation110_spill] sm:$0xff] %v19180_v11 }
 0x7f9   : > { %22513 = vst [vmem:[#allocation117_spill] sm:$0xff] %v19176_v14  ;;  %4885 = vmax.xlane.f32.xlu0 %v19176_v14 }
 0x7fa   : > { %v13317_v57 = vpop.f32.mrb[92].mxu1 }
 0x7fb   : > { %v4509_v18 = vpop.f32.mrb[93].mxu1 }
 0x7fd   : > { %4887 = vmax.xlane.f32.xlu0 %v19180_v11 }
 0x7fe   : > { %v19183_v61 = vpop.f32.mrb[94].mxu1 }
 0x7ff   : > { %v4519_v51 = vpop.f32.mrb[95].mxu1 }
 0x802   : > { %v19185_v62 = vpop.f32.mrb[144].mxu0 }
 0x803   : > { %v19187_v7 = vpop.f32.mrb[145].mxu0 }
 0x806   : > { %v19189_v5 = vpop.f32.mrb[146].mxu0  ;;  %15504 = vrot.lane.b32.xlu1 %v22515_v50, %s16205_s20  ;;  %v4929_v50 = vsub.f32 %v18933_v2, %v4802_v15 }
 0x807   : > { %v19193_v14 = vpop.f32.mrb[147].mxu0 }
 0x808   : > { %v4993_v34 = vmul.f32 1.442695, %v4929_v50 }
 0x80a   : > { %v19195_v60 = vpop.f32.mrb[148].mxu0  ;;  %15919 = vpow2.f32 %v4993_v34 }
 0x80b   : > { %v19197_v49 = vpop.f32.mrb[149].mxu0 }
 0x80e   : > { %v19199_v11 = vpop.f32.mrb[150].mxu0 }
 0x80f   : > { %v19201_v53 = vpop.f32.mrb[151].mxu0 }
 0x812   : > { %v19203_v48 = vpop.f32.mrb[152].mxu0 }
 0x813   : > { %15509 = vrot.lane.b32.xlu0 %v22279_v55, %s16205_s20  ;;  %v19207_v28 = vpop.f32.mrb[153].mxu0  ;;  %v4995_v55 = vmul.f32 1.442695, %v4930_v26 }
 0x814   : > { %v19224_v4 = vpop.eup %15919 }
 0x815   : > { %15921 = vpow2.f32 %v4995_v55 }
 0x816   : > { %v19209_v21 = vpop.f32.mrb[154].mxu0  ;;  %v4806_v38 = vpop.xlane.xlu0 %4805 }
 0x817   : > { %22516 = vst [vmem:[#allocation120_spill] sm:$0xff] %v19209_v21  ;;  %v19212_v17 = vpop.f32.mrb[155].mxu0  ;;  %v4931_v2 = vsub.f32 %v18947_v22, %v4806_v38  ;;  %v19234_v38 = vadd.f32 %v19038_v36, %v13317_v57  ;;  %v19237_v22 = vadd.f32 %v19046_v41, %v4509_v18 }
 0x818   : > { %22517 = vst [vmem:[#allocation116_spill] sm:$0xff] %v19212_v17 }
 0x819   : > { %v4997_v21 = vmul.f32 1.442695, %v4931_v2  ;;  %22519 = vst [vmem:[#allocation121_spill] sm:$0xff] %v19234_v38  ;;  %22520 = vst [vmem:[#allocation125_spill] sm:$0xff] %v19237_v22 }
 0x81a   : > { %v19214_v19 = vpop.f32.mrb[156].mxu0  ;;  %v4808_v54 = vpop.xlane.xlu0 %4807 }
 0x81b   : > { %v19217_v8 = vpop.f32.mrb[157].mxu0  ;;  %v4810_v17 = vpop.xlane.xlu1 %4809  ;;  %15923 = vpow2.f32 %v4997_v21  ;;  %v4932_v0 = vsub.f32 %v18956_v9, %v4808_v54 }
 0x81c   : > { %v4933_v21 = vsub.f32 %v18964_v39, %v4810_v17 }
 0x81d   : > { %v4999_v26 = vmul.f32 1.442695, %v4932_v0  ;;  %v19253_v0 = vadd.f32 %v19064_v35, %v4519_v51 }
 0x81e   : > { %v19219_v44 = vpop.f32.mrb[158].mxu0  ;;  %v4812_v15 = vpop.xlane.xlu0 %4811  ;;  %v5001_v54 = vmul.f32 1.442695, %v4933_v21 }
 0x81f   : > { %v19221_v59 = vpop.f32.mrb[159].mxu0  ;;  %v19228_v50 = vpop.eup %15921  ;;  %15925 = vpow2.f32 %v4999_v26  ;;  %v4934_v57 = vsub.f32 %v18976_v40, %v4812_v15  ;;  %22522 = vst [vmem:[#allocation130_spill] sm:$0xff] %v19253_v0  ;;  %v19267_v40 = vadd.f32 %v19056_v63, %v19183_v61 }
 0x820   : > { %22518 = vst [vmem:[#allocation122_spill] sm:$0xff] %v19228_v50  ;;  %v19230_v34 = vpop.xlane.xlu1 %4813  ;;  %15927 = vpow2.f32 %v5001_v54 }
 0x821   : > { %v5003_v26 = vmul.f32 1.442695, %v4934_v57  ;;  %22524 = vst [vmem:[#allocation131_spill] sm:$0xff] %v19267_v40 }
 0x822   : > { %v4816_v37 = vpop.xlane.xlu0 %4815 }
 0x823   : > { %15929 = vpow2.f32 %v5003_v26 }
 0x825   : > { %v19246_v9 = vpop.eup %15923 }
 0x826   : > { %22521 = vst [vmem:[#allocation123_spill] sm:$0xff] %v19246_v9 }
 0x827   : > { %v19239_v55 = vpop.xlane.xlu0 %4819 }
 0x828   : > { %v19241_v2 = vpop.xlane.xlu1 %4817 }
 0x829   : > { %v19262_v39 = vpop.eup %15925 }
 0x82a   : > { %5121 = vadd.xlane.f32.xlu1 %v19224_v4  ;;  %22523 = vst [vmem:[#allocation124_spill] sm:$0xff] %v19262_v39  ;;  %v19276_v21 = vpop.eup %15927 }
 0x82b   : > { %v19250_v18 = vpop.xlane.xlu0 %4823  ;;  %22525 = vst [vmem:[#allocation129_spill] sm:$0xff] %v19276_v21 }
 0x82d   : > { %v19285_v61 = vpop.eup %15929 }
 0x82e   : > { %5123 = vadd.xlane.f32.xlu1 %v19228_v50  ;;  %v19255_v50 = vpop.xlane.xlu1 %4821  ;;  %22526 = vst [vmem:[#allocation134_spill] sm:$0xff] %v19285_v61 }
 0x832   : > { %4889 = vmax.xlane.f32.xlu0 %v19237_v22  ;;  %4891 = vmax.xlane.f32.xlu1 %v19234_v38 }
 0x833   : > { %v19258_v38 = vpop.xlane.xlu0 %4827 }
 0x834   : > { %v19260_v17 = vpop.xlane.xlu1 %4825 }
 0x836   : > { %5125 = vadd.xlane.f32.xlu0 %v19246_v9 }
 0x837   : > { %v19269_v51 = vpop.xlane.xlu0 %4831 }
 0x838   : > { %v19271_v15 = vpop.xlane.xlu1 %4829 }
 0x83a   : > { %4893 = vmax.xlane.f32.xlu0 %v19253_v0 }
 0x83e   : > { %5127 = vadd.xlane.f32.xlu0 %v19262_v39  ;;  %v19278_v54 = vpop.xlane.xlu0 %4835 }
 0x83f   : > { %v19280_v57 = vpop.xlane.xlu1 %4833 }
 0x842   : > { %4895 = vmax.xlane.f32.xlu0 %v19267_v40  ;;  %v19288_v26 = vpop.xlane.xlu0 %4839 }
 0x843   : > { %15514 = vrot.lane.b32.xlu1 %v22286_v32, %s16205_s20  ;;  %v19292_v32 = vadd.f32 %v18922_v25, %v19185_v62  ;;  %v19294_v0 = vpop.xlane.xlu1 %4837  ;;  %v4936_v25 = vsub.f32 %v18996_v52, %v4816_v37  ;;  %v19331_v52 = vadd.f32 %v18944_v10, %v19193_v14  ;;  %v4937_v10 = vsub.f32 %v19013_v46, %v19241_v2 }
 0x844   : > { %v19351_v14 = vadd.f32 %v18953_v29, %v19189_v5 }
 0x845   : > { %22527 = vst [vmem:[#allocation132_spill] sm:$0xff] %v19292_v32  ;;  %22533 = vst [vmem:[#allocation141_spill] sm:$0xff] %v19331_v52 }
 0x846   : > { %5129 = vadd.xlane.f32.xlu0 %v19276_v21  ;;  %22536 = vst [vmem:[#allocation146_spill] sm:$0xff] %v19351_v14 }
 0x847   : > { %15519 = vrot.lane.b32.xlu1 %v22295_v31, %s16205_s20 }
 0x84a   : > { %5131 = vadd.xlane.f32.xlu0 %v19285_v61  ;;  %v19297_v40 = vpop.xlane.xlu0 %4843 }
 0x84b   : > { %22528 = vst [vmem:[#allocation137_spill] sm:$0xff] %v19297_v40  ;;  %v19299_v22 = vpop.xlane.xlu1 %4841 }
 0x84e   : > { %4899 = vmax.xlane.f32.xlu0 %v19292_v32  ;;  %v19301_v21 = vpop.xlane.xlu0 %4847  ;;  %v5007_v32 = vmul.f32 1.442695, %v4936_v25 }
 0x84f   : > { %v19303_v31 = vpop.xlane.xlu1 %4845 }
 0x850   : > { %15931 = vpow2.f32 %v5007_v32 }
 0x856   : > { %v19305_v39 = vpop.xlane.xlu0 %4851 }
 0x857   : > { %22529 = vst [vmem:[#allocation135_spill] sm:$0xff] %v19305_v39  ;;  %v19307_v61 = vpop.xlane.xlu1 %4849  ;;  %v19322_v39 = vadd.f32 %v18930_v23, %v19187_v7 }
 0x858   : > { %22530 = vst [vmem:[#allocation140_spill] sm:$0xff] %v19307_v61 }
 0x859   : > { %22532 = vst [vmem:[#allocation143_spill] sm:$0xff] %v19322_v39 }
 0x85a   : > { %v19309_v9 = vpop.xlane.xlu0 %4855  ;;  %v19342_v23 = vpop.eup %15931 }
 0x85b   : > { %22531 = vst [vmem:[#allocation138_spill] sm:$0xff] %v19309_v9  ;;  %v19312_v62 = vpop.xlane.xlu1 %4853 }
 0x862   : > { %v19314_v63 = vpop.xlane.xlu0 %4859 }
 0x863   : > { %v19316_v40 = vpop.xlane.xlu1 %4857 }
 0x864   : > { %15524 = vrot.lane.b32.xlu0 %v22300_v33, %s16205_s20  ;;  %v4935_v33 = vsub.f32 %v18986_v27, %v19230_v34  ;;  %v4938_v27 = vsub.f32 %v19005_v30, %v19239_v55  ;;  %v5009_v34 = vmul.f32 1.442695, %v4937_v10 }
 0x866   : > { %v19324_v61 = vpop.xlane.xlu0 %4863 }
 0x867   : > { %v19326_v9 = vpop.xlane.xlu1 %4861 }
 0x86b   : > { %4897 = vmax.xlane.f32.xlu1 %v19322_v39  ;;  %v5005_v39 = vmul.f32 1.442695, %v4935_v33 }
 0x86d   : > { %v19333_v37 = vpop.xlane.xlu0 %4867  ;;  %15933 = vpow2.f32 %v5005_v39 }
 0x86e   : > { %v19335_v25 = vpop.xlane.xlu1 %4865  ;;  %15935 = vpow2.f32 %v5009_v34 }
 0x86f   : > { %4901 = vmax.xlane.f32.xlu1 %v19331_v52 }
 0x871   : > { %v19340_v7 = vpop.xlane.xlu0 %4871 }
 0x872   : > { %22534 = vst [vmem:[#allocation148_spill] sm:$0xff] %v19340_v7  ;;  %v19344_v32 = vpop.xlane.xlu1 %4869  ;;  %v5011_v7 = vmul.f32 1.442695, %v4938_v27 }
 0x873   : > { %22535 = vst [vmem:[#allocation144_spill] sm:$0xff] %v19344_v32  ;;  %5135 = vadd.xlane.f32.xlu1 %v19342_v23 }
 0x874   : > { %15937 = vpow2.f32 %v5011_v7 }
 0x876   : > { %v19353_v52 = vpop.xlane.xlu0 %4875 }
 0x877   : > { %4903 = vmax.xlane.f32.xlu1 %v19351_v14  ;;  %v19358_v32 = vpop.xlane.xlu1 %4873  ;;  %v19366_v5 = vpop.eup %15933 }
 0x878   : > { %v19371_v39 = vpop.eup %15935 }
 0x87a   : > { %v19360_v33 = vpop.xlane.xlu0 %4879 }
 0x87b   : > { %v19362_v46 = vpop.xlane.xlu1 %4877 }
 0x87c   : > { %22537 = vst [vmem:[#allocation149_spill] sm:$0xff] %v19362_v46 }
 0x87e   : > { %v19378_v34 = vpop.eup %15937 }
 0x881   : > { %v19364_v29 = vpop.xlane.xlu0 %4883 }
 0x882   : > { %22538 = vst [vmem:[#allocation152_spill] sm:$0xff] %v19364_v29  ;;  %v19368_v2 = vpop.xlane.xlu1 %4881 }
 0x883   : > { %22539 = vst [vmem:[#allocation147_spill] sm:$0xff] %v19368_v2  ;;  %5133 = vadd.xlane.f32.xlu0 %v19366_v5 }
 0x886   : > { %v19373_v30 = vpop.xlane.xlu0 %4885  ;;  %v15505_v55 = vpop.permute.xlu1 %15504 }
 0x887   : > { %22540 = vst [vmem:[#allocation155_spill] sm:$0xff] %v19373_v30  ;;  %v15507_v10 = vunpack.i.h.bf16 %v15505_v55  ;;  %v15506_v27 = vunpack.i.l.bf16 %v15505_v55  ;;  %5137 = vadd.xlane.f32.xlu0 %v19371_v39  ;;  %v19385_v30 = vadd.f32 %v18973_v1, %v19195_v60  ;;  %v19394_v1 = vadd.f32 %v18961_v16, %v19197_v49 }
 0x888   : > { %15529 = vrot.lane.b32.xlu1 %v22322_v13, %s16205_s20  ;;  %v4940_v13 = vsub.f32 %v19023_v58, %v19250_v18  ;;  %v19399_v60 = vadd.f32 %v18983_v42, %v19201_v53  ;;  %v4939_v58 = vsub.f32 %v19031_v20, %v19255_v50  ;;  %v4941_v49 = vsub.f32 %v19049_v6, %v19260_v17 }
 0x889   : > { %v14761_v7 = vpack.c.bf16 %v15507_v10, %v15506_v27  ;;  %v19411_v16 = vadd.f32 %v18993_v12, %v19199_v11  ;;  %v4942_v53 = vsub.f32 %v19041_v24, %v19258_v38 }
 0x88a   : > { %v19380_v14 = vpop.xlane.xlu0 %4887  ;;  %v5015_v10 = vmul.f32 1.442695, %v4940_v13  ;;  %22541 = vst [vmem:[#allocation153_spill] sm:$0xff] %v19399_v60  ;;  %v5017_v42 = vmul.f32 1.442695, %v4941_v49 }
 0x88b   : > { %5139 = vadd.xlane.f32.xlu0 %v19378_v34  ;;  %14762 = vmatprep.subr.bf16.mxu1 %v14761_v7  ;;  %v5019_v50 = vmul.f32 1.442695, %v4942_v53  ;;  %v19442_v53 = vadd.f32 %v19002_v47, %v19203_v48  ;;  %v22543_v47 = vld [vmem:[#allocation70_spill] sm:$0xff] }
 0x88c   : > { %14764 = vmatpush3.bf16.msra.mxu1 %v14761_v7  ;;  %15939 = vpow2.f32 %v5015_v10 }
 0x88d   : > { %22542 = vst [vmem:[#allocation160_spill] sm:$0xff] %v19442_v53 }
 0x88e   : > { %v15510_v29 = vpop.permute.xlu0 %15509 }
 0x88f   : > { %v15512_v55 = vunpack.i.h.bf16 %v15510_v29  ;;  %v15511_v2 = vunpack.i.l.bf16 %v15510_v29  ;;  %4907 = vmax.xlane.f32.xlu0 %v19385_v30 }
 0x891   : > { %v14765_v46 = vpack.c.bf16 %v15512_v55, %v15511_v2 }
 0x893   : > { %14766 = vmatprep.subr.bf16.mxu1 %v14765_v46 }
 0x894   : > { %14768 = vmatpush3.bf16.msra.mxu1 %v14765_v46 }
 0x896   : > { %v19404_v18 = vpop.eup %15939 }
 0x8a5   : > { %15534 = vrot.lane.b32.xlu0 %v22345_v56, %s16205_s20  ;;  %v5013_v56 = vmul.f32 1.442695, %v4939_v58 }
 0x8ac   : > { %4905 = vmax.xlane.f32.xlu1 %v19394_v1 }
 0x8b0   : > { %4909 = vmax.xlane.f32.xlu1 %v19399_v60 }
 0x8b4   : > { %5143 = vadd.xlane.f32.xlu1 %v19404_v18 }
 0x8b7   : > { %v5122_v46 = vpop.xlane.xlu1 %5121 }
 0x8b8   : > { %15941 = vrcp.f32 %v5122_v46  ;;  %4911 = vmax.xlane.f32.xlu1 %v19411_v16 }
 0x8b9   : > { %15943 = vpow2.f32 %v5013_v56 }
 0x8ba   : > { %15945 = vpow2.f32 %v5017_v42 }
 0x8bb   : > { %v19416_v20 = vpop.xlane.xlu1 %5123  ;;  %15947 = vpow2.f32 %v5019_v50 }
 0x8bf   : > { %v19418_v29 = vpop.xlane.xlu0 %4889  ;;  %v19420_v6 = vpop.xlane.xlu1 %4891 }
 0x8c2   : > { %v15942_v12 = vpop.eup %15941 }
 0x8c3   : > { %v19422_v11 = vpop.eup %15943  ;;  %v19424_v17 = vpop.xlane.xlu0 %5125  ;;  %v5250_v27 = vmul.f32 %v15942_v12, %v19224_v4 }
 0x8c4   : > { %v15515_v2 = vpop.permute.xlu1 %15514  ;;  %5141 = vadd.xlane.f32.xlu0 %v19422_v11  ;;  %v19428_v55 = vpop.eup %15945 }
 0x8c5   : > { %v15517_v7 = vunpack.i.h.bf16 %v15515_v2  ;;  %v15516_v24 = vunpack.i.l.bf16 %v15515_v2  ;;  %13409 = vmatprep.mubr.f32.mxu1 %v5250_v27  ;;  %v19435_v49 = vpop.eup %15947 }
 0x8c7   : > { %v14769_v38 = vpack.c.bf16 %v15517_v7, %v15516_v24  ;;  %v19430_v13 = vpop.xlane.xlu0 %4893  ;;  %v4944_v24 = vsub.f32 %v19059_v3, %v19269_v51  ;;  %v22548_v3 = vld [vmem:[#allocation73_spill] sm:$0xff] }
 0x8c8   : > { %v15520_v10 = vpop.permute.xlu1 %15519  ;;  %5145 = vadd.xlane.f32.xlu0 %v19428_v55  ;;  %v4943_v51 = vsub.f32 %v22548_v3, %v19271_v15 }
 0x8c9   : > { %v15522_v58 = vunpack.i.h.bf16 %v15520_v10  ;;  %v15521_v56 = vunpack.i.l.bf16 %v15520_v10  ;;  %14770 = vmatprep.subr.bf16.mxu1 %v14769_v38  ;;  %15539 = vrot.lane.b32.xlu1 %v22359_v43, %s16205_s20  ;;  %v5023_v48 = vmul.f32 1.442695, %v4944_v24  ;;  %v19459_v10 = vadd.f32 %v22543_v47, %v19207_v28  ;;  %v22551_v24 = vld [vmem:[#allocation72_spill] sm:$0xff] }
 0x8ca   : > { %14772 = vmatpush3.bf16.msra.mxu1 %v14769_v38  ;;  %v22553_v47 = vld [vmem:[#allocation76_spill] sm:$0xff] }
 0x8cb   : > { %v14773_v4 = vpack.c.bf16 %v15522_v58, %v15521_v56  ;;  %v19437_v46 = vpop.xlane.xlu0 %5127  ;;  %15949 = vpow2.f32 %v5023_v48  ;;  %22544 = vst [vmem:[#allocation156_spill] sm:$0xff] %v19459_v10  ;;  %v22545_v58 = vld [vmem:[#allocation116_spill] sm:$0xff]  ;;  %v22546_v56 = vld [vmem:[#allocation69_spill] sm:$0xff]  ;;  %v4946_v15 = vsub.f32 %v22553_v47, %v19278_v54  ;;  %v22554_v54 = vld [vmem:[#allocation95_spill] sm:$0xff] }
 0x8cc   : > { %5147 = vadd.xlane.f32.xlu0 %v19435_v49 }
 0x8cd   : > { %14774 = vmatprep.subr.bf16.mxu1 %v14773_v4  ;;  %v5027_v3 = vmul.f32 1.442695, %v4946_v15  ;;  %v19502_v15 = vadd.f32 %v19038_v36, %v19214_v19  ;;  %v22557_v36 = vld [vmem:[#allocation100_spill] sm:$0xff]  ;;  %v19513_v19 = vadd.f32 %v19046_v41, %v19217_v8  ;;  %v22562_v8 = vld [vmem:[#allocation75_spill] sm:$0xff] }
 0x8ce   : > { %14776 = vmatpush3.bf16.msra.mxu1 %v14773_v4  ;;  %v19464_v4 = vadd.f32 %v22546_v56, %v22545_v58 }
 0x8cf   : > { %v19444_v42 = vpop.xlane.xlu0 %4895  ;;  %22555 = vst [vmem:[#allocation70_spill] sm:$0xff] %v19502_v15  ;;  %22558 = vst [vmem:[#allocation116_spill] sm:$0xff] %v19513_v19 }
 0x8d0   : > { %4915 = vmax.xlane.f32.xlu0 %v19442_v53  ;;  %22547 = vst [vmem:[#allocation161_spill] sm:$0xff] %v19464_v4 }
 0x8d3   : > { %v19447_v50 = vpop.xlane.xlu0 %5129 }
 0x8d7   : > { %v19449_v43 = vpop.xlane.xlu0 %5131 }
 0x8db   : > { %v19451_v12 = vpop.xlane.xlu0 %4899 }
 0x8df   : > { %v15525_v2 = vpop.permute.xlu0 %15524 }
 0x8e0   : > { %v15527_v27 = vunpack.i.h.bf16 %v15525_v2  ;;  %v15526_v7 = vunpack.i.l.bf16 %v15525_v2  ;;  %v19469_v2 = vpop.eup %15949 }
 0x8e2   : > { %v14777_v38 = vpack.c.bf16 %v15527_v27, %v15526_v7  ;;  %v22549_v27 = vld [vmem:[#allocation78_spill] sm:$0xff]  ;;  %v22550_v7 = vld [vmem:[#allocation120_spill] sm:$0xff] }
 0x8e3   : > { %v4945_v28 = vsub.f32 %v22549_v27, %v19280_v57 }
 0x8e4   : > { %14778 = vmatprep.subr.bf16.mxu1 %v14777_v38 }
 0x8e5   : > { %14780 = vmatpush3.bf16.msra.mxu1 %v14777_v38  ;;  %v19476_v38 = vadd.f32 %v22551_v24, %v22550_v7  ;;  %v5025_v58 = vmul.f32 1.442695, %v4945_v28 }
 0x8e6   : > { %15544 = vrot.lane.b32.xlu0 %v22303_v45, %s16205_s20  ;;  %v5021_v45 = vmul.f32 1.442695, %v4943_v51 }
 0x8e7   : > { %22552 = vst [vmem:[#allocation68_spill] sm:$0xff] %v19476_v38 }
 0x8e8   : > { %15951 = vpow2.f32 %v5021_v45 }
 0x8e9   : > { %15953 = vpow2.f32 %v5025_v58 }
 0x8ea   : > { %15955 = vpow2.f32 %v5027_v3 }
 0x8ed   : > { %4913 = vmax.xlane.f32.xlu1 %v19459_v10 }
 0x8f1   : > { %4917 = vmax.xlane.f32.xlu1 %v19464_v4 }
 0x8f2   : > { %v19487_v57 = vpop.eup %15951 }
 0x8f3   : > { %v19492_v7 = vpop.eup %15953 }
 0x8f4   : > { %v19497_v47 = vpop.eup %15955 }
 0x8f5   : > { %5151 = vadd.xlane.f32.xlu1 %v19469_v2 }
 0x8f8   : > { %v19478_v48 = vpop.xlane.xlu1 %4897 }
 0x8f9   : > { %4919 = vmax.xlane.f32.xlu1 %v19476_v38 }
 0x8fc   : > { %v19483_v56 = vpop.xlane.xlu1 %4901 }
 0x900   : > { %v19485_v51 = vpop.xlane.xlu1 %5135 }
 0x904   : > { %v19489_v27 = vpop.xlane.xlu1 %4903 }
 0x905   : > { %5149 = vadd.xlane.f32.xlu0 %v19487_v57 }
 0x908   : > { %v15530_v45 = vpop.permute.xlu1 %15529 }
 0x909   : > { %v15532_v24 = vunpack.i.h.bf16 %v15530_v45  ;;  %v15531_v4 = vunpack.i.l.bf16 %v15530_v45  ;;  %5153 = vadd.xlane.f32.xlu0 %v19492_v7 }
 0x90a   : > { %15549 = vrot.lane.b32.xlu1 %v22554_v54, %s16205_s20 }
 0x90b   : > { %v14781_v28 = vpack.c.bf16 %v15532_v24, %v15531_v4  ;;  %v22556_v24 = vld [vmem:[#allocation81_spill] sm:$0xff] }
 0x90c   : > { %v4948_v10 = vsub.f32 %v22556_v24, %v19288_v26  ;;  %v22560_v26 = vld [vmem:[#allocation79_spill] sm:$0xff]  ;;  %v19530_v24 = vadd.f32 %v22562_v8, %v19219_v44 }
 0x90d   : > { %5155 = vadd.xlane.f32.xlu0 %v19497_v47  ;;  %14782 = vmatprep.subr.bf16.mxu1 %v14781_v28 }
 0x90e   : > { %14784 = vmatpush3.bf16.msra.mxu1 %v14781_v28  ;;  %v5031_v28 = vmul.f32 1.442695, %v4948_v10  ;;  %22563 = vst [vmem:[#allocation73_spill] sm:$0xff] %v19530_v24 }
 0x910   : > { %v5134_v58 = vpop.xlane.xlu0 %5133  ;;  %15957 = vpow2.f32 %v5031_v28 }
 0x911   : > { %4923 = vmax.xlane.f32.xlu0 %v19502_v15 }
 0x914   : > { %v5138_v3 = vpop.xlane.xlu0 %5137 }
 0x918   : > { %v5140_v45 = vpop.xlane.xlu0 %5139 }
 0x91a   : > { %v19523_v10 = vpop.eup %15957 }
 0x91c   : > { %v19505_v38 = vpop.xlane.xlu0 %4907 }
 0x920   : > { %v15535_v53 = vpop.permute.xlu0 %15534 }
 0x921   : > { %v15537_v54 = vunpack.i.h.bf16 %v15535_v53  ;;  %v15536_v4 = vunpack.i.l.bf16 %v15535_v53  ;;  %v19518_v53 = vadd.f32 %v19064_v35, %v19221_v59 }
 0x923   : > { %v14785_v60 = vpack.c.bf16 %v15537_v54, %v15536_v4  ;;  %22559 = vst [vmem:[#allocation69_spill] sm:$0xff] %v19518_v53  ;;  %v22561_v4 = vld [vmem:[#allocation84_spill] sm:$0xff] }
 0x924   : > { %v4949_v41 = vsub.f32 %v22561_v4, %v19299_v22 }
 0x925   : > { %14786 = vmatprep.subr.bf16.mxu1 %v14785_v60 }
 0x926   : > { %14788 = vmatpush3.bf16.msra.mxu1 %v14785_v60  ;;  %v4947_v60 = vsub.f32 %v22560_v26, %v19294_v0  ;;  %v5033_v35 = vmul.f32 1.442695, %v4949_v41 }
 0x927   : > { %15554 = vrot.lane.b32.xlu0 %v22557_v36, %s16205_s20 }
 0x928   : > { %v5029_v54 = vmul.f32 1.442695, %v4947_v60 }
 0x92a   : > { %15959 = vpow2.f32 %v5029_v54 }
 0x92b   : > { %15961 = vpow2.f32 %v5033_v35 }
 0x92c   : > { %15963 = vrcp.f32 %v19416_v20  ;;  %v22564_v20 = vld [vmem:[#allocation101_spill] sm:$0xff] }
 0x92d   : > { %15965 = vrcp.f32 %v19424_v17 }
 0x92e   : > { %4921 = vmax.xlane.f32.xlu1 %v19513_v19  ;;  %15967 = vrcp.f32 %v19437_v46  ;;  %v22565_v46 = vld [vmem:[#allocation122_spill] sm:$0xff]  ;;  %v22599_v19 = vld [vmem:[#allocation144_spill] sm:$0xff] }
 0x92f   : > { %15969 = vrcp.f32 %v19447_v50 }
 0x930   : > { %15971 = vrcp.f32 %v19449_v43  ;;  %v22567_v43 = vld [vmem:[#allocation124_spill] sm:$0xff] }
 0x931   : > { %15973 = vrcp.f32 %v5134_v58 }
 0x932   : > { %4925 = vmax.xlane.f32.xlu1 %v19518_v53  ;;  %15975 = vrcp.f32 %v19485_v51 }
 0x933   : > { %15977 = vrcp.f32 %v5138_v3  ;;  %v22569_v3 = vld [vmem:[#allocation134_spill] sm:$0xff] }
 0x934   : > { %v19539_v36 = vpop.eup %15959  ;;  %15979 = vrcp.f32 %v5140_v45 }
 0x935   : > { %v19546_v44 = vpop.eup %15961 }
 0x936   : > { %5159 = vadd.xlane.f32.xlu1 %v19523_v10  ;;  %v15964_v4 = vpop.eup %15963 }
 0x937   : > { %v15966_v41 = vpop.eup %15965  ;;  %v5252_v50 = vmul.f32 %v15964_v4, %v22565_v46 }
 0x938   : > { %v15968_v8 = vpop.eup %15967 }
 0x939   : > { %v19532_v28 = vpop.xlane.xlu1 %4905  ;;  %v5256_v58 = vmul.f32 %v15968_v8, %v22567_v43 }
 0x93a   : > { %4927 = vmax.xlane.f32.xlu1 %v19530_v24  ;;  %v15970_v24 = vpop.eup %15969 }
 0x93d   : > { %v19535_v59 = vpop.xlane.xlu1 %4909 }
 0x941   : > { %v5144_v0 = vpop.xlane.xlu1 %5143 }
 0x945   : > { %v19541_v22 = vpop.xlane.xlu1 %4911 }
 0x946   : > { %5157 = vadd.xlane.f32.xlu0 %v19539_v36 }
 0x949   : > { %v15540_v26 = vpop.permute.xlu1 %15539 }
 0x94a   : > { %v15542_v60 = vunpack.i.h.bf16 %v15540_v26  ;;  %v15541_v54 = vunpack.i.l.bf16 %v15540_v26  ;;  %5161 = vadd.xlane.f32.xlu0 %v19546_v44  ;;  %v22566_v26 = vld [vmem:[#allocation123_spill] sm:$0xff] }
 0x94b   : > { %15559 = vrot.lane.b32.xlu1 %v22564_v20, %s16205_s20  ;;  %v5254_v15 = vmul.f32 %v15966_v41, %v22566_v26  ;;  %v22568_v20 = vld [vmem:[#allocation129_spill] sm:$0xff] }
 0x94c   : > { %v14789_v17 = vpack.c.bf16 %v15542_v60, %v15541_v54  ;;  %v15972_v60 = vpop.eup %15971  ;;  %v5258_v53 = vmul.f32 %v15970_v24, %v22568_v20 }
 0x94d   : > { %v15974_v51 = vpop.eup %15973 }
 0x94e   : > { %14790 = vmatprep.subr.bf16.mxu1 %v14789_v17  ;;  %v15976_v4 = vpop.eup %15975  ;;  %v5262_v46 = vmul.f32 %v15974_v51, %v19366_v5  ;;  %v22572_v5 = vld [vmem:[#allocation87_spill] sm:$0xff] }
 0x94f   : > { %14792 = vmatpush3.bf16.msra.mxu1 %v14789_v17  ;;  %v5260_v17 = vmul.f32 %v15972_v60, %v22569_v3  ;;  %v15978_v45 = vpop.eup %15977  ;;  %v5264_v24 = vmul.f32 %v15976_v4, %v19342_v23  ;;  %v22573_v60 = vld [vmem:[#allocation106_spill] sm:$0xff] }
 0x951   : > { %v5142_v35 = vpop.xlane.xlu0 %5141 }
 0x952   : > { %13410 = vmatmul.mubr.f32.vlgmr.msra.gmra.mrb[96].mxu1 %v5252_v50  ;;  %15981 = vrcp.f32 %v5142_v35  ;;  %v22571_v50 = vld [vmem:[#allocation82_spill] sm:$0xff]  ;;  %v15980_v35 = vpop.eup %15979 }
 0x953   : > { %13412 = vmatprep.mubr.f32.mxu1 %v5254_v15  ;;  %15983 = vrcp.f32 %v5144_v0  ;;  %v22570_v15 = vld [vmem:[#allocation137_spill] sm:$0xff] }
 0x954   : > { %v4950_v8 = vsub.f32 %v22571_v50, %v22570_v15 }
 0x955   : > { %v5146_v54 = vpop.xlane.xlu0 %5145 }
 0x956   : > { %13413 = vmatmul.mubr.f32.gmra.mrb[98].mxu1 %v5256_v58  ;;  %15985 = vrcp.f32 %v5146_v54  ;;  %v5035_v43 = vmul.f32 1.442695, %v4950_v8  ;;  %v4952_v58 = vsub.f32 %v22572_v5, %v19301_v21  ;;  %v5268_v54 = vmul.f32 %v15980_v35, %v19378_v34 }
 0x957   : > { %13415 = vmatprep.mubr.f32.mxu1 %v5258_v53  ;;  %v5266_v53 = vmul.f32 %v15978_v45, %v19371_v39 }
 0x958   : > { %v5039_v39 = vmul.f32 1.442695, %v4952_v58  ;;  %v22577_v58 = vld [vmem:[#allocation107_spill] sm:$0xff] }
 0x959   : > { %v5148_v41 = vpop.xlane.xlu0 %5147 }
 0x95a   : > { %13416 = vmatmul.mubr.f32.gmra.mrb[100].mxu1 %v5260_v17  ;;  %15987 = vrcp.f32 %v5148_v41 }
 0x95b   : > { %13418 = vmatprep.mubr.f32.mxu1 %v5262_v46  ;;  %15989 = vpow2.f32 %v5035_v43 }
 0x95c   : > { %v15982_v0 = vpop.eup %15981  ;;  %15991 = vpow2.f32 %v5039_v39 }
 0x95d   : > { %v19562_v26 = vpop.xlane.xlu0 %4915  ;;  %v15984_v20 = vpop.eup %15983  ;;  %v5270_v23 = vmul.f32 %v15982_v0, %v19422_v11  ;;  %v22574_v11 = vld [vmem:[#allocation85_spill] sm:$0xff] }
 0x95e   : > { %13419 = vmatmul.mubr.f32.gmra.mrb[102].mxu1 %v5264_v24  ;;  %v5272_v46 = vmul.f32 %v15984_v20, %v19404_v18  ;;  %v4951_v15 = vsub.f32 %v22574_v11, %v19303_v31  ;;  %v22575_v18 = vld [vmem:[#allocation140_spill] sm:$0xff]  ;;  %v22576_v24 = vld [vmem:[#allocation90_spill] sm:$0xff] }
 0x95f   : > { %13421 = vmatprep.mubr.f32.mxu1 %v5266_v53  ;;  %v4953_v35 = vsub.f32 %v22576_v24, %v22575_v18  ;;  %v22582_v11 = vld [vmem:[#allocation112_spill] sm:$0xff] }
 0x960   : > { %15564 = vrot.lane.b32.xlu0 %v22573_v60, %s16205_s20  ;;  %v15986_v3 = vpop.eup %15985  ;;  %v5037_v8 = vmul.f32 1.442695, %v4951_v15 }
 0x961   : > { %v15545_v51 = vpop.permute.xlu0 %15544  ;;  %v5274_v45 = vmul.f32 %v15986_v3, %v19428_v55  ;;  %v5041_v53 = vmul.f32 1.442695, %v4953_v35 }
 0x962   : > { %v15547_v17 = vunpack.i.h.bf16 %v15545_v51  ;;  %v15546_v4 = vunpack.i.l.bf16 %v15545_v51  ;;  %13422 = vmatmul.mubr.f32.gmra.mrb[104].mxu1 %v5268_v54  ;;  %15993 = vpow2.f32 %v5037_v8 }
 0x963   : > { %13424 = vmatprep.mubr.f32.mxu1 %v5270_v23  ;;  %15995 = vpow2.f32 %v5041_v53 }
 0x964   : > { %v14793_v41 = vpack.c.bf16 %v15547_v17, %v15546_v4  ;;  %v15988_v21 = vpop.eup %15987  ;;  %v22578_v17 = vld [vmem:[#allocation135_spill] sm:$0xff]  ;;  %v22579_v4 = vld [vmem:[#allocation88_spill] sm:$0xff] }
 0x965   : > { %v5276_v34 = vmul.f32 %v15988_v21, %v19435_v49  ;;  %v19576_v50 = vpop.eup %15989  ;;  %v4954_v39 = vsub.f32 %v22579_v4, %v22578_v17  ;;  %v22580_v21 = vld [vmem:[#allocation138_spill] sm:$0xff] }
 0x966   : > { %13425 = vmatmul.mubr.f32.gmra.mrb[106].mxu1 %v5272_v46  ;;  %14794 = vmatprep.subr.bf16.mxu0 %v14793_v41  ;;  %v19581_v55 = vpop.eup %15991 }
 0x967   : > { %13427 = vmatprep.mubr.f32.mxu1 %v5274_v45  ;;  %14796 = vmatpush3.bf16.msra.mxu0 %v14793_v41  ;;  %v5043_v46 = vmul.f32 1.442695, %v4954_v39  ;;  %v22581_v45 = vld [vmem:[#allocation93_spill] sm:$0xff] }
 0x96a   : > { %13428 = vmatmul.mubr.f32.gmra.mrb[108].mxu1 %v5276_v34  ;;  %v4956_v34 = vsub.f32 %v22581_v45, %v22580_v21 }
 0x96c   : > { %v19586_v0 = vpop.eup %15993  ;;  %v5047_v24 = vmul.f32 1.442695, %v4956_v34  ;;  %v22586_v34 = vld [vmem:[#allocation118_spill] sm:$0xff] }
 0x96d   : > { %v19591_v43 = vpop.eup %15995 }
 0x96f   : > { %5163 = vadd.xlane.f32.xlu1 %v19576_v50 }
 0x973   : > { %5167 = vadd.xlane.f32.xlu1 %v19581_v55 }
 0x97a   : > { %v19584_v49 = vpop.xlane.xlu1 %4913 }
 0x97e   : > { %v19588_v31 = vpop.xlane.xlu1 %4917 }
 0x97f   : > { %5165 = vadd.xlane.f32.xlu0 %v19586_v0 }
 0x982   : > { %v5152_v5 = vpop.xlane.xlu1 %5151 }
 0x983   : > { %5169 = vadd.xlane.f32.xlu0 %v19591_v43  ;;  %15997 = vrcp.f32 %v5152_v5 }
 0x984   : > { %15569 = vrot.lane.b32.xlu1 %v22577_v58, %s16205_s20 }
 0x986   : > { %v19596_v60 = vpop.xlane.xlu1 %4919 }
 0x98a   : > { %v15550_v54 = vpop.permute.xlu1 %15549 }
 0x98b   : > { %v15552_v20 = vunpack.i.h.bf16 %v15550_v54  ;;  %v15551_v51 = vunpack.i.l.bf16 %v15550_v54 }
 0x98d   : > { %v14797_v23 = vpack.c.bf16 %v15552_v20, %v15551_v51  ;;  %v15998_v8 = vpop.eup %15997 }
 0x98e   : > { %v5280_v5 = vmul.f32 %v15998_v8, %v19469_v2 }
 0x98f   : > { %14798 = vmatprep.subr.bf16.mxu0 %v14797_v23 }
 0x990   : > { %14800 = vmatpush3.bf16.msra.mxu0 %v14797_v23 }
 0x992   : > { %v5150_v3 = vpop.xlane.xlu0 %5149 }
 0x993   : > { %15999 = vrcp.f32 %v5150_v3  ;;  %v22584_v3 = vld [vmem:[#allocation91_spill] sm:$0xff] }
 0x994   : > { %v4955_v17 = vsub.f32 %v22584_v3, %v19312_v62  ;;  %v22591_v3 = vld [vmem:[#allocation113_spill] sm:$0xff] }
 0x996   : > { %v5154_v41 = vpop.xlane.xlu0 %5153  ;;  %v5045_v2 = vmul.f32 1.442695, %v4955_v17 }
 0x997   : > { %16001 = vrcp.f32 %v5154_v41 }
 0x998   : > { %16003 = vpow2.f32 %v5043_v46 }
 0x999   : > { %15574 = vrot.lane.b32.xlu0 %v22582_v11, %s16205_s20  ;;  %16005 = vpow2.f32 %v5047_v24 }
 0x99a   : > { %v19604_v15 = vpop.xlane.xlu0 %5155  ;;  %16007 = vpow2.f32 %v5045_v2 }
 0x99d   : > { %v16000_v18 = vpop.eup %15999 }
 0x99e   : > { %v19606_v35 = vpop.xlane.xlu0 %4923  ;;  %v5278_v53 = vmul.f32 %v16000_v18, %v19487_v57  ;;  %v22585_v57 = vld [vmem:[#allocation96_spill] sm:$0xff] }
 0x99f   : > { %22583 = vst [vmem:[#allocation78_spill] sm:$0xff] %v19606_v35  ;;  %v4957_v41 = vsub.f32 %v22585_v57, %v19316_v40 }
 0x9a0   : > { %13430 = vmatprep.mubr.f32.mxu1 %v5278_v53 }
 0x9a1   : > { %v16002_v58 = vpop.eup %16001  ;;  %13431 = vmatmul.mubr.f32.gmra.mrb[110].mxu1 %v5280_v5  ;;  %v22589_v5 = vld [vmem:[#allocation94_spill] sm:$0xff] }
 0x9a2   : > { %v15555_v54 = vpop.permute.xlu0 %15554  ;;  %v5282_v20 = vmul.f32 %v16002_v58, %v19492_v7  ;;  %v19613_v39 = vpop.eup %16003  ;;  %v5049_v7 = vmul.f32 1.442695, %v4957_v41  ;;  %v4958_v58 = vsub.f32 %v22589_v5, %v19314_v63 }
 0x9a3   : > { %v15557_v51 = vunpack.i.h.bf16 %v15555_v54  ;;  %v15556_v23 = vunpack.i.l.bf16 %v15555_v54  ;;  %v19618_v46 = vpop.eup %16005 }
 0x9a4   : > { %13465 = vmatprep.mubr.f32.mxu0 %v5282_v20  ;;  %16009 = vpow2.f32 %v5049_v7  ;;  %v19621_v21 = vpop.eup %16007  ;;  %v5051_v20 = vmul.f32 1.442695, %v4958_v58  ;;  %v22592_v7 = vld [vmem:[#allocation97_spill] sm:$0xff] }
 0x9a5   : > { %v14801_v4 = vpack.c.bf16 %v15557_v51, %v15556_v23  ;;  %v22590_v51 = vld [vmem:[#allocation98_spill] sm:$0xff] }
 0x9a6   : > { %v4960_v23 = vsub.f32 %v22590_v51, %v19324_v61  ;;  %16011 = vpow2.f32 %v5051_v20  ;;  %v22594_v51 = vld [vmem:[#allocation119_spill] sm:$0xff] }
 0x9a7   : > { %14802 = vmatprep.subr.bf16.mxu0 %v14801_v4 }
 0x9a8   : > { %5171 = vadd.xlane.f32.xlu1 %v19613_v39  ;;  %14804 = vmatpush3.bf16.msra.mxu0 %v14801_v4  ;;  %v5055_v4 = vmul.f32 1.442695, %v4960_v23 }
 0x9aa   : > { %16013 = vpow2.f32 %v5055_v4 }
 0x9ac   : > { %5175 = vadd.xlane.f32.xlu1 %v19618_v46 }
 0x9ae   : > { %v19624_v62 = vpop.eup %16009 }
 0x9b8   : > { %5173 = vadd.xlane.f32.xlu0 %v19621_v21 }
 0x9bb   : > { %v19626_v45 = vpop.xlane.xlu1 %4921 }
 0x9bc   : > { %5177 = vadd.xlane.f32.xlu0 %v19624_v62 }
 0x9bd   : > { %15579 = vrot.lane.b32.xlu1 %v22586_v34, %s16205_s20  ;;  %v4959_v34 = vsub.f32 %v22592_v7, %v19326_v9 }
 0x9bf   : > { %v19631_v40 = vpop.xlane.xlu1 %4925  ;;  %v5053_v61 = vmul.f32 1.442695, %v4959_v34 }
 0x9c0   : > { %22587 = vst [vmem:[#allocation120_spill] sm:$0xff] %v19631_v40 }
 0x9c1   : > { %16015 = vpow2.f32 %v5053_v61  ;;  %v22597_v61 = vld [vmem:[#allocation104_spill] sm:$0xff] }
 0x9c3   : > { %v19633_v11 = vpop.xlane.xlu1 %5159 }
 0x9c7   : > { %v19635_v8 = vpop.xlane.xlu1 %4927 }
 0x9c8   : > { %22588 = vst [vmem:[#allocation72_spill] sm:$0xff] %v19635_v8 }
 0x9cb   : > { %v15560_v18 = vpop.permute.xlu1 %15559 }
 0x9cc   : > { %v15562_v24 = vunpack.i.h.bf16 %v15560_v18  ;;  %v15561_v53 = vunpack.i.l.bf16 %v15560_v18 }
 0x9ce   : > { %v14805_v54 = vpack.c.bf16 %v15562_v24, %v15561_v53  ;;  %v19649_v24 = vpop.eup %16011  ;;  %v22593_v53 = vld [vmem:[#allocation102_spill] sm:$0xff] }
 0x9cf   : > { %v4961_v5 = vsub.f32 %v22593_v53, %v19335_v25  ;;  %v19654_v58 = vpop.eup %16013 }
 0x9d0   : > { %14806 = vmatprep.subr.bf16.mxu0 %v14805_v54  ;;  %v19657_v20 = vpop.eup %16015 }
 0x9d1   : > { %14808 = vmatpush3.bf16.msra.mxu0 %v14805_v54  ;;  %v5057_v54 = vmul.f32 1.442695, %v4961_v5  ;;  %v22598_v5 = vld [vmem:[#allocation126_spill] sm:$0xff] }
 0x9d2   : > { %15584 = vrot.lane.b32.xlu0 %v22591_v3, %s16205_s20 }
 0x9d3   : > { %v19643_v17 = vpop.xlane.xlu0 %5157  ;;  %16017 = vpow2.f32 %v5057_v54 }
 0x9d7   : > { %v19645_v2 = vpop.xlane.xlu0 %5161 }
 0x9db   : > { %v15565_v57 = vpop.permute.xlu0 %15564 }
 0x9dc   : > { %v15567_v41 = vunpack.i.h.bf16 %v15565_v57  ;;  %v15566_v63 = vunpack.i.l.bf16 %v15565_v57 }
 0x9dd   : > { %v19660_v9 = vpop.eup %16017 }
 0x9de   : > { %v14809_v18 = vpack.c.bf16 %v15567_v41, %v15566_v63  ;;  %v22595_v41 = vld [vmem:[#allocation99_spill] sm:$0xff] }
 0x9df   : > { %v4962_v63 = vsub.f32 %v22595_v41, %v19333_v37  ;;  %v22600_v37 = vld [vmem:[#allocation103_spill] sm:$0xff] }
 0x9e0   : > { %14810 = vmatprep.subr.bf16.mxu0 %v14809_v18 }
 0x9e1   : > { %5179 = vadd.xlane.f32.xlu1 %v19649_v24  ;;  %14812 = vmatpush3.bf16.msra.mxu0 %v14809_v18  ;;  %v5059_v34 = vmul.f32 1.442695, %v4962_v63  ;;  %v22596_v18 = vld [vmem:[#allocation148_spill] sm:$0xff] }
 0x9e2   : > { %v4964_v53 = vsub.f32 %v22597_v61, %v22596_v18 }
 0x9e3   : > { %16019 = vpow2.f32 %v5059_v34 }
 0x9e5   : > { %5183 = vadd.xlane.f32.xlu1 %v19654_v58 }
 0x9ed   : > { %v19675_v41 = vpop.eup %16019 }
 0x9f1   : > { %5181 = vadd.xlane.f32.xlu0 %v19657_v20 }
 0x9f5   : > { %5185 = vadd.xlane.f32.xlu0 %v19660_v9 }
 0x9f6   : > { %15589 = vrot.lane.b32.xlu1 %v22594_v51, %s16205_s20  ;;  %v5063_v51 = vmul.f32 1.442695, %v4964_v53 }
 0x9f8   : > { %16021 = vpow2.f32 %v5063_v51 }
 0x9fc   : > { %v5164_v23 = vpop.xlane.xlu1 %5163 }
 0xa00   : > { %v19665_v25 = vpop.xlane.xlu1 %5167 }
 0xa02   : > { %v19680_v18 = vpop.eup %16021 }
 0xa04   : > { %v15570_v3 = vpop.permute.xlu1 %15569 }
 0xa05   : > { %v15572_v4 = vunpack.i.h.bf16 %v15570_v3  ;;  %v15571_v57 = vunpack.i.l.bf16 %v15570_v3 }
 0xa07   : > { %v14813_v7 = vpack.c.bf16 %v15572_v4, %v15571_v57  ;;  %v4963_v4 = vsub.f32 %v22600_v37, %v22599_v19  ;;  %v22607_v37 = vld [vmem:[#allocation127_spill] sm:$0xff] }
 0xa09   : > { %14814 = vmatprep.subr.bf16.mxu0 %v14813_v7  ;;  %v5061_v63 = vmul.f32 1.442695, %v4963_v4 }
 0xa0a   : > { %14816 = vmatpush3.bf16.msra.mxu0 %v14813_v7  ;;  %v22601_v7 = vld [vmem:[#allocation108_spill] sm:$0xff] }
 0xa0b   : > { %15594 = vrot.lane.b32.xlu0 %v22598_v5, %s16205_s20  ;;  %v4965_v34 = vsub.f32 %v22601_v7, %v19358_v32  ;;  %16023 = vpow2.f32 %v5061_v63 }
 0xa0c   : > { %v5166_v54 = vpop.xlane.xlu0 %5165 }
 0xa10   : > { %v5170_v35 = vpop.xlane.xlu0 %5169 }
 0xa14   : > { %v15575_v8 = vpop.permute.xlu0 %15574 }
 0xa15   : > { %v15577_v3 = vunpack.i.h.bf16 %v15575_v8  ;;  %v15576_v40 = vunpack.i.l.bf16 %v15575_v8  ;;  %v5065_v8 = vmul.f32 1.442695, %v4965_v34 }
 0xa17   : > { %v14817_v57 = vpack.c.bf16 %v15577_v3, %v15576_v40  ;;  %16025 = vpow2.f32 %v5065_v8  ;;  %v19687_v40 = vpop.eup %16023 }
 0xa18   : > { %16027 = vrcp.f32 %v19604_v15 }
 0xa19   : > { %14818 = vmatprep.subr.bf16.mxu0 %v14817_v57  ;;  %16029 = vrcp.f32 %v19643_v17 }
 0xa1a   : > { %5187 = vadd.xlane.f32.xlu1 %v19675_v41  ;;  %14820 = vmatpush3.bf16.msra.mxu0 %v14817_v57  ;;  %16031 = vrcp.f32 %v19633_v11  ;;  %v22615_v11 = vld [vmem:[#allocation114_spill] sm:$0xff] }
 0xa1b   : > { %16033 = vrcp.f32 %v19645_v2 }
 0xa1c   : > { %16035 = vrcp.f32 %v5164_v23 }
 0xa1d   : > { %16037 = vrcp.f32 %v5166_v54 }
 0xa1e   : > { %5191 = vadd.xlane.f32.xlu1 %v19680_v18  ;;  %16039 = vrcp.f32 %v19665_v25 }
 0xa1f   : > { %16041 = vrcp.f32 %v5170_v35 }
 0xa21   : > { %v19694_v32 = vpop.eup %16025 }
 0xa25   : > { %v19683_v61 = vpop.f32.mrb[96].mxu1 }
 0xa26   : > { %22602 = vst [vmem:[#allocation76_spill] sm:$0xff] %v19683_v61  ;;  %v19685_v19 = vpop.f32.mrb[97].mxu1  ;;  %v4968_v61 = vsub.f32 %v22615_v11, %v19360_v33 }
 0xa29   : > { %v19689_v53 = vpop.f32.mrb[98].mxu1 }
 0xa2a   : > { %22603 = vst [vmem:[#allocation95_spill] sm:$0xff] %v19689_v53  ;;  %5189 = vadd.xlane.f32.xlu0 %v19687_v40  ;;  %v19692_v5 = vpop.f32.mrb[99].mxu1 }
 0xa2b   : > { %22604 = vst [vmem:[#allocation81_spill] sm:$0xff] %v19692_v5 }
 0xa2d   : > { %v19696_v51 = vpop.f32.mrb[100].mxu1 }
 0xa2e   : > { %22605 = vst [vmem:[#allocation100_spill] sm:$0xff] %v19696_v51  ;;  %5193 = vadd.xlane.f32.xlu0 %v19694_v32  ;;  %v19699_v3 = vpop.f32.mrb[101].mxu1 }
 0xa2f   : > { %22606 = vst [vmem:[#allocation79_spill] sm:$0xff] %v19699_v3  ;;  %15599 = vrot.lane.b32.xlu1 %v22607_v37, %s16205_s20 }
 0xa31   : > { %v19703_v4 = vpop.f32.mrb[102].mxu1 }
 0xa32   : > { %22608 = vst [vmem:[#allocation84_spill] sm:$0xff] %v19703_v4  ;;  %v19705_v57 = vpop.f32.mrb[103].mxu1 }
 0xa33   : > { %22609 = vst [vmem:[#allocation75_spill] sm:$0xff] %v19705_v57 }
 0xa35   : > { %v5172_v63 = vpop.xlane.xlu1 %5171  ;;  %v19707_v7 = vpop.f32.mrb[104].mxu1 }
 0xa36   : > { %22610 = vst [vmem:[#allocation101_spill] sm:$0xff] %v19707_v7  ;;  %v19709_v34 = vpop.f32.mrb[105].mxu1  ;;  %v22614_v7 = vld [vmem:[#allocation105_spill] sm:$0xff] }
 0xa37   : > { %22611 = vst [vmem:[#allocation122_spill] sm:$0xff] %v19709_v34  ;;  %v4966_v57 = vsub.f32 %v22614_v7, %v19353_v52  ;;  %v22616_v52 = vld [vmem:[#allocation128_spill] sm:$0xff] }
 0xa39   : > { %v5176_v8 = vpop.xlane.xlu1 %5175  ;;  %v19713_v51 = vpop.f32.mrb[106].mxu1 }
 0xa3a   : > { %22612 = vst [vmem:[#allocation123_spill] sm:$0xff] %v19713_v51  ;;  %v19715_v3 = vpop.f32.mrb[107].mxu1  ;;  %v16028_v51 = vpop.eup %16027 }
 0xa3b   : > { %22613 = vst [vmem:[#allocation124_spill] sm:$0xff] %v19715_v3  ;;  %v16030_v5 = vpop.eup %16029  ;;  %v5067_v3 = vmul.f32 1.442695, %v4966_v57  ;;  %v5284_v2 = vmul.f32 %v16028_v51, %v19497_v47  ;;  %v5071_v57 = vmul.f32 1.442695, %v4968_v61 }
 0xa3c   : > { %v16032_v7 = vpop.eup %16031  ;;  %v5286_v54 = vmul.f32 %v16030_v5, %v19539_v36 }
 0xa3d   : > { %v15580_v37 = vpop.permute.xlu1 %15579  ;;  %v19719_v4 = vpop.f32.mrb[108].mxu1  ;;  %16043 = vpow2.f32 %v5067_v3  ;;  %v5288_v33 = vmul.f32 %v16032_v7, %v19523_v10 }
 0xa3e   : > { %v15582_v34 = vunpack.i.h.bf16 %v15580_v37  ;;  %v15581_v53 = vunpack.i.l.bf16 %v15580_v37  ;;  %v19723_v15 = vpop.f32.mrb[109].mxu1  ;;  %16045 = vrcp.f32 %v5172_v63 }
 0xa40   : > { %v14821_v17 = vpack.c.bf16 %v15582_v34, %v15581_v53  ;;  %v16034_v53 = vpop.eup %16033 }
 0xa41   : > { %v16036_v25 = vpop.eup %16035  ;;  %v5290_v47 = vmul.f32 %v16034_v53, %v19546_v44  ;;  %v22617_v44 = vld [vmem:[#allocation149_spill] sm:$0xff]  ;;  %v22620_v53 = vld [vmem:[#allocation115_spill] sm:$0xff] }
 0xa42   : > { %14822 = vmatprep.subr.bf16.mxu0 %v14821_v17  ;;  %v16038_v35 = vpop.eup %16037  ;;  %v5292_v36 = vmul.f32 %v16036_v25, %v19576_v50 }
 0xa43   : > { %14824 = vmatpush3.bf16.msra.mxu0 %v14821_v17  ;;  %v16040_v5 = vpop.eup %16039  ;;  %v5294_v51 = vmul.f32 %v16038_v35, %v19586_v0  ;;  %v22618_v17 = vld [vmem:[#allocation109_spill] sm:$0xff] }
 0xa44   : > { %15604 = vrot.lane.b32.xlu0 %v22616_v52, %s16205_s20  ;;  %v16042_v3 = vpop.eup %16041  ;;  %v4967_v11 = vsub.f32 %v22618_v17, %v22617_v44  ;;  %v22622_v44 = vld [vmem:[#allocation152_spill] sm:$0xff]  ;;  %v22623_v17 = vld [vmem:[#allocation111_spill] sm:$0xff] }
 0xa45   : > { %v5174_v23 = vpop.xlane.xlu0 %5173  ;;  %v5298_v50 = vmul.f32 %v16042_v3, %v19591_v43 }
 0xa46   : > { %13466 = vmatmul.mubr.f32.vlgmr.msra.gmra.mrb[160].mxu0 %v5284_v2  ;;  %16047 = vrcp.f32 %v5174_v23  ;;  %v5069_v23 = vmul.f32 1.442695, %v4967_v11  ;;  %v4970_v11 = vsub.f32 %v22623_v17, %v22622_v44 }
 0xa47   : > { %13468 = vmatprep.mubr.f32.mxu0 %v5286_v54  ;;  %16049 = vpow2.f32 %v5071_v57  ;;  %v19736_v10 = vpop.eup %16043  ;;  %v22619_v54 = vld [vmem:[#allocation147_spill] sm:$0xff] }
 0xa48   : > { %16051 = vrcp.f32 %v5176_v8  ;;  %v5296_v8 = vmul.f32 %v16040_v5, %v19581_v55  ;;  %v16046_v52 = vpop.eup %16045  ;;  %v4969_v57 = vsub.f32 %v22620_v53, %v22619_v54 }
 0xa49   : > { %v5178_v34 = vpop.xlane.xlu0 %5177 }
 0xa4a   : > { %13469 = vmatmul.mubr.f32.gmra.mrb[162].mxu0 %v5288_v33  ;;  %16053 = vrcp.f32 %v5178_v34  ;;  %v5300_v33 = vmul.f32 %v16046_v52, %v19613_v39  ;;  %v5073_v43 = vmul.f32 1.442695, %v4969_v57  ;;  %v5075_v52 = vmul.f32 1.442695, %v4970_v11 }
 0xa4b   : > { %13471 = vmatprep.mubr.f32.mxu0 %v5290_v47  ;;  %16055 = vpow2.f32 %v5069_v23  ;;  %v22625_v23 = vld [vmem:[#allocation136_spill] sm:$0xff] }
 0xa4c   : > { %16057 = vpow2.f32 %v5073_v43  ;;  %v22626_v43 = vld [vmem:[#allocation155_spill] sm:$0xff] }
 0xa4d   : > { %v15585_v61 = vpop.permute.xlu0 %15584 }
 0xa4e   : > { %v15587_v63 = vunpack.i.h.bf16 %v15585_v61  ;;  %v15586_v37 = vunpack.i.l.bf16 %v15585_v61  ;;  %13472 = vmatmul.mubr.f32.gmra.mrb[164].mxu0 %v5292_v36 }
 0xa4f   : > { %13474 = vmatprep.mubr.f32.mxu0 %v5294_v51 }
 0xa50   : > { %v14825_v2 = vpack.c.bf16 %v15587_v63, %v15586_v37  ;;  %v16048_v7 = vpop.eup %16047 }
 0xa51   : > { %v19743_v0 = vpop.eup %16049  ;;  %v5302_v55 = vmul.f32 %v16048_v7, %v19621_v21  ;;  %v22621_v21 = vld [vmem:[#allocation133_spill] sm:$0xff] }
 0xa52   : > { %13475 = vmatmul.mubr.f32.gmra.mrb[166].mxu0 %v5296_v8  ;;  %14826 = vmatprep.subr.bf16.mxu1 %v14825_v2  ;;  %v16052_v25 = vpop.eup %16051 }
 0xa53   : > { %5195 = vadd.xlane.f32.xlu1 %v19736_v10  ;;  %13477 = vmatprep.mubr.f32.mxu0 %v5298_v50  ;;  %v5304_v47 = vmul.f32 %v16052_v25, %v19618_v46  ;;  %v22624_v50 = vld [vmem:[#allocation110_spill] sm:$0xff] }
 0xa54   : > { %14828 = vmatpush3.bf16.msra.mxu1 %v14825_v2  ;;  %v16054_v34 = vpop.eup %16053  ;;  %v4972_v7 = vsub.f32 %v22624_v50, %v19380_v14 }
 0xa55   : > { %v5306_v35 = vmul.f32 %v16054_v34, %v19624_v62  ;;  %v19752_v36 = vpop.eup %16055 }
 0xa56   : > { %13478 = vmatmul.mubr.f32.gmra.mrb[168].mxu0 %v5300_v33  ;;  %v19755_v39 = vpop.eup %16057  ;;  %v5079_v53 = vmul.f32 1.442695, %v4972_v7  ;;  %v22630_v7 = vld [vmem:[#allocation121_spill] sm:$0xff] }
 0xa57   : > { %5199 = vadd.xlane.f32.xlu1 %v19743_v0  ;;  %13480 = vmatprep.mubr.f32.mxu0 %v5302_v55 }
 0xa5a   : > { %13481 = vmatmul.mubr.f32.gmra.mrb[170].mxu0 %v5304_v47  ;;  %v22627_v47 = vld [vmem:[#allocation117_spill] sm:$0xff] }
 0xa5b   : > { %13483 = vmatprep.mubr.f32.mxu0 %v5306_v35  ;;  %v4971_v35 = vsub.f32 %v22627_v47, %v22626_v43 }
 0xa63   : > { %5197 = vadd.xlane.f32.xlu0 %v19752_v36 }
 0xa67   : > { %5201 = vadd.xlane.f32.xlu0 %v19755_v39 }
 0xa68   : > { %15609 = vrot.lane.b32.xlu1 %v22621_v21, %s16205_s20 }
 0xa6e   : > { %v5180_v5 = vpop.xlane.xlu1 %5179 }
 0xa6f   : > { %16059 = vrcp.f32 %v5180_v5 }
 0xa72   : > { %v5184_v61 = vpop.xlane.xlu1 %5183 }
 0xa73   : > { %16061 = vrcp.f32 %v5184_v61 }
 0xa74   : > { %v19760_v46 = vpop.f32.mrb[110].mxu1 }
 0xa75   : > { %v19762_v62 = vpop.f32.mrb[111].mxu1 }
 0xa76   : > { %v15590_v51 = vpop.permute.xlu1 %15589 }
 0xa77   : > { %v15592_v3 = vunpack.i.h.bf16 %v15590_v51  ;;  %v15591_v63 = vunpack.i.l.bf16 %v15590_v51 }
 0xa79   : > { %v16060_v37 = vpop.eup %16059  ;;  %v14829_v2 = vpack.c.bf16 %v15592_v3, %v15591_v63  ;;  %v5077_v3 = vmul.f32 1.442695, %v4971_v35  ;;  %v22628_v63 = vld [vmem:[#allocation125_spill] sm:$0xff]  ;;  %v22633_v35 = vld [vmem:[#allocation130_spill] sm:$0xff] }
 0xa7a   : > { %v5308_v8 = vmul.f32 %v16060_v37, %v19649_v24  ;;  %v4973_v37 = vsub.f32 %v22628_v63, %v19418_v29  ;;  %v22629_v29 = vld [vmem:[#allocation139_spill] sm:$0xff] }
 0xa7b   : > { %14830 = vmatprep.subr.bf16.mxu1 %v14829_v2 }
 0xa7c   : > { %13484 = vmatmul.mubr.f32.gmra.mrb[172].mxu0 %v5308_v8  ;;  %14832 = vmatpush3.bf16.msra.mxu1 %v14829_v2 }
 0xa7d   : > { %15614 = vrot.lane.b32.xlu0 %v22625_v23, %s16205_s20  ;;  %v16062_v55 = vpop.eup %16061  ;;  %v4974_v23 = vsub.f32 %v22630_v7, %v19420_v6  ;;  %v22636_v7 = vld [vmem:[#allocation132_spill] sm:$0xff] }
 0xa7e   : > { %v5182_v54 = vpop.xlane.xlu0 %5181  ;;  %v5312_v61 = vmul.f32 %v16062_v55, %v19654_v58 }
 0xa7f   : > { %16063 = vrcp.f32 %v5182_v54 }
 0xa80   : > { %16065 = vpow2.f32 %v5075_v52 }
 0xa82   : > { %v5186_v57 = vpop.xlane.xlu0 %5185 }
 0xa83   : > { %16067 = vrcp.f32 %v5186_v57  ;;  %v22631_v57 = vld [vmem:[#allocation131_spill] sm:$0xff] }
 0xa84   : > { %16069 = vpow2.f32 %v5079_v53  ;;  %v5083_v53 = vmul.f32 1.442695, %v4974_v23  ;;  %v4978_v23 = vsub.f32 %v22636_v7, %v19451_v12  ;;  %v22639_v12 = vld [vmem:[#allocation141_spill] sm:$0xff] }
 0xa85   : > { %16071 = vpow2.f32 %v5077_v3 }
 0xa86   : > { %v15595_v33 = vpop.permute.xlu0 %15594 }
 0xa87   : > { %v15597_v24 = vunpack.i.h.bf16 %v15595_v33  ;;  %v15596_v25 = vunpack.i.l.bf16 %v15595_v33  ;;  %v4976_v33 = vsub.f32 %v22631_v57, %v19444_v42  ;;  %v22637_v57 = vld [vmem:[#allocation146_spill] sm:$0xff] }
 0xa89   : > { %v16064_v34 = vpop.eup %16063  ;;  %v14833_v14 = vpack.c.bf16 %v15597_v24, %v15596_v25  ;;  %v22632_v24 = vld [vmem:[#allocation142_spill] sm:$0xff]  ;;  %v5087_v55 = vmul.f32 1.442695, %v4976_v33  ;;  %v4980_v33 = vsub.f32 %v22637_v57, %v19489_v27 }
 0xa8a   : > { %v5310_v21 = vmul.f32 %v16064_v34, %v19657_v20  ;;  %v19774_v5 = vpop.eup %16065  ;;  %v5081_v20 = vmul.f32 1.442695, %v4973_v37 }
 0xa8b   : > { %14834 = vmatprep.subr.bf16.mxu1 %v14833_v14 }
 0xa8c   : > { %5203 = vadd.xlane.f32.xlu1 %v19774_v5  ;;  %13486 = vmatprep.mubr.f32.mxu0 %v5310_v21  ;;  %16073 = vpow2.f32 %v5081_v20  ;;  %v22635_v20 = vld [vmem:[#allocation145_spill] sm:$0xff] }
 0xa8d   : > { %v16068_v51 = vpop.eup %16067  ;;  %14836 = vmatpush3.bf16.msra.mxu1 %v14833_v14  ;;  %13487 = vmatmul.mubr.f32.gmra.mrb[174].mxu0 %v5312_v61  ;;  %16075 = vpow2.f32 %v5083_v53  ;;  %v4975_v14 = vsub.f32 %v22633_v35, %v19430_v13  ;;  %v5091_v53 = vmul.f32 1.442695, %v4978_v23 }
 0xa8e   : > { %v5314_v44 = vmul.f32 %v16068_v51, %v19660_v9  ;;  %v19781_v17 = vpop.eup %16069  ;;  %16077 = vpow2.f32 %v5087_v55  ;;  %v22634_v51 = vld [vmem:[#allocation143_spill] sm:$0xff] }
 0xa8f   : > { %v19784_v58 = vpop.eup %16071  ;;  %v5085_v42 = vmul.f32 1.442695, %v4975_v14  ;;  %v4977_v3 = vsub.f32 %v22634_v51, %v19478_v48 }
 0xa90   : > { %5207 = vadd.xlane.f32.xlu1 %v19781_v17  ;;  %13521 = vmatprep.mubr.f32.mxu1 %v5314_v44 }
 0xa91   : > { %16079 = vpow2.f32 %v5085_v42  ;;  %v5089_v37 = vmul.f32 1.442695, %v4977_v3  ;;  %v4981_v3 = vsub.f32 %v19394_v1, %v19532_v28 }
 0xa93   : > { %16081 = vpow2.f32 %v5089_v37 }
 0xa94   : > { %16083 = vpow2.f32 %v5091_v53 }
 0xa96   : > { %v19787_v11 = vpop.eup %16073 }
 0xa97   : > { %v19808_v61 = vpop.eup %16075 }
 0xa98   : > { %v19813_v63 = vpop.eup %16077 }
 0xa9b   : > { %v19816_v44 = vpop.eup %16079 }
 0xa9c   : > { %5205 = vadd.xlane.f32.xlu0 %v19784_v58 }
 0xa9d   : > { %v19819_v13 = vpop.eup %16081 }
 0xa9e   : > { %v19834_v51 = vpop.eup %16083 }
 0xaa0   : > { %5209 = vadd.xlane.f32.xlu0 %v19787_v11 }
 0xaa1   : > { %15619 = vrot.lane.b32.xlu1 %v22629_v29, %s16205_s20 }
 0xaa7   : > { %v19792_v9 = vpop.xlane.xlu1 %5187 }
 0xaab   : > { %v19794_v2 = vpop.xlane.xlu1 %5191 }
 0xaaf   : > { %v15600_v8 = vpop.permute.xlu1 %15599 }
 0xab0   : > { %v15602_v52 = vunpack.i.h.bf16 %v15600_v8  ;;  %v15601_v50 = vunpack.i.l.bf16 %v15600_v8 }
 0xab2   : > { %v14837_v54 = vpack.c.bf16 %v15602_v52, %v15601_v50 }
 0xab4   : > { %14838 = vmatprep.subr.bf16.mxu1 %v14837_v54 }
 0xab5   : > { %14840 = vmatpush3.bf16.msra.mxu1 %v14837_v54 }
 0xab6   : > { %15624 = vrot.lane.b32.xlu0 %v22632_v24, %s16205_s20  ;;  %v22638_v24 = vld [vmem:[#allocation150_spill] sm:$0xff] }
 0xab7   : > { %v19802_v25 = vpop.xlane.xlu0 %5189 }
 0xabb   : > { %v19804_v34 = vpop.xlane.xlu0 %5193 }
 0xabf   : > { %v15605_v43 = vpop.permute.xlu0 %15604 }
 0xac0   : > { %v15607_v47 = vunpack.i.h.bf16 %v15605_v43  ;;  %v15606_v6 = vunpack.i.l.bf16 %v15605_v43  ;;  %v5095_v43 = vmul.f32 1.442695, %v4980_v33  ;;  %v1314_v33 = vld [vmem:[%s21623_s1 + $0x48] sm:$0xff] }
 0xac2   : > { %v14841_v21 = vpack.c.bf16 %v15607_v47, %v15606_v6  ;;  %16085 = vpow2.f32 %v5095_v43 }
 0xac4   : > { %14842 = vmatprep.subr.bf16.mxu1 %v14841_v21 }
 0xac5   : > { %5211 = vadd.xlane.f32.xlu1 %v19808_v61  ;;  %14844 = vmatpush3.bf16.msra.mxu1 %v14841_v21  ;;  %v4979_v21 = vsub.f32 %v22639_v12, %v19483_v56 }
 0xac7   : > { %v5093_v27 = vmul.f32 1.442695, %v4979_v21 }
 0xac9   : > { %5215 = vadd.xlane.f32.xlu1 %v19813_v63  ;;  %16087 = vpow2.f32 %v5093_v27 }
 0xacc   : > { %v19839_v37 = vpop.eup %16085 }
 0xad5   : > { %5213 = vadd.xlane.f32.xlu0 %v19816_v44 }
 0xad9   : > { %5217 = vadd.xlane.f32.xlu0 %v19819_v13 }
 0xada   : > { %15629 = vrot.lane.b32.xlu1 %v22635_v20, %s16205_s20  ;;  %v5097_v20 = vmul.f32 1.442695, %v4981_v3 }
 0xadc   : > { %16089 = vpow2.f32 %v5097_v20 }
 0xadd   : > { %16091 = vrcp.f32 %v19792_v9  ;;  %v1315_v9 = vld [vmem:[%s21623_s1 + $0x50] sm:$0xff] }
 0xade   : > { %16093 = vrcp.f32 %v19802_v25  ;;  %v4982_v25 = vsub.f32 %v19385_v30, %v19505_v38  ;;  %v22641_v38 = vld [vmem:[#allocation151_spill] sm:$0xff] }
 0xadf   : > { %16095 = vrcp.f32 %v19794_v2 }
 0xae0   : > { %v5196_v29 = vpop.xlane.xlu1 %5195  ;;  %16097 = vrcp.f32 %v19804_v34  ;;  %v14889_v34 = vpack.c.bf16 %v1315_v9, %v1314_v33  ;;  %v5099_v21 = vmul.f32 1.442695, %v4982_v25 }
 0xae1   : > { %16099 = vrcp.f32 %v5196_v29 }
 0xae4   : > { %v19824_v48 = vpop.xlane.xlu1 %5199 }
 0xae8   : > { %v15610_v8 = vpop.permute.xlu1 %15609 }
 0xae9   : > { %v15612_v52 = vunpack.i.h.bf16 %v15610_v8  ;;  %v15611_v50 = vunpack.i.l.bf16 %v15610_v8  ;;  %v19842_v8 = vpop.eup %16087 }
 0xaea   : > { %v19845_v56 = vpop.eup %16089 }
 0xaeb   : > { %v14845_v54 = vpack.c.bf16 %v15612_v52, %v15611_v50  ;;  %v22640_v52 = vld [vmem:[#allocation154_spill] sm:$0xff] }
 0xaed   : > { %14846 = vmatprep.subr.bf16.mxu1 %v14845_v54 }
 0xaee   : > { %14848 = vmatpush3.bf16.msra.mxu1 %v14845_v54 }
 0xaef   : > { %15634 = vrot.lane.b32.xlu0 %v22638_v24, %s16205_s20 }
 0xaf0   : > { %v5198_v55 = vpop.xlane.xlu0 %5197 }
 0xaf1   : > { %16101 = vrcp.f32 %v5198_v55 }
 0xaf2   : > { %16103 = vrcp.f32 %v19824_v48 }
 0xaf4   : > { %v5202_v47 = vpop.xlane.xlu0 %5201 }
 0xaf5   : > { %16105 = vrcp.f32 %v5202_v47 }
 0xaf6   : > { %16107 = vpow2.f32 %v5099_v21 }
 0xaf8   : > { %v15615_v6 = vpop.permute.xlu0 %15614 }
 0xaf9   : > { %v15617_v35 = vunpack.i.h.bf16 %v15615_v6  ;;  %v15616_v14 = vunpack.i.l.bf16 %v15615_v6 }
 0xafb   : > { %v14849_v42 = vpack.c.bf16 %v15617_v35, %v15616_v14  ;;  %v16092_v35 = vpop.eup %16091 }
 0xafc   : > { %v16094_v12 = vpop.eup %16093  ;;  %v5316_v30 = vmul.f32 %v16092_v35, %v19675_v41  ;;  %v22642_v35 = vld [vmem:[#allocation153_spill] sm:$0xff] }
 0xafd   : > { %14850 = vmatprep.subr.bf16.mxu1 %v14849_v42  ;;  %v16096_v29 = vpop.eup %16095  ;;  %v5318_v20 = vmul.f32 %v16094_v12, %v19687_v40  ;;  %v4983_v12 = vsub.f32 %v22642_v35, %v19535_v59 }
 0xafe   : > { %5219 = vadd.xlane.f32.xlu1 %v19834_v51  ;;  %14852 = vmatpush3.bf16.msra.mxu1 %v14849_v42  ;;  %v4984_v42 = vsub.f32 %v19411_v16, %v19541_v22  ;;  %v16098_v16 = vpop.eup %16097  ;;  %v5320_v41 = vmul.f32 %v16096_v29, %v19680_v18  ;;  %v22643_v29 = vld [vmem:[#allocation156_spill] sm:$0xff] }
 0xaff   : > { %v16100_v48 = vpop.eup %16099  ;;  %v5322_v33 = vmul.f32 %v16098_v16, %v19694_v32 }
 0xb00   : > { %v5103_v22 = vmul.f32 1.442695, %v4984_v42  ;;  %v16102_v9 = vpop.eup %16101 }
 0xb01   : > { %v16104_v25 = vpop.eup %16103  ;;  %v5326_v18 = vmul.f32 %v16102_v9, %v19752_v36 }
 0xb02   : > { %5223 = vadd.xlane.f32.xlu1 %v19839_v37 }
 0xb0e   : > { %5221 = vadd.xlane.f32.xlu0 %v19842_v8 }
 0xb12   : > { %5225 = vadd.xlane.f32.xlu0 %v19845_v56 }
 0xb13   : > { %15639 = vrot.lane.b32.xlu1 %v22640_v52, %s16205_s20 }
 0xb19   : > { %v5204_v50 = vpop.xlane.xlu1 %5203  ;;  %v19850_v1 = vpop.f32.mrb[160].mxu0 }
 0xb1a   : > { %v19852_v28 = vpop.f32.mrb[161].mxu0  ;;  %16109 = vrcp.f32 %v5204_v50  ;;  %v5324_v50 = vmul.f32 %v16100_v48, %v19736_v10 }
 0xb1d   : > { %v5208_v7 = vpop.xlane.xlu1 %5207  ;;  %v19856_v23 = vpop.f32.mrb[162].mxu0 }
 0xb1e   : > { %v19858_v54 = vpop.f32.mrb[163].mxu0 }
 0xb21   : > { %v15620_v53 = vpop.permute.xlu1 %15619  ;;  %v19862_v57 = vpop.f32.mrb[164].mxu0 }
 0xb22   : > { %v15622_v24 = vunpack.i.h.bf16 %v15620_v53  ;;  %v15621_v43 = vunpack.i.l.bf16 %v15620_v53  ;;  %v19872_v6 = vpop.f32.mrb[165].mxu0 }
 0xb24   : > { %v14853_v2 = vpack.c.bf16 %v15622_v24, %v15621_v43  ;;  %v16106_v43 = vpop.eup %16105 }
 0xb25   : > { %v19874_v14 = vpop.f32.mrb[166].mxu0  ;;  %v19897_v32 = vpop.eup %16107  ;;  %v5330_v10 = vmul.f32 %v16106_v43, %v19755_v39 }
 0xb26   : > { %v19878_v27 = vpop.f32.mrb[167].mxu0  ;;  %14854 = vmatprep.subr.bf16.mxu1 %v14853_v2  ;;  %v16110_v42 = vpop.eup %16109 }
 0xb27   : > { %14856 = vmatpush3.bf16.msra.mxu1 %v14853_v2  ;;  %v5332_v59 = vmul.f32 %v16110_v42, %v19774_v5 }
 0xb28   : > { %15644 = vrot.lane.b32.xlu0 %v22641_v38, %s16205_s20  ;;  %14890 = vmatprep.subr.bf16.mxu1 %v14889_v34  ;;  %v5101_v38 = vmul.f32 1.442695, %v4983_v12  ;;  %v22646_v12 = vld [vmem:[#allocation68_spill] sm:$0xff] }
 0xb29   : > { %v5206_v55 = vpop.xlane.xlu0 %5205  ;;  %v19884_v3 = vpop.f32.mrb[168].mxu0 }
 0xb2a   : > { %v19887_v52 = vpop.f32.mrb[169].mxu0  ;;  %13522 = vmatmul.mubr.f32.vlgmr.msra.gmra.mrb[112].mxu1 %v5316_v30  ;;  %16111 = vrcp.f32 %v5206_v55  ;;  %v4985_v55 = vsub.f32 %v22643_v29, %v19584_v49 }
 0xb2b   : > { %13524 = vmatprep.mubr.f32.mxu1 %v5318_v20  ;;  %14892 = vmatpush3.bf16.msra.mxu1 %v14889_v34  ;;  %16113 = vpow2.f32 %v5103_v22 }
 0xb2c   : > { %16115 = vrcp.f32 %v5208_v7  ;;  %v5328_v7 = vmul.f32 %v16104_v25, %v19743_v0  ;;  %v5105_v39 = vmul.f32 1.442695, %v4985_v55 }
 0xb2d   : > { %v5210_v47 = vpop.xlane.xlu0 %5209  ;;  %v19890_v53 = vpop.f32.mrb[170].mxu0 }
 0xb2e   : > { %v19893_v40 = vpop.f32.mrb[171].mxu0  ;;  %13525 = vmatmul.mubr.f32.gmra.mrb[114].mxu1 %v5320_v41  ;;  %16117 = vrcp.f32 %v5210_v47 }
 0xb2f   : > { %13527 = vmatprep.mubr.f32.mxu1 %v5322_v33  ;;  %16119 = vpow2.f32 %v5101_v38 }
 0xb30   : > { %16121 = vpow2.f32 %v5105_v39 }
 0xb31   : > { %v15625_v24 = vpop.permute.xlu0 %15624 }
 0xb32   : > { %v15627_v2 = vunpack.i.h.bf16 %v15625_v24  ;;  %v15626_v34 = vunpack.i.l.bf16 %v15625_v24  ;;  %13528 = vmatmul.mubr.f32.gmra.mrb[116].mxu1 %v5324_v50  ;;  %v22645_v24 = vld [vmem:[#allocation160_spill] sm:$0xff] }
 0xb33   : > { %13530 = vmatprep.mubr.f32.mxu1 %v5326_v18  ;;  %v4986_v18 = vsub.f32 %v22645_v24, %v19562_v26  ;;  %v22654_v24 = vld [vmem:[#allocation72_spill] sm:$0xff] }
 0xb34   : > { %v14857_v21 = vpack.c.bf16 %v15627_v2, %v15626_v34  ;;  %v16112_v30 = vpop.eup %16111 }
 0xb35   : > { %v19904_v36 = vpop.eup %16113  ;;  %v5334_v0 = vmul.f32 %v16112_v30, %v19784_v58  ;;  %v22644_v58 = vld [vmem:[#allocation158_spill] sm:$0xff]  ;;  %v5107_v35 = vmul.f32 1.442695, %v4986_v18 }
 0xb36   : > { %13531 = vmatmul.mubr.f32.gmra.mrb[118].mxu1 %v5328_v7  ;;  %14858 = vmatprep.subr.bf16.mxu0 %v14857_v21  ;;  %v16116_v20 = vpop.eup %16115  ;;  %v22647_v7 = vld [vmem:[#allocation159_spill] sm:$0xff] }
 0xb37   : > { %5227 = vadd.xlane.f32.xlu1 %v19897_v32  ;;  %13533 = vmatprep.mubr.f32.mxu1 %v5330_v10  ;;  %v5336_v22 = vmul.f32 %v16116_v20, %v19781_v17 }
 0xb38   : > { %14860 = vmatpush3.bf16.msra.mxu0 %v14857_v21  ;;  %v16118_v16 = vpop.eup %16117  ;;  %v4988_v21 = vsub.f32 %v22646_v12, %v19596_v60  ;;  %v22648_v60 = vld [vmem:[#allocation161_spill] sm:$0xff]  ;;  %v22658_v12 = vld [vmem:[#allocation100_spill] sm:$0xff] }
 0xb39   : > { %v5338_v41 = vmul.f32 %v16118_v16, %v19787_v11  ;;  %v19913_v49 = vpop.eup %16119  ;;  %v4987_v20 = vsub.f32 %v22648_v60, %v19588_v31 }
 0xb3a   : > { %13534 = vmatmul.mubr.f32.gmra.mrb[120].mxu1 %v5332_v59  ;;  %v19916_v5 = vpop.eup %16121  ;;  %v5111_v26 = vmul.f32 1.442695, %v4988_v21  ;;  %v22659_v21 = vld [vmem:[#allocation75_spill] sm:$0xff] }
 0xb3b   : > { %5231 = vadd.xlane.f32.xlu1 %v19904_v36  ;;  %13536 = vmatprep.mubr.f32.mxu1 %v5334_v0 }
 0xb3e   : > { %13537 = vmatmul.mubr.f32.gmra.mrb[122].mxu1 %v5336_v22 }
 0xb3f   : > { %13539 = vmatprep.mubr.f32.mxu1 %v5338_v41 }
 0xb47   : > { %5229 = vadd.xlane.f32.xlu0 %v19913_v49 }
 0xb4b   : > { %5233 = vadd.xlane.f32.xlu0 %v19916_v5 }
 0xb4c   : > { %15649 = vrot.lane.b32.xlu1 %v22644_v58, %s16205_s20  ;;  %v5109_v58 = vmul.f32 1.442695, %v4987_v20 }
 0xb4f   : > { %v19921_v48 = vpop.f32.mrb[172].mxu0 }
 0xb50   : > { %v19923_v47 = vpop.f32.mrb[173].mxu0 }
 0xb52   : > { %v5212_v17 = vpop.xlane.xlu1 %5211 }
 0xb53   : > { %16123 = vrcp.f32 %v5212_v17  ;;  %v22649_v17 = vld [vmem:[#allocation116_spill] sm:$0xff] }
 0xb56   : > { %v5216_v11 = vpop.xlane.xlu1 %5215 }
 0xb57   : > { %16125 = vrcp.f32 %v5216_v11  ;;  %v4989_v11 = vsub.f32 %v22649_v17, %v19626_v45  ;;  %v22653_v45 = vld [vmem:[#allocation81_spill] sm:$0xff] }
 0xb5a   : > { %v15630_v33 = vpop.permute.xlu1 %15629 }
 0xb5b   : > { %v15632_v9 = vunpack.i.h.bf16 %v15630_v33  ;;  %v15631_v50 = vunpack.i.l.bf16 %v15630_v33  ;;  %v22650_v33 = vld [vmem:[#allocation120_spill] sm:$0xff] }
 0xb5d   : > { %v16124_v25 = vpop.eup %16123  ;;  %v14861_v43 = vpack.c.bf16 %v15632_v9, %v15631_v50  ;;  %v22651_v9 = vld [vmem:[#allocation69_spill] sm:$0xff] }
 0xb5e   : > { %v5340_v2 = vmul.f32 %v16124_v25, %v19808_v61  ;;  %v4991_v50 = vsub.f32 %v22651_v9, %v22650_v33  ;;  %v22652_v25 = vld [vmem:[#allocation76_spill] sm:$0xff] }
 0xb5f   : > { %14862 = vmatprep.subr.bf16.mxu0 %v14861_v43 }
 0xb60   : > { %v19928_v34 = vpop.f32.mrb[174].mxu0  ;;  %13540 = vmatmul.mubr.f32.gmra.mrb[124].mxu1 %v5340_v2  ;;  %14864 = vmatpush3.bf16.msra.mxu0 %v14861_v43  ;;  %v22656_v43 = vld [vmem:[#allocation95_spill] sm:$0xff] }
 0xb61   : > { %15654 = vrot.lane.b32.xlu0 %v22647_v7, %s16205_s20  ;;  %v19934_v42 = vpop.f32.mrb[175].mxu0  ;;  %v16126_v55 = vpop.eup %16125  ;;  %v22657_v2 = vld [vmem:[#allocation79_spill] sm:$0xff] }
 0xb62   : > { %v5214_v10 = vpop.xlane.xlu0 %5213  ;;  %v5344_v22 = vmul.f32 %v16126_v55, %v19813_v63  ;;  %v5113_v63 = vmul.f32 1.442695, %v4989_v11 }
 0xb63   : > { %16127 = vrcp.f32 %v5214_v10  ;;  %v22660_v10 = vld [vmem:[#allocation84_spill] sm:$0xff] }
 0xb64   : > { %16129 = vpow2.f32 %v5107_v35 }
 0xb66   : > { %v5218_v61 = vpop.xlane.xlu0 %5217 }
 0xb67   : > { %16131 = vrcp.f32 %v5218_v61 }
 0xb68   : > { %16133 = vpow2.f32 %v5111_v26  ;;  %v22661_v26 = vld [vmem:[#allocation122_spill] sm:$0xff] }
 0xb69   : > { %16135 = vpow2.f32 %v5109_v58  ;;  %v22667_v58 = vld [vmem:[#allocation70_spill] sm:$0xff] }
 0xb6a   : > { %v15635_v30 = vpop.permute.xlu0 %15634  ;;  %16137 = vpow2.f32 %v5113_v63 }
 0xb6b   : > { %v15637_v38 = vunpack.i.h.bf16 %v15635_v30  ;;  %v15636_v29 = vunpack.i.l.bf16 %v15635_v30  ;;  %v22662_v30 = vld [vmem:[#allocation162_spill] sm:$0xff] }
 0xb6d   : > { %v16128_v59 = vpop.eup %16127  ;;  %v14865_v0 = vpack.c.bf16 %v15637_v38, %v15636_v29  ;;  %v22663_v38 = vld [vmem:[#allocation101_spill] sm:$0xff]  ;;  %v22664_v29 = vld [vmem:[#allocation124_spill] sm:$0xff] }
 0xb6e   : > { %v5342_v16 = vmul.f32 %v16128_v59, %v19816_v44  ;;  %v19939_v39 = vpop.eup %16129  ;;  %v22665_v59 = vld [vmem:[#allocation123_spill] sm:$0xff] }
 0xb6f   : > { %14866 = vmatprep.subr.bf16.mxu0 %v14865_v0 }
 0xb70   : > { %5235 = vadd.xlane.f32.xlu1 %v19939_v39  ;;  %13542 = vmatprep.mubr.f32.mxu1 %v5342_v16 }
 0xb71   : > { %v16132_v41 = vpop.eup %16131  ;;  %14868 = vmatpush3.bf16.msra.mxu0 %v14865_v0  ;;  %13543 = vmatmul.mubr.f32.gmra.mrb[126].mxu1 %v5344_v22 }
 0xb72   : > { %13605 = vmatprep.mubr.msk.f32.mxu1 %vm1380_vm1, %v19685_v19  ;;  %v5346_v31 = vmul.f32 %v16132_v41, %v19819_v13  ;;  %v19948_v44 = vpop.eup %16133  ;;  %v5117_v19 = vmul.f32 1.442695, %v4991_v50  ;;  %v22655_v13 = vld [vmem:[#allocation73_spill] sm:$0xff]  ;;  %v22666_v41 = vld [vmem:[#allocation78_spill] sm:$0xff] }
 0xb73   : > { %v4992_v18 = vsub.f32 %v22655_v13, %v22654_v24  ;;  %v19967_v7 = vpop.eup %16135 }
 0xb74   : > { %5239 = vadd.xlane.f32.xlu1 %v19948_v44  ;;  %13577 = vmatprep.mubr.f32.mxu0 %v5346_v31  ;;  %16139 = vpow2.f32 %v5117_v19  ;;  %v19974_v61 = vpop.eup %16137 }
 0xb75   : > { %13606 = vmatmul.mubr.msk.f32.vlgmr.msra.gmra.mrb[128].mxu1 %vm1380_vm1, %v22652_v25  ;;  %v5119_v35 = vmul.f32 1.442695, %v4992_v18 }
 0xb76   : > { %13608 = vmatprep.mubr.msk.f32.mxu1 %vm1380_vm1, %v22653_v45 }
 0xb77   : > { %16141 = vpow2.f32 %v5119_v35 }
 0xb79   : > { %13609 = vmatmul.mubr.msk.f32.gmra.mrb[130].mxu1 %vm1380_vm1, %v22656_v43 }
 0xb7a   : > { %13611 = vmatprep.mubr.msk.f32.mxu1 %vm1380_vm1, %v22657_v2 }
 0xb7d   : > { %13612 = vmatmul.mubr.msk.f32.gmra.mrb[132].mxu1 %vm1380_vm1, %v22658_v12 }
 0xb7e   : > { %13614 = vmatprep.mubr.msk.f32.mxu1 %vm1380_vm1, %v22659_v21  ;;  %v19983_v55 = vpop.eup %16139 }
 0xb80   : > { %5237 = vadd.xlane.f32.xlu0 %v19967_v7 }
 0xb81   : > { %13615 = vmatmul.mubr.msk.f32.gmra.mrb[134].mxu1 %vm1380_vm1, %v22660_v10  ;;  %v19990_v60 = vpop.eup %16141 }
 0xb82   : > { %13617 = vmatprep.mubr.msk.f32.mxu1 %vm1380_vm1, %v22661_v26 }
 0xb84   : > { %5241 = vadd.xlane.f32.xlu0 %v19974_v61 }
 0xb85   : > { %15659 = vrot.lane.b32.xlu1 %v22662_v30, %s16205_s20  ;;  %13618 = vmatmul.mubr.msk.f32.gmra.mrb[136].mxu1 %vm1380_vm1, %v22663_v38 }
 0xb86   : > { %13620 = vmatprep.mubr.msk.f32.mxu1 %vm1380_vm1, %v22664_v29 }
 0xb88   : > { %5245 = vadd.xlane.f32.xlu0 %v19983_v55 }
 0xb89   : > { %13621 = vmatmul.mubr.msk.f32.gmra.mrb[138].mxu1 %vm1380_vm1, %v22665_v59 }
 0xb8a   : > { %13623 = vmatprep.mubr.msk.f32.mxu1 %vm1380_vm1, %v19723_v15 }
 0xb8b   : > { %v19992_v20 = vpop.xlane.xlu1 %5219 }
 0xb8c   : > { %5247 = vadd.xlane.f32.xlu0 %v19990_v60 }
 0xb8d   : > { %13624 = vmatmul.mubr.msk.f32.gmra.mrb[140].mxu1 %vm1380_vm1, %v19719_v4  ;;  %v4990_v4 = vsub.f32 %v22667_v58, %v22666_v41 }
 0xb8e   : > { %13626 = vmatprep.mubr.msk.f32.mxu1 %vm1380_vm1, %v19762_v62 }
 0xb8f   : > { %v19999_v0 = vpop.xlane.xlu1 %5223 }
 0xb91   : > { %13627 = vmatmul.mubr.msk.f32.gmra.mrb[142].mxu1 %vm1380_vm1, %v19760_v46  ;;  %v5115_v46 = vmul.f32 1.442695, %v4990_v4 }
 0xb92   : > { %13629 = vmatprep.mubr.msk.f32.mxu1 %vm1380_vm1, %v19852_v28 }
 0xb93   : > { %v15640_v15 = vpop.permute.xlu1 %15639  ;;  %16143 = vpow2.f32 %v5115_v46 }
 0xb94   : > { %v15642_v16 = vunpack.i.h.bf16 %v15640_v15  ;;  %v15641_v22 = vunpack.i.l.bf16 %v15640_v15  ;;  %16145 = vrcp.f32 %v19992_v20 }
 0xb95   : > { %13630 = vmatmul.mubr.msk.f32.gmra.mrb[144].mxu1 %vm1380_vm1, %v19850_v1 }
 0xb96   : > { %v14869_v17 = vpack.c.bf16 %v15642_v16, %v15641_v22  ;;  %13632 = vmatprep.mubr.msk.f32.mxu1 %vm1380_vm1, %v19858_v54 }
 0xb98   : > { %14870 = vmatprep.subr.bf16.mxu0 %v14869_v17 }
 0xb99   : > { %14872 = vmatpush3.bf16.msra.mxu0 %v14869_v17  ;;  %13633 = vmatmul.mubr.msk.f32.gmra.mrb[146].mxu1 %vm1380_vm1, %v19856_v23 }
 0xb9a   : > { %13635 = vmatprep.mubr.msk.f32.mxu1 %vm1380_vm1, %v19872_v6 }
 0xb9b   : > { %v5222_v62 = vpop.xlane.xlu0 %5221 }
 0xb9c   : > { %16147 = vrcp.f32 %v5222_v62 }
 0xb9d   : > { %13636 = vmatmul.mubr.msk.f32.gmra.mrb[148].mxu1 %vm1380_vm1, %v19862_v57  ;;  %v20027_v57 = vpop.eup %16143  ;;  %16149 = vrcp.f32 %v19999_v0 }
 0xb9e   : > { %13638 = vmatprep.mubr.msk.f32.mxu1 %vm1380_vm1, %v19878_v27  ;;  %v16146_v10 = vpop.eup %16145 }
 0xb9f   : > { %v5226_v1 = vpop.xlane.xlu0 %5225  ;;  %v5348_v29 = vmul.f32 %v16146_v10, %v19834_v51 }
 0xba0   : > { %16151 = vrcp.f32 %v5226_v1 }
 0xba1   : > { %13639 = vmatmul.mubr.msk.f32.gmra.mrb[150].mxu1 %vm1380_vm1, %v19874_v14 }
 0xba2   : > { %13641 = vmatprep.mubr.msk.f32.mxu1 %vm1380_vm1, %v19887_v52  ;;  %v1313_v52 = vld [vmem:[%s21623_s1 + $0x40] sm:$0xff] }
 0xba3   : > { %v15645_v28 = vpop.permute.xlu0 %15644 }
 0xba4   : > { %v15647_v23 = vunpack.i.h.bf16 %v15645_v28  ;;  %v15646_v54 = vunpack.i.l.bf16 %v15645_v28 }
 0xba5   : > { %13642 = vmatmul.mubr.msk.f32.gmra.mrb[152].mxu1 %vm1380_vm1, %v19884_v3  ;;  %v1312_v3 = vld [vmem:[%s21623_s1 + $0x38] sm:$0xff] }
 0xba6   : > { %v14873_v6 = vpack.c.bf16 %v15647_v23, %v15646_v54  ;;  %13644 = vmatprep.mubr.msk.f32.mxu1 %vm1380_vm1, %v19893_v40  ;;  %v16148_v30 = vpop.eup %16147 }
 0xba7   : > { %v16150_v59 = vpop.eup %16149  ;;  %v5350_v15 = vmul.f32 %v16148_v30, %v19842_v8  ;;  %v22670_v30 = vld [vmem:[#allocation167_spill] sm:$0xff] }
 0xba8   : > { %14874 = vmatprep.subr.bf16.mxu0 %v14873_v6  ;;  %v5352_v51 = vmul.f32 %v16150_v59, %v19839_v37  ;;  %v22673_v59 = vld [vmem:[#allocation168_spill] sm:$0xff] }
 0xba9   : > { %5243 = vadd.xlane.f32.xlu1 %v20027_v57  ;;  %14876 = vmatpush3.bf16.msra.mxu0 %v14873_v6 }
 0xbaa   : > { %13645 = vmatmul.mubr.msk.f32.gmra.mrb[154].mxu1 %vm1380_vm1, %v19890_v53  ;;  %v14893_v53 = vpack.c.bf16 %v1313_v52, %v1312_v3  ;;  %v16152_v16 = vpop.eup %16151 }
 0xbab   : > { %13647 = vmatprep.mubr.msk.f32.mxu1 %vm1380_vm1, %v19923_v47  ;;  %v5354_v17 = vmul.f32 %v16152_v16, %v19845_v56  ;;  %v22677_v16 = vld [vmem:[#allocation71_spill] sm:$0xff] }
 0xbac   : > { %14894 = vmatprep.subr.bf16.mxu1 %v14893_v53 }
 0xbad   : > { %14896 = vmatpush3.bf16.msra.mxu1 %v14893_v53 }
 0xbae   : > { %13648 = vmatmul.mubr.msk.f32.gmra.mrb[156].mxu1 %vm1380_vm1, %v19921_v48 }
 0xbaf   : > { %13650 = vmatprep.mubr.msk.f32.mxu1 %vm1380_vm1, %v19934_v42 }
 0xbb2   : > { %13651 = vmatmul.mubr.msk.f32.gmra.mrb[158].mxu1 %vm1380_vm1, %v19928_v34 }
 0xbc4   : > { %v5228_v14 = vpop.xlane.xlu1 %5227 }
 0xbc5   : > { %16153 = vrcp.f32 %v5228_v14 }
 0xbc8   : > { %v5232_v27 = vpop.xlane.xlu1 %5231 }
 0xbcc   : > { %v15650_v40 = vpop.permute.xlu1 %15649 }
 0xbcd   : > { %v15652_v48 = vunpack.i.h.bf16 %v15650_v40  ;;  %v15651_v47 = vunpack.i.l.bf16 %v15650_v40 }
 0xbcf   : > { %v14877_v42 = vpack.c.bf16 %v15652_v48, %v15651_v47  ;;  %v16154_v41 = vpop.eup %16153 }
 0xbd0   : > { %v5356_v8 = vmul.f32 %v16154_v41, %v19897_v32  ;;  %v22680_v41 = vld [vmem:[#allocation74_spill] sm:$0xff] }
 0xbd1   : > { %14878 = vmatprep.subr.bf16.mxu0 %v14877_v42 }
 0xbd2   : > { %14880 = vmatpush3.bf16.msra.mxu0 %v14877_v42 }
 0xbd4   : > { %v5230_v34 = vpop.xlane.xlu0 %5229 }
 0xbd5   : > { %16155 = vrcp.f32 %v5230_v34 }
 0xbd6   : > { %16157 = vrcp.f32 %v5232_v27 }
 0xbd8   : > { %v5234_v11 = vpop.xlane.xlu0 %5233 }
 0xbd9   : > { %16159 = vrcp.f32 %v5234_v11 }
 0xbdc   : > { %v15655_v31 = vpop.permute.xlu0 %15654 }
 0xbdd   : > { %v15657_v63 = vunpack.i.h.bf16 %v15655_v31  ;;  %v15656_v33 = vunpack.i.l.bf16 %v15655_v31 }
 0xbdf   : > { %v14881_v9 = vpack.c.bf16 %v15657_v63, %v15656_v33  ;;  %v16156_v46 = vpop.eup %16155 }
 0xbe0   : > { %v16158_v1 = vpop.eup %16157  ;;  %v5358_v37 = vmul.f32 %v16156_v46, %v19913_v49  ;;  %v22684_v46 = vld [vmem:[#allocation178_spill] sm:$0xff] }
 0xbe1   : > { %14882 = vmatprep.subr.bf16.mxu0 %v14881_v9  ;;  %v5360_v56 = vmul.f32 %v16158_v1, %v19904_v36  ;;  %v22687_v1 = vld [vmem:[#allocation77_spill] sm:$0xff] }
 0xbe2   : > { %14884 = vmatpush3.bf16.msra.mxu0 %v14881_v9 }
 0xbe3   : > { %v16160_v28 = vpop.eup %16159 }
 0xbe4   : > { %v5362_v54 = vmul.f32 %v16160_v28, %v19916_v5  ;;  %v22689_v28 = vld [vmem:[#allocation179_spill] sm:$0xff] }
 0xbfd   : > { %v5236_v50 = vpop.xlane.xlu1 %5235  ;;  %v13523_v25 = vpop.f32.mrb[112].mxu1 }
 0xbfe   : > { %v5877_v45 = vpop.f32.mrb[113].mxu1  ;;  %16161 = vrcp.f32 %v5236_v50 }
 0xbff   : > { %13653 = vmatprep.mubr.msk.f32.mxu1 %vm1380_vm1, %v5877_v45 }
 0xc00   : > { %13654 = vmatmul.mubr.msk.f32.gmra.mrb[160].mxu1 %vm1380_vm1, %v13523_v25 }
 0xc01   : > { %v5240_v19 = vpop.xlane.xlu1 %5239  ;;  %v13526_v24 = vpop.f32.mrb[114].mxu1 }
 0xc02   : > { %v5887_v13 = vpop.f32.mrb[115].mxu1 }
 0xc03   : > { %13656 = vmatprep.mubr.msk.f32.mxu1 %vm1380_vm1, %v5887_v13 }
 0xc04   : > { %13657 = vmatmul.mubr.msk.f32.gmra.mrb[162].mxu1 %vm1380_vm1, %v13526_v24 }
 0xc05   : > { %v15660_v18 = vpop.permute.xlu1 %15659  ;;  %v13529_v43 = vpop.f32.mrb[116].mxu1 }
 0xc06   : > { %v15662_v2 = vunpack.i.h.bf16 %v15660_v18  ;;  %v15661_v35 = vunpack.i.l.bf16 %v15660_v18  ;;  %v5897_v12 = vpop.f32.mrb[117].mxu1 }
 0xc07   : > { %13659 = vmatprep.mubr.msk.f32.mxu1 %vm1380_vm1, %v5897_v12  ;;  %v7437_v12 = vld [vmem:[%s21623_s1 + $0x68] sm:$0xff] }
 0xc08   : > { %v14885_v21 = vpack.c.bf16 %v15662_v2, %v15661_v35  ;;  %13660 = vmatmul.mubr.msk.f32.gmra.mrb[164].mxu1 %vm1380_vm1, %v13529_v43  ;;  %v16162_v23 = vpop.eup %16161  ;;  %v7436_v35 = vld [vmem:[%s21623_s1 + $0x60] sm:$0xff] }
 0xc09   : > { %v13532_v26 = vpop.f32.mrb[118].mxu1  ;;  %v5364_v14 = vmul.f32 %v16162_v23, %v19939_v39  ;;  %v14897_v10 = vpack.c.bf16 %v7437_v12, %v7436_v35  ;;  %v22691_v23 = vld [vmem:[#allocation176_spill] sm:$0xff]  ;;  %v22726_v35 = vld [vmem:[#allocation66_spill] sm:$0xff]  ;;  %v22727_v12 = vld [vmem:[#allocation67_spill] sm:$0xff] }
 0xc0a   : > { %v5907_v38 = vpop.f32.mrb[119].mxu1  ;;  %14886 = vmatprep.subr.bf16.mxu0 %v14885_v21 }
 0xc0b   : > { %14888 = vmatpush3.bf16.msra.mxu0 %v14885_v21  ;;  %13662 = vmatprep.mubr.msk.f32.mxu1 %vm1380_vm1, %v5907_v38  ;;  %v22668_v21 = vld [vmem:[#allocation166_spill] sm:$0xff]  ;;  %v22671_v38 = vld [vmem:[#allocation164_spill] sm:$0xff] }
 0xc0c   : > { %13663 = vmatmul.mubr.msk.f32.gmra.mrb[166].mxu1 %vm1380_vm1, %v13532_v26  ;;  %14898 = vmatprep.subr.bf16.mxu0 %v14897_v10  ;;  %v22669_v26 = vld [vmem:[#allocation165_spill] sm:$0xff] }
 0xc0d   : > { %v5238_v20 = vpop.xlane.xlu0 %5237  ;;  %v13535_v0 = vpop.f32.mrb[120].mxu1 }
 0xc0e   : > { %v5917_v22 = vpop.f32.mrb[121].mxu1  ;;  %13578 = vmatmul.mubr.f32.vlgmr.msra.gmra.mrb[176].mxu0 %v5348_v29  ;;  %16163 = vrcp.f32 %v5238_v20  ;;  %v22672_v29 = vld [vmem:[#allocation169_spill] sm:$0xff]  ;;  %v22674_v20 = vld [vmem:[#allocation171_spill] sm:$0xff] }
 0xc0f   : > { %13580 = vmatprep.mubr.f32.mxu0 %v5350_v15  ;;  %13665 = vmatprep.mubr.msk.f32.mxu1 %vm1380_vm1, %v5917_v22  ;;  %16165 = vrcp.f32 %v5240_v19  ;;  %v22676_v15 = vld [vmem:[#allocation163_spill] sm:$0xff]  ;;  %v22678_v22 = vld [vmem:[#allocation174_spill] sm:$0xff] }
 0xc10   : > { %13666 = vmatmul.mubr.msk.f32.gmra.mrb[168].mxu1 %vm1380_vm1, %v13535_v0  ;;  %14900 = vmatpush3.bf16.msra.mxu0 %v14897_v10  ;;  %v22675_v0 = vld [vmem:[#allocation170_spill] sm:$0xff] }
 0xc11   : > { %v5242_v58 = vpop.xlane.xlu0 %5241  ;;  %v13538_v4 = vpop.f32.mrb[122].mxu1  ;;  %v22729_v10 = vld [vmem:[#allocation214_spill] sm:$0xff] }
 0xc12   : > { %v5927_v62 = vpop.f32.mrb[123].mxu1  ;;  %13581 = vmatmul.mubr.f32.gmra.mrb[178].mxu0 %v5352_v51  ;;  %16167 = vrcp.f32 %v5242_v58  ;;  %v22679_v51 = vld [vmem:[#allocation172_spill] sm:$0xff]  ;;  %v22681_v58 = vld [vmem:[#allocation173_spill] sm:$0xff] }
 0xc13   : > { %13583 = vmatprep.mubr.f32.mxu0 %v5354_v17  ;;  %13668 = vmatprep.mubr.msk.f32.mxu1 %vm1380_vm1, %v5927_v62  ;;  %v22683_v17 = vld [vmem:[#allocation157_spill] sm:$0xff] }
 0xc14   : > { %13669 = vmatmul.mubr.msk.f32.gmra.mrb[170].mxu1 %vm1380_vm1, %v13538_v4  ;;  %v22682_v4 = vld [vmem:[#allocation175_spill] sm:$0xff]  ;;  %v22685_v62 = vld [vmem:[#allocation177_spill] sm:$0xff] }
 0xc15   : > { %v5246_v36 = vpop.xlane.xlu0 %5245 }
 0xc16   : > { %13584 = vmatmul.mubr.f32.gmra.mrb[180].mxu0 %v5356_v8  ;;  %16169 = vrcp.f32 %v5246_v36  ;;  %v22686_v8 = vld [vmem:[#allocation198_spill] sm:$0xff]  ;;  %v22700_v36 = vld [vmem:[#allocation181_spill] sm:$0xff] }
 0xc17   : > { %13586 = vmatprep.mubr.f32.mxu0 %v5358_v37  ;;  %v22688_v37 = vld [vmem:[#allocation197_spill] sm:$0xff] }
 0xc18   : > { %v16164_v6 = vpop.eup %16163 }
 0xc19   : > { %v16166_v27 = vpop.eup %16165  ;;  %v5366_v3 = vmul.f32 %v16164_v6, %v19967_v7  ;;  %v5248_v40 = vpop.xlane.xlu0 %5247  ;;  %v22693_v6 = vld [vmem:[#allocation92_spill] sm:$0xff] }
 0xc1a   : > { %13587 = vmatmul.mubr.f32.gmra.mrb[182].mxu0 %v5360_v56  ;;  %v5368_v49 = vmul.f32 %v16166_v27, %v19948_v44  ;;  %v22690_v56 = vld [vmem:[#allocation80_spill] sm:$0xff] }
 0xc1b   : > { %13589 = vmatprep.mubr.f32.mxu0 %v5362_v54  ;;  %v22692_v54 = vld [vmem:[#allocation201_spill] sm:$0xff]  ;;  %v22695_v27 = vld [vmem:[#allocation180_spill] sm:$0xff] }
 0xc1c   : > { %v16168_v32 = vpop.eup %16167 }
 0xc1d   : > { %v5370_v52 = vmul.f32 %v16168_v32, %v19974_v61  ;;  %v22697_v32 = vld [vmem:[#allocation182_spill] sm:$0xff] }
 0xc1e   : > { %13590 = vmatmul.mubr.f32.gmra.mrb[184].mxu0 %v5364_v14  ;;  %v22694_v14 = vld [vmem:[#allocation200_spill] sm:$0xff] }
 0xc1f   : > { %13592 = vmatprep.mubr.f32.mxu0 %v5366_v3  ;;  %v22696_v3 = vld [vmem:[#allocation83_spill] sm:$0xff] }
 0xc20   : > { %v16170_v7 = vpop.eup %16169 }
 0xc21   : > { %v5374_v61 = vmul.f32 %v16170_v7, %v19983_v55  ;;  %v22705_v7 = vld [vmem:[#allocation206_spill] sm:$0xff] }
 0xc22   : > { %13593 = vmatmul.mubr.f32.gmra.mrb[186].mxu0 %v5368_v49  ;;  %v22698_v49 = vld [vmem:[#allocation186_spill] sm:$0xff] }
 0xc23   : > { %13595 = vmatprep.mubr.f32.mxu0 %v5370_v52  ;;  %v22699_v52 = vld [vmem:[#allocation204_spill] sm:$0xff] }
 0xc33   : > { %v13541_v53 = vpop.f32.mrb[124].mxu1 }
 0xc34   : > { %v5937_v5 = vpop.f32.mrb[125].mxu1 }
 0xc35   : > { %13671 = vmatprep.mubr.msk.f32.mxu1 %vm1380_vm1, %v5937_v5  ;;  %v22702_v5 = vld [vmem:[#allocation184_spill] sm:$0xff] }
 0xc36   : > { %v5244_v39 = vpop.xlane.xlu1 %5243  ;;  %13672 = vmatmul.mubr.msk.f32.gmra.mrb[172].mxu1 %vm1380_vm1, %v13541_v53  ;;  %v22701_v53 = vld [vmem:[#allocation199_spill] sm:$0xff] }
 0xc37   : > { %16171 = vrcp.f32 %v5244_v39  ;;  %v22704_v39 = vld [vmem:[#allocation187_spill] sm:$0xff] }
 0xc38   : > { %16173 = vrcp.f32 %v5248_v40  ;;  %v22703_v40 = vld [vmem:[#allocation203_spill] sm:$0xff] }
 0xc41   : > { %v16172_v48 = vpop.eup %16171 }
 0xc42   : > { %v5372_v44 = vmul.f32 %v16172_v48, %v20027_v57  ;;  %v16174_v47 = vpop.eup %16173  ;;  %v22706_v48 = vld [vmem:[#allocation183_spill] sm:$0xff] }
 0xc43   : > { %v5376_v11 = vmul.f32 %v16174_v47, %v19990_v60  ;;  %v22708_v47 = vld [vmem:[#allocation211_spill] sm:$0xff] }
 0xc44   : > { %v13544_v42 = vpop.f32.mrb[126].mxu1  ;;  %13596 = vmatmul.mubr.f32.gmra.mrb[188].mxu0 %v5372_v44  ;;  %v22707_v44 = vld [vmem:[#allocation202_spill] sm:$0xff] }
 0xc45   : > { %v5947_v34 = vpop.f32.mrb[127].mxu1  ;;  %13598 = vmatprep.mubr.f32.mxu0 %v5374_v61  ;;  %v22709_v61 = vld [vmem:[#allocation188_spill] sm:$0xff] }
 0xc46   : > { %13674 = vmatprep.mubr.msk.f32.mxu1 %vm1380_vm1, %v5947_v34  ;;  %v22711_v34 = vld [vmem:[#allocation192_spill] sm:$0xff] }
 0xc47   : > { %13675 = vmatmul.mubr.msk.f32.gmra.mrb[174].mxu1 %vm1380_vm1, %v13544_v42  ;;  %v22710_v42 = vld [vmem:[#allocation205_spill] sm:$0xff] }
 0xc48   : > { %13599 = vmatmul.mubr.f32.gmra.mrb[190].mxu0 %v5376_v11  ;;  %v22712_v11 = vld [vmem:[#allocation209_spill] sm:$0xff] }
 0xce1   : > { %v13579_v31 = vpop.f32.mrb[176].mxu0 }
 0xce2   : > { %v6070_v63 = vpop.f32.mrb[177].mxu0 }
 0xce3   : > { %13677 = vmatprep.mubr.msk.f32.mxu1 %vm1380_vm1, %v6070_v63  ;;  %v7439_v63 = vld [vmem:[%s21623_s1 + $0x78] sm:$0xff] }
 0xce4   : > { %13678 = vmatmul.mubr.msk.f32.gmra.mrb[176].mxu1 %vm1380_vm1, %v13579_v31  ;;  %v7438_v31 = vld [vmem:[%s21623_s1 + $0x70] sm:$0xff] }
 0xce5   : > { %v13582_v57 = vpop.f32.mrb[178].mxu0 }
 0xce6   : > { %v6080_v33 = vpop.f32.mrb[179].mxu0 }
 0xce7   : > { %13680 = vmatprep.mubr.msk.f32.mxu1 %vm1380_vm1, %v6080_v33  ;;  %v22713_v33 = vld [vmem:[#allocation185_spill] sm:$0xff] }
 0xce8   : > { %13681 = vmatmul.mubr.msk.f32.gmra.mrb[178].mxu1 %vm1380_vm1, %v13582_v57  ;;  %v14901_v57 = vpack.c.bf16 %v7439_v63, %v7438_v31  ;;  %v22746_v31 = vld [vmem:[#allocation9_spill] sm:$0xff] }
 0xce9   : > { %v13585_v55 = vpop.f32.mrb[180].mxu0  ;;  %v22747_v63 = vmax.f32 %v22746_v31, 0.0  ;;  %v22768_v31 = vld [vmem:[#allocation20_spill] sm:$0xff] }
 0xcea   : > { %v6090_v9 = vpop.f32.mrb[181].mxu0  ;;  %14902 = vmatprep.subr.bf16.mxu0 %v14901_v57 }
 0xceb   : > { %13683 = vmatprep.mubr.msk.f32.mxu1 %vm1380_vm1, %v6090_v9  ;;  %14904 = vmatpush3.bf16.msra.mxu0 %v14901_v57  ;;  %v22715_v9 = vld [vmem:[#allocation190_spill] sm:$0xff] }
 0xcec   : > { %13684 = vmatmul.mubr.msk.f32.gmra.mrb[180].mxu1 %vm1380_vm1, %v13585_v55  ;;  %v22714_v55 = vld [vmem:[#allocation89_spill] sm:$0xff] }
 0xced   : > { %v13588_v60 = vpop.f32.mrb[182].mxu0 }
 0xcee   : > { %v6100_v50 = vpop.f32.mrb[183].mxu0 }
 0xcef   : > { %13686 = vmatprep.mubr.msk.f32.mxu1 %vm1380_vm1, %v6100_v50  ;;  %v22717_v50 = vld [vmem:[#allocation86_spill] sm:$0xff] }
 0xcf0   : > { %13687 = vmatmul.mubr.msk.f32.gmra.mrb[182].mxu1 %vm1380_vm1, %v13588_v60  ;;  %v22716_v60 = vld [vmem:[#allocation207_spill] sm:$0xff] }
 0xcf1   : > { %v13591_v25 = vpop.f32.mrb[184].mxu0 }
 0xcf2   : > { %v6110_v45 = vpop.f32.mrb[185].mxu0 }
 0xcf3   : > { %13689 = vmatprep.mubr.msk.f32.mxu1 %vm1380_vm1, %v6110_v45  ;;  %v22719_v45 = vld [vmem:[#allocation208_spill] sm:$0xff] }
 0xcf4   : > { %13690 = vmatmul.mubr.msk.f32.gmra.mrb[184].mxu1 %vm1380_vm1, %v13591_v25  ;;  %v22718_v25 = vld [vmem:[#allocation189_spill] sm:$0xff] }
 0xcf5   : > { %v13594_v19 = vpop.f32.mrb[186].mxu0 }
 0xcf6   : > { %v6120_v24 = vpop.f32.mrb[187].mxu0 }
 0xcf7   : > { %13692 = vmatprep.mubr.msk.f32.mxu1 %vm1380_vm1, %v6120_v24  ;;  %v22721_v24 = vld [vmem:[#allocation213_spill] sm:$0xff] }
 0xcf8   : > { %13693 = vmatmul.mubr.msk.f32.gmra.mrb[186].mxu1 %vm1380_vm1, %v13594_v19  ;;  %v22720_v19 = vld [vmem:[#allocation194_spill] sm:$0xff] }
 0xd17   : > { %v13597_v13 = vpop.f32.mrb[188].mxu0 }
 0xd18   : > { %v6130_v18 = vpop.f32.mrb[189].mxu0 }
 0xd19   : > { %13695 = vmatprep.mubr.msk.f32.mxu1 %vm1380_vm1, %v6130_v18  ;;  %v22723_v18 = vld [vmem:[#allocation215_spill] sm:$0xff] }
 0xd1a   : > { %13696 = vmatmul.mubr.msk.f32.gmra.mrb[188].mxu1 %vm1380_vm1, %v13597_v13  ;;  %v22722_v13 = vld [vmem:[#allocation195_spill] sm:$0xff] }
 0xd1b   : > { %v13600_v43 = vpop.f32.mrb[190].mxu0 }
 0xd1c   : > { %v6140_v2 = vpop.f32.mrb[191].mxu0 }
 0xd1d   : > { %13698 = vmatprep.mubr.msk.f32.mxu1 %vm1380_vm1, %v6140_v2  ;;  %v22725_v2 = vld [vmem:[#allocation210_spill] sm:$0xff] }
 0xd1e   : > { %13699 = vmatmul.mubr.msk.f32.gmra.mrb[190].mxu1 %vm1380_vm1, %v13600_v43  ;;  %v22724_v43 = vld [vmem:[#allocation191_spill] sm:$0xff] }
 0xd1f   : > { %13705 = vmatprep.mubr.msk.f32.mxu1 %vm1380_vm1, %v22668_v21  ;;  %v22728_v21 = vld [vmem:[#allocation196_spill] sm:$0xff] }
 0xd22   : > { %13706 = vmatmul.mubr.msk.f32.vlgmr.msra.gmra.mrb[128].mxu1 %vm1380_vm1, %v22669_v26  ;;  %v22730_v26 = vld [vmem:[#allocation193_spill] sm:$0xff] }
 0xd23   : > { %13708 = vmatprep.mubr.msk.f32.mxu1 %vm1380_vm1, %v22670_v30  ;;  %v22731_v30 = vld [vmem:[#allocation212_spill] sm:$0xff] }
 0xd26   : > { %13709 = vmatmul.mubr.msk.f32.gmra.mrb[130].mxu1 %vm1380_vm1, %v22671_v38  ;;  %v20238_v38 = vld [vmem:[%s21623_s1 + $0x58] ss:$0 sm:$0xff] }
 0xd27   : > { %13711 = vmatprep.mubr.msk.f32.mxu1 %vm1380_vm1, %v22672_v29 }
 0xd2a   : > { %13712 = vmatmul.mubr.msk.f32.gmra.mrb[132].mxu1 %vm1380_vm1, %v22673_v59 }
 0xd2b   : > { %13714 = vmatprep.mubr.msk.f32.mxu1 %vm1380_vm1, %v22674_v20 }
 0xd2e   : > { %13715 = vmatmul.mubr.msk.f32.gmra.mrb[134].mxu1 %vm1380_vm1, %v22675_v0 }
 0xd2f   : > { %13717 = vmatprep.mubr.msk.f32.mxu1 %vm1380_vm1, %v22676_v15  ;;  %v8086_v15 = vld [vmem:[%s21623_s1 + $0x88] sm:$0xff] }
 0xd32   : > { %13718 = vmatmul.mubr.msk.f32.gmra.mrb[136].mxu1 %vm1380_vm1, %v22677_v16  ;;  %v8087_v16 = vld [vmem:[%s21623_s1 + $0x90] sm:$0xff] }
 0xd33   : > { %13720 = vmatprep.mubr.msk.f32.mxu1 %vm1380_vm1, %v22678_v22  ;;  %v22732_v22 = vld [vmem:[#allocation2_spill] sm:$0xff] }
 0xd36   : > { %13721 = vmatmul.mubr.msk.f32.gmra.mrb[138].mxu1 %vm1380_vm1, %v22679_v51  ;;  %v22733_v51 = vmax.f32 %v22732_v22, 0.0 }
 0xd37   : > { %13723 = vmatprep.mubr.msk.f32.mxu1 %vm1380_vm1, %v22680_v41 }
 0xd3a   : > { %13724 = vmatmul.mubr.msk.f32.gmra.mrb[140].mxu1 %vm1380_vm1, %v22681_v58 }
 0xd3b   : > { %13726 = vmatprep.mubr.msk.f32.mxu1 %vm1380_vm1, %v22682_v4  ;;  %v14905_v4 = vpack.c.bf16 %v8087_v16, %v8086_v15  ;;  %v22756_v15 = vld [vmem:[#allocation14_spill] sm:$0xff] }
 0xd3c   : > { %v22757_v16 = vmax.f32 %v22756_v15, 0.0 }
 0xd3d   : > { %14906 = vmatprep.subr.bf16.mxu0 %v14905_v4 }
 0xd3e   : > { %13727 = vmatmul.mubr.msk.f32.gmra.mrb[142].mxu1 %vm1380_vm1, %v22683_v17  ;;  %v22734_v17 = vld [vmem:[#allocation5_spill] sm:$0xff] }
 0xd3f   : > { %13729 = vmatprep.mubr.msk.f32.mxu1 %vm1380_vm1, %v22684_v46  ;;  %v22735_v46 = vmax.f32 %v22734_v17, 0.0 }
 0xd42   : > { %13730 = vmatmul.mubr.msk.f32.gmra.mrb[144].mxu1 %vm1380_vm1, %v22685_v62 }
 0xd43   : > { %13732 = vmatprep.mubr.msk.f32.mxu1 %vm1380_vm1, %v22686_v8 }
 0xd46   : > { %13733 = vmatmul.mubr.msk.f32.gmra.mrb[146].mxu1 %vm1380_vm1, %v22687_v1 }
 0xd47   : > { %13735 = vmatprep.mubr.msk.f32.mxu1 %vm1380_vm1, %v22688_v37 }
 0xd4a   : > { %13736 = vmatmul.mubr.msk.f32.gmra.mrb[148].mxu1 %vm1380_vm1, %v22689_v28  ;;  %v22736_v28 = vld [vmem:[#allocation3_spill] sm:$0xff] }
 0xd4b   : > { %13738 = vmatprep.mubr.msk.f32.mxu1 %vm1380_vm1, %v22690_v56  ;;  %v22737_v56 = vmax.f32 %v22736_v28, 0.0 }
 0xd4e   : > { %13739 = vmatmul.mubr.msk.f32.gmra.mrb[150].mxu1 %vm1380_vm1, %v22691_v23 }
 0xd4f   : > { %13741 = vmatprep.mubr.msk.f32.mxu1 %vm1380_vm1, %v22692_v54 }
 0xd52   : > { %13742 = vmatmul.mubr.msk.f32.gmra.mrb[152].mxu1 %vm1380_vm1, %v22693_v6  ;;  %v22738_v6 = vld [vmem:[#allocation4_spill] sm:$0xff] }
 0xd53   : > { %13744 = vmatprep.mubr.msk.f32.mxu1 %vm1380_vm1, %v22694_v14  ;;  %v22739_v14 = vmax.f32 %v22738_v6, 0.0  ;;  %v22762_v6 = vld [vmem:[#allocation17_spill] sm:$0xff] }
 0xd56   : > { %13745 = vmatmul.mubr.msk.f32.gmra.mrb[154].mxu1 %vm1380_vm1, %v22695_v27 }
 0xd57   : > { %13747 = vmatprep.mubr.msk.f32.mxu1 %vm1380_vm1, %v22696_v3 }
 0xd5a   : > { %13748 = vmatmul.mubr.msk.f32.gmra.mrb[156].mxu1 %vm1380_vm1, %v22697_v32 }
 0xd5b   : > { %13750 = vmatprep.mubr.msk.f32.mxu1 %vm1380_vm1, %v22698_v49 }
 0xd5e   : > { %13751 = vmatmul.mubr.msk.f32.gmra.mrb[158].mxu1 %vm1380_vm1, %v22699_v52  ;;  %v22740_v52 = vld [vmem:[#allocation6_spill] sm:$0xff] }
 0xd5f   : > { %13753 = vmatprep.mubr.msk.f32.mxu1 %vm1380_vm1, %v22700_v36  ;;  %v22741_v36 = vmax.f32 %v22740_v52, 0.0 }
 0xd62   : > { %13754 = vmatmul.mubr.msk.f32.gmra.mrb[160].mxu1 %vm1380_vm1, %v22701_v53 }
 0xd63   : > { %13756 = vmatprep.mubr.msk.f32.mxu1 %vm1380_vm1, %v22702_v5 }
 0xd66   : > { %13757 = vmatmul.mubr.msk.f32.gmra.mrb[162].mxu1 %vm1380_vm1, %v22703_v40  ;;  %v22742_v40 = vld [vmem:[#allocation7_spill] sm:$0xff] }
 0xd67   : > { %13759 = vmatprep.mubr.msk.f32.mxu1 %vm1380_vm1, %v22704_v39  ;;  %v22743_v39 = vmax.f32 %v22742_v40, 0.0 }
 0xd6a   : > { %13760 = vmatmul.mubr.msk.f32.gmra.mrb[164].mxu1 %vm1380_vm1, %v22705_v7 }
 0xd6b   : > { %13762 = vmatprep.mubr.msk.f32.mxu1 %vm1380_vm1, %v22706_v48 }
 0xd6e   : > { %13763 = vmatmul.mubr.msk.f32.gmra.mrb[166].mxu1 %vm1380_vm1, %v22707_v44 }
 0xd6f   : > { %13765 = vmatprep.mubr.msk.f32.mxu1 %vm1380_vm1, %v22708_v47 }
 0xd72   : > { %13766 = vmatmul.mubr.msk.f32.gmra.mrb[168].mxu1 %vm1380_vm1, %v22709_v61  ;;  %v22744_v61 = vld [vmem:[#allocation8_spill] sm:$0xff] }
 0xd73   : > { %13768 = vmatprep.mubr.msk.f32.mxu1 %vm1380_vm1, %v22710_v42  ;;  %v22745_v42 = vmax.f32 %v22744_v61, 0.0 }
 0xd76   : > { %13769 = vmatmul.mubr.msk.f32.gmra.mrb[170].mxu1 %vm1380_vm1, %v22711_v34 }
 0xd77   : > { %13771 = vmatprep.mubr.msk.f32.mxu1 %vm1380_vm1, %v22712_v11 }
 0xd7a   : > { %13772 = vmatmul.mubr.msk.f32.gmra.mrb[172].mxu1 %vm1380_vm1, %v22713_v33 }
 0xd7b   : > { %13774 = vmatprep.mubr.msk.f32.mxu1 %vm1380_vm1, %v22714_v55 }
 0xd7e   : > { %13775 = vmatmul.mubr.msk.f32.gmra.mrb[174].mxu1 %vm1380_vm1, %v22715_v9 }
 0xd7f   : > { %13777 = vmatprep.mubr.msk.f32.mxu1 %vm1380_vm1, %v22716_v60  ;;  %v22748_v60 = vld [vmem:[#allocation10_spill] sm:$0xff] }
 0xd82   : > { %13778 = vmatmul.mubr.msk.f32.gmra.mrb[176].mxu1 %vm1380_vm1, %v22717_v50  ;;  %v22749_v50 = vmax.f32 %v22748_v60, 0.0 }
 0xd83   : > { %13780 = vmatprep.mubr.msk.f32.mxu1 %vm1380_vm1, %v22718_v25 }
 0xd86   : > { %13781 = vmatmul.mubr.msk.f32.gmra.mrb[178].mxu1 %vm1380_vm1, %v22719_v45 }
 0xd87   : > { %13783 = vmatprep.mubr.msk.f32.mxu1 %vm1380_vm1, %v22720_v19  ;;  %v22750_v19 = vld [vmem:[#allocation11_spill] sm:$0xff] }
 0xd8a   : > { %13784 = vmatmul.mubr.msk.f32.gmra.mrb[180].mxu1 %vm1380_vm1, %v22721_v24  ;;  %v22751_v24 = vmax.f32 %v22750_v19, 0.0 }
 0xd8b   : > { %13786 = vmatprep.mubr.msk.f32.mxu1 %vm1380_vm1, %v22722_v13 }
 0xd8e   : > { %13787 = vmatmul.mubr.msk.f32.gmra.mrb[182].mxu1 %vm1380_vm1, %v22723_v18 }
 0xd8f   : > { %13789 = vmatprep.mubr.msk.f32.mxu1 %vm1380_vm1, %v22724_v43 }
 0xd92   : > { %13790 = vmatmul.mubr.msk.f32.gmra.mrb[184].mxu1 %vm1380_vm1, %v22725_v2 }
 0xd93   : > { %13792 = vmatprep.mubr.msk.f32.mxu1 %vm1380_vm1, %v22726_v35  ;;  %v22752_v35 = vld [vmem:[#allocation12_spill] sm:$0xff] }
 0xd96   : > { %13793 = vmatmul.mubr.msk.f32.gmra.mrb[186].mxu1 %vm1380_vm1, %v22727_v12  ;;  %v22753_v12 = vmax.f32 %v22752_v35, 0.0 }
 0xd97   : > { %13795 = vmatprep.mubr.msk.f32.mxu1 %vm1380_vm1, %v22728_v21 }
 0xd9a   : > { %13796 = vmatmul.mubr.msk.f32.gmra.mrb[188].mxu1 %vm1380_vm1, %v22729_v10 }
 0xd9b   : > { %13798 = vmatprep.mubr.msk.f32.mxu1 %vm1380_vm1, %v22730_v26  ;;  %v22754_v26 = vld [vmem:[#allocation13_spill] sm:$0xff] }
 0xd9e   : > { %13799 = vmatmul.mubr.msk.f32.gmra.mrb[190].mxu1 %vm1380_vm1, %v22731_v30  ;;  %v22755_v30 = vmax.f32 %v22754_v26, 0.0 }
 0xdf5   : > { %v13707_v29 = vpop.f32.mrb[128].mxu1 }
 0xdf6   : > { %v7309_v59 = vadd.f32 %v13707_v29, %v20238_v38  ;;  %v6984_v20 = vpop.f32.mrb[129].mxu1 }
 0xdf7   : > { %v7308_v0 = vadd.f32 %v20238_v38, %v6984_v20 }
 0xdf8   : > { %v20254_v62 = vadd.f32 %v7309_v59, %v22735_v46 }
 0xdf9   : > { %v20250_v41 = vadd.f32 %v7308_v0, %v22733_v51  ;;  %v13710_v58 = vpop.f32.mrb[130].mxu1 }
 0xdfa   : > { %v7311_v8 = vadd.f32 %v13710_v58, %v20238_v38  ;;  %v6994_v1 = vpop.f32.mrb[131].mxu1  ;;  %v22758_v58 = vld [vmem:[#allocation15_spill] sm:$0xff] }
 0xdfb   : > { %v7310_v37 = vadd.f32 %v20238_v38, %v6994_v1  ;;  %13809 = vmatprep.mubr.msk.f32.mxu0 %vm734_vm0, %v20250_v41 }
 0xdfc   : > { %13810 = vmatmul.mubr.msk.f32.vlgmr.msra.gmra.mrb[192].mxu0 %vm734_vm0, %v20254_v62  ;;  %v20268_v27 = vadd.f32 %v7311_v8, %v22739_v14  ;;  %v22763_v14 = vmax.f32 %v22762_v6, 0.0 }
 0xdfd   : > { %v20264_v23 = vadd.f32 %v7310_v37, %v22737_v56  ;;  %v13713_v54 = vpop.f32.mrb[132].mxu1  ;;  %14908 = vmatpush3.bf16.msra.mxu0 %v14905_v4  ;;  %v22759_v4 = vmax.f32 %v22758_v58, 0.0  ;;  %v22760_v37 = vld [vmem:[#allocation16_spill] sm:$0xff]  ;;  %v22778_v58 = vld [vmem:[#allocation25_spill] sm:$0xff] }
 0xdfe   : > { %v7313_v3 = vadd.f32 %v13713_v54, %v20238_v38  ;;  %v7004_v32 = vpop.f32.mrb[133].mxu1  ;;  %v22761_v28 = vmax.f32 %v22760_v37, 0.0 }
 0xdff   : > { %v7312_v49 = vadd.f32 %v20238_v38, %v7004_v32  ;;  %13812 = vmatprep.mubr.msk.f32.mxu0 %vm734_vm0, %v20264_v23 }
 0xe00   : > { %13813 = vmatmul.mubr.msk.f32.gmra.mrb[194].mxu0 %vm734_vm0, %v20268_v27  ;;  %v20282_v7 = vadd.f32 %v7313_v3, %v22743_v39 }
 0xe01   : > { %v20278_v53 = vadd.f32 %v7312_v49, %v22741_v36  ;;  %v13716_v5 = vpop.f32.mrb[134].mxu1  ;;  %v22764_v36 = vld [vmem:[#allocation18_spill] sm:$0xff] }
 0xe02   : > { %v7315_v48 = vadd.f32 %v13716_v5, %v20238_v38  ;;  %v7014_v44 = vpop.f32.mrb[135].mxu1  ;;  %v22765_v5 = vmax.f32 %v22764_v36, 0.0 }
 0xe03   : > { %v7314_v47 = vadd.f32 %v20238_v38, %v7014_v44  ;;  %13815 = vmatprep.mubr.msk.f32.mxu0 %vm734_vm0, %v20278_v53 }
 0xe04   : > { %13816 = vmatmul.mubr.msk.f32.gmra.mrb[196].mxu0 %vm734_vm0, %v20282_v7  ;;  %v20296_v57 = vadd.f32 %v7315_v48, %v22747_v63  ;;  %v22766_v48 = vld [vmem:[#allocation19_spill] sm:$0xff]  ;;  %v22769_v63 = vmax.f32 %v22768_v31, 0.0 }
 0xe05   : > { %v20292_v34 = vadd.f32 %v7314_v47, %v22745_v42  ;;  %v13719_v11 = vpop.f32.mrb[136].mxu1  ;;  %v22767_v44 = vmax.f32 %v22766_v48, 0.0  ;;  %v22784_v48 = vld [vmem:[#allocation28_spill] sm:$0xff] }
 0xe06   : > { %v7317_v33 = vadd.f32 %v13719_v11, %v20238_v38  ;;  %v7024_v55 = vpop.f32.mrb[137].mxu1 }
 0xe07   : > { %v7316_v9 = vadd.f32 %v20238_v38, %v7024_v55  ;;  %13818 = vmatprep.mubr.msk.f32.mxu0 %vm734_vm0, %v20292_v34 }
 0xe08   : > { %13819 = vmatmul.mubr.msk.f32.gmra.mrb[198].mxu0 %vm734_vm0, %v20296_v57  ;;  %v20310_v13 = vadd.f32 %v7317_v33, %v22751_v24 }
 0xe09   : > { %v20306_v25 = vadd.f32 %v7316_v9, %v22749_v50  ;;  %v13722_v45 = vpop.f32.mrb[138].mxu1  ;;  %v22770_v9 = vld [vmem:[#allocation21_spill] sm:$0xff] }
 0xe0a   : > { %v7319_v18 = vadd.f32 %v13722_v45, %v20238_v38  ;;  %v7034_v43 = vpop.f32.mrb[139].mxu1  ;;  %v22771_v60 = vmax.f32 %v22770_v9, 0.0 }
 0xe0b   : > { %v7318_v2 = vadd.f32 %v20238_v38, %v7034_v43  ;;  %13821 = vmatprep.mubr.msk.f32.mxu0 %vm734_vm0, %v20306_v25 }
 0xe0c   : > { %13822 = vmatmul.mubr.msk.f32.gmra.mrb[200].mxu0 %vm734_vm0, %v20310_v13  ;;  %v20324_v29 = vadd.f32 %v7319_v18, %v22755_v30  ;;  %v22772_v18 = vld [vmem:[#allocation22_spill] sm:$0xff] }
 0xe0d   : > { %v20320_v21 = vadd.f32 %v7318_v2, %v22753_v12  ;;  %v13725_v10 = vpop.f32.mrb[140].mxu1  ;;  %v22773_v43 = vmax.f32 %v22772_v18, 0.0  ;;  %v22774_v12 = vld [vmem:[#allocation23_spill] sm:$0xff] }
 0xe0e   : > { %v7321_v59 = vadd.f32 %v13725_v10, %v20238_v38  ;;  %v7044_v20 = vpop.f32.mrb[141].mxu1  ;;  %v22775_v10 = vmax.f32 %v22774_v12, 0.0 }
 0xe0f   : > { %v7320_v0 = vadd.f32 %v20238_v38, %v7044_v20  ;;  %13824 = vmatprep.mubr.msk.f32.mxu0 %vm734_vm0, %v20320_v21 }
 0xe10   : > { %13825 = vmatmul.mubr.msk.f32.gmra.mrb[202].mxu0 %vm734_vm0, %v20324_v29  ;;  %v20338_v17 = vadd.f32 %v7321_v59, %v22759_v4  ;;  %v22779_v4 = vmax.f32 %v22778_v58, 0.0  ;;  %v22794_v58 = vld [vmem:[#allocation33_spill] sm:$0xff] }
 0xe11   : > { %v20334_v22 = vadd.f32 %v7320_v0, %v22757_v16  ;;  %v13728_v51 = vpop.f32.mrb[142].mxu1  ;;  %v22776_v0 = vld [vmem:[#allocation24_spill] sm:$0xff] }
 0xe12   : > { %v7323_v46 = vadd.f32 %v13728_v51, %v20238_v38  ;;  %v7054_v8 = vpop.f32.mrb[143].mxu1  ;;  %v22777_v15 = vmax.f32 %v22776_v0, 0.0 }
 0xe13   : > { %v7322_v1 = vadd.f32 %v20238_v38, %v7054_v8  ;;  %13827 = vmatprep.mubr.msk.f32.mxu0 %vm734_vm0, %v20334_v22 }
 0xe14   : > { %13828 = vmatmul.mubr.msk.f32.gmra.mrb[204].mxu0 %vm734_vm0, %v20338_v17  ;;  %v20352_v3 = vadd.f32 %v7323_v46, %v22763_v14 }
 0xe15   : > { %v20348_v56 = vadd.f32 %v7322_v1, %v22761_v28  ;;  %v13731_v54 = vpop.f32.mrb[144].mxu1  ;;  %v22780_v28 = vld [vmem:[#allocation26_spill] sm:$0xff] }
 0xe16   : > { %v7325_v32 = vadd.f32 %v13731_v54, %v20238_v38  ;;  %v7064_v49 = vpop.f32.mrb[145].mxu1  ;;  %v22781_v54 = vmax.f32 %v22780_v28, 0.0 }
 0xe17   : > { %v7324_v52 = vadd.f32 %v20238_v38, %v7064_v49  ;;  %13830 = vmatprep.mubr.msk.f32.mxu0 %vm734_vm0, %v20348_v56 }
 0xe18   : > { %13831 = vmatmul.mubr.msk.f32.gmra.mrb[206].mxu0 %vm734_vm0, %v20352_v3  ;;  %v20366_v47 = vadd.f32 %v7325_v32, %v22767_v44  ;;  %v22782_v32 = vld [vmem:[#allocation27_spill] sm:$0xff]  ;;  %v22785_v44 = vmax.f32 %v22784_v48, 0.0 }
 0xe19   : > { %v20362_v40 = vadd.f32 %v7324_v52, %v22765_v5  ;;  %v13734_v39 = vpop.f32.mrb[146].mxu1  ;;  %v22783_v49 = vmax.f32 %v22782_v32, 0.0 }
 0xe1a   : > { %v7327_v61 = vadd.f32 %v13734_v39, %v20238_v38  ;;  %v7074_v42 = vpop.f32.mrb[147].mxu1 }
 0xe1b   : > { %v7326_v11 = vadd.f32 %v20238_v38, %v7074_v42  ;;  %13833 = vmatprep.mubr.msk.f32.mxu0 %vm734_vm0, %v20362_v40 }
 0xe1c   : > { %13834 = vmatmul.mubr.msk.f32.gmra.mrb[208].mxu0 %vm734_vm0, %v20366_v47  ;;  %v20380_v50 = vadd.f32 %v7327_v61, %v22771_v60 }
 0xe1d   : > { %v20376_v33 = vadd.f32 %v7326_v11, %v22769_v63  ;;  %v13737_v55 = vpop.f32.mrb[148].mxu1  ;;  %v22786_v11 = vld [vmem:[#allocation29_spill] sm:$0xff] }
 0xe1e   : > { %v7329_v45 = vadd.f32 %v13737_v55, %v20238_v38  ;;  %v7084_v19 = vpop.f32.mrb[149].mxu1  ;;  %v22787_v31 = vmax.f32 %v22786_v11, 0.0  ;;  %v22800_v11 = vld [vmem:[#allocation36_spill] sm:$0xff] }
 0xe1f   : > { %v7328_v24 = vadd.f32 %v20238_v38, %v7084_v19  ;;  %13836 = vmatprep.mubr.msk.f32.mxu0 %vm734_vm0, %v20376_v33 }
 0xe20   : > { %13837 = vmatmul.mubr.msk.f32.gmra.mrb[210].mxu0 %vm734_vm0, %v20380_v50  ;;  %v20394_v26 = vadd.f32 %v7329_v45, %v22775_v10  ;;  %v22788_v45 = vld [vmem:[#allocation30_spill] sm:$0xff] }
 0xe21   : > { %v20390_v2 = vadd.f32 %v7328_v24, %v22773_v43  ;;  %v13740_v35 = vpop.f32.mrb[150].mxu1  ;;  %v22789_v19 = vmax.f32 %v22788_v45, 0.0  ;;  %v22790_v43 = vld [vmem:[#allocation31_spill] sm:$0xff] }
 0xe22   : > { %v7331_v30 = vadd.f32 %v13740_v35, %v20238_v38  ;;  %v7094_v59 = vpop.f32.mrb[151].mxu1  ;;  %v22791_v35 = vmax.f32 %v22790_v43, 0.0 }
 0xe23   : > { %v7330_v20 = vadd.f32 %v20238_v38, %v7094_v59  ;;  %13839 = vmatprep.mubr.msk.f32.mxu0 %vm734_vm0, %v20390_v2 }
 0xe24   : > { %13840 = vmatmul.mubr.msk.f32.gmra.mrb[212].mxu0 %vm734_vm0, %v20394_v26  ;;  %v20408_v46 = vadd.f32 %v7331_v30, %v22779_v4  ;;  %v22795_v4 = vmax.f32 %v22794_v58, 0.0 }
 0xe25   : > { %v20404_v16 = vadd.f32 %v7330_v20, %v22777_v15  ;;  %v13743_v51 = vpop.f32.mrb[152].mxu1  ;;  %v22792_v20 = vld [vmem:[#allocation32_spill] sm:$0xff] }
 0xe26   : > { %v7333_v8 = vadd.f32 %v13743_v51, %v20238_v38  ;;  %v7104_v1 = vpop.f32.mrb[153].mxu1  ;;  %v22793_v0 = vmax.f32 %v22792_v20, 0.0 }
 0xe27   : > { %v7332_v37 = vadd.f32 %v20238_v38, %v7104_v1  ;;  %13842 = vmatprep.mubr.msk.f32.mxu0 %vm734_vm0, %v20404_v16 }
 0xe28   : > { %13843 = vmatmul.mubr.msk.f32.gmra.mrb[214].mxu0 %vm734_vm0, %v20408_v46  ;;  %v20422_v52 = vadd.f32 %v7333_v8, %v22783_v49 }
 0xe29   : > { %v20418_v6 = vadd.f32 %v7332_v37, %v22781_v54  ;;  %v13746_v14 = vpop.f32.mrb[154].mxu1  ;;  %v22796_v54 = vld [vmem:[#allocation34_spill] sm:$0xff] }
 0xe2a   : > { %v7335_v36 = vadd.f32 %v13746_v14, %v20238_v38  ;;  %v7114_v5 = vpop.f32.mrb[155].mxu1  ;;  %v22797_v14 = vmax.f32 %v22796_v54, 0.0 }
 0xe2b   : > { %v7334_v39 = vadd.f32 %v20238_v38, %v7114_v5  ;;  %13845 = vmatprep.mubr.msk.f32.mxu0 %vm734_vm0, %v20418_v6 }
 0xe2c   : > { %13846 = vmatmul.mubr.msk.f32.gmra.mrb[216].mxu0 %vm734_vm0, %v20422_v52  ;;  %v20436_v63 = vadd.f32 %v7335_v36, %v22787_v31  ;;  %v22798_v36 = vld [vmem:[#allocation35_spill] sm:$0xff]  ;;  %v22801_v31 = vmax.f32 %v22800_v11, 0.0 }
 0xe2d   : > { %v20432_v61 = vadd.f32 %v7334_v39, %v22785_v44  ;;  %v13749_v42 = vpop.f32.mrb[156].mxu1  ;;  %v22799_v5 = vmax.f32 %v22798_v36, 0.0  ;;  %v22810_v36 = vld [vmem:[#allocation41_spill] sm:$0xff] }
 0xe2e   : > { %v7337_v55 = vadd.f32 %v13749_v42, %v20238_v38  ;;  %v7124_v9 = vpop.f32.mrb[157].mxu1 }
 0xe2f   : > { %v7336_v60 = vadd.f32 %v20238_v38, %v7124_v9  ;;  %13848 = vmatprep.mubr.msk.f32.mxu0 %vm734_vm0, %v20432_v61 }
 0xe30   : > { %13849 = vmatmul.mubr.msk.f32.gmra.mrb[218].mxu0 %vm734_vm0, %v20436_v63  ;;  %v20450_v12 = vadd.f32 %v7337_v55, %v22791_v35 }
 0xe31   : > { %v20446_v24 = vadd.f32 %v7336_v60, %v22789_v19  ;;  %v13752_v18 = vpop.f32.mrb[158].mxu1  ;;  %v22802_v60 = vld [vmem:[#allocation37_spill] sm:$0xff] }
 0xe32   : > { %v7339_v10 = vadd.f32 %v13752_v18, %v20238_v38  ;;  %v7134_v30 = vpop.f32.mrb[159].mxu1  ;;  %v22803_v45 = vmax.f32 %v22802_v60, 0.0 }
 0xe33   : > { %v7338_v59 = vadd.f32 %v20238_v38, %v7134_v30  ;;  %13851 = vmatprep.mubr.msk.f32.mxu0 %vm734_vm0, %v20446_v24 }
 0xe34   : > { %13852 = vmatmul.mubr.msk.f32.gmra.mrb[220].mxu0 %vm734_vm0, %v20450_v12  ;;  %v20464_v8 = vadd.f32 %v7339_v10, %v22795_v4  ;;  %v22804_v10 = vld [vmem:[#allocation38_spill] sm:$0xff] }
 0xe35   : > { %v20460_v15 = vadd.f32 %v7338_v59, %v22793_v0  ;;  %v13755_v51 = vpop.f32.mrb[160].mxu1  ;;  %v22805_v30 = vmax.f32 %v22804_v10, 0.0  ;;  %v22806_v0 = vld [vmem:[#allocation39_spill] sm:$0xff] }
 0xe36   : > { %v7341_v1 = vadd.f32 %v13755_v51, %v20238_v38  ;;  %v7144_v37 = vpop.f32.mrb[161].mxu1  ;;  %v22807_v51 = vmax.f32 %v22806_v0, 0.0  ;;  %v22816_v0 = vld [vmem:[#allocation44_spill] sm:$0xff] }
 0xe37   : > { %v7340_v28 = vadd.f32 %v20238_v38, %v7144_v37  ;;  %13854 = vmatprep.mubr.msk.f32.mxu0 %vm734_vm0, %v20460_v15 }
 0xe38   : > { %13855 = vmatmul.mubr.msk.f32.gmra.mrb[222].mxu0 %vm734_vm0, %v20464_v8  ;;  %v20478_v39 = vadd.f32 %v7341_v1, %v22799_v5  ;;  %v22811_v5 = vmax.f32 %v22810_v36, 0.0 }
 0xe39   : > { %v20474_v32 = vadd.f32 %v7340_v28, %v22797_v14  ;;  %v13758_v49 = vpop.f32.mrb[162].mxu1  ;;  %v22808_v28 = vld [vmem:[#allocation40_spill] sm:$0xff] }
 0xe3a   : > { %v7343_v48 = vadd.f32 %v13758_v49, %v20238_v38  ;;  %v7154_v44 = vpop.f32.mrb[163].mxu1  ;;  %v22809_v54 = vmax.f32 %v22808_v28, 0.0 }
 0xe3b   : > { %v7342_v42 = vadd.f32 %v20238_v38, %v7154_v44  ;;  %13857 = vmatprep.mubr.msk.f32.mxu0 %vm734_vm0, %v20474_v32 }
 0xe3c   : > { %13858 = vmatmul.mubr.msk.f32.gmra.mrb[224].mxu0 %vm734_vm0, %v20478_v39  ;;  %v20492_v19 = vadd.f32 %v7343_v48, %v22803_v45 }
 0xe3d   : > { %v20488_v55 = vadd.f32 %v7342_v42, %v22801_v31  ;;  %v13761_v9 = vpop.f32.mrb[164].mxu1  ;;  %v22812_v31 = vld [vmem:[#allocation42_spill] sm:$0xff] }
 0xe3e   : > { %v7345_v18 = vadd.f32 %v13761_v9, %v20238_v38  ;;  %v7164_v43 = vpop.f32.mrb[165].mxu1  ;;  %v22813_v9 = vmax.f32 %v22812_v31, 0.0 }
 0xe3f   : > { %v7344_v35 = vadd.f32 %v20238_v38, %v7164_v43  ;;  %13860 = vmatprep.mubr.msk.f32.mxu0 %vm734_vm0, %v20488_v55 }
 0xe40   : > { %13861 = vmatmul.mubr.msk.f32.gmra.mrb[226].mxu0 %vm734_vm0, %v20492_v19  ;;  %v20506_v58 = vadd.f32 %v7345_v18, %v22807_v51  ;;  %v22814_v18 = vld [vmem:[#allocation43_spill] sm:$0xff]  ;;  %v22817_v51 = vmax.f32 %v22816_v0, 0.0 }
 0xe41   : > { %v20502_v59 = vadd.f32 %v7344_v35, %v22805_v30  ;;  %v13764_v20 = vpop.f32.mrb[166].mxu1  ;;  %v22815_v43 = vmax.f32 %v22814_v18, 0.0 }
 0xe42   : > { %v7347_v4 = vadd.f32 %v13764_v20, %v20238_v38  ;;  %v7174_v1 = vpop.f32.mrb[167].mxu1 }
 0xe43   : > { %v7346_v37 = vadd.f32 %v20238_v38, %v7174_v1  ;;  %13863 = vmatprep.mubr.msk.f32.mxu0 %vm734_vm0, %v20502_v59 }
 0xe44   : > { %13864 = vmatmul.mubr.msk.f32.gmra.mrb[228].mxu0 %vm734_vm0, %v20506_v58  ;;  %v20520_v48 = vadd.f32 %v7347_v4, %v22811_v5 }
 0xe45   : > { %v20516_v14 = vadd.f32 %v7346_v37, %v22809_v54  ;;  %v13767_v49 = vpop.f32.mrb[168].mxu1  ;;  %v22818_v37 = vld [vmem:[#allocation45_spill] sm:$0xff] }
 0xe46   : > { %v7349_v44 = vadd.f32 %v13767_v49, %v20238_v38  ;;  %v7184_v42 = vpop.f32.mrb[169].mxu1  ;;  %v22819_v28 = vmax.f32 %v22818_v37, 0.0 }
 0xe47   : > { %v7348_v11 = vadd.f32 %v20238_v38, %v7184_v42  ;;  %13866 = vmatprep.mubr.msk.f32.mxu0 %vm734_vm0, %v20516_v14 }
 0xe48   : > { %13867 = vmatmul.mubr.msk.f32.gmra.mrb[230].mxu0 %vm734_vm0, %v20520_v48  ;;  %v20534_v35 = vadd.f32 %v7349_v44, %v22815_v43  ;;  %v22820_v44 = vld [vmem:[#allocation46_spill] sm:$0xff] }
 0xe49   : > { %v20530_v60 = vadd.f32 %v7348_v11, %v22813_v9  ;;  %v13770_v45 = vpop.f32.mrb[170].mxu1  ;;  %v22821_v42 = vmax.f32 %v22820_v44, 0.0  ;;  %v22822_v9 = vld [vmem:[#allocation47_spill] sm:$0xff] }
 0xe4a   : > { %v7351_v10 = vadd.f32 %v13770_v45, %v20238_v38  ;;  %v7194_v30 = vpop.f32.mrb[171].mxu1  ;;  %v22823_v45 = vmax.f32 %v22822_v9, 0.0 }
 0xe4b   : > { %v7350_v20 = vadd.f32 %v20238_v38, %v7194_v30  ;;  %13869 = vmatprep.mubr.msk.f32.mxu0 %vm734_vm0, %v20530_v60  ;;  %v8088_v30 = vld [vmem:[%s21623_s1 + $0x98] sm:$0xff] }
 0xe4c   : > { %13870 = vmatmul.mubr.msk.f32.gmra.mrb[232].mxu0 %vm734_vm0, %v20534_v35  ;;  %v20548_v54 = vadd.f32 %v7351_v10, %v22819_v28 }
 0xe4d   : > { %v20544_v4 = vadd.f32 %v7350_v20, %v22817_v51  ;;  %v13773_v1 = vpop.f32.mrb[172].mxu1  ;;  %v8089_v20 = vld [vmem:[%s21623_s1 + $0xa0] sm:$0xff] }
 0xe4e   : > { %v7353_v49 = vadd.f32 %v13773_v1, %v20238_v38  ;;  %v7204_v36 = vpop.f32.mrb[173].mxu1  ;;  %v14909_v51 = vpack.c.bf16 %v8089_v20, %v8088_v30  ;;  %v22824_v1 = vld [vmem:[#allocation48_spill] sm:$0xff] }
 0xe4f   : > { %v7352_v5 = vadd.f32 %v20238_v38, %v7204_v36  ;;  %13872 = vmatprep.mubr.msk.f32.mxu0 %vm734_vm0, %v20544_v4  ;;  %v22825_v37 = vmax.f32 %v22824_v1, 0.0  ;;  %v22826_v36 = vld [vmem:[#allocation49_spill] sm:$0xff] }
 0xe50   : > { %13873 = vmatmul.mubr.msk.f32.gmra.mrb[234].mxu0 %vm734_vm0, %v20548_v54  ;;  %v20562_v18 = vadd.f32 %v7353_v49, %v22823_v45  ;;  %14910 = vmatprep.subr.bf16.mxu0 %v14909_v51  ;;  %v22828_v45 = vld [vmem:[#allocation50_spill] sm:$0xff] }
 0xe51   : > { %v20558_v11 = vadd.f32 %v7352_v5, %v22821_v42  ;;  %v13776_v31 = vpop.f32.mrb[174].mxu1  ;;  %v22827_v5 = vmax.f32 %v22826_v36, 0.0  ;;  %14912 = vmatpush3.bf16.msra.mxu0 %v14909_v51  ;;  %v22834_v36 = vld [vmem:[#allocation52_spill] sm:$0xff] }
 0xe52   : > { %v7355_v43 = vadd.f32 %v13776_v31, %v20238_v38  ;;  %v7214_v10 = vpop.f32.mrb[175].mxu1 }
 0xe53   : > { %v7354_v0 = vadd.f32 %v20238_v38, %v7214_v10  ;;  %13875 = vmatprep.mubr.msk.f32.mxu0 %vm734_vm0, %v20558_v11  ;;  %v22829_v10 = vmax.f32 %v22828_v45, 0.0  ;;  %v22837_v45 = vld [vmem:[#allocation53_spill] sm:$0xff] }
 0xe54   : > { %13876 = vmatmul.mubr.msk.f32.gmra.mrb[236].mxu0 %vm734_vm0, %v20562_v18  ;;  %v20582_v44 = vadd.f32 %v7355_v43, %v22827_v5  ;;  %v22835_v5 = vmax.f32 %v22834_v36, 0.0 }
 0xe55   : > { %v20578_v28 = vadd.f32 %v7354_v0, %v22825_v37  ;;  %v13779_v49 = vpop.f32.mrb[176].mxu1  ;;  %v22831_v0 = vld [vmem:[#allocation51_spill] sm:$0xff] }
 0xe56   : > { %v7357_v42 = vadd.f32 %v13779_v49, %v20238_v38  ;;  %v7224_v31 = vpop.f32.mrb[177].mxu1  ;;  %v22832_v43 = vmax.f32 %v22831_v0, 0.0 }
 0xe57   : > { %v7356_v9 = vadd.f32 %v20238_v38, %v7224_v31  ;;  %13878 = vmatprep.mubr.msk.f32.mxu0 %vm734_vm0, %v20578_v28 }
 0xe58   : > { %13879 = vmatmul.mubr.msk.f32.gmra.mrb[238].mxu0 %vm734_vm0, %v20582_v44  ;;  %v20596_v1 = vadd.f32 %v7357_v42, %v22832_v43 }
 0xe59   : > { %v20592_v30 = vadd.f32 %v7356_v9, %v22829_v10  ;;  %v13782_v20 = vpop.f32.mrb[178].mxu1  ;;  %v22838_v10 = vmax.f32 %v22837_v45, 0.0 }
 0xe5a   : > { %22833 = vst [vmem:[#allocation134_spill] sm:$0xff] %v20596_v1  ;;  %v7359_v37 = vadd.f32 %v13782_v20, %v20238_v38  ;;  %v7234_v51 = vpop.f32.mrb[179].mxu1 }
 0xe5b   : > { %22830 = vst [vmem:[#allocation129_spill] sm:$0xff] %v20592_v30  ;;  %v7358_v49 = vadd.f32 %v20238_v38, %v7234_v51  ;;  %13881 = vmatprep.mubr.msk.f32.mxu0 %vm734_vm0, %v20592_v30  ;;  %v22840_v51 = vld [vmem:[#allocation54_spill] sm:$0xff] }
 0xe5c   : > { %13882 = vmatmul.mubr.msk.f32.gmra.mrb[240].mxu0 %vm734_vm0, %v20596_v1  ;;  %v20610_v42 = vadd.f32 %v7359_v37, %v22838_v10  ;;  %v22841_v36 = vmax.f32 %v22840_v51, 0.0  ;;  %v22843_v1 = vld [vmem:[#allocation55_spill] sm:$0xff] }
 0xe5d   : > { %v20606_v31 = vadd.f32 %v7358_v49, %v22835_v5  ;;  %v13785_v9 = vpop.f32.mrb[180].mxu1  ;;  %v22844_v45 = vmax.f32 %v22843_v1, 0.0 }
 0xe5e   : > { %22839 = vst [vmem:[#allocation82_spill] sm:$0xff] %v20610_v42  ;;  %v7361_v20 = vadd.f32 %v13785_v9, %v20238_v38  ;;  %v7244_v0 = vpop.f32.mrb[181].mxu1 }
 0xe5f   : > { %22836 = vst [vmem:[#allocation137_spill] sm:$0xff] %v20606_v31  ;;  %v7360_v43 = vadd.f32 %v20238_v38, %v7244_v0  ;;  %13884 = vmatprep.mubr.msk.f32.mxu0 %vm734_vm0, %v20606_v31  ;;  %v22849_v31 = vld [vmem:[#allocation57_spill] sm:$0xff] }
 0xe60   : > { %13885 = vmatmul.mubr.msk.f32.gmra.mrb[242].mxu0 %vm734_vm0, %v20610_v42  ;;  %v20624_v37 = vadd.f32 %v7361_v20, %v22844_v45  ;;  %v22846_v42 = vld [vmem:[#allocation56_spill] sm:$0xff]  ;;  %v22850_v1 = vmax.f32 %v22849_v31, 0.0 }
 0xe61   : > { %v20620_v49 = vadd.f32 %v7360_v43, %v22841_v36  ;;  %v13788_v5 = vpop.f32.mrb[182].mxu1  ;;  %v22847_v51 = vmax.f32 %v22846_v42, 0.0 }
 0xe62   : > { %22845 = vst [vmem:[#allocation106_spill] sm:$0xff] %v20624_v37  ;;  %v7363_v9 = vadd.f32 %v13788_v5, %v20238_v38  ;;  %v7254_v10 = vpop.f32.mrb[183].mxu1 }
 0xe63   : > { %22842 = vst [vmem:[#allocation87_spill] sm:$0xff] %v20620_v49  ;;  %v7362_v0 = vadd.f32 %v20238_v38, %v7254_v10  ;;  %13887 = vmatprep.mubr.msk.f32.mxu0 %vm734_vm0, %v20620_v49  ;;  %v22855_v49 = vld [vmem:[#allocation59_spill] sm:$0xff] }
 0xe64   : > { %13888 = vmatmul.mubr.msk.f32.gmra.mrb[244].mxu0 %vm734_vm0, %v20624_v37  ;;  %v20638_v20 = vadd.f32 %v7363_v9, %v22850_v1  ;;  %v22852_v37 = vld [vmem:[#allocation58_spill] sm:$0xff]  ;;  %v22856_v31 = vmax.f32 %v22855_v49, 0.0 }
 0xe65   : > { %v20634_v43 = vadd.f32 %v7362_v0, %v22847_v51  ;;  %v13791_v36 = vpop.f32.mrb[184].mxu1  ;;  %v22853_v42 = vmax.f32 %v22852_v37, 0.0 }
 0xe66   : > { %22851 = vst [vmem:[#allocation140_spill] sm:$0xff] %v20638_v20  ;;  %v7365_v5 = vadd.f32 %v13791_v36, %v20238_v38  ;;  %v7264_v45 = vpop.f32.mrb[185].mxu1 }
 0xe67   : > { %22848 = vst [vmem:[#allocation85_spill] sm:$0xff] %v20634_v43  ;;  %v7364_v10 = vadd.f32 %v20238_v38, %v7264_v45  ;;  %13890 = vmatprep.mubr.msk.f32.mxu0 %vm734_vm0, %v20634_v43  ;;  %v22861_v43 = vld [vmem:[#allocation61_spill] sm:$0xff] }
 0xe68   : > { %13891 = vmatmul.mubr.msk.f32.gmra.mrb[246].mxu0 %vm734_vm0, %v20638_v20  ;;  %v20652_v9 = vadd.f32 %v7365_v5, %v22856_v31  ;;  %v22858_v20 = vld [vmem:[#allocation60_spill] sm:$0xff]  ;;  %v22862_v49 = vmax.f32 %v22861_v43, 0.0 }
 0xe69   : > { %v20648_v0 = vadd.f32 %v7364_v10, %v22853_v42  ;;  %v13794_v51 = vpop.f32.mrb[186].mxu1  ;;  %v22859_v37 = vmax.f32 %v22858_v20, 0.0 }
 0xe6a   : > { %22857 = vst [vmem:[#allocation107_spill] sm:$0xff] %v20652_v9  ;;  %v7367_v36 = vadd.f32 %v13794_v51, %v20238_v38  ;;  %v7274_v1 = vpop.f32.mrb[187].mxu1 }
 0xe6b   : > { %22854 = vst [vmem:[#allocation90_spill] sm:$0xff] %v20648_v0  ;;  %v7366_v45 = vadd.f32 %v20238_v38, %v7274_v1  ;;  %13893 = vmatprep.mubr.msk.f32.mxu0 %vm734_vm0, %v20648_v0  ;;  %v22867_v0 = vld [vmem:[#allocation63_spill] sm:$0xff] }
 0xe6c   : > { %13894 = vmatmul.mubr.msk.f32.gmra.mrb[248].mxu0 %vm734_vm0, %v20652_v9  ;;  %v20666_v5 = vadd.f32 %v7367_v36, %v22862_v49  ;;  %v22864_v9 = vld [vmem:[#allocation62_spill] sm:$0xff]  ;;  %v22868_v43 = vmax.f32 %v22867_v0, 0.0 }
 0xe6d   : > { %v20662_v10 = vadd.f32 %v7366_v45, %v22859_v37  ;;  %v13797_v42 = vpop.f32.mrb[188].mxu1  ;;  %v22865_v20 = vmax.f32 %v22864_v9, 0.0 }
 0xe6e   : > { %22863 = vst [vmem:[#allocation88_spill] sm:$0xff] %v20666_v5  ;;  %v7369_v51 = vadd.f32 %v13797_v42, %v20238_v38  ;;  %v7284_v31 = vpop.f32.mrb[189].mxu1 }
 0xe6f   : > { %22860 = vst [vmem:[#allocation135_spill] sm:$0xff] %v20662_v10  ;;  %v7368_v1 = vadd.f32 %v20238_v38, %v7284_v31  ;;  %13896 = vmatprep.mubr.msk.f32.mxu0 %vm734_vm0, %v20662_v10 }
 0xe70   : > { %13897 = vmatmul.mubr.msk.f32.gmra.mrb[250].mxu0 %vm734_vm0, %v20666_v5  ;;  %v20680_v36 = vadd.f32 %v7369_v51, %v22868_v43  ;;  %v22870_v5 = vld [vmem:[#allocation64_spill] sm:$0xff] }
 0xe71   : > { %v20676_v45 = vadd.f32 %v7368_v1, %v22865_v20  ;;  %v13800_v37 = vpop.f32.mrb[190].mxu1  ;;  %v22871_v9 = vmax.f32 %v22870_v5, 0.0  ;;  %v22873_v20 = vld [vmem:[#allocation65_spill] sm:$0xff] }
 0xe72   : > { %22869 = vst [vmem:[#allocation93_spill] sm:$0xff] %v20680_v36  ;;  %v7371_v42 = vadd.f32 %v13800_v37, %v20238_v38  ;;  %v7294_v49 = vpop.f32.mrb[191].mxu1  ;;  %v22874_v10 = vmax.f32 %v22873_v20, 0.0 }
 0xe73   : > { %22866 = vst [vmem:[#allocation138_spill] sm:$0xff] %v20676_v45  ;;  %v7370_v31 = vadd.f32 %v20238_v38, %v7294_v49  ;;  %13899 = vmatprep.mubr.msk.f32.mxu0 %vm734_vm0, %v20676_v45  ;;  %v20703_v38 = vld [vmem:[%s21623_s1 + $0x80] ss:$0 sm:$0xff] }
 0xe74   : > { %13900 = vmatmul.mubr.msk.f32.gmra.mrb[252].mxu0 %vm734_vm0, %v20680_v36  ;;  %v20694_v0 = vadd.f32 %v7371_v42, %v22874_v10  ;;  %v8736_v10 = vld [vmem:[%s21623_s1 + $0xb0] sm:$0xff]  ;;  %v8737_v42 = vld [vmem:[%s21623_s1 + $0xb8] sm:$0xff] }
 0xe75   : > { %v20690_v1 = vadd.f32 %v7370_v31, %v22871_v9  ;;  %v14913_v9 = vpack.c.bf16 %v8737_v42, %v8736_v10 }
 0xe76   : > { %22875 = vst [vmem:[#allocation91_spill] sm:$0xff] %v20694_v0 }
 0xe77   : > { %22872 = vst [vmem:[#allocation112_spill] sm:$0xff] %v20690_v1  ;;  %13902 = vmatprep.mubr.msk.f32.mxu0 %vm734_vm0, %v20690_v1  ;;  %14914 = vmatprep.subr.bf16.mxu1 %v14913_v9 }
 0xe78   : > { %13903 = vmatmul.mubr.msk.f32.gmra.mrb[254].mxu0 %vm734_vm0, %v20694_v0  ;;  %14916 = vmatpush3.bf16.msra.mxu1 %v14913_v9 }
 0xecf   : > { %v13811_v51 = vpop.f32.mrb[192].mxu0 }
 0xed0   : > { %v7709_v5 = vadd.f32 %v13811_v51, %v20703_v38  ;;  %v7703_v37 = vpop.f32.mrb[193].mxu0 }
 0xed1   : > { %v7704_v43 = vadd.f32 %v20703_v38, %v7703_v37 }
 0xed2   : > { %v8023_v20 = vmax.f32 %v7709_v5, 0.0 }
 0xed3   : > { %v8022_v49 = vmax.f32 %v7704_v43, 0.0  ;;  %v13814_v31 = vpop.f32.mrb[194].mxu0 }
 0xed4   : > { %v7719_v0 = vadd.f32 %v13814_v31, %v20703_v38  ;;  %v7713_v1 = vpop.f32.mrb[195].mxu0 }
 0xed5   : > { %v7714_v51 = vadd.f32 %v20703_v38, %v7713_v1  ;;  %13913 = vmatprep.mubr.msk.f32.mxu0 %vm734_vm0, %v8022_v49 }
 0xed6   : > { %13914 = vmatmul.mubr.msk.f32.vlgmr.msra.gmra.mrb[0].mxu0 %vm734_vm0, %v8023_v20  ;;  %v8025_v45 = vmax.f32 %v7719_v0, 0.0 }
 0xed7   : > { %v8024_v37 = vmax.f32 %v7714_v51, 0.0  ;;  %v13817_v36 = vpop.f32.mrb[196].mxu0 }
 0xed8   : > { %v7729_v30 = vadd.f32 %v13817_v36, %v20703_v38  ;;  %v7723_v43 = vpop.f32.mrb[197].mxu0 }
 0xed9   : > { %v7724_v10 = vadd.f32 %v20703_v38, %v7723_v43  ;;  %13916 = vmatprep.mubr.msk.f32.mxu0 %vm734_vm0, %v8024_v37 }
 0xeda   : > { %13917 = vmatmul.mubr.msk.f32.gmra.mrb[2].mxu0 %vm734_vm0, %v8025_v45  ;;  %v8027_v42 = vmax.f32 %v7729_v30, 0.0 }
 0xedb   : > { %v8026_v5 = vmax.f32 %v7724_v10, 0.0  ;;  %v13820_v1 = vpop.f32.mrb[198].mxu0 }
 0xedc   : > { %v7739_v49 = vadd.f32 %v13820_v1, %v20703_v38  ;;  %v7733_v31 = vpop.f32.mrb[199].mxu0 }
 0xedd   : > { %v7734_v9 = vadd.f32 %v20703_v38, %v7733_v31  ;;  %13919 = vmatprep.mubr.msk.f32.mxu0 %vm734_vm0, %v8026_v5 }
 0xede   : > { %13920 = vmatmul.mubr.msk.f32.gmra.mrb[4].mxu0 %vm734_vm0, %v8027_v42  ;;  %v8029_v20 = vmax.f32 %v7739_v49, 0.0 }
 0xedf   : > { %v8028_v36 = vmax.f32 %v7734_v9, 0.0  ;;  %v13823_v0 = vpop.f32.mrb[200].mxu0 }
 0xee0   : > { %v7749_v51 = vadd.f32 %v13823_v0, %v20703_v38  ;;  %v7743_v37 = vpop.f32.mrb[201].mxu0 }
 0xee1   : > { %v7744_v45 = vadd.f32 %v20703_v38, %v7743_v37  ;;  %13922 = vmatprep.mubr.msk.f32.mxu0 %vm734_vm0, %v8028_v36 }
 0xee2   : > { %13923 = vmatmul.mubr.msk.f32.gmra.mrb[6].mxu0 %vm734_vm0, %v8029_v20  ;;  %v8031_v10 = vmax.f32 %v7749_v51, 0.0 }
 0xee3   : > { %v8030_v30 = vmax.f32 %v7744_v45, 0.0  ;;  %v13826_v43 = vpop.f32.mrb[202].mxu0 }
 0xee4   : > { %v7759_v1 = vadd.f32 %v13826_v43, %v20703_v38  ;;  %v7753_v5 = vpop.f32.mrb[203].mxu0 }
 0xee5   : > { %v7754_v42 = vadd.f32 %v20703_v38, %v7753_v5  ;;  %13925 = vmatprep.mubr.msk.f32.mxu0 %vm734_vm0, %v8030_v30 }
 0xee6   : > { %13926 = vmatmul.mubr.msk.f32.gmra.mrb[8].mxu0 %vm734_vm0, %v8031_v10  ;;  %v8033_v9 = vmax.f32 %v7759_v1, 0.0 }
 0xee7   : > { %v8032_v49 = vmax.f32 %v7754_v42, 0.0  ;;  %v13829_v31 = vpop.f32.mrb[204].mxu0 }
 0xee8   : > { %v7769_v0 = vadd.f32 %v13829_v31, %v20703_v38  ;;  %v7763_v36 = vpop.f32.mrb[205].mxu0 }
 0xee9   : > { %v7764_v20 = vadd.f32 %v20703_v38, %v7763_v36  ;;  %13928 = vmatprep.mubr.msk.f32.mxu0 %vm734_vm0, %v8032_v49 }
 0xeea   : > { %13929 = vmatmul.mubr.msk.f32.gmra.mrb[10].mxu0 %vm734_vm0, %v8033_v9  ;;  %v8035_v45 = vmax.f32 %v7769_v0, 0.0 }
 0xeeb   : > { %v8034_v51 = vmax.f32 %v7764_v20, 0.0  ;;  %v13832_v37 = vpop.f32.mrb[206].mxu0 }
 0xeec   : > { %v7779_v43 = vadd.f32 %v13832_v37, %v20703_v38  ;;  %v7773_v30 = vpop.f32.mrb[207].mxu0 }
 0xeed   : > { %v7774_v10 = vadd.f32 %v20703_v38, %v7773_v30  ;;  %13931 = vmatprep.mubr.msk.f32.mxu0 %vm734_vm0, %v8034_v51 }
 0xeee   : > { %13932 = vmatmul.mubr.msk.f32.gmra.mrb[12].mxu0 %vm734_vm0, %v8035_v45  ;;  %v8037_v42 = vmax.f32 %v7779_v43, 0.0 }
 0xeef   : > { %v8036_v1 = vmax.f32 %v7774_v10, 0.0  ;;  %v13835_v5 = vpop.f32.mrb[208].mxu0 }
 0xef0   : > { %v7789_v31 = vadd.f32 %v13835_v5, %v20703_v38  ;;  %v7783_v49 = vpop.f32.mrb[209].mxu0 }
 0xef1   : > { %v7784_v9 = vadd.f32 %v20703_v38, %v7783_v49  ;;  %13934 = vmatprep.mubr.msk.f32.mxu0 %vm734_vm0, %v8036_v1 }
 0xef2   : > { %13935 = vmatmul.mubr.msk.f32.gmra.mrb[14].mxu0 %vm734_vm0, %v8037_v42  ;;  %v8039_v20 = vmax.f32 %v7789_v31, 0.0 }
 0xef3   : > { %v8038_v0 = vmax.f32 %v7784_v9, 0.0  ;;  %v13838_v36 = vpop.f32.mrb[210].mxu0 }
 0xef4   : > { %v7799_v37 = vadd.f32 %v13838_v36, %v20703_v38  ;;  %v7793_v51 = vpop.f32.mrb[211].mxu0 }
 0xef5   : > { %v7794_v45 = vadd.f32 %v20703_v38, %v7793_v51  ;;  %13937 = vmatprep.mubr.msk.f32.mxu0 %vm734_vm0, %v8038_v0 }
 0xef6   : > { %13938 = vmatmul.mubr.msk.f32.gmra.mrb[16].mxu0 %vm734_vm0, %v8039_v20  ;;  %v8041_v10 = vmax.f32 %v7799_v37, 0.0 }
 0xef7   : > { %v8040_v43 = vmax.f32 %v7794_v45, 0.0  ;;  %v13841_v30 = vpop.f32.mrb[212].mxu0 }
 0xef8   : > { %v7809_v5 = vadd.f32 %v13841_v30, %v20703_v38  ;;  %v7803_v1 = vpop.f32.mrb[213].mxu0 }
 0xef9   : > { %v7804_v42 = vadd.f32 %v20703_v38, %v7803_v1  ;;  %13940 = vmatprep.mubr.msk.f32.mxu0 %vm734_vm0, %v8040_v43 }
 0xefa   : > { %13941 = vmatmul.mubr.msk.f32.gmra.mrb[18].mxu0 %vm734_vm0, %v8041_v10  ;;  %v8043_v9 = vmax.f32 %v7809_v5, 0.0 }
 0xefb   : > { %v8042_v31 = vmax.f32 %v7804_v42, 0.0  ;;  %v13844_v49 = vpop.f32.mrb[214].mxu0 }
 0xefc   : > { %v7819_v36 = vadd.f32 %v13844_v49, %v20703_v38  ;;  %v7813_v0 = vpop.f32.mrb[215].mxu0 }
 0xefd   : > { %v7814_v20 = vadd.f32 %v20703_v38, %v7813_v0  ;;  %13943 = vmatprep.mubr.msk.f32.mxu0 %vm734_vm0, %v8042_v31 }
 0xefe   : > { %13944 = vmatmul.mubr.msk.f32.gmra.mrb[20].mxu0 %vm734_vm0, %v8043_v9  ;;  %v8045_v45 = vmax.f32 %v7819_v36, 0.0 }
 0xeff   : > { %v8044_v37 = vmax.f32 %v7814_v20, 0.0  ;;  %v13847_v51 = vpop.f32.mrb[216].mxu0 }
 0xf00   : > { %v7829_v30 = vadd.f32 %v13847_v51, %v20703_v38  ;;  %v7823_v43 = vpop.f32.mrb[217].mxu0 }
 0xf01   : > { %v7824_v10 = vadd.f32 %v20703_v38, %v7823_v43  ;;  %13946 = vmatprep.mubr.msk.f32.mxu0 %vm734_vm0, %v8044_v37 }
 0xf02   : > { %13947 = vmatmul.mubr.msk.f32.gmra.mrb[22].mxu0 %vm734_vm0, %v8045_v45  ;;  %v8047_v42 = vmax.f32 %v7829_v30, 0.0 }
 0xf03   : > { %v8046_v5 = vmax.f32 %v7824_v10, 0.0  ;;  %v13850_v1 = vpop.f32.mrb[218].mxu0 }
 0xf04   : > { %v7839_v49 = vadd.f32 %v13850_v1, %v20703_v38  ;;  %v7833_v31 = vpop.f32.mrb[219].mxu0 }
 0xf05   : > { %v7834_v9 = vadd.f32 %v20703_v38, %v7833_v31  ;;  %13949 = vmatprep.mubr.msk.f32.mxu0 %vm734_vm0, %v8046_v5 }
 0xf06   : > { %13950 = vmatmul.mubr.msk.f32.gmra.mrb[24].mxu0 %vm734_vm0, %v8047_v42  ;;  %v8049_v20 = vmax.f32 %v7839_v49, 0.0 }
 0xf07   : > { %v8048_v36 = vmax.f32 %v7834_v9, 0.0  ;;  %v13853_v0 = vpop.f32.mrb[220].mxu0 }
 0xf08   : > { %v7849_v51 = vadd.f32 %v13853_v0, %v20703_v38  ;;  %v7843_v37 = vpop.f32.mrb[221].mxu0 }
 0xf09   : > { %v7844_v45 = vadd.f32 %v20703_v38, %v7843_v37  ;;  %13952 = vmatprep.mubr.msk.f32.mxu0 %vm734_vm0, %v8048_v36 }
 0xf0a   : > { %13953 = vmatmul.mubr.msk.f32.gmra.mrb[26].mxu0 %vm734_vm0, %v8049_v20  ;;  %v8051_v10 = vmax.f32 %v7849_v51, 0.0 }
 0xf0b   : > { %v8050_v30 = vmax.f32 %v7844_v45, 0.0  ;;  %v13856_v43 = vpop.f32.mrb[222].mxu0 }
 0xf0c   : > { %v7859_v1 = vadd.f32 %v13856_v43, %v20703_v38  ;;  %v7853_v5 = vpop.f32.mrb[223].mxu0 }
 0xf0d   : > { %v7854_v42 = vadd.f32 %v20703_v38, %v7853_v5  ;;  %13955 = vmatprep.mubr.msk.f32.mxu0 %vm734_vm0, %v8050_v30 }
 0xf0e   : > { %13956 = vmatmul.mubr.msk.f32.gmra.mrb[28].mxu0 %vm734_vm0, %v8051_v10  ;;  %v8053_v9 = vmax.f32 %v7859_v1, 0.0 }
 0xf0f   : > { %v8052_v49 = vmax.f32 %v7854_v42, 0.0  ;;  %v13859_v31 = vpop.f32.mrb[224].mxu0 }
 0xf10   : > { %v7869_v0 = vadd.f32 %v13859_v31, %v20703_v38  ;;  %v7863_v36 = vpop.f32.mrb[225].mxu0 }
 0xf11   : > { %v7864_v20 = vadd.f32 %v20703_v38, %v7863_v36  ;;  %13958 = vmatprep.mubr.msk.f32.mxu0 %vm734_vm0, %v8052_v49 }
 0xf12   : > { %13959 = vmatmul.mubr.msk.f32.gmra.mrb[30].mxu0 %vm734_vm0, %v8053_v9  ;;  %v8055_v45 = vmax.f32 %v7869_v0, 0.0 }
 0xf13   : > { %v8054_v51 = vmax.f32 %v7864_v20, 0.0  ;;  %v13862_v37 = vpop.f32.mrb[226].mxu0 }
 0xf14   : > { %v7879_v43 = vadd.f32 %v13862_v37, %v20703_v38  ;;  %v7873_v30 = vpop.f32.mrb[227].mxu0 }
 0xf15   : > { %v7874_v10 = vadd.f32 %v20703_v38, %v7873_v30  ;;  %13961 = vmatprep.mubr.msk.f32.mxu0 %vm734_vm0, %v8054_v51 }
 0xf16   : > { %13962 = vmatmul.mubr.msk.f32.gmra.mrb[32].mxu0 %vm734_vm0, %v8055_v45  ;;  %v8057_v42 = vmax.f32 %v7879_v43, 0.0 }
 0xf17   : > { %v8056_v1 = vmax.f32 %v7874_v10, 0.0  ;;  %v13865_v5 = vpop.f32.mrb[228].mxu0 }
 0xf18   : > { %v7889_v31 = vadd.f32 %v13865_v5, %v20703_v38  ;;  %v7883_v49 = vpop.f32.mrb[229].mxu0 }
 0xf19   : > { %v7884_v9 = vadd.f32 %v20703_v38, %v7883_v49  ;;  %13964 = vmatprep.mubr.msk.f32.mxu0 %vm734_vm0, %v8056_v1 }
 0xf1a   : > { %13965 = vmatmul.mubr.msk.f32.gmra.mrb[34].mxu0 %vm734_vm0, %v8057_v42  ;;  %v8059_v20 = vmax.f32 %v7889_v31, 0.0 }
 0xf1b   : > { %v8058_v0 = vmax.f32 %v7884_v9, 0.0  ;;  %v13868_v36 = vpop.f32.mrb[230].mxu0 }
 0xf1c   : > { %v7899_v37 = vadd.f32 %v13868_v36, %v20703_v38  ;;  %v7893_v51 = vpop.f32.mrb[231].mxu0 }
 0xf1d   : > { %v7894_v45 = vadd.f32 %v20703_v38, %v7893_v51  ;;  %13967 = vmatprep.mubr.msk.f32.mxu0 %vm734_vm0, %v8058_v0 }
 0xf1e   : > { %13968 = vmatmul.mubr.msk.f32.gmra.mrb[36].mxu0 %vm734_vm0, %v8059_v20  ;;  %v8061_v10 = vmax.f32 %v7899_v37, 0.0 }
 0xf1f   : > { %v8060_v43 = vmax.f32 %v7894_v45, 0.0  ;;  %v13871_v30 = vpop.f32.mrb[232].mxu0 }
 0xf20   : > { %v7909_v5 = vadd.f32 %v13871_v30, %v20703_v38  ;;  %v7903_v1 = vpop.f32.mrb[233].mxu0 }
 0xf21   : > { %v7904_v42 = vadd.f32 %v20703_v38, %v7903_v1  ;;  %13970 = vmatprep.mubr.msk.f32.mxu0 %vm734_vm0, %v8060_v43 }
 0xf22   : > { %13971 = vmatmul.mubr.msk.f32.gmra.mrb[38].mxu0 %vm734_vm0, %v8061_v10  ;;  %v8063_v9 = vmax.f32 %v7909_v5, 0.0 }
 0xf23   : > { %v8062_v31 = vmax.f32 %v7904_v42, 0.0  ;;  %v13874_v49 = vpop.f32.mrb[234].mxu0 }
 0xf24   : > { %v7919_v36 = vadd.f32 %v13874_v49, %v20703_v38  ;;  %v7913_v0 = vpop.f32.mrb[235].mxu0 }
 0xf25   : > { %v7914_v20 = vadd.f32 %v20703_v38, %v7913_v0  ;;  %13973 = vmatprep.mubr.msk.f32.mxu0 %vm734_vm0, %v8062_v31 }
 0xf26   : > { %13974 = vmatmul.mubr.msk.f32.gmra.mrb[40].mxu0 %vm734_vm0, %v8063_v9  ;;  %v8065_v45 = vmax.f32 %v7919_v36, 0.0  ;;  %v8738_v9 = vld [vmem:[%s21623_s1 + $0xc0] sm:$0xff]  ;;  %v8739_v36 = vld [vmem:[%s21623_s1 + $0xc8] sm:$0xff] }
 0xf27   : > { %v8064_v37 = vmax.f32 %v7914_v20, 0.0  ;;  %v13877_v51 = vpop.f32.mrb[236].mxu0  ;;  %v14917_v20 = vpack.c.bf16 %v8739_v36, %v8738_v9 }
 0xf28   : > { %v7929_v30 = vadd.f32 %v13877_v51, %v20703_v38  ;;  %v7923_v43 = vpop.f32.mrb[237].mxu0 }
 0xf29   : > { %v7924_v10 = vadd.f32 %v20703_v38, %v7923_v43  ;;  %13976 = vmatprep.mubr.msk.f32.mxu0 %vm734_vm0, %v8064_v37  ;;  %14918 = vmatprep.subr.bf16.mxu1 %v14917_v20 }
 0xf2a   : > { %13977 = vmatmul.mubr.msk.f32.gmra.mrb[42].mxu0 %vm734_vm0, %v8065_v45  ;;  %v8067_v42 = vmax.f32 %v7929_v30, 0.0  ;;  %14920 = vmatpush3.bf16.msra.mxu1 %v14917_v20 }
 0xf2b   : > { %v8066_v5 = vmax.f32 %v7924_v10, 0.0  ;;  %v13880_v1 = vpop.f32.mrb[238].mxu0 }
 0xf2c   : > { %v7939_v49 = vadd.f32 %v13880_v1, %v20703_v38  ;;  %v7933_v31 = vpop.f32.mrb[239].mxu0 }
 0xf2d   : > { %v7934_v0 = vadd.f32 %v20703_v38, %v7933_v31  ;;  %13979 = vmatprep.mubr.msk.f32.mxu0 %vm734_vm0, %v8066_v5 }
 0xf2e   : > { %13980 = vmatmul.mubr.msk.f32.gmra.mrb[44].mxu0 %vm734_vm0, %v8067_v42  ;;  %v8069_v45 = vmax.f32 %v7939_v49, 0.0 }
 0xf2f   : > { %v8068_v37 = vmax.f32 %v7934_v0, 0.0  ;;  %v13883_v51 = vpop.f32.mrb[240].mxu0 }
 0xf30   : > { %v7949_v30 = vadd.f32 %v13883_v51, %v20703_v38  ;;  %v7943_v43 = vpop.f32.mrb[241].mxu0 }
 0xf31   : > { %v7944_v10 = vadd.f32 %v20703_v38, %v7943_v43  ;;  %13982 = vmatprep.mubr.msk.f32.mxu0 %vm734_vm0, %v8068_v37 }
 0xf32   : > { %13983 = vmatmul.mubr.msk.f32.gmra.mrb[46].mxu0 %vm734_vm0, %v8069_v45  ;;  %v8071_v5 = vmax.f32 %v7949_v30, 0.0 }
 0xf33   : > { %v8070_v1 = vmax.f32 %v7944_v10, 0.0  ;;  %v13886_v31 = vpop.f32.mrb[242].mxu0 }
 0xf34   : > { %v7959_v9 = vadd.f32 %v13886_v31, %v20703_v38  ;;  %v7953_v42 = vpop.f32.mrb[243].mxu0 }
 0xf35   : > { %v7954_v36 = vadd.f32 %v20703_v38, %v7953_v42  ;;  %13985 = vmatprep.mubr.msk.f32.mxu0 %vm734_vm0, %v8070_v1 }
 0xf36   : > { %13986 = vmatmul.mubr.msk.f32.gmra.mrb[48].mxu0 %vm734_vm0, %v8071_v5  ;;  %v8073_v20 = vmax.f32 %v7959_v9, 0.0 }
 0xf37   : > { %v8072_v49 = vmax.f32 %v7954_v36, 0.0  ;;  %v13889_v0 = vpop.f32.mrb[244].mxu0 }
 0xf38   : > { %v7969_v51 = vadd.f32 %v13889_v0, %v20703_v38  ;;  %v7963_v37 = vpop.f32.mrb[245].mxu0 }
 0xf39   : > { %v7964_v45 = vadd.f32 %v20703_v38, %v7963_v37  ;;  %13988 = vmatprep.mubr.msk.f32.mxu0 %vm734_vm0, %v8072_v49 }
 0xf3a   : > { %13989 = vmatmul.mubr.msk.f32.gmra.mrb[50].mxu0 %vm734_vm0, %v8073_v20  ;;  %v8075_v10 = vmax.f32 %v7969_v51, 0.0 }
 0xf3b   : > { %v8074_v30 = vmax.f32 %v7964_v45, 0.0  ;;  %v13892_v43 = vpop.f32.mrb[246].mxu0 }
 0xf3c   : > { %v7979_v31 = vadd.f32 %v13892_v43, %v20703_v38  ;;  %v7973_v1 = vpop.f32.mrb[247].mxu0 }
 0xf3d   : > { %v7974_v5 = vadd.f32 %v20703_v38, %v7973_v1  ;;  %13991 = vmatprep.mubr.msk.f32.mxu0 %vm734_vm0, %v8074_v30 }
 0xf3e   : > { %13992 = vmatmul.mubr.msk.f32.gmra.mrb[52].mxu0 %vm734_vm0, %v8075_v10  ;;  %v8077_v36 = vmax.f32 %v7979_v31, 0.0 }
 0xf3f   : > { %v8076_v9 = vmax.f32 %v7974_v5, 0.0  ;;  %v13895_v42 = vpop.f32.mrb[248].mxu0 }
 0xf40   : > { %v7989_v0 = vadd.f32 %v13895_v42, %v20703_v38  ;;  %v7983_v49 = vpop.f32.mrb[249].mxu0 }
 0xf41   : > { %v7984_v20 = vadd.f32 %v20703_v38, %v7983_v49  ;;  %13994 = vmatprep.mubr.msk.f32.mxu0 %vm734_vm0, %v8076_v9 }
 0xf42   : > { %13995 = vmatmul.mubr.msk.f32.gmra.mrb[54].mxu0 %vm734_vm0, %v8077_v36  ;;  %v8079_v45 = vmax.f32 %v7989_v0, 0.0 }
 0xf43   : > { %v8078_v51 = vmax.f32 %v7984_v20, 0.0  ;;  %v13898_v37 = vpop.f32.mrb[250].mxu0 }
 0xf44   : > { %v7999_v43 = vadd.f32 %v13898_v37, %v20703_v38  ;;  %v7993_v30 = vpop.f32.mrb[251].mxu0 }
 0xf45   : > { %v7994_v10 = vadd.f32 %v20703_v38, %v7993_v30  ;;  %13997 = vmatprep.mubr.msk.f32.mxu0 %vm734_vm0, %v8078_v51 }
 0xf46   : > { %13998 = vmatmul.mubr.msk.f32.gmra.mrb[56].mxu0 %vm734_vm0, %v8079_v45  ;;  %v8081_v5 = vmax.f32 %v7999_v43, 0.0 }
 0xf47   : > { %v8080_v31 = vmax.f32 %v7994_v10, 0.0  ;;  %v13901_v1 = vpop.f32.mrb[252].mxu0  ;;  %v20848_v10 = vld [vmem:[%s21623_s1 + $0xa8] ss:$0 sm:$0xff] }
 0xf48   : > { %v8009_v42 = vadd.f32 %v13901_v1, %v20703_v38  ;;  %v8003_v9 = vpop.f32.mrb[253].mxu0 }
 0xf49   : > { %v8004_v36 = vadd.f32 %v20703_v38, %v8003_v9  ;;  %14000 = vmatprep.mubr.msk.f32.mxu0 %vm734_vm0, %v8080_v31  ;;  %v9387_v9 = vld [vmem:[%s21623_s1 + $0xe0] sm:$0xff] }
 0xf4a   : > { %14001 = vmatmul.mubr.msk.f32.gmra.mrb[58].mxu0 %vm734_vm0, %v8081_v5  ;;  %v8083_v20 = vmax.f32 %v8009_v42, 0.0  ;;  %v9386_v42 = vld [vmem:[%s21623_s1 + $0xd8] sm:$0xff] }
 0xf4b   : > { %v8082_v0 = vmax.f32 %v8004_v36, 0.0  ;;  %v13904_v49 = vpop.f32.mrb[254].mxu0  ;;  %v9388_v36 = vld [vmem:[%s21623_s1 + $0xe8] sm:$0xff] }
 0xf4c   : > { %v8019_v37 = vadd.f32 %v13904_v49, %v20703_v38  ;;  %v8013_v51 = vpop.f32.mrb[255].mxu0 }
 0xf4d   : > { %v8014_v45 = vadd.f32 %v20703_v38, %v8013_v51  ;;  %14003 = vmatprep.mubr.msk.f32.mxu0 %vm734_vm0, %v8082_v0 }
 0xf4e   : > { %14004 = vmatmul.mubr.msk.f32.gmra.mrb[60].mxu0 %vm734_vm0, %v8083_v20  ;;  %v8085_v30 = vmax.f32 %v8019_v37, 0.0  ;;  %v14921_v20 = vpack.c.bf16 %v9387_v9, %v9386_v42  ;;  %v9389_v37 = vld [vmem:[%s21623_s1 + $0xf0] sm:$0xff] }
 0xf4f   : > { %v8084_v43 = vmax.f32 %v8014_v45, 0.0 }
 0xf50   : > { %14922 = vmatprep.subr.bf16.mxu0 %v14921_v20 }
 0xf51   : > { %14006 = vmatprep.mubr.msk.f32.mxu0 %vm734_vm0, %v8084_v43  ;;  %14924 = vmatpush3.bf16.msra.mxu0 %v14921_v20 }
 0xf52   : > { %14007 = vmatmul.mubr.msk.f32.gmra.mrb[62].mxu0 %vm734_vm0, %v8085_v30  ;;  %v14925_v30 = vpack.c.bf16 %v9389_v37, %v9388_v36 }
 0xf54   : > { %14926 = vmatprep.subr.bf16.mxu0 %v14925_v30 }
 0xf55   : > { %14928 = vmatpush3.bf16.msra.mxu0 %v14925_v30 }
 0xfa9   : > { %v13915_v31 = vpop.f32.mrb[0].mxu0 }
 0xfaa   : > { %v8359_v1 = vadd.f32 %v13915_v31, %v20848_v10  ;;  %v8353_v5 = vpop.f32.mrb[1].mxu0 }
 0xfab   : > { %v8354_v38 = vadd.f32 %v20848_v10, %v8353_v5 }
 0xfac   : > { %v8673_v51 = vadd.f32 %v8359_v1, %v20254_v62 }
 0xfad   : > { %v8672_v0 = vadd.f32 %v8354_v38, %v20250_v41  ;;  %v13918_v49 = vpop.f32.mrb[2].mxu0 }
 0xfae   : > { %v8369_v45 = vadd.f32 %v13918_v49, %v20848_v10  ;;  %v8363_v43 = vpop.f32.mrb[3].mxu0 }
 0xfaf   : > { %v8364_v31 = vadd.f32 %v20848_v10, %v8363_v43  ;;  %14017 = vmatprep.mubr.msk.f32.mxu1 %vm734_vm0, %v8672_v0 }
 0xfb0   : > { %14018 = vmatmul.mubr.msk.f32.vlgmr.msra.gmra.mrb[192].mxu1 %vm734_vm0, %v8673_v51  ;;  %v8675_v38 = vadd.f32 %v8369_v45, %v20268_v27 }
 0xfb1   : > { %v8674_v41 = vadd.f32 %v8364_v31, %v20264_v23  ;;  %v13921_v5 = vpop.f32.mrb[4].mxu0 }
 0xfb2   : > { %v8379_v62 = vadd.f32 %v13921_v5, %v20848_v10  ;;  %v8373_v1 = vpop.f32.mrb[5].mxu0 }
 0xfb3   : > { %v8374_v42 = vadd.f32 %v20848_v10, %v8373_v1  ;;  %14020 = vmatprep.mubr.msk.f32.mxu1 %vm734_vm0, %v8674_v41 }
 0xfb4   : > { %14021 = vmatmul.mubr.msk.f32.gmra.mrb[194].mxu1 %vm734_vm0, %v8675_v38  ;;  %v8677_v0 = vadd.f32 %v8379_v62, %v20282_v7 }
 0xfb5   : > { %v8676_v9 = vadd.f32 %v8374_v42, %v20278_v53  ;;  %v13924_v36 = vpop.f32.mrb[6].mxu0 }
 0xfb6   : > { %v8389_v23 = vadd.f32 %v13924_v36, %v20848_v10  ;;  %v8383_v49 = vpop.f32.mrb[7].mxu0 }
 0xfb7   : > { %v8384_v27 = vadd.f32 %v20848_v10, %v8383_v49  ;;  %14023 = vmatprep.mubr.msk.f32.mxu1 %vm734_vm0, %v8676_v9 }
 0xfb8   : > { %14024 = vmatmul.mubr.msk.f32.gmra.mrb[196].mxu1 %vm734_vm0, %v8677_v0  ;;  %v8679_v51 = vadd.f32 %v8389_v23, %v20296_v57 }
 0xfb9   : > { %v8678_v20 = vadd.f32 %v8384_v27, %v20292_v34  ;;  %v13927_v37 = vpop.f32.mrb[8].mxu0 }
 0xfba   : > { %v8399_v45 = vadd.f32 %v13927_v37, %v20848_v10  ;;  %v8393_v53 = vpop.f32.mrb[9].mxu0 }
 0xfbb   : > { %v8394_v43 = vadd.f32 %v20848_v10, %v8393_v53  ;;  %14026 = vmatprep.mubr.msk.f32.mxu1 %vm734_vm0, %v8678_v20 }
 0xfbc   : > { %14027 = vmatmul.mubr.msk.f32.gmra.mrb[198].mxu1 %vm734_vm0, %v8679_v51  ;;  %v8681_v31 = vadd.f32 %v8399_v45, %v20310_v13 }
 0xfbd   : > { %v8680_v7 = vadd.f32 %v8394_v43, %v20306_v25  ;;  %v13930_v30 = vpop.f32.mrb[10].mxu0 }
 0xfbe   : > { %v8409_v41 = vadd.f32 %v13930_v30, %v20848_v10  ;;  %v8403_v34 = vpop.f32.mrb[11].mxu0 }
 0xfbf   : > { %v8404_v5 = vadd.f32 %v20848_v10, %v8403_v34  ;;  %14029 = vmatprep.mubr.msk.f32.mxu1 %vm734_vm0, %v8680_v7 }
 0xfc0   : > { %14030 = vmatmul.mubr.msk.f32.gmra.mrb[200].mxu1 %vm734_vm0, %v8681_v31  ;;  %v8683_v62 = vadd.f32 %v8409_v41, %v20324_v29 }
 0xfc1   : > { %v8682_v57 = vadd.f32 %v8404_v5, %v20320_v21  ;;  %v13933_v38 = vpop.f32.mrb[12].mxu0 }
 0xfc2   : > { %v8419_v1 = vadd.f32 %v13933_v38, %v20848_v10  ;;  %v8413_v25 = vpop.f32.mrb[13].mxu0 }
 0xfc3   : > { %v8414_v42 = vadd.f32 %v20848_v10, %v8413_v25  ;;  %14032 = vmatprep.mubr.msk.f32.mxu1 %vm734_vm0, %v8682_v57 }
 0xfc4   : > { %14033 = vmatmul.mubr.msk.f32.gmra.mrb[202].mxu1 %vm734_vm0, %v8683_v62  ;;  %v8685_v36 = vadd.f32 %v8419_v1, %v20338_v17 }
 0xfc5   : > { %v8684_v13 = vadd.f32 %v8414_v42, %v20334_v22  ;;  %v13936_v9 = vpop.f32.mrb[14].mxu0 }
 0xfc6   : > { %v8429_v0 = vadd.f32 %v13936_v9, %v20848_v10  ;;  %v8423_v21 = vpop.f32.mrb[15].mxu0 }
 0xfc7   : > { %v8424_v23 = vadd.f32 %v20848_v10, %v8423_v21  ;;  %14035 = vmatprep.mubr.msk.f32.mxu1 %vm734_vm0, %v8684_v13 }
 0xfc8   : > { %14036 = vmatmul.mubr.msk.f32.gmra.mrb[204].mxu1 %vm734_vm0, %v8685_v36  ;;  %v8687_v27 = vadd.f32 %v8429_v0, %v20352_v3 }
 0xfc9   : > { %v8686_v29 = vadd.f32 %v8424_v23, %v20348_v56  ;;  %v13939_v49 = vpop.f32.mrb[16].mxu0 }
 0xfca   : > { %v8439_v20 = vadd.f32 %v13939_v49, %v20848_v10  ;;  %v8433_v22 = vpop.f32.mrb[17].mxu0 }
 0xfcb   : > { %v8434_v37 = vadd.f32 %v20848_v10, %v8433_v22  ;;  %14038 = vmatprep.mubr.msk.f32.mxu1 %vm734_vm0, %v8686_v29 }
 0xfcc   : > { %14039 = vmatmul.mubr.msk.f32.gmra.mrb[206].mxu1 %vm734_vm0, %v8687_v27  ;;  %v8689_v45 = vadd.f32 %v8439_v20, %v20366_v47 }
 0xfcd   : > { %v8688_v17 = vadd.f32 %v8434_v37, %v20362_v40  ;;  %v13942_v51 = vpop.f32.mrb[18].mxu0 }
 0xfce   : > { %v8449_v53 = vadd.f32 %v13942_v51, %v20848_v10  ;;  %v8443_v56 = vpop.f32.mrb[19].mxu0 }
 0xfcf   : > { %v8444_v43 = vadd.f32 %v20848_v10, %v8443_v56  ;;  %14041 = vmatprep.mubr.msk.f32.mxu1 %vm734_vm0, %v8688_v17 }
 0xfd0   : > { %14042 = vmatmul.mubr.msk.f32.gmra.mrb[208].mxu1 %vm734_vm0, %v8689_v45  ;;  %v8691_v30 = vadd.f32 %v8449_v53, %v20380_v50 }
 0xfd1   : > { %v8690_v3 = vadd.f32 %v8444_v43, %v20376_v33  ;;  %v13945_v7 = vpop.f32.mrb[20].mxu0 }
 0xfd2   : > { %v8459_v31 = vadd.f32 %v13945_v7, %v20848_v10  ;;  %v8453_v40 = vpop.f32.mrb[21].mxu0 }
 0xfd3   : > { %v8454_v41 = vadd.f32 %v20848_v10, %v8453_v40  ;;  %14044 = vmatprep.mubr.msk.f32.mxu1 %vm734_vm0, %v8690_v3 }
 0xfd4   : > { %14045 = vmatmul.mubr.msk.f32.gmra.mrb[210].mxu1 %vm734_vm0, %v8691_v30  ;;  %v8693_v5 = vadd.f32 %v8459_v31, %v20394_v26 }
 0xfd5   : > { %v8692_v47 = vadd.f32 %v8454_v41, %v20390_v2  ;;  %v13948_v34 = vpop.f32.mrb[22].mxu0 }
 0xfd6   : > { %v8469_v57 = vadd.f32 %v13948_v34, %v20848_v10  ;;  %v8463_v33 = vpop.f32.mrb[23].mxu0 }
 0xfd7   : > { %v8464_v38 = vadd.f32 %v20848_v10, %v8463_v33  ;;  %14047 = vmatprep.mubr.msk.f32.mxu1 %vm734_vm0, %v8692_v47 }
 0xfd8   : > { %14048 = vmatmul.mubr.msk.f32.gmra.mrb[212].mxu1 %vm734_vm0, %v8693_v5  ;;  %v8695_v1 = vadd.f32 %v8469_v57, %v20408_v46 }
 0xfd9   : > { %v8694_v50 = vadd.f32 %v8464_v38, %v20404_v16  ;;  %v13951_v62 = vpop.f32.mrb[24].mxu0 }
 0xfda   : > { %v8479_v25 = vadd.f32 %v13951_v62, %v20848_v10  ;;  %v8473_v2 = vpop.f32.mrb[25].mxu0 }
 0xfdb   : > { %v8474_v42 = vadd.f32 %v20848_v10, %v8473_v2  ;;  %14050 = vmatprep.mubr.msk.f32.mxu1 %vm734_vm0, %v8694_v50 }
 0xfdc   : > { %14051 = vmatmul.mubr.msk.f32.gmra.mrb[214].mxu1 %vm734_vm0, %v8695_v1  ;;  %v8697_v9 = vadd.f32 %v8479_v25, %v20422_v52 }
 0xfdd   : > { %v8696_v26 = vadd.f32 %v8474_v42, %v20418_v6  ;;  %v13954_v13 = vpop.f32.mrb[26].mxu0 }
 0xfde   : > { %v8489_v36 = vadd.f32 %v13954_v13, %v20848_v10  ;;  %v8483_v16 = vpop.f32.mrb[27].mxu0 }
 0xfdf   : > { %v8484_v0 = vadd.f32 %v20848_v10, %v8483_v16  ;;  %14053 = vmatprep.mubr.msk.f32.mxu1 %vm734_vm0, %v8696_v26 }
 0xfe0   : > { %14054 = vmatmul.mubr.msk.f32.gmra.mrb[216].mxu1 %vm734_vm0, %v8697_v9  ;;  %v8699_v23 = vadd.f32 %v8489_v36, %v20436_v63 }
 0xfe1   : > { %v8698_v46 = vadd.f32 %v8484_v0, %v20432_v61  ;;  %v13957_v21 = vpop.f32.mrb[28].mxu0 }
 0xfe2   : > { %v8499_v29 = vadd.f32 %v13957_v21, %v20848_v10  ;;  %v8493_v6 = vpop.f32.mrb[29].mxu0 }
 0xfe3   : > { %v8494_v49 = vadd.f32 %v20848_v10, %v8493_v6  ;;  %14056 = vmatprep.mubr.msk.f32.mxu1 %vm734_vm0, %v8698_v46 }
 0xfe4   : > { %14057 = vmatmul.mubr.msk.f32.gmra.mrb[218].mxu1 %vm734_vm0, %v8699_v23  ;;  %v8701_v20 = vadd.f32 %v8499_v29, %v20450_v12 }
 0xfe5   : > { %v8700_v52 = vadd.f32 %v8494_v49, %v20446_v24  ;;  %v13960_v27 = vpop.f32.mrb[30].mxu0 }
 0xfe6   : > { %v8509_v22 = vadd.f32 %v13960_v27, %v20848_v10  ;;  %v8503_v61 = vpop.f32.mrb[31].mxu0 }
 0xfe7   : > { %v8504_v37 = vadd.f32 %v20848_v10, %v8503_v61  ;;  %14059 = vmatprep.mubr.msk.f32.mxu1 %vm734_vm0, %v8700_v52  ;;  %v22876_v52 = vld [vmem:[#allocation129_spill] sm:$0xff] }
 0xfe8   : > { %14060 = vmatmul.mubr.msk.f32.gmra.mrb[220].mxu1 %vm734_vm0, %v8701_v20  ;;  %v8703_v51 = vadd.f32 %v8509_v22, %v20464_v8  ;;  %v22877_v20 = vld [vmem:[#allocation134_spill] sm:$0xff] }
 0xfe9   : > { %v8702_v63 = vadd.f32 %v8504_v37, %v20460_v15  ;;  %v13963_v17 = vpop.f32.mrb[32].mxu0 }
 0xfea   : > { %v8519_v45 = vadd.f32 %v13963_v17, %v20848_v10  ;;  %v8513_v24 = vpop.f32.mrb[33].mxu0 }
 0xfeb   : > { %v8514_v53 = vadd.f32 %v20848_v10, %v8513_v24  ;;  %14062 = vmatprep.mubr.msk.f32.mxu1 %vm734_vm0, %v8702_v63  ;;  %v22878_v63 = vld [vmem:[#allocation137_spill] sm:$0xff] }
 0xfec   : > { %14063 = vmatmul.mubr.msk.f32.gmra.mrb[222].mxu1 %vm734_vm0, %v8703_v51  ;;  %v8705_v43 = vadd.f32 %v8519_v45, %v20478_v39  ;;  %v22879_v45 = vld [vmem:[#allocation82_spill] sm:$0xff] }
 0xfed   : > { %v8704_v12 = vadd.f32 %v8514_v53, %v20474_v32  ;;  %v13966_v56 = vpop.f32.mrb[34].mxu0 }
 0xfee   : > { %v8529_v3 = vadd.f32 %v13966_v56, %v20848_v10  ;;  %v8523_v15 = vpop.f32.mrb[35].mxu0 }
 0xfef   : > { %v8524_v7 = vadd.f32 %v20848_v10, %v8523_v15  ;;  %14065 = vmatprep.mubr.msk.f32.mxu1 %vm734_vm0, %v8704_v12 }
 0xff0   : > { %14066 = vmatmul.mubr.msk.f32.gmra.mrb[224].mxu1 %vm734_vm0, %v8705_v43  ;;  %v8707_v31 = vadd.f32 %v8529_v3, %v20492_v19  ;;  %v22880_v43 = vld [vmem:[#allocation87_spill] sm:$0xff] }
 0xff1   : > { %v8706_v8 = vadd.f32 %v8524_v7, %v20488_v55  ;;  %v13969_v30 = vpop.f32.mrb[36].mxu0  ;;  %v22881_v7 = vld [vmem:[#allocation106_spill] sm:$0xff] }
 0xff2   : > { %v8539_v40 = vadd.f32 %v13969_v30, %v20848_v10  ;;  %v8533_v32 = vpop.f32.mrb[37].mxu0 }
 0xff3   : > { %v8534_v41 = vadd.f32 %v20848_v10, %v8533_v32  ;;  %14068 = vmatprep.mubr.msk.f32.mxu1 %vm734_vm0, %v8706_v8  ;;  %v22882_v32 = vld [vmem:[#allocation85_spill] sm:$0xff] }
 0xff4   : > { %14069 = vmatmul.mubr.msk.f32.gmra.mrb[226].mxu1 %vm734_vm0, %v8707_v31  ;;  %v8709_v34 = vadd.f32 %v8539_v40, %v20506_v58 }
 0xff5   : > { %v8708_v39 = vadd.f32 %v8534_v41, %v20502_v59  ;;  %v13972_v47 = vpop.f32.mrb[38].mxu0 }
 0xff6   : > { %v8549_v5 = vadd.f32 %v13972_v47, %v20848_v10  ;;  %v8543_v55 = vpop.f32.mrb[39].mxu0  ;;  %v22883_v47 = vld [vmem:[#allocation140_spill] sm:$0xff] }
 0xff7   : > { %v8544_v57 = vadd.f32 %v20848_v10, %v8543_v55  ;;  %14071 = vmatprep.mubr.msk.f32.mxu1 %vm734_vm0, %v8708_v39 }
 0xff8   : > { %14072 = vmatmul.mubr.msk.f32.gmra.mrb[228].mxu1 %vm734_vm0, %v8709_v34  ;;  %v8711_v38 = vadd.f32 %v8549_v5, %v20520_v48 }
 0xff9   : > { %v8710_v19 = vadd.f32 %v8544_v57, %v20516_v14  ;;  %v13975_v33 = vpop.f32.mrb[40].mxu0 }
 0xffa   : > { %v8559_v50 = vadd.f32 %v13975_v33, %v20848_v10  ;;  %v8553_v59 = vpop.f32.mrb[41].mxu0 }
 0xffb   : > { %v8554_v62 = vadd.f32 %v20848_v10, %v8553_v59  ;;  %14074 = vmatprep.mubr.msk.f32.mxu1 %vm734_vm0, %v8710_v19  ;;  %v22884_v19 = vld [vmem:[#allocation90_spill] sm:$0xff] }
 0xffc   : > { %14075 = vmatmul.mubr.msk.f32.gmra.mrb[230].mxu1 %vm734_vm0, %v8711_v38  ;;  %v8713_v25 = vadd.f32 %v8559_v50, %v20534_v35  ;;  %v22885_v50 = vld [vmem:[#allocation107_spill] sm:$0xff] }
 0xffd   : > { %v8712_v58 = vadd.f32 %v8554_v62, %v20530_v60  ;;  %v13978_v1 = vpop.f32.mrb[42].mxu0 }
 0xffe   : > { %v8569_v2 = vadd.f32 %v13978_v1, %v20848_v10  ;;  %v8563_v14 = vpop.f32.mrb[43].mxu0 }
 0xfff   : > { %v8564_v42 = vadd.f32 %v20848_v10, %v8563_v14  ;;  %14077 = vmatprep.mubr.msk.f32.mxu1 %vm734_vm0, %v8712_v58 }
0x1000   : > { %14078 = vmatmul.mubr.msk.f32.gmra.mrb[232].mxu1 %vm734_vm0, %v8713_v25  ;;  %v8715_v13 = vadd.f32 %v8569_v2, %v20548_v54  ;;  %v22886_v25 = vld [vmem:[#allocation135_spill] sm:$0xff] }
0x1001   : > { %v8714_v48 = vadd.f32 %v8564_v42, %v20544_v4  ;;  %v13981_v26 = vpop.f32.mrb[44].mxu0  ;;  %v22887_v42 = vld [vmem:[#allocation88_spill] sm:$0xff] }
0x1002   : > { %v8579_v9 = vadd.f32 %v13981_v26, %v20848_v10  ;;  %v8573_v60 = vpop.f32.mrb[45].mxu0 }
0x1003   : > { %v8574_v36 = vadd.f32 %v20848_v10, %v8573_v60  ;;  %14080 = vmatprep.mubr.msk.f32.mxu1 %vm734_vm0, %v8714_v48  ;;  %v22888_v60 = vld [vmem:[#allocation138_spill] sm:$0xff] }
0x1004   : > { %14081 = vmatmul.mubr.msk.f32.gmra.mrb[234].mxu1 %vm734_vm0, %v8715_v13  ;;  %v8717_v0 = vadd.f32 %v8579_v9, %v20562_v18  ;;  %v9390_v18 = vld [vmem:[%s21623_s1 + $0xf8] sm:$0xff] }
0x1005   : > { %v8716_v35 = vadd.f32 %v8574_v36, %v20558_v11  ;;  %v13984_v16 = vpop.f32.mrb[46].mxu0  ;;  %14121 = vmatprep.subr.mxu0 %v9390_v18 }
0x1006   : > { %v8589_v46 = vadd.f32 %v13984_v16, %v20848_v10  ;;  %v8583_v4 = vpop.f32.mrb[47].mxu0  ;;  %14122 = vmatpush3.msra.mxu0 %v9390_v18  ;;  %v22889_v16 = vld [vmem:[#allocation93_spill] sm:$0xff] }
0x1007   : > { %v8584_v21 = vadd.f32 %v20848_v10, %v8583_v4  ;;  %14083 = vmatprep.mubr.msk.f32.mxu1 %vm734_vm0, %v8716_v35 }
0x1008   : > { %14084 = vmatmul.mubr.msk.f32.gmra.mrb[236].mxu1 %vm734_vm0, %v8717_v0  ;;  %v8719_v29 = vadd.f32 %v8589_v46, %v20582_v44 }
0x1009   : > { %v8718_v54 = vadd.f32 %v8584_v21, %v20578_v28  ;;  %v13987_v23 = vpop.f32.mrb[48].mxu0 }
0x100a   : > { %v8599_v6 = vadd.f32 %v13987_v23, %v20848_v10  ;;  %v8593_v11 = vpop.f32.mrb[49].mxu0 }
0x100b   : > { %v8594_v49 = vadd.f32 %v20848_v10, %v8593_v11  ;;  %14086 = vmatprep.mubr.msk.f32.mxu1 %vm734_vm0, %v8718_v54  ;;  %v22890_v54 = vld [vmem:[#allocation112_spill] sm:$0xff] }
0x100c   : > { %14087 = vmatmul.mubr.msk.f32.gmra.mrb[238].mxu1 %vm734_vm0, %v8719_v29  ;;  %v8721_v44 = vadd.f32 %v8599_v6, %v22877_v20  ;;  %v22891_v29 = vld [vmem:[#allocation91_spill] sm:$0xff]  ;;  %v21060_v11 = vld [vmem:[%s21623_s1 + $0xd0] ss:$0 sm:$0xff] }
0x100d   : > { %v8720_v28 = vadd.f32 %v8594_v49, %v22876_v52  ;;  %v13990_v27 = vpop.f32.mrb[50].mxu0 }
0x100e   : > { %v8609_v22 = vadd.f32 %v13990_v27, %v20848_v10  ;;  %v8603_v61 = vpop.f32.mrb[51].mxu0 }
0x100f   : > { %v8604_v37 = vadd.f32 %v20848_v10, %v8603_v61  ;;  %14089 = vmatprep.mubr.msk.f32.mxu1 %vm734_vm0, %v8720_v28 }
0x1010   : > { %14090 = vmatmul.mubr.msk.f32.gmra.mrb[240].mxu1 %vm734_vm0, %v8721_v44  ;;  %v8723_v24 = vadd.f32 %v8609_v22, %v22879_v45 }
0x1011   : > { %v8722_v17 = vadd.f32 %v8604_v37, %v22878_v63  ;;  %v13993_v51 = vpop.f32.mrb[52].mxu0 }
0x1012   : > { %v8619_v53 = vadd.f32 %v13993_v51, %v20848_v10  ;;  %v8613_v12 = vpop.f32.mrb[53].mxu0 }
0x1013   : > { %v8614_v56 = vadd.f32 %v20848_v10, %v8613_v12  ;;  %14092 = vmatprep.mubr.msk.f32.mxu1 %vm734_vm0, %v8722_v17 }
0x1014   : > { %14093 = vmatmul.mubr.msk.f32.gmra.mrb[242].mxu1 %vm734_vm0, %v8723_v24  ;;  %v8725_v8 = vadd.f32 %v8619_v53, %v22881_v7 }
0x1015   : > { %v8724_v3 = vadd.f32 %v8614_v56, %v22880_v43  ;;  %v13996_v15 = vpop.f32.mrb[54].mxu0 }
0x1016   : > { %v8629_v30 = vadd.f32 %v13996_v15, %v20848_v10  ;;  %v8623_v31 = vpop.f32.mrb[55].mxu0 }
0x1017   : > { %v8624_v40 = vadd.f32 %v20848_v10, %v8623_v31  ;;  %14095 = vmatprep.mubr.msk.f32.mxu1 %vm734_vm0, %v8724_v3 }
0x1018   : > { %14096 = vmatmul.mubr.msk.f32.gmra.mrb[244].mxu1 %vm734_vm0, %v8725_v8  ;;  %v8727_v34 = vadd.f32 %v8629_v30, %v22883_v47 }
0x1019   : > { %v8726_v41 = vadd.f32 %v8624_v40, %v22882_v32  ;;  %v13999_v39 = vpop.f32.mrb[56].mxu0 }
0x101a   : > { %v8639_v5 = vadd.f32 %v13999_v39, %v20848_v10  ;;  %v8633_v55 = vpop.f32.mrb[57].mxu0 }
0x101b   : > { %v8634_v57 = vadd.f32 %v20848_v10, %v8633_v55  ;;  %14098 = vmatprep.mubr.msk.f32.mxu1 %vm734_vm0, %v8726_v41 }
0x101c   : > { %14099 = vmatmul.mubr.msk.f32.gmra.mrb[246].mxu1 %vm734_vm0, %v8727_v34  ;;  %v8729_v59 = vadd.f32 %v8639_v5, %v22885_v50 }
0x101d   : > { %v8728_v33 = vadd.f32 %v8634_v57, %v22884_v19  ;;  %v14002_v38 = vpop.f32.mrb[58].mxu0 }
0x101e   : > { %v8649_v62 = vadd.f32 %v14002_v38, %v20848_v10  ;;  %v8643_v58 = vpop.f32.mrb[59].mxu0 }
0x101f   : > { %v8644_v1 = vadd.f32 %v20848_v10, %v8643_v58  ;;  %14101 = vmatprep.mubr.msk.f32.mxu1 %vm734_vm0, %v8728_v33 }
0x1020   : > { %14102 = vmatmul.mubr.msk.f32.gmra.mrb[248].mxu1 %vm734_vm0, %v8729_v59  ;;  %v8731_v48 = vadd.f32 %v8649_v62, %v22887_v42 }
0x1021   : > { %v8730_v2 = vadd.f32 %v8644_v1, %v22886_v25  ;;  %v14005_v14 = vpop.f32.mrb[60].mxu0 }
0x1022   : > { %v8659_v26 = vadd.f32 %v14005_v14, %v20848_v10  ;;  %v8653_v13 = vpop.f32.mrb[61].mxu0 }
0x1023   : > { %v8654_v9 = vadd.f32 %v20848_v10, %v8653_v13  ;;  %14104 = vmatprep.mubr.msk.f32.mxu1 %vm734_vm0, %v8730_v2 }
0x1024   : > { %14105 = vmatmul.mubr.msk.f32.gmra.mrb[250].mxu1 %vm734_vm0, %v8731_v48  ;;  %v8733_v0 = vadd.f32 %v8659_v26, %v22889_v16 }
0x1025   : > { %v8732_v36 = vadd.f32 %v8654_v9, %v22888_v60  ;;  %v14008_v35 = vpop.f32.mrb[62].mxu0 }
0x1026   : > { %v8669_v46 = vadd.f32 %v14008_v35, %v20848_v10  ;;  %v8663_v4 = vpop.f32.mrb[63].mxu0 }
0x1027   : > { %v8664_v21 = vadd.f32 %v20848_v10, %v8663_v4  ;;  %14107 = vmatprep.mubr.msk.f32.mxu1 %vm734_vm0, %v8732_v36 }
0x1028   : > { %14108 = vmatmul.mubr.msk.f32.gmra.mrb[252].mxu1 %vm734_vm0, %v8733_v0  ;;  %v8735_v6 = vadd.f32 %v8669_v46, %v22891_v29 }
0x1029   : > { %v8734_v23 = vadd.f32 %v8664_v21, %v22890_v54 }
0x102b   : > { %14110 = vmatprep.mubr.msk.f32.mxu1 %vm734_vm0, %v8734_v23 }
0x102c   : > { %14111 = vmatmul.mubr.msk.f32.gmra.mrb[254].mxu1 %vm734_vm0, %v8735_v6 }
0x1083   : > { %v14019_v18 = vpop.f32.mrb[192].mxu1 }
0x1084   : > { %v9009_v10 = vadd.f32 %v14019_v18, %v21060_v11  ;;  %v9003_v49 = vpop.f32.mrb[193].mxu1 }
0x1085   : > { %v9004_v52 = vadd.f32 %v21060_v11, %v9003_v49 }
0x1086   : > { %v9323_v20 = vmax.f32 %v9009_v10, 0.0 }
0x1087   : > { %v9322_v28 = vmax.f32 %v9004_v52, 0.0  ;;  %v14022_v27 = vpop.f32.mrb[194].mxu1 }
0x1088   : > { %v9019_v44 = vadd.f32 %v14022_v27, %v21060_v11  ;;  %v9013_v22 = vpop.f32.mrb[195].mxu1 }
0x1089   : > { %v9014_v61 = vadd.f32 %v21060_v11, %v9013_v22  ;;  %14123 = vmatprep.mubr.msk.f32.mxu0 %vm9396_vm3, %v9322_v28 }
0x108a   : > { %14124 = vmatmul.mubr.msk.f32.vlgmr.msra.gmra.mrb[64].mxu0 %vm9396_vm3, %v9323_v20  ;;  %v9325_v17 = vmax.f32 %v9019_v44, 0.0 }
0x108b   : > { %v9324_v37 = vmax.f32 %v9014_v61, 0.0  ;;  %v14025_v63 = vpop.f32.mrb[196].mxu1 }
0x108c   : > { %v9029_v51 = vadd.f32 %v14025_v63, %v21060_v11  ;;  %v9023_v45 = vpop.f32.mrb[197].mxu1 }
0x108d   : > { %v9024_v24 = vadd.f32 %v21060_v11, %v9023_v45  ;;  %14126 = vmatprep.mubr.msk.f32.mxu0 %vm9396_vm3, %v9324_v37 }
0x108e   : > { %14127 = vmatmul.mubr.msk.f32.gmra.mrb[66].mxu0 %vm9396_vm3, %v9325_v17  ;;  %v9327_v56 = vmax.f32 %v9029_v51, 0.0 }
0x108f   : > { %v9326_v53 = vmax.f32 %v9024_v24, 0.0  ;;  %v14028_v12 = vpop.f32.mrb[198].mxu1 }
0x1090   : > { %v9039_v43 = vadd.f32 %v14028_v12, %v21060_v11  ;;  %v9033_v3 = vpop.f32.mrb[199].mxu1 }
0x1091   : > { %v9034_v15 = vadd.f32 %v21060_v11, %v9033_v3  ;;  %14129 = vmatprep.mubr.msk.f32.mxu0 %vm9396_vm3, %v9326_v53 }
0x1092   : > { %14130 = vmatmul.mubr.msk.f32.gmra.mrb[68].mxu0 %vm9396_vm3, %v9327_v56  ;;  %v9329_v30 = vmax.f32 %v9039_v43, 0.0 }
0x1093   : > { %v9328_v7 = vmax.f32 %v9034_v15, 0.0  ;;  %v14031_v8 = vpop.f32.mrb[200].mxu1 }
0x1094   : > { %v9049_v31 = vadd.f32 %v14031_v8, %v21060_v11  ;;  %v9043_v40 = vpop.f32.mrb[201].mxu1 }
0x1095   : > { %v9044_v32 = vadd.f32 %v21060_v11, %v9043_v40  ;;  %14132 = vmatprep.mubr.msk.f32.mxu0 %vm9396_vm3, %v9328_v7 }
0x1096   : > { %14133 = vmatmul.mubr.msk.f32.gmra.mrb[70].mxu0 %vm9396_vm3, %v9329_v30  ;;  %v9331_v47 = vmax.f32 %v9049_v31, 0.0 }
0x1097   : > { %v9330_v41 = vmax.f32 %v9044_v32, 0.0  ;;  %v14034_v39 = vpop.f32.mrb[202].mxu1 }
0x1098   : > { %v9059_v34 = vadd.f32 %v14034_v39, %v21060_v11  ;;  %v9053_v5 = vpop.f32.mrb[203].mxu1 }
0x1099   : > { %v9054_v55 = vadd.f32 %v21060_v11, %v9053_v5  ;;  %14135 = vmatprep.mubr.msk.f32.mxu0 %vm9396_vm3, %v9330_v41 }
0x109a   : > { %14136 = vmatmul.mubr.msk.f32.gmra.mrb[72].mxu0 %vm9396_vm3, %v9331_v47  ;;  %v9333_v33 = vmax.f32 %v9059_v34, 0.0 }
0x109b   : > { %v9332_v57 = vmax.f32 %v9054_v55, 0.0  ;;  %v14037_v19 = vpop.f32.mrb[204].mxu1 }
0x109c   : > { %v9069_v38 = vadd.f32 %v14037_v19, %v21060_v11  ;;  %v9063_v50 = vpop.f32.mrb[205].mxu1 }
0x109d   : > { %v9064_v59 = vadd.f32 %v21060_v11, %v9063_v50  ;;  %14138 = vmatprep.mubr.msk.f32.mxu0 %vm9396_vm3, %v9332_v57 }
0x109e   : > { %14139 = vmatmul.mubr.msk.f32.gmra.mrb[74].mxu0 %vm9396_vm3, %v9333_v33  ;;  %v9335_v1 = vmax.f32 %v9069_v38, 0.0 }
0x109f   : > { %v9334_v62 = vmax.f32 %v9064_v59, 0.0  ;;  %v14040_v58 = vpop.f32.mrb[206].mxu1 }
0x10a0   : > { %v9079_v25 = vadd.f32 %v14040_v58, %v21060_v11  ;;  %v9073_v2 = vpop.f32.mrb[207].mxu1 }
0x10a1   : > { %v9074_v14 = vadd.f32 %v21060_v11, %v9073_v2  ;;  %14141 = vmatprep.mubr.msk.f32.mxu0 %vm9396_vm3, %v9334_v62 }
0x10a2   : > { %14142 = vmatmul.mubr.msk.f32.gmra.mrb[76].mxu0 %vm9396_vm3, %v9335_v1  ;;  %v9337_v26 = vmax.f32 %v9079_v25, 0.0 }
0x10a3   : > { %v9336_v42 = vmax.f32 %v9074_v14, 0.0  ;;  %v14043_v48 = vpop.f32.mrb[208].mxu1 }
0x10a4   : > { %v9089_v13 = vadd.f32 %v14043_v48, %v21060_v11  ;;  %v9083_v9 = vpop.f32.mrb[209].mxu1 }
0x10a5   : > { %v9084_v60 = vadd.f32 %v21060_v11, %v9083_v9  ;;  %14144 = vmatprep.mubr.msk.f32.mxu0 %vm9396_vm3, %v9336_v42 }
0x10a6   : > { %14145 = vmatmul.mubr.msk.f32.gmra.mrb[78].mxu0 %vm9396_vm3, %v9337_v26  ;;  %v9339_v16 = vmax.f32 %v9089_v13, 0.0 }
0x10a7   : > { %v9338_v36 = vmax.f32 %v9084_v60, 0.0  ;;  %v14046_v35 = vpop.f32.mrb[210].mxu1 }
0x10a8   : > { %v9099_v0 = vadd.f32 %v14046_v35, %v21060_v11  ;;  %v9093_v46 = vpop.f32.mrb[211].mxu1 }
0x10a9   : > { %v9094_v4 = vadd.f32 %v21060_v11, %v9093_v46  ;;  %14147 = vmatprep.mubr.msk.f32.mxu0 %vm9396_vm3, %v9338_v36 }
0x10aa   : > { %14148 = vmatmul.mubr.msk.f32.gmra.mrb[80].mxu0 %vm9396_vm3, %v9339_v16  ;;  %v9341_v23 = vmax.f32 %v9099_v0, 0.0 }
0x10ab   : > { %v9340_v21 = vmax.f32 %v9094_v4, 0.0  ;;  %v14049_v54 = vpop.f32.mrb[212].mxu1 }
0x10ac   : > { %v9109_v29 = vadd.f32 %v14049_v54, %v21060_v11  ;;  %v9103_v6 = vpop.f32.mrb[213].mxu1 }
0x10ad   : > { %v9104_v18 = vadd.f32 %v21060_v11, %v9103_v6  ;;  %14150 = vmatprep.mubr.msk.f32.mxu0 %vm9396_vm3, %v9340_v21 }
0x10ae   : > { %14151 = vmatmul.mubr.msk.f32.gmra.mrb[82].mxu0 %vm9396_vm3, %v9341_v23  ;;  %v9343_v52 = vmax.f32 %v9109_v29, 0.0 }
0x10af   : > { %v9342_v10 = vmax.f32 %v9104_v18, 0.0  ;;  %v14052_v49 = vpop.f32.mrb[214].mxu1 }
0x10b0   : > { %v9119_v28 = vadd.f32 %v14052_v49, %v21060_v11  ;;  %v9113_v27 = vpop.f32.mrb[215].mxu1 }
0x10b1   : > { %v9114_v20 = vadd.f32 %v21060_v11, %v9113_v27  ;;  %14153 = vmatprep.mubr.msk.f32.mxu0 %vm9396_vm3, %v9342_v10 }
0x10b2   : > { %14154 = vmatmul.mubr.msk.f32.gmra.mrb[84].mxu0 %vm9396_vm3, %v9343_v52  ;;  %v9345_v61 = vmax.f32 %v9119_v28, 0.0 }
0x10b3   : > { %v9344_v44 = vmax.f32 %v9114_v20, 0.0  ;;  %v14055_v22 = vpop.f32.mrb[216].mxu1 }
0x10b4   : > { %v9129_v37 = vadd.f32 %v14055_v22, %v21060_v11  ;;  %v9123_v63 = vpop.f32.mrb[217].mxu1 }
0x10b5   : > { %v9124_v17 = vadd.f32 %v21060_v11, %v9123_v63  ;;  %14156 = vmatprep.mubr.msk.f32.mxu0 %vm9396_vm3, %v9344_v44 }
0x10b6   : > { %14157 = vmatmul.mubr.msk.f32.gmra.mrb[86].mxu0 %vm9396_vm3, %v9345_v61  ;;  %v9347_v24 = vmax.f32 %v9129_v37, 0.0 }
0x10b7   : > { %v9346_v51 = vmax.f32 %v9124_v17, 0.0  ;;  %v14058_v45 = vpop.f32.mrb[218].mxu1 }
0x10b8   : > { %v9139_v53 = vadd.f32 %v14058_v45, %v21060_v11  ;;  %v9133_v12 = vpop.f32.mrb[219].mxu1 }
0x10b9   : > { %v9134_v56 = vadd.f32 %v21060_v11, %v9133_v12  ;;  %14159 = vmatprep.mubr.msk.f32.mxu0 %vm9396_vm3, %v9346_v51 }
0x10ba   : > { %14160 = vmatmul.mubr.msk.f32.gmra.mrb[88].mxu0 %vm9396_vm3, %v9347_v24  ;;  %v9349_v15 = vmax.f32 %v9139_v53, 0.0 }
0x10bb   : > { %v9348_v43 = vmax.f32 %v9134_v56, 0.0  ;;  %v14061_v3 = vpop.f32.mrb[220].mxu1 }
0x10bc   : > { %v9149_v7 = vadd.f32 %v14061_v3, %v21060_v11  ;;  %v9143_v8 = vpop.f32.mrb[221].mxu1 }
0x10bd   : > { %v9144_v30 = vadd.f32 %v21060_v11, %v9143_v8  ;;  %14162 = vmatprep.mubr.msk.f32.mxu0 %vm9396_vm3, %v9348_v43 }
0x10be   : > { %14163 = vmatmul.mubr.msk.f32.gmra.mrb[90].mxu0 %vm9396_vm3, %v9349_v15  ;;  %v9351_v32 = vmax.f32 %v9149_v7, 0.0 }
0x10bf   : > { %v9350_v31 = vmax.f32 %v9144_v30, 0.0  ;;  %v14064_v40 = vpop.f32.mrb[222].mxu1 }
0x10c0   : > { %v9159_v41 = vadd.f32 %v14064_v40, %v21060_v11  ;;  %v9153_v39 = vpop.f32.mrb[223].mxu1 }
0x10c1   : > { %v9154_v47 = vadd.f32 %v21060_v11, %v9153_v39  ;;  %14165 = vmatprep.mubr.msk.f32.mxu0 %vm9396_vm3, %v9350_v31 }
0x10c2   : > { %14166 = vmatmul.mubr.msk.f32.gmra.mrb[92].mxu0 %vm9396_vm3, %v9351_v32  ;;  %v9353_v55 = vmax.f32 %v9159_v41, 0.0 }
0x10c3   : > { %v9352_v34 = vmax.f32 %v9154_v47, 0.0  ;;  %v14067_v5 = vpop.f32.mrb[224].mxu1 }
0x10c4   : > { %v9169_v57 = vadd.f32 %v14067_v5, %v21060_v11  ;;  %v9163_v19 = vpop.f32.mrb[225].mxu1 }
0x10c5   : > { %v9164_v33 = vadd.f32 %v21060_v11, %v9163_v19  ;;  %14168 = vmatprep.mubr.msk.f32.mxu0 %vm9396_vm3, %v9352_v34 }
0x10c6   : > { %14169 = vmatmul.mubr.msk.f32.gmra.mrb[94].mxu0 %vm9396_vm3, %v9353_v55  ;;  %v9355_v59 = vmax.f32 %v9169_v57, 0.0 }
0x10c7   : > { %v9354_v38 = vmax.f32 %v9164_v33, 0.0  ;;  %v14070_v50 = vpop.f32.mrb[226].mxu1 }
0x10c8   : > { %v9179_v62 = vadd.f32 %v14070_v50, %v21060_v11  ;;  %v9173_v58 = vpop.f32.mrb[227].mxu1 }
0x10c9   : > { %v9174_v1 = vadd.f32 %v21060_v11, %v9173_v58  ;;  %14171 = vmatprep.mubr.msk.f32.mxu0 %vm9396_vm3, %v9354_v38 }
0x10ca   : > { %14172 = vmatmul.mubr.msk.f32.gmra.mrb[96].mxu0 %vm9396_vm3, %v9355_v59  ;;  %v9357_v14 = vmax.f32 %v9179_v62, 0.0 }
0x10cb   : > { %v9356_v25 = vmax.f32 %v9174_v1, 0.0  ;;  %v14073_v2 = vpop.f32.mrb[228].mxu1 }
0x10cc   : > { %v9189_v42 = vadd.f32 %v14073_v2, %v21060_v11  ;;  %v9183_v48 = vpop.f32.mrb[229].mxu1 }
0x10cd   : > { %v9184_v26 = vadd.f32 %v21060_v11, %v9183_v48  ;;  %14174 = vmatprep.mubr.msk.f32.mxu0 %vm9396_vm3, %v9356_v25 }
0x10ce   : > { %14175 = vmatmul.mubr.msk.f32.gmra.mrb[98].mxu0 %vm9396_vm3, %v9357_v14  ;;  %v9359_v60 = vmax.f32 %v9189_v42, 0.0 }
0x10cf   : > { %v9358_v13 = vmax.f32 %v9184_v26, 0.0  ;;  %v14076_v9 = vpop.f32.mrb[230].mxu1 }
0x10d0   : > { %v9199_v36 = vadd.f32 %v14076_v9, %v21060_v11  ;;  %v9193_v35 = vpop.f32.mrb[231].mxu1 }
0x10d1   : > { %v9194_v16 = vadd.f32 %v21060_v11, %v9193_v35  ;;  %14177 = vmatprep.mubr.msk.f32.mxu0 %vm9396_vm3, %v9358_v13 }
0x10d2   : > { %14178 = vmatmul.mubr.msk.f32.gmra.mrb[100].mxu0 %vm9396_vm3, %v9359_v60  ;;  %v9361_v4 = vmax.f32 %v9199_v36, 0.0 }
0x10d3   : > { %v9360_v0 = vmax.f32 %v9194_v16, 0.0  ;;  %v14079_v46 = vpop.f32.mrb[232].mxu1 }
0x10d4   : > { %v9209_v21 = vadd.f32 %v14079_v46, %v21060_v11  ;;  %v9203_v54 = vpop.f32.mrb[233].mxu1 }
0x10d5   : > { %v9204_v23 = vadd.f32 %v21060_v11, %v9203_v54  ;;  %14180 = vmatprep.mubr.msk.f32.mxu0 %vm9396_vm3, %v9360_v0 }
0x10d6   : > { %14181 = vmatmul.mubr.msk.f32.gmra.mrb[102].mxu0 %vm9396_vm3, %v9361_v4  ;;  %v9363_v18 = vmax.f32 %v9209_v21, 0.0 }
0x10d7   : > { %v9362_v29 = vmax.f32 %v9204_v23, 0.0  ;;  %v14082_v6 = vpop.f32.mrb[234].mxu1 }
0x10d8   : > { %v9219_v10 = vadd.f32 %v14082_v6, %v21060_v11  ;;  %v9213_v49 = vpop.f32.mrb[235].mxu1 }
0x10d9   : > { %v9214_v52 = vadd.f32 %v21060_v11, %v9213_v49  ;;  %14183 = vmatprep.mubr.msk.f32.mxu0 %vm9396_vm3, %v9362_v29 }
0x10da   : > { %14184 = vmatmul.mubr.msk.f32.gmra.mrb[104].mxu0 %vm9396_vm3, %v9363_v18  ;;  %v9365_v20 = vmax.f32 %v9219_v10, 0.0 }
0x10db   : > { %v9364_v28 = vmax.f32 %v9214_v52, 0.0  ;;  %v14085_v27 = vpop.f32.mrb[236].mxu1  ;;  %v10551_v52 = vld [vmem:[%s21623_s1 + $0x108] sm:$0xff] }
0x10dc   : > { %v9229_v44 = vadd.f32 %v14085_v27, %v21060_v11  ;;  %v9223_v22 = vpop.f32.mrb[237].mxu1 }
0x10dd   : > { %v9224_v61 = vadd.f32 %v21060_v11, %v9223_v22  ;;  %14186 = vmatprep.mubr.msk.f32.mxu0 %vm9396_vm3, %v9364_v28  ;;  %v10552_v28 = vld [vmem:[%s21623_s1 + $0x110] sm:$0xff]  ;;  %v10555_v22 = vld [vmem:[%s21623_s1 + $0x128] sm:$0xff] }
0x10de   : > { %14187 = vmatmul.mubr.msk.f32.gmra.mrb[106].mxu0 %vm9396_vm3, %v9365_v20  ;;  %v9367_v17 = vmax.f32 %v9229_v44, 0.0  ;;  %v14929_v27 = vpack.c.bf16 %v10552_v28, %v10551_v52  ;;  %v10554_v20 = vld [vmem:[%s21623_s1 + $0x120] sm:$0xff] }
0x10df   : > { %v9366_v37 = vmax.f32 %v9224_v61, 0.0  ;;  %v14088_v63 = vpop.f32.mrb[238].mxu1  ;;  %v21208_v61 = vld [vmem:[%s21623_s1 + $0x100] ss:$0 sm:$0xff] }
0x10e0   : > { %v9239_v51 = vadd.f32 %v14088_v63, %v21060_v11  ;;  %v9233_v45 = vpop.f32.mrb[239].mxu1  ;;  %14930 = vmatprep.subr.bf16.mxu0 %v14929_v27  ;;  %14937 = vmatprep.subr.bf16.mxu1 %v14929_v27 }
0x10e1   : > { %v9234_v24 = vadd.f32 %v21060_v11, %v9233_v45  ;;  %14189 = vmatprep.mubr.msk.f32.mxu0 %vm9396_vm3, %v9366_v37  ;;  %14932 = vmatpush3.bf16.msra.mxu0 %v14929_v27 }
0x10e2   : > { %14190 = vmatmul.mubr.msk.f32.gmra.mrb[108].mxu0 %vm9396_vm3, %v9367_v17  ;;  %v9369_v56 = vmax.f32 %v9239_v51, 0.0  ;;  %14940 = vmatpush3.bf16.msra.mxu1 %v14929_v27 }
0x10e3   : > { %v9368_v53 = vmax.f32 %v9234_v24, 0.0  ;;  %v14091_v12 = vpop.f32.mrb[240].mxu1 }
0x10e4   : > { %v9249_v43 = vadd.f32 %v14091_v12, %v21060_v11  ;;  %v9243_v3 = vpop.f32.mrb[241].mxu1 }
0x10e5   : > { %v9244_v15 = vadd.f32 %v21060_v11, %v9243_v3  ;;  %14192 = vmatprep.mubr.msk.f32.mxu0 %vm9396_vm3, %v9368_v53 }
0x10e6   : > { %14193 = vmatmul.mubr.msk.f32.gmra.mrb[110].mxu0 %vm9396_vm3, %v9369_v56  ;;  %v9371_v30 = vmax.f32 %v9249_v43, 0.0 }
0x10e7   : > { %v9370_v7 = vmax.f32 %v9244_v15, 0.0  ;;  %v14094_v8 = vpop.f32.mrb[242].mxu1 }
0x10e8   : > { %v9259_v31 = vadd.f32 %v14094_v8, %v21060_v11  ;;  %v9253_v40 = vpop.f32.mrb[243].mxu1 }
0x10e9   : > { %v9254_v32 = vadd.f32 %v21060_v11, %v9253_v40  ;;  %14195 = vmatprep.mubr.msk.f32.mxu0 %vm9396_vm3, %v9370_v7 }
0x10ea   : > { %14196 = vmatmul.mubr.msk.f32.gmra.mrb[112].mxu0 %vm9396_vm3, %v9371_v30  ;;  %v9373_v47 = vmax.f32 %v9259_v31, 0.0 }
0x10eb   : > { %v9372_v41 = vmax.f32 %v9254_v32, 0.0  ;;  %v14097_v39 = vpop.f32.mrb[244].mxu1 }
0x10ec   : > { %v9269_v34 = vadd.f32 %v14097_v39, %v21060_v11  ;;  %v9263_v5 = vpop.f32.mrb[245].mxu1 }
0x10ed   : > { %v9264_v55 = vadd.f32 %v21060_v11, %v9263_v5  ;;  %14198 = vmatprep.mubr.msk.f32.mxu0 %vm9396_vm3, %v9372_v41 }
0x10ee   : > { %14199 = vmatmul.mubr.msk.f32.gmra.mrb[114].mxu0 %vm9396_vm3, %v9373_v47  ;;  %v9375_v33 = vmax.f32 %v9269_v34, 0.0 }
0x10ef   : > { %v9374_v57 = vmax.f32 %v9264_v55, 0.0  ;;  %v14100_v19 = vpop.f32.mrb[246].mxu1 }
0x10f0   : > { %v9279_v38 = vadd.f32 %v14100_v19, %v21060_v11  ;;  %v9273_v50 = vpop.f32.mrb[247].mxu1 }
0x10f1   : > { %v9274_v59 = vadd.f32 %v21060_v11, %v9273_v50  ;;  %14201 = vmatprep.mubr.msk.f32.mxu0 %vm9396_vm3, %v9374_v57 }
0x10f2   : > { %14202 = vmatmul.mubr.msk.f32.gmra.mrb[116].mxu0 %vm9396_vm3, %v9375_v33  ;;  %v9377_v1 = vmax.f32 %v9279_v38, 0.0 }
0x10f3   : > { %v9376_v62 = vmax.f32 %v9274_v59, 0.0  ;;  %v14103_v58 = vpop.f32.mrb[248].mxu1 }
0x10f4   : > { %v9289_v25 = vadd.f32 %v14103_v58, %v21060_v11  ;;  %v9283_v2 = vpop.f32.mrb[249].mxu1 }
0x10f5   : > { %v9284_v14 = vadd.f32 %v21060_v11, %v9283_v2  ;;  %14204 = vmatprep.mubr.msk.f32.mxu0 %vm9396_vm3, %v9376_v62 }
0x10f6   : > { %14205 = vmatmul.mubr.msk.f32.gmra.mrb[118].mxu0 %vm9396_vm3, %v9377_v1  ;;  %v9379_v26 = vmax.f32 %v9289_v25, 0.0 }
0x10f7   : > { %v9378_v42 = vmax.f32 %v9284_v14, 0.0  ;;  %v14106_v48 = vpop.f32.mrb[250].mxu1 }
0x10f8   : > { %v9299_v13 = vadd.f32 %v14106_v48, %v21060_v11  ;;  %v9293_v9 = vpop.f32.mrb[251].mxu1 }
0x10f9   : > { %v9294_v60 = vadd.f32 %v21060_v11, %v9293_v9  ;;  %14207 = vmatprep.mubr.msk.f32.mxu0 %vm9396_vm3, %v9378_v42 }
0x10fa   : > { %14208 = vmatmul.mubr.msk.f32.gmra.mrb[120].mxu0 %vm9396_vm3, %v9379_v26  ;;  %v9381_v16 = vmax.f32 %v9299_v13, 0.0 }
0x10fb   : > { %v9380_v36 = vmax.f32 %v9294_v60, 0.0  ;;  %v14109_v35 = vpop.f32.mrb[252].mxu1 }
0x10fc   : > { %v9309_v0 = vadd.f32 %v14109_v35, %v21060_v11  ;;  %v9303_v46 = vpop.f32.mrb[253].mxu1 }
0x10fd   : > { %v9304_v4 = vadd.f32 %v21060_v11, %v9303_v46  ;;  %14210 = vmatprep.mubr.msk.f32.mxu0 %vm9396_vm3, %v9380_v36 }
0x10fe   : > { %14211 = vmatmul.mubr.msk.f32.gmra.mrb[122].mxu0 %vm9396_vm3, %v9381_v16  ;;  %v9383_v23 = vmax.f32 %v9309_v0, 0.0 }
0x10ff   : > { %v9382_v21 = vmax.f32 %v9304_v4, 0.0  ;;  %v14112_v54 = vpop.f32.mrb[254].mxu1 }
0x1100   : > { %v9319_v29 = vadd.f32 %v14112_v54, %v21060_v11  ;;  %v9313_v6 = vpop.f32.mrb[255].mxu1 }
0x1101   : > { %v9314_v18 = vadd.f32 %v21060_v11, %v9313_v6  ;;  %14213 = vmatprep.mubr.msk.f32.mxu0 %vm9396_vm3, %v9382_v21  ;;  %v10553_v11 = vld [vmem:[%s21623_s1 + $0x118] sm:$0xff] }
0x1102   : > { %14214 = vmatmul.mubr.msk.f32.gmra.mrb[124].mxu0 %vm9396_vm3, %v9383_v23  ;;  %v9385_v49 = vmax.f32 %v9319_v29, 0.0  ;;  %v14933_v44 = vpack.c.bf16 %v10554_v20, %v10553_v11 }
0x1103   : > { %v9384_v10 = vmax.f32 %v9314_v18, 0.0 }
0x1104   : > { %14934 = vmatprep.subr.bf16.mxu0 %v14933_v44  ;;  %14938 = vmatprep.subr.bf16.mxu1 %v14933_v44 }
0x1105   : > { %14216 = vmatprep.mubr.msk.f32.mxu0 %vm9396_vm3, %v9384_v10  ;;  %14936 = vmatpush3.bf16.msra.mxu0 %v14933_v44 }
0x1106   : > { %14217 = vmatmul.mubr.msk.f32.gmra.mrb[126].mxu0 %vm9396_vm3, %v9385_v49  ;;  %14941 = vmatpush3.bf16.msra.mxu1 %v14933_v44 }
0x1107   : > { %14227 = vmatprep.subr.mxu0 %v10555_v22  ;;  %14939 = vmatprep.subr.mxu1 %v10555_v22 }
0x1109   : > { %14228 = vmatpush3.msra.mxu0 %v10555_v22 }
0x110a   : > { %14942 = vmatpush3.msra.mxu1 %v10555_v22 }
0x115d   : > { %v14125_v37 = vpop.f32.mrb[64].mxu0 }
0x115e   : > { %v9661_v63 = vadd.f32 %v14125_v37, %v21208_v61  ;;  %v9655_v17 = vpop.f32.mrb[65].mxu0 }
0x115f   : > { %v9656_v51 = vadd.f32 %v21208_v61, %v9655_v17 }
0x1160   : > { %v9975_v45 = vmax.f32 %v9661_v63, 0.0 }
0x1161   : > { %v9974_v24 = vmax.f32 %v9656_v51, 0.0  ;;  %v14128_v53 = vpop.f32.mrb[66].mxu0 }
0x1162   : > { %v10045_v12 = vsel %vm9396_vm3, %v9975_v45, 0.0  ;;  %v9671_v56 = vadd.f32 %v14128_v53, %v21208_v61  ;;  %v9665_v43 = vpop.f32.mrb[67].mxu0 }
0x1163   : > { %v10046_v3 = vrot.slane %v10045_v12, 4  ;;  %v10038_v15 = vsel %vm9396_vm3, %v9974_v24, 0.0  ;;  %v9666_v7 = vadd.f32 %v21208_v61, %v9665_v43 }
0x1164   : > { %v10039_v8 = vrot.slane %v10038_v15, 4  ;;  %v9977_v30 = vmax.f32 %v9671_v56, 0.0 }
0x1165   : > { %v10047_v31 = vadd.f32 %v10046_v3, %v10045_v12  ;;  %v9976_v40 = vmax.f32 %v9666_v7, 0.0  ;;  %v14131_v32 = vpop.f32.mrb[68].mxu0 }
0x1166   : > { %v10040_v41 = vadd.f32 %v10039_v8, %v10038_v15  ;;  %v10059_v39 = vsel %vm9396_vm3, %v9977_v30, 0.0  ;;  %v9681_v47 = vadd.f32 %v14131_v32, %v21208_v61  ;;  %v9675_v34 = vpop.f32.mrb[69].mxu0 }
0x1167   : > { %v10048_v5 = vrot.slane %v10047_v31, 2  ;;  %v10060_v55 = vrot.slane %v10059_v39, 4  ;;  %v10052_v57 = vsel %vm9396_vm3, %v9976_v40, 0.0  ;;  %v9676_v19 = vadd.f32 %v21208_v61, %v9675_v34 }
0x1168   : > { %v10041_v33 = vrot.slane %v10040_v41, 2  ;;  %v10053_v38 = vrot.slane %v10052_v57, 4  ;;  %v9979_v50 = vmax.f32 %v9681_v47, 0.0 }
0x1169   : > { %v10049_v59 = vadd.f32 %v10048_v5, %v10047_v31  ;;  %v10061_v62 = vadd.f32 %v10060_v55, %v10059_v39  ;;  %v9978_v58 = vmax.f32 %v9676_v19, 0.0  ;;  %v14134_v1 = vpop.f32.mrb[70].mxu0 }
0x116a   : > { %v10042_v25 = vadd.f32 %v10041_v33, %v10040_v41  ;;  %v10054_v2 = vadd.f32 %v10053_v38, %v10052_v57  ;;  %v10073_v14 = vsel %vm9396_vm3, %v9979_v50, 0.0  ;;  %v9691_v42 = vadd.f32 %v14134_v1, %v21208_v61  ;;  %v9685_v48 = vpop.f32.mrb[71].mxu0 }
0x116b   : > { %v10050_v26 = vrot.slane %v10049_v59, 1  ;;  %v10062_v13 = vrot.slane %v10061_v62, 2  ;;  %v10074_v9 = vrot.slane %v10073_v14, 4  ;;  %v10066_v60 = vsel %vm9396_vm3, %v9978_v58, 0.0 }
0x116c   : > { %v10043_v36 = vrot.slane %v10042_v25, 1  ;;  %v10055_v35 = vrot.slane %v10054_v2, 2  ;;  %v10067_v16 = vrot.slane %v10066_v60, 4  ;;  %v9981_v0 = vmax.f32 %v9691_v42, 0.0 }
0x116d   : > { %v10051_v46 = vadd.f32 %v10050_v26, %v10049_v59  ;;  %v10063_v4 = vadd.f32 %v10062_v13, %v10061_v62  ;;  %v10075_v21 = vadd.f32 %v10074_v9, %v10073_v14  ;;  %v9686_v54 = vadd.f32 %v21208_v61, %v9685_v48  ;;  %v14137_v23 = vpop.f32.mrb[72].mxu0 }
0x116e   : > { %v10044_v29 = vadd.f32 %v10043_v36, %v10042_v25  ;;  %v10056_v6 = vadd.f32 %v10055_v35, %v10054_v2  ;;  %v10068_v18 = vadd.f32 %v10067_v16, %v10066_v60  ;;  %v10087_v10 = vsel %vm9396_vm3, %v9981_v0, 0.0  ;;  %v9695_v49 = vpop.f32.mrb[73].mxu0 }
0x116f   : > { %v10488_v52 = vmul.f32 0.125, %v10051_v46  ;;  %v10064_v28 = vrot.slane %v10063_v4, 1  ;;  %v10076_v27 = vrot.slane %v10075_v21, 2  ;;  %v10088_v11 = vrot.slane %v10087_v10, 4 }
0x1170   : > { %v10487_v20 = vmul.f32 0.125, %v10044_v29  ;;  %v10057_v44 = vrot.slane %v10056_v6, 1  ;;  %v10069_v22 = vrot.slane %v10068_v18, 2  ;;  %v9980_v37 = vmax.f32 %v9686_v54, 0.0 }
0x1171   : > { %v10065_v63 = vadd.f32 %v10064_v28, %v10063_v4  ;;  %v10077_v17 = vadd.f32 %v10076_v27, %v10075_v21  ;;  %v10089_v51 = vadd.f32 %v10088_v11, %v10087_v10  ;;  %v9701_v45 = vadd.f32 %v14137_v23, %v21208_v61  ;;  %v14140_v24 = vpop.f32.mrb[74].mxu0 }
0x1172   : > { %v10626_v53 = vsel %vm10625_vm4, %v10488_v52, %v10487_v20  ;;  %v10058_v12 = vadd.f32 %v10057_v44, %v10056_v6  ;;  %v10070_v56 = vadd.f32 %v10069_v22, %v10068_v18  ;;  %v10080_v43 = vsel %vm9396_vm3, %v9980_v37, 0.0  ;;  %v9705_v3 = vpop.f32.mrb[75].mxu0 }
0x1173   : > { %v21228_v15 = vmul.f32 0.125, %v10065_v63  ;;  %v10078_v7 = vrot.slane %v10077_v17, 1  ;;  %v10090_v8 = vrot.slane %v10089_v51, 2  ;;  %v10081_v30 = vrot.slane %v10080_v43, 4 }
0x1174   : > { %v10489_v31 = vmul.f32 0.125, %v10058_v12  ;;  %v10071_v40 = vrot.slane %v10070_v56, 1  ;;  %v9983_v32 = vmax.f32 %v9701_v45, 0.0  ;;  %v9696_v41 = vadd.f32 %v21208_v61, %v9695_v49 }
0x1175   : > { %v10079_v39 = vadd.f32 %v10078_v7, %v10077_v17  ;;  %v10091_v47 = vadd.f32 %v10090_v8, %v10089_v51  ;;  %v10082_v34 = vadd.f32 %v10081_v30, %v10080_v43  ;;  %v9711_v5 = vadd.f32 %v14140_v24, %v21208_v61  ;;  %v14143_v55 = vpop.f32.mrb[76].mxu0 }
0x1176   : > { %v21233_v57 = vsel %vm10627_vm5, %v10489_v31, %v10626_v53  ;;  %v10072_v19 = vadd.f32 %v10071_v40, %v10070_v56  ;;  %v10101_v33 = vsel %vm9396_vm3, %v9983_v32, 0.0  ;;  %v9982_v38 = vmax.f32 %v9696_v41, 0.0  ;;  %v9715_v50 = vpop.f32.mrb[77].mxu0 }
0x1177   : > { %v21236_v59 = vmul.f32 0.125, %v10079_v39  ;;  %v10092_v62 = vrot.slane %v10091_v47, 1  ;;  %v10083_v58 = vrot.slane %v10082_v34, 2  ;;  %v10102_v1 = vrot.slane %v10101_v33, 4 }
0x1178   : > { %v21238_v25 = vmul.f32 0.125, %v10072_v19  ;;  %v10094_v2 = vsel %vm9396_vm3, %v9982_v38, 0.0  ;;  %v9985_v14 = vmax.f32 %v9711_v5, 0.0  ;;  %v9706_v42 = vadd.f32 %v21208_v61, %v9705_v3 }
0x1179   : > { %v21242_v48 = vadd.f32 %v10092_v62, %v10091_v47  ;;  %v10084_v26 = vadd.f32 %v10083_v58, %v10082_v34  ;;  %v10103_v13 = vadd.f32 %v10102_v1, %v10101_v33  ;;  %v10095_v9 = vrot.slane %v10094_v2, 4  ;;  %v14146_v60 = vpop.f32.mrb[78].mxu0 }
0x117a   : > { %v10115_v36 = vsel %vm9396_vm3, %v9985_v14, 0.0  ;;  %v9984_v35 = vmax.f32 %v9706_v42, 0.0  ;;  %v9721_v16 = vadd.f32 %v14143_v55, %v21208_v61  ;;  %v9716_v0 = vadd.f32 %v21208_v61, %v9715_v50  ;;  %v9725_v46 = vpop.f32.mrb[79].mxu0 }
0x117b   : > { %v10085_v4 = vrot.slane %v10084_v26, 1  ;;  %v10104_v21 = vrot.slane %v10103_v13, 2  ;;  %v10096_v54 = vadd.f32 %v10095_v9, %v10094_v2  ;;  %v10116_v23 = vrot.slane %v10115_v36, 4 }
0x117c   : > { %v10108_v29 = vsel %vm9396_vm3, %v9984_v35, 0.0  ;;  %v9987_v6 = vmax.f32 %v9721_v16, 0.0  ;;  %v9986_v18 = vmax.f32 %v9716_v0, 0.0  ;;  %v9731_v10 = vadd.f32 %v14146_v60, %v21208_v61 }
0x117d   : > { %v10086_v49 = vadd.f32 %v10085_v4, %v10084_v26  ;;  %v10105_v52 = vadd.f32 %v10104_v21, %v10103_v13  ;;  %v10097_v28 = vrot.slane %v10096_v54, 2  ;;  %v10117_v27 = vadd.f32 %v10116_v23, %v10115_v36  ;;  %v14149_v11 = vpop.f32.mrb[80].mxu0 }
0x117e   : > { %v10109_v20 = vrot.slane %v10108_v29, 4  ;;  %v10129_v44 = vsel %vm9396_vm3, %v9987_v6, 0.0  ;;  %v10122_v22 = vsel %vm9396_vm3, %v9986_v18, 0.0  ;;  %v9989_v37 = vmax.f32 %v9731_v10, 0.0  ;;  %v9735_v63 = vpop.f32.mrb[81].mxu0 }
0x117f   : > { %v21251_v17 = vmul.f32 0.125, %v10086_v49  ;;  %v10106_v51 = vrot.slane %v10105_v52, 1  ;;  %v10098_v45 = vadd.f32 %v10097_v28, %v10096_v54  ;;  %v10118_v24 = vrot.slane %v10117_v27, 2 }
0x1180   : > { %v10110_v53 = vadd.f32 %v10109_v20, %v10108_v29  ;;  %v10130_v12 = vrot.slane %v10129_v44, 4  ;;  %v10123_v56 = vrot.slane %v10122_v22, 4  ;;  %v10143_v43 = vsel %vm9396_vm3, %v9989_v37, 0.0 }
0x1181   : > { %v10107_v3 = vadd.f32 %v10106_v51, %v10105_v52  ;;  %v10099_v7 = vrot.slane %v10098_v45, 1  ;;  %v10119_v8 = vadd.f32 %v10118_v24, %v10117_v27  ;;  %v10144_v30 = vrot.slane %v10143_v43, 4  ;;  %v21254_v31 = vpop.f32.mrb[82].mxu0 }
0x1182   : > { %v10111_v40 = vrot.slane %v10110_v53, 2  ;;  %v10131_v32 = vadd.f32 %v10130_v12, %v10129_v44  ;;  %v10124_v41 = vadd.f32 %v10123_v56, %v10122_v22  ;;  %v9726_v39 = vadd.f32 %v21208_v61, %v9725_v46  ;;  %v21257_v47 = vpop.f32.mrb[83].mxu0 }
0x1183   : > { %v10496_v34 = vmul.f32 0.125, %v10107_v3  ;;  %v10100_v5 = vadd.f32 %v10099_v7, %v10098_v45  ;;  %v10120_v55 = vrot.slane %v10119_v8, 1  ;;  %v10145_v19 = vadd.f32 %v10144_v30, %v10143_v43 }
0x1184   : > { %v10112_v33 = vadd.f32 %v10111_v40, %v10110_v53  ;;  %v10132_v38 = vrot.slane %v10131_v32, 2  ;;  %v10125_v50 = vrot.slane %v10124_v41, 2  ;;  %v9988_v62 = vmax.f32 %v9726_v39, 0.0 }
0x1185   : > { %v10495_v58 = vmul.f32 0.125, %v10100_v5  ;;  %v10121_v1 = vadd.f32 %v10120_v55, %v10119_v8  ;;  %v10146_v2 = vrot.slane %v10145_v19, 2  ;;  %v9741_v14 = vadd.f32 %v14149_v11, %v21208_v61  ;;  %v14155_v42 = vpop.f32.mrb[84].mxu0 }
0x1186   : > { %v10113_v26 = vrot.slane %v10112_v33, 1  ;;  %v10133_v13 = vadd.f32 %v10132_v38, %v10131_v32  ;;  %v10126_v9 = vadd.f32 %v10125_v50, %v10124_v41  ;;  %v10136_v60 = vsel %vm9396_vm3, %v9988_v62, 0.0  ;;  %v21261_v36 = vpop.f32.mrb[85].mxu0 }
0x1187   : > { %v10639_v35 = vsel %vm10625_vm4, %v10496_v34, %v10495_v58  ;;  %v10498_v16 = vmul.f32 0.125, %v10121_v1  ;;  %v10147_v0 = vadd.f32 %v10146_v2, %v10145_v19  ;;  %v10137_v46 = vrot.slane %v10136_v60, 4 }
0x1188   : > { %v10114_v4 = vadd.f32 %v10113_v26, %v10112_v33  ;;  %v10134_v21 = vrot.slane %v10133_v13, 1  ;;  %v10127_v54 = vrot.slane %v10126_v9, 1  ;;  %v9991_v23 = vmax.f32 %v9741_v14, 0.0 }
0x1189   : > { %v10148_v29 = vrot.slane %v10147_v0, 1  ;;  %v10138_v6 = vadd.f32 %v10137_v46, %v10136_v60  ;;  %v9736_v18 = vadd.f32 %v21208_v61, %v9735_v63  ;;  %v10494_v10 = vmul.f32 0.125, %v21242_v48  ;;  %v14158_v49 = vpop.f32.mrb[86].mxu0 }
0x118a   : > { %v10497_v52 = vmul.f32 0.125, %v10114_v4  ;;  %v10135_v28 = vadd.f32 %v10134_v21, %v10133_v13  ;;  %v10128_v27 = vadd.f32 %v10127_v54, %v10126_v9  ;;  %v10157_v11 = vsel %vm9396_vm3, %v9991_v23, 0.0  ;;  %v21267_v20 = vpop.f32.mrb[87].mxu0 }
0x118b   : > { %v10149_v44 = vadd.f32 %v10148_v29, %v10147_v0  ;;  %v10139_v22 = vrot.slane %v10138_v6, 2  ;;  %v10158_v37 = vrot.slane %v10157_v11, 4  ;;  %v9990_v51 = vmax.f32 %v9736_v18, 0.0 }
0x118c   : > { %v10640_v45 = vsel %vm10627_vm5, %v10497_v52, %v10639_v35  ;;  %v10500_v24 = vmul.f32 0.125, %v10135_v28  ;;  %v10499_v53 = vmul.f32 0.125, %v10128_v27  ;;  %v10630_v48 = vsel %vm10629_vm6, %v21228_v15, %v21233_v57 }
0x118d   : > { %v10641_v63 = vsel %vm10629_vm6, %v10498_v16, %v10640_v45  ;;  %v10502_v12 = vmul.f32 0.125, %v10149_v44  ;;  %v10140_v56 = vadd.f32 %v10139_v22, %v10138_v6  ;;  %v10159_v43 = vadd.f32 %v10158_v37, %v10157_v11  ;;  %v21274_v3 = vpop.f32.mrb[88].mxu0 }
0x118e   : > { %v10642_v7 = vsel %vm10631_vm7, %v10499_v53, %v10641_v63  ;;  %v10150_v8 = vsel %vm9396_vm3, %v9990_v51, 0.0  ;;  %v10632_v30 = vsel %vm10631_vm7, %v21238_v25, %v10630_v48  ;;  %v9751_v40 = vadd.f32 %v21254_v31, %v21208_v61  ;;  %v21282_v32 = vpop.f32.mrb[89].mxu0 }
0x118f   : > { %v10141_v15 = vrot.slane %v10140_v56, 1  ;;  %v10643_v57 = vsel %vm10633_vm8, %v10500_v24, %v10642_v7  ;;  %v10160_v41 = vrot.slane %v10159_v43, 2  ;;  %v10151_v39 = vrot.slane %v10150_v8, 4 }
0x1190   : > { %v10634_v34 = vsel %vm10633_vm8, %v21236_v59, %v10632_v30  ;;  %v9993_v5 = vmax.f32 %v9751_v40, 0.0  ;;  %v9746_v55 = vadd.f32 %v21208_v61, %v21257_v47  ;;  %v9761_v19 = vadd.f32 %v14155_v42, %v21208_v61 }
0x1191   : > { %v10142_v25 = vadd.f32 %v10141_v15, %v10140_v56  ;;  %v10161_v33 = vadd.f32 %v10160_v41, %v10159_v43  ;;  %v10152_v38 = vadd.f32 %v10151_v39, %v10150_v8  ;;  %v10636_v31 = vsel %vm10635_vm9, %v21251_v17, %v10634_v34  ;;  %v21292_v50 = vpop.f32.mrb[90].mxu0 }
0x1192   : > { %v10638_v62 = vsel %vm10637_vm10, %v10494_v10, %v10636_v31  ;;  %v10171_v58 = vsel %vm9396_vm3, %v9993_v5, 0.0  ;;  %v9992_v1 = vmax.f32 %v9746_v55, 0.0  ;;  %v9995_v59 = vmax.f32 %v9761_v19, 0.0  ;;  %v21296_v2 = vpop.f32.mrb[91].mxu0 }
0x1193   : > { %v10501_v14 = vmul.f32 0.125, %v10142_v25  ;;  %v10162_v47 = vrot.slane %v10161_v33, 1  ;;  %v10153_v26 = vrot.slane %v10152_v38, 2  ;;  %14229 = vmatprep.mubr.msk.f32.mxu0 %vm9396_vm3, %v10638_v62  ;;  %v10172_v42 = vrot.slane %v10171_v58, 4 }
0x1194   : > { %v10164_v13 = vsel %vm9396_vm3, %v9992_v1, 0.0  ;;  %v10185_v17 = vsel %vm9396_vm3, %v9995_v59, 0.0  ;;  %v9756_v9 = vadd.f32 %v21208_v61, %v21261_v36  ;;  %v9771_v60 = vadd.f32 %v14158_v49, %v21208_v61 }
0x1195   : > { %v10644_v35 = vsel %vm10635_vm9, %v10501_v14, %v10643_v57  ;;  %v10163_v16 = vadd.f32 %v10162_v47, %v10161_v33  ;;  %v10154_v0 = vadd.f32 %v10153_v26, %v10152_v38  ;;  %v10173_v46 = vadd.f32 %v10172_v42, %v10171_v58  ;;  %v21305_v4 = vpop.f32.mrb[92].mxu0 }
0x1196   : > { %v10645_v21 = vsel %vm10637_vm10, %v10502_v12, %v10644_v35  ;;  %v10165_v54 = vrot.slane %v10164_v13, 4  ;;  %v10186_v23 = vrot.slane %v10185_v17, 4  ;;  %v9994_v29 = vmax.f32 %v9756_v9, 0.0  ;;  %v21308_v6 = vpop.f32.mrb[93].mxu0 }
0x1197   : > { %v10504_v18 = vmul.f32 0.125, %v10163_v16  ;;  %v10155_v10 = vrot.slane %v10154_v0, 1  ;;  %v10174_v52 = vrot.slane %v10173_v46, 2  ;;  %v9997_v36 = vmax.f32 %v9771_v60, 0.0  ;;  %14230 = vmatmul.mubr.msk.f32.vlgmr.msra.gmra.mrb[128].mxu0 %vm9396_vm3, %v10645_v21 }
0x1198   : > { %v10166_v49 = vadd.f32 %v10165_v54, %v10164_v13  ;;  %v10187_v28 = vadd.f32 %v10186_v23, %v10185_v17  ;;  %v10178_v27 = vsel %vm9396_vm3, %v9994_v29, 0.0  ;;  %v9766_v11 = vadd.f32 %v21208_v61, %v21267_v20 }
0x1199   : > { %v10156_v44 = vadd.f32 %v10155_v10, %v10154_v0  ;;  %v10175_v22 = vadd.f32 %v10174_v52, %v10173_v46  ;;  %v10179_v37 = vrot.slane %v10178_v27, 4  ;;  %v10199_v51 = vsel %vm9396_vm3, %v9997_v36, 0.0  ;;  %v21315_v45 = vpop.f32.mrb[94].mxu0 }
0x119a   : > { %v10167_v24 = vrot.slane %v10166_v49, 2  ;;  %v10188_v53 = vrot.slane %v10187_v28, 2  ;;  %v10200_v48 = vrot.slane %v10199_v51, 4  ;;  %v9996_v63 = vmax.f32 %v9766_v11, 0.0  ;;  %v21317_v12 = vpop.f32.mrb[95].mxu0 }
0x119b   : > { %v10503_v56 = vmul.f32 0.125, %v10156_v44  ;;  %v10176_v43 = vrot.slane %v10175_v22, 1  ;;  %v10180_v7 = vadd.f32 %v10179_v37, %v10178_v27  ;;  %v9781_v8 = vadd.f32 %v21274_v3, %v21208_v61 }
0x119c   : > { %v10168_v20 = vadd.f32 %v10167_v24, %v10166_v49  ;;  %v10189_v30 = vadd.f32 %v10188_v53, %v10187_v28  ;;  %v10201_v40 = vadd.f32 %v10200_v48, %v10199_v51  ;;  %v10192_v15 = vsel %vm9396_vm3, %v9996_v63, 0.0 }
0x119d   : > { %v10646_v57 = vsel %vm10625_vm4, %v10504_v18, %v10503_v56  ;;  %v10177_v41 = vadd.f32 %v10176_v43, %v10175_v22  ;;  %v10181_v39 = vrot.slane %v10180_v7, 2  ;;  %v10193_v34 = vrot.slane %v10192_v15, 4  ;;  %v21323_v5 = vpop.f32.mrb[96].mxu0 }
0x119e   : > { %v10169_v55 = vrot.slane %v10168_v20, 1  ;;  %v10190_v19 = vrot.slane %v10189_v30, 1  ;;  %v10202_v25 = vrot.slane %v10201_v40, 2  ;;  %v9999_v33 = vmax.f32 %v9781_v8, 0.0  ;;  %v21325_v38 = vpop.f32.mrb[97].mxu0 }
0x119f   : > { %v21327_v31 = vmul.f32 0.125, %v10177_v41  ;;  %v10182_v3 = vadd.f32 %v10181_v39, %v10180_v7  ;;  %v10194_v62 = vadd.f32 %v10193_v34, %v10192_v15  ;;  %v9776_v58 = vadd.f32 %v21208_v61, %v21282_v32 }
0x11a0   : > { %v10170_v1 = vadd.f32 %v10169_v55, %v10168_v20  ;;  %v10191_v59 = vadd.f32 %v10190_v19, %v10189_v30  ;;  %v10203_v14 = vadd.f32 %v10202_v25, %v10201_v40  ;;  %v10213_v47 = vsel %vm9396_vm3, %v9999_v33, 0.0 }
0x11a1   : > { %v10183_v26 = vrot.slane %v10182_v3, 1  ;;  %v10195_v42 = vrot.slane %v10194_v62, 2  ;;  %v10214_v13 = vrot.slane %v10213_v47, 4  ;;  %v9998_v17 = vmax.f32 %v9776_v58, 0.0  ;;  %v21332_v9 = vpop.f32.mrb[98].mxu0 }
0x11a2   : > { %v10505_v60 = vmul.f32 0.125, %v10170_v1  ;;  %v21334_v35 = vmul.f32 0.125, %v10191_v59  ;;  %v10204_v16 = vrot.slane %v10203_v14, 1  ;;  %v9791_v0 = vadd.f32 %v21292_v50, %v21208_v61  ;;  %v21338_v46 = vpop.f32.mrb[99].mxu0 }
0x11a3   : > { %v10184_v32 = vadd.f32 %v10183_v26, %v10182_v3  ;;  %v10196_v21 = vadd.f32 %v10195_v42, %v10194_v62  ;;  %v10215_v54 = vadd.f32 %v10214_v13, %v10213_v47  ;;  %v10206_v23 = vsel %vm9396_vm3, %v9998_v17, 0.0 }
0x11a4   : > { %v21342_v29 = vsel %vm10627_vm5, %v10505_v60, %v10646_v57  ;;  %v21344_v18 = vadd.f32 %v10204_v16, %v10203_v14  ;;  %v10207_v10 = vrot.slane %v10206_v23, 4  ;;  %v10001_v52 = vmax.f32 %v9791_v0, 0.0 }
0x11a5   : > { %v21346_v36 = vmul.f32 0.125, %v10184_v32  ;;  %v10197_v49 = vrot.slane %v10196_v21, 1  ;;  %v10216_v28 = vrot.slane %v10215_v54, 2  ;;  %v9786_v50 = vadd.f32 %v21208_v61, %v21296_v2  ;;  %v21350_v27 = vpop.f32.mrb[100].mxu0 }
0x11a6   : > { %v10208_v11 = vadd.f32 %v10207_v10, %v10206_v23  ;;  %v10227_v44 = vsel %vm9396_vm3, %v10001_v52, 0.0  ;;  %v9801_v22 = vadd.f32 %v21305_v4, %v21208_v61  ;;  %v9796_v37 = vadd.f32 %v21208_v61, %v21308_v6  ;;  %v21357_v51 = vpop.f32.mrb[101].mxu0 }
0x11a7   : > { %v10198_v24 = vadd.f32 %v10197_v49, %v10196_v21  ;;  %v10217_v53 = vadd.f32 %v10216_v28, %v10215_v54  ;;  %v10228_v48 = vrot.slane %v10227_v44, 4  ;;  %v10000_v63 = vmax.f32 %v9786_v50, 0.0 }
0x11a8   : > { %v10209_v56 = vrot.slane %v10208_v11, 2  ;;  %v10003_v43 = vmax.f32 %v9801_v22, 0.0  ;;  %v10002_v2 = vmax.f32 %v9796_v37, 0.0  ;;  %v9811_v7 = vadd.f32 %v21315_v45, %v21208_v61 }
0x11a9   : > { %v21361_v8 = vmul.f32 0.125, %v10198_v24  ;;  %v10218_v20 = vrot.slane %v10217_v53, 1  ;;  %v10229_v30 = vadd.f32 %v10228_v48, %v10227_v44  ;;  %v10220_v4 = vsel %vm9396_vm3, %v10000_v63, 0.0  ;;  %v21364_v40 = vpop.f32.mrb[102].mxu0 }
0x11aa   : > { %v10210_v6 = vadd.f32 %v10209_v56, %v10208_v11  ;;  %v10221_v15 = vrot.slane %v10220_v4, 4  ;;  %v10241_v57 = vsel %vm9396_vm3, %v10003_v43, 0.0  ;;  %v10234_v41 = vsel %vm9396_vm3, %v10002_v2, 0.0  ;;  %v21368_v39 = vpop.f32.mrb[103].mxu0 }
0x11ab   : > { %v10219_v34 = vadd.f32 %v10218_v20, %v10217_v53  ;;  %v10230_v55 = vrot.slane %v10229_v30, 2  ;;  %v10242_v19 = vrot.slane %v10241_v57, 4  ;;  %v10235_v45 = vrot.slane %v10234_v41, 4 }
0x11ac   : > { %v10211_v25 = vrot.slane %v10210_v6, 1  ;;  %v10222_v33 = vadd.f32 %v10221_v15, %v10220_v4  ;;  %v10005_v3 = vmax.f32 %v9811_v7, 0.0  ;;  %v9806_v62 = vadd.f32 %v21208_v61, %v21317_v12 }
0x11ad   : > { %v10512_v58 = vmul.f32 0.125, %v10219_v34  ;;  %v10231_v1 = vadd.f32 %v10230_v55, %v10229_v30  ;;  %v10243_v59 = vadd.f32 %v10242_v19, %v10241_v57  ;;  %v10236_v14 = vadd.f32 %v10235_v45, %v10234_v41  ;;  %v21372_v47 = vpop.f32.mrb[104].mxu0 }
0x11ae   : > { %v10212_v26 = vadd.f32 %v10211_v25, %v10210_v6  ;;  %v10223_v42 = vrot.slane %v10222_v33, 2  ;;  %v10255_v13 = vsel %vm9396_vm3, %v10005_v3, 0.0  ;;  %v10004_v17 = vmax.f32 %v9806_v62, 0.0  ;;  %v21375_v60 = vpop.f32.mrb[105].mxu0 }
0x11af   : > { %v10232_v16 = vrot.slane %v10231_v1, 1  ;;  %v10244_v0 = vrot.slane %v10243_v59, 2  ;;  %v10237_v32 = vrot.slane %v10236_v14, 2  ;;  %v10256_v21 = vrot.slane %v10255_v13, 4 }
0x11b0   : > { %v10511_v54 = vmul.f32 0.125, %v10212_v26  ;;  %v10224_v23 = vadd.f32 %v10223_v42, %v10222_v33  ;;  %v10248_v12 = vsel %vm9396_vm3, %v10004_v17, 0.0  ;;  %v9821_v10 = vadd.f32 %v21323_v5, %v21208_v61 }
0x11b1   : > { %v10233_v52 = vadd.f32 %v10232_v16, %v10231_v1  ;;  %v10245_v49 = vadd.f32 %v10244_v0, %v10243_v59  ;;  %v10238_v28 = vadd.f32 %v10237_v32, %v10236_v14  ;;  %v10257_v50 = vadd.f32 %v10256_v21, %v10255_v13  ;;  %v21380_v11 = vpop.f32.mrb[106].mxu0 }
0x11b2   : > { %v10653_v44 = vsel %vm10625_vm4, %v10512_v58, %v10511_v54  ;;  %v10225_v22 = vrot.slane %v10224_v23, 1  ;;  %v10249_v37 = vrot.slane %v10248_v12, 4  ;;  %v10007_v24 = vmax.f32 %v9821_v10, 0.0  ;;  %v21383_v53 = vpop.f32.mrb[107].mxu0 }
0x11b3   : > { %v10514_v48 = vmul.f32 0.125, %v10233_v52  ;;  %v10246_v63 = vrot.slane %v10245_v49, 1  ;;  %v10239_v56 = vrot.slane %v10238_v28, 1  ;;  %v10258_v43 = vrot.slane %v10257_v50, 2 }
0x11b4   : > { %v10226_v2 = vadd.f32 %v10225_v22, %v10224_v23  ;;  %v10250_v7 = vadd.f32 %v10249_v37, %v10248_v12  ;;  %v10269_v5 = vsel %vm9396_vm3, %v10007_v24, 0.0  ;;  %v9816_v20 = vadd.f32 %v21208_v61, %v21325_v38 }
0x11b5   : > { %v10247_v30 = vadd.f32 %v10246_v63, %v10245_v49  ;;  %v10240_v4 = vadd.f32 %v10239_v56, %v10238_v28  ;;  %v10259_v6 = vadd.f32 %v10258_v43, %v10257_v50  ;;  %v10270_v15 = vrot.slane %v10269_v5, 4  ;;  %v21388_v57 = vpop.f32.mrb[108].mxu0 }
0x11b6   : > { %v10513_v41 = vmul.f32 0.125, %v10226_v2  ;;  %v10251_v34 = vrot.slane %v10250_v7, 2  ;;  %v10006_v55 = vmax.f32 %v9816_v20, 0.0  ;;  %v10510_v19 = vmul.f32 0.125, %v21344_v18  ;;  %v21391_v45 = vpop.f32.mrb[109].mxu0 }
0x11b7   : > { %v10516_v25 = vmul.f32 0.125, %v10247_v30  ;;  %v10515_v33 = vmul.f32 0.125, %v10240_v4  ;;  %v10260_v3 = vrot.slane %v10259_v6, 1  ;;  %v10271_v62 = vadd.f32 %v10270_v15, %v10269_v5 }
0x11b8   : > { %v10654_v58 = vsel %vm10627_vm5, %v10513_v41, %v10653_v44  ;;  %v10252_v38 = vadd.f32 %v10251_v34, %v10250_v7  ;;  %v10262_v1 = vsel %vm9396_vm3, %v10006_v55, 0.0  ;;  %v10648_v59 = vsel %vm10629_vm6, %v21327_v31, %v21342_v29 }
0x11b9   : > { %v10655_v14 = vsel %vm10629_vm6, %v10514_v48, %v10654_v58  ;;  %v10261_v26 = vadd.f32 %v10260_v3, %v10259_v6  ;;  %v10272_v42 = vrot.slane %v10271_v62, 2  ;;  %v10263_v18 = vrot.slane %v10262_v1, 4  ;;  %v21399_v13 = vpop.f32.mrb[110].mxu0 }
0x11ba   : > { %v10656_v17 = vsel %vm10631_vm7, %v10515_v33, %v10655_v14  ;;  %v10253_v16 = vrot.slane %v10252_v38, 1  ;;  %v10649_v0 = vsel %vm10631_vm7, %v21346_v36, %v10648_v59  ;;  %v9831_v32 = vadd.f32 %v21332_v9, %v21208_v61  ;;  %v21406_v21 = vpop.f32.mrb[111].mxu0 }
0x11bb   : > { %v10518_v54 = vmul.f32 0.125, %v10261_v26  ;;  %v10657_v31 = vsel %vm10633_vm8, %v10516_v25, %v10656_v17  ;;  %v10273_v29 = vadd.f32 %v10272_v42, %v10271_v62  ;;  %v10264_v23 = vadd.f32 %v10263_v18, %v10262_v1 }
0x11bc   : > { %v10254_v12 = vadd.f32 %v10253_v16, %v10252_v38  ;;  %v10650_v10 = vsel %vm10633_vm8, %v21334_v35, %v10649_v0  ;;  %v10009_v52 = vmax.f32 %v9831_v32, 0.0  ;;  %v9826_v49 = vadd.f32 %v21208_v61, %v21338_v46 }
0x11bd   : > { %v10274_v28 = vrot.slane %v10273_v29, 1  ;;  %v10265_v36 = vrot.slane %v10264_v23, 2  ;;  %v10651_v9 = vsel %vm10635_vm9, %v21361_v8, %v10650_v10  ;;  %v9841_v50 = vadd.f32 %v21350_v27, %v21208_v61  ;;  %v21417_v44 = vpop.f32.mrb[112].mxu0 }
0x11be   : > { %v10517_v22 = vmul.f32 0.125, %v10254_v12  ;;  %v10652_v37 = vsel %vm10637_vm10, %v10510_v19, %v10651_v9  ;;  %v10283_v24 = vsel %vm9396_vm3, %v10009_v52, 0.0  ;;  %v10008_v35 = vmax.f32 %v9826_v49, 0.0  ;;  %v21421_v48 = vpop.f32.mrb[113].mxu0 }
0x11bf   : > { %v10275_v63 = vadd.f32 %v10274_v28, %v10273_v29  ;;  %v10266_v46 = vadd.f32 %v10265_v36, %v10264_v23  ;;  %14232 = vmatprep.mubr.msk.f32.mxu1 %vm9396_vm3, %v10652_v37  ;;  %v10284_v56 = vrot.slane %v10283_v24, 4  ;;  %v10011_v43 = vmax.f32 %v9841_v50, 0.0 }
0x11c0   : > { %v10658_v8 = vsel %vm10635_vm9, %v10517_v22, %v10657_v31  ;;  %v10276_v27 = vsel %vm9396_vm3, %v10008_v35, 0.0  ;;  %v9836_v2 = vadd.f32 %v21208_v61, %v21357_v51  ;;  %v9851_v7 = vadd.f32 %v21364_v40, %v21208_v61 }
0x11c1   : > { %v10659_v5 = vsel %vm10637_vm10, %v10518_v54, %v10658_v8  ;;  %v10520_v20 = vmul.f32 0.125, %v10275_v63  ;;  %v10267_v30 = vrot.slane %v10266_v46, 1  ;;  %v10285_v4 = vadd.f32 %v10284_v56, %v10283_v24  ;;  %v21431_v6 = vpop.f32.mrb[114].mxu0 }
0x11c2   : > { %v10277_v15 = vrot.slane %v10276_v27, 4  ;;  %v10297_v41 = vsel %vm9396_vm3, %v10011_v43, 0.0  ;;  %v10010_v34 = vmax.f32 %v9836_v2, 0.0  ;;  %v10013_v55 = vmax.f32 %v9851_v7, 0.0  ;;  %14233 = vmatmul.mubr.msk.f32.vlgmr.msra.gmra.mrb[0].mxu1 %vm9396_vm3, %v10659_v5  ;;  %v21435_v19 = vpop.f32.mrb[115].mxu0 }
0x11c3   : > { %v10268_v51 = vadd.f32 %v10267_v30, %v10266_v46  ;;  %v10286_v25 = vrot.slane %v10285_v4, 2  ;;  %v10298_v33 = vrot.slane %v10297_v41, 4  ;;  %v9846_v40 = vadd.f32 %v21208_v61, %v21368_v39 }
0x11c4   : > { %v10278_v3 = vadd.f32 %v10277_v15, %v10276_v27  ;;  %v10290_v62 = vsel %vm9396_vm3, %v10010_v34, 0.0  ;;  %v10311_v58 = vsel %vm9396_vm3, %v10013_v55, 0.0  ;;  %v9861_v38 = vadd.f32 %v21372_v47, %v21208_v61 }
0x11c5   : > { %v10519_v1 = vmul.f32 0.125, %v10268_v51  ;;  %v10287_v59 = vadd.f32 %v10286_v25, %v10285_v4  ;;  %v10299_v14 = vadd.f32 %v10298_v33, %v10297_v41  ;;  %v10291_v26 = vrot.slane %v10290_v62, 4  ;;  %v21443_v42 = vpop.f32.mrb[116].mxu0 }
0x11c6   : > { %v10279_v18 = vrot.slane %v10278_v3, 2  ;;  %v10312_v17 = vrot.slane %v10311_v58, 4  ;;  %v10012_v16 = vmax.f32 %v9846_v40, 0.0  ;;  %v10015_v0 = vmax.f32 %v9861_v38, 0.0  ;;  %v21445_v32 = vpop.f32.mrb[117].mxu0 }
0x11c7   : > { %v10660_v39 = vsel %vm10625_vm4, %v10520_v20, %v10519_v1  ;;  %v10288_v54 = vrot.slane %v10287_v59, 1  ;;  %v10300_v31 = vrot.slane %v10299_v14, 2  ;;  %v10292_v29 = vadd.f32 %v10291_v26, %v10290_v62 }
0x11c8   : > { %v10280_v23 = vadd.f32 %v10279_v18, %v10278_v3  ;;  %v10313_v12 = vadd.f32 %v10312_v17, %v10311_v58  ;;  %v10304_v47 = vsel %vm9396_vm3, %v10012_v16, 0.0  ;;  %v10325_v10 = vsel %vm9396_vm3, %v10015_v0, 0.0  ;;  %v21482_v0 = vld [vmem:[%s21623_s1 + $0x100] ss:$0 sm:$0xff] }
0x11c9   : > { %v10289_v52 = vadd.f32 %v10288_v54, %v10287_v59  ;;  %v10301_v49 = vadd.f32 %v10300_v31, %v10299_v14  ;;  %v10293_v28 = vrot.slane %v10292_v29, 2  ;;  %v10305_v36 = vrot.slane %v10304_v47, 4  ;;  %v21450_v9 = vpop.f32.mrb[118].mxu0 }
0x11ca   : > { %v10281_v50 = vrot.slane %v10280_v23, 1  ;;  %v10314_v22 = vrot.slane %v10313_v12, 2  ;;  %v10326_v37 = vrot.slane %v10325_v10, 4  ;;  %v9856_v24 = vadd.f32 %v21208_v61, %v21375_v60  ;;  %v21454_v35 = vpop.f32.mrb[119].mxu0 }
0x11cb   : > { %v21456_v63 = vmul.f32 0.125, %v10289_v52  ;;  %v10302_v46 = vrot.slane %v10301_v49, 1  ;;  %v10294_v56 = vadd.f32 %v10293_v28, %v10292_v29  ;;  %v10306_v43 = vadd.f32 %v10305_v36, %v10304_v47 }
0x11cc   : > { %v10282_v8 = vadd.f32 %v10281_v50, %v10280_v23  ;;  %v10315_v27 = vadd.f32 %v10314_v22, %v10313_v12  ;;  %v10327_v2 = vadd.f32 %v10326_v37, %v10325_v10  ;;  %v10014_v7 = vmax.f32 %v9856_v24, 0.0 }
0x11cd   : > { %v10303_v5 = vadd.f32 %v10302_v46, %v10301_v49  ;;  %v10295_v20 = vrot.slane %v10294_v56, 1  ;;  %v10307_v30 = vrot.slane %v10306_v43, 2  ;;  %v9871_v4 = vadd.f32 %v21380_v11, %v21208_v61  ;;  %v21460_v15 = vpop.f32.mrb[120].mxu0 }
0x11ce   : > { %v10521_v60 = vmul.f32 0.125, %v10282_v8  ;;  %v10316_v41 = vrot.slane %v10315_v27, 1  ;;  %v10328_v34 = vrot.slane %v10327_v2, 2  ;;  %v10318_v55 = vsel %vm9396_vm3, %v10014_v7, 0.0  ;;  %v21463_v51 = vpop.f32.mrb[121].mxu0 }
0x11cf   : > { %v21465_v25 = vmul.f32 0.125, %v10303_v5  ;;  %v10296_v33 = vadd.f32 %v10295_v20, %v10294_v56  ;;  %v10308_v40 = vadd.f32 %v10307_v30, %v10306_v43  ;;  %v10319_v3 = vrot.slane %v10318_v55, 4 }
0x11d0   : > { %v21468_v62 = vsel %vm10627_vm5, %v10521_v60, %v10660_v39  ;;  %v21470_v58 = vadd.f32 %v10316_v41, %v10315_v27  ;;  %v10329_v11 = vadd.f32 %v10328_v34, %v10327_v2  ;;  %v10017_v38 = vmax.f32 %v9871_v4, 0.0 }
0x11d1   : > { %v21472_v1 = vmul.f32 0.125, %v10296_v33  ;;  %v10309_v59 = vrot.slane %v10308_v40, 1  ;;  %v10320_v14 = vadd.f32 %v10319_v3, %v10318_v55  ;;  %v9866_v26 = vadd.f32 %v21208_v61, %v21383_v53  ;;  %v21476_v18 = vpop.f32.mrb[122].mxu0 }
0x11d2   : > { %v10330_v17 = vrot.slane %v10329_v11, 1  ;;  %v10339_v16 = vsel %vm9396_vm3, %v10017_v38, 0.0  ;;  %v9881_v39 = vadd.f32 %v21482_v0, %v21388_v57  ;;  %v9876_v54 = vadd.f32 %v21482_v0, %v21391_v45  ;;  %v21488_v31 = vpop.f32.mrb[123].mxu0 }
0x11d3   : > { %v10310_v29 = vadd.f32 %v10309_v59, %v10308_v40  ;;  %v10321_v61 = vrot.slane %v10320_v14, 2  ;;  %v10340_v53 = vrot.slane %v10339_v16, 4  ;;  %v10016_v23 = vmax.f32 %v9866_v26, 0.0 }
0x11d4   : > { %v10331_v12 = vadd.f32 %v10330_v17, %v10329_v11  ;;  %v10019_v47 = vmax.f32 %v9881_v39, 0.0  ;;  %v10018_v10 = vmax.f32 %v9876_v54, 0.0  ;;  %v9891_v52 = vadd.f32 %v21482_v0, %v21399_v13 }
0x11d5   : > { %v21492_v49 = vmul.f32 0.125, %v10310_v29  ;;  %v10322_v28 = vadd.f32 %v10321_v61, %v10320_v14  ;;  %v10341_v36 = vadd.f32 %v10340_v53, %v10339_v16  ;;  %v10332_v57 = vsel %vm9396_vm3, %v10016_v23, 0.0  ;;  %v21495_v50 = vpop.f32.mrb[124].mxu0 }
0x11d6   : > { %v10528_v45 = vmul.f32 0.125, %v10331_v12  ;;  %v10333_v22 = vrot.slane %v10332_v57, 4  ;;  %v10353_v37 = vsel %vm9396_vm3, %v10019_v47, 0.0  ;;  %v10346_v24 = vsel %vm9396_vm3, %v10018_v10, 0.0  ;;  %v21499_v46 = vpop.f32.mrb[125].mxu0 }
0x11d7   : > { %v10323_v56 = vrot.slane %v10322_v28, 1  ;;  %v10342_v43 = vrot.slane %v10341_v36, 2  ;;  %v10354_v8 = vrot.slane %v10353_v37, 4  ;;  %v10347_v13 = vrot.slane %v10346_v24, 4 }
0x11d8   : > { %v10334_v27 = vadd.f32 %v10333_v22, %v10332_v57  ;;  %v10021_v2 = vmax.f32 %v9891_v52, 0.0  ;;  %v9886_v7 = vadd.f32 %v21482_v0, %v21406_v21  ;;  %v9901_v5 = vadd.f32 %v21482_v0, %v21417_v44 }
0x11d9   : > { %v10324_v20 = vadd.f32 %v10323_v56, %v10322_v28  ;;  %v10343_v30 = vadd.f32 %v10342_v43, %v10341_v36  ;;  %v10355_v4 = vadd.f32 %v10354_v8, %v10353_v37  ;;  %v10348_v60 = vadd.f32 %v10347_v13, %v10346_v24  ;;  %v21505_v41 = vpop.f32.mrb[126].mxu0 }
0x11da   : > { %v10335_v34 = vrot.slane %v10334_v27, 2  ;;  %v10367_v55 = vsel %vm9396_vm3, %v10021_v2, 0.0  ;;  %v10020_v33 = vmax.f32 %v9886_v7, 0.0  ;;  %v10023_v40 = vmax.f32 %v9901_v5, 0.0  ;;  %v21508_v3 = vpop.f32.mrb[127].mxu0 }
0x11db   : > { %v10527_v11 = vmul.f32 0.125, %v10324_v20  ;;  %v10344_v38 = vrot.slane %v10343_v30, 1  ;;  %v10356_v59 = vrot.slane %v10355_v4, 2  ;;  %v10349_v21 = vrot.slane %v10348_v60, 2 }
0x11dc   : > { %v10336_v14 = vadd.f32 %v10335_v34, %v10334_v27  ;;  %v10368_v26 = vrot.slane %v10367_v55, 4  ;;  %v10360_v44 = vsel %vm9396_vm3, %v10020_v33, 0.0  ;;  %v10381_v17 = vsel %vm9396_vm3, %v10023_v40, 0.0 }
0x11dd   : > { %v10667_v16 = vsel %vm10625_vm4, %v10528_v45, %v10527_v11  ;;  %v10345_v39 = vadd.f32 %v10344_v38, %v10343_v30  ;;  %v10357_v54 = vadd.f32 %v10356_v59, %v10355_v4  ;;  %v10350_v29 = vadd.f32 %v10349_v21, %v10348_v60 }
0x11de   : > { %v10337_v61 = vrot.slane %v10336_v14, 1  ;;  %v10369_v53 = vadd.f32 %v10368_v26, %v10367_v55  ;;  %v10361_v23 = vrot.slane %v10360_v44, 4  ;;  %v10382_v12 = vrot.slane %v10381_v17, 4 }
0x11df   : > { %v10530_v47 = vmul.f32 0.125, %v10345_v39  ;;  %v10358_v10 = vrot.slane %v10357_v54, 1  ;;  %v10351_v52 = vrot.slane %v10350_v29, 1  ;;  %v9896_v28 = vadd.f32 %v21482_v0, %v21421_v48 }
0x11e0   : > { %v10338_v36 = vadd.f32 %v10337_v61, %v10336_v14  ;;  %v10370_v57 = vrot.slane %v10369_v53, 2  ;;  %v10362_v22 = vadd.f32 %v10361_v23, %v10360_v44  ;;  %v10383_v37 = vadd.f32 %v10382_v12, %v10381_v17 }
0x11e1   : > { %v10359_v24 = vadd.f32 %v10358_v10, %v10357_v54  ;;  %v10352_v56 = vadd.f32 %v10351_v52, %v10350_v29  ;;  %v10022_v45 = vmax.f32 %v9896_v28, 0.0  ;;  %v10526_v43 = vmul.f32 0.125, %v21470_v58 }
0x11e2   : > { %v10529_v8 = vmul.f32 0.125, %v10338_v36  ;;  %v10371_v13 = vadd.f32 %v10370_v57, %v10369_v53  ;;  %v10363_v27 = vrot.slane %v10362_v22, 2  ;;  %v10384_v2 = vrot.slane %v10383_v37, 2 }
0x11e3   : > { %v21516_v7 = vmul.f32 0.125, %v10359_v24  ;;  %v10531_v5 = vmul.f32 0.125, %v10352_v56  ;;  %v10374_v20 = vsel %vm9396_vm3, %v10022_v45, 0.0  ;;  %v10662_v48 = vsel %vm10629_vm6, %v21456_v63, %v21468_v62 }
0x11e4   : > { %v10668_v30 = vsel %vm10627_vm5, %v10529_v8, %v10667_v16  ;;  %v10372_v4 = vrot.slane %v10371_v13, 1  ;;  %v10364_v60 = vadd.f32 %v10363_v27, %v10362_v22  ;;  %v10385_v34 = vadd.f32 %v10384_v2, %v10383_v37 }
0x11e5   : > { %v10669_v58 = vsel %vm10629_vm6, %v10530_v47, %v10668_v30  ;;  %v10375_v55 = vrot.slane %v10374_v20, 4  ;;  %v10663_v33 = vsel %vm10631_vm7, %v21472_v1, %v10662_v48  ;;  %v9911_v40 = vadd.f32 %v21482_v0, %v21431_v6 }
0x11e6   : > { %v21529_v11 = vsel %vm10631_vm7, %v10531_v5, %v10669_v58  ;;  %v10373_v38 = vadd.f32 %v10372_v4, %v10371_v13  ;;  %v10365_v59 = vrot.slane %v10364_v60, 1  ;;  %v10386_v63 = vrot.slane %v10385_v34, 1 }
0x11e7   : > { %v10376_v62 = vadd.f32 %v10375_v55, %v10374_v20  ;;  %v10664_v21 = vsel %vm10633_vm8, %v21465_v25, %v10663_v33  ;;  %v10025_v14 = vmax.f32 %v9911_v40, 0.0  ;;  %v9906_v26 = vadd.f32 %v21482_v0, %v21435_v19 }
0x11e8   : > { %v21535_v44 = vmul.f32 0.125, %v10373_v38  ;;  %v10366_v1 = vadd.f32 %v10365_v59, %v10364_v60  ;;  %v10387_v17 = vadd.f32 %v10386_v63, %v10385_v34  ;;  %v10665_v6 = vsel %vm10635_vm9, %v21492_v49, %v10664_v21 }
0x11e9   : > { %v10377_v16 = vrot.slane %v10376_v62, 2  ;;  %v10666_v39 = vsel %vm10637_vm10, %v10526_v43, %v10665_v6  ;;  %v10395_v54 = vsel %vm9396_vm3, %v10025_v14, 0.0  ;;  %v10024_v29 = vmax.f32 %v9906_v26, 0.0 }
0x11ea   : > { %v21541_v61 = vmul.f32 0.125, %v10366_v1  ;;  %v10536_v25 = vmul.f32 0.125, %v10387_v17  ;;  %14235 = vmatprep.mubr.msk.f32.mxu1 %vm9396_vm3, %v10666_v39  ;;  %v10396_v53 = vrot.slane %v10395_v54, 4  ;;  %v9921_v19 = vadd.f32 %v21482_v0, %v21443_v42 }
0x11eb   : > { %v10378_v23 = vadd.f32 %v10377_v16, %v10376_v62  ;;  %v10388_v12 = vsel %vm9396_vm3, %v10024_v29, 0.0  ;;  %v9916_v49 = vadd.f32 %v21482_v0, %v21445_v32  ;;  %v9931_v47 = vadd.f32 %v21482_v0, %v21450_v9 }
0x11ec   : > { %v10397_v10 = vadd.f32 %v10396_v53, %v10395_v54  ;;  %v10389_v52 = vrot.slane %v10388_v12, 4  ;;  %v10027_v28 = vmax.f32 %v9921_v19, 0.0  ;;  %v9926_v36 = vadd.f32 %v21482_v0, %v21454_v35 }
0x11ed   : > { %v10379_v57 = vrot.slane %v10378_v23, 1  ;;  %v10026_v22 = vmax.f32 %v9916_v49, 0.0  ;;  %v10029_v37 = vmax.f32 %v9931_v47, 0.0  ;;  %v9941_v42 = vadd.f32 %v21482_v0, %v21460_v15 }
0x11ee   : > { %v10398_v24 = vrot.slane %v10397_v10, 2  ;;  %v10390_v56 = vadd.f32 %v10389_v52, %v10388_v12  ;;  %v10409_v45 = vsel %vm9396_vm3, %v10027_v28, 0.0  ;;  %v10028_v32 = vmax.f32 %v9926_v36, 0.0 }
0x11ef   : > { %v10380_v43 = vadd.f32 %v10379_v57, %v10378_v23  ;;  %v10410_v8 = vrot.slane %v10409_v45, 4  ;;  %v10402_v9 = vsel %vm9396_vm3, %v10026_v22, 0.0  ;;  %v10423_v13 = vsel %vm9396_vm3, %v10029_v37, 0.0 }
0x11f0   : > { %v10399_v27 = vadd.f32 %v10398_v24, %v10397_v10  ;;  %v10391_v2 = vrot.slane %v10390_v56, 2  ;;  %v10403_v35 = vrot.slane %v10402_v9, 4  ;;  %v10424_v5 = vrot.slane %v10423_v13, 4 }
0x11f1   : > { %v10535_v20 = vmul.f32 0.125, %v10380_v43  ;;  %v10411_v48 = vadd.f32 %v10410_v8, %v10409_v45  ;;  %v10416_v30 = vsel %vm9396_vm3, %v10028_v32, 0.0  ;;  %v10031_v15 = vmax.f32 %v9941_v42, 0.0 }
0x11f2   : > { %v10400_v4 = vrot.slane %v10399_v27, 1  ;;  %v10392_v60 = vadd.f32 %v10391_v2, %v10390_v56  ;;  %v10404_v34 = vadd.f32 %v10403_v35, %v10402_v9  ;;  %v10425_v58 = vadd.f32 %v10424_v5, %v10423_v13 }
0x11f3   : > { %v10674_v55 = vsel %vm10625_vm4, %v10536_v25, %v10535_v20  ;;  %v10412_v33 = vrot.slane %v10411_v48, 2  ;;  %v10417_v40 = vrot.slane %v10416_v30, 4  ;;  %v10437_v38 = vsel %vm9396_vm3, %v10031_v15, 0.0 }
0x11f4   : > { %v10401_v59 = vadd.f32 %v10400_v4, %v10399_v27  ;;  %v10393_v63 = vrot.slane %v10392_v60, 1  ;;  %v10405_v62 = vrot.slane %v10404_v34, 2  ;;  %v10426_v21 = vrot.slane %v10425_v58, 2 }
0x11f5   : > { %v10413_v14 = vadd.f32 %v10412_v33, %v10411_v48  ;;  %v10418_v26 = vadd.f32 %v10417_v40, %v10416_v30  ;;  %v10438_v1 = vrot.slane %v10437_v38, 4  ;;  %v9936_v17 = vadd.f32 %v21482_v0, %v21463_v51 }
0x11f6   : > { %v21563_v6 = vmul.f32 0.125, %v10401_v59  ;;  %v10394_v16 = vadd.f32 %v10393_v63, %v10392_v60  ;;  %v10406_v39 = vadd.f32 %v10405_v62, %v10404_v34  ;;  %v10427_v54 = vadd.f32 %v10426_v21, %v10425_v58 }
0x11f7   : > { %v10414_v29 = vrot.slane %v10413_v14, 1  ;;  %v10419_v25 = vrot.slane %v10418_v26, 2  ;;  %v10439_v53 = vadd.f32 %v10438_v1, %v10437_v38  ;;  %v10030_v19 = vmax.f32 %v9936_v17, 0.0 }
0x11f8   : > { %v10537_v23 = vmul.f32 0.125, %v10394_v16  ;;  %v10407_v12 = vrot.slane %v10406_v39, 1  ;;  %v10428_v49 = vrot.slane %v10427_v54, 1  ;;  %v10671_v47 = vsel %vm10633_vm8, %v21516_v7, %v21529_v11 }
0x11f9   : > { %v10415_v10 = vadd.f32 %v10414_v29, %v10413_v14  ;;  %v10420_v52 = vadd.f32 %v10419_v25, %v10418_v26  ;;  %v10440_v28 = vrot.slane %v10439_v53, 2  ;;  %v10430_v51 = vsel %vm9396_vm3, %v10030_v19, 0.0 }
0x11fa   : > { %v10675_v36 = vsel %vm10627_vm5, %v10537_v23, %v10674_v55  ;;  %v10408_v57 = vadd.f32 %v10407_v12, %v10406_v39  ;;  %v10429_v22 = vadd.f32 %v10428_v49, %v10427_v54  ;;  %v10431_v37 = vrot.slane %v10430_v51, 4 }
0x11fb   : > { %v21570_v42 = vmul.f32 0.125, %v10415_v10  ;;  %v10421_v24 = vrot.slane %v10420_v52, 1  ;;  %v10441_v56 = vadd.f32 %v10440_v28, %v10439_v53  ;;  %v10672_v45 = vsel %vm10635_vm9, %v21541_v61, %v10671_v47 }
0x11fc   : > { %v10539_v32 = vmul.f32 0.125, %v10408_v57  ;;  %v10432_v43 = vadd.f32 %v10431_v37, %v10430_v51  ;;  %v10673_v7 = vsel %vm10637_vm10, %v21535_v44, %v10672_v45  ;;  %v9951_v11 = vadd.f32 %v21482_v0, %v21476_v18 }
0x11fd   : > { %v10422_v8 = vadd.f32 %v10421_v24, %v10420_v52  ;;  %v10442_v9 = vrot.slane %v10441_v56, 1  ;;  %14236 = vmatmul.mubr.msk.f32.gmra.mrb[2].mxu1 %vm9396_vm3, %v10673_v7  ;;  %v9946_v13 = vadd.f32 %v21482_v0, %v21488_v31  ;;  %v9961_v27 = vadd.f32 %v21482_v0, %v21495_v50 }
0x11fe   : > { %v10433_v2 = vrot.slane %v10432_v43, 2  ;;  %v10033_v61 = vmax.f32 %v9951_v11, 0.0  ;;  %v9956_v35 = vadd.f32 %v21482_v0, %v21499_v46  ;;  %v9971_v44 = vadd.f32 %v21482_v0, %v21505_v41 }
0x11ff   : > { %v10541_v5 = vmul.f32 0.125, %v10422_v8  ;;  %v10443_v18 = vadd.f32 %v10442_v9, %v10441_v56  ;;  %v10032_v20 = vmax.f32 %v9946_v13, 0.0  ;;  %v10035_v48 = vmax.f32 %v9961_v27, 0.0 }
0x1200   : > { %v10434_v30 = vadd.f32 %v10433_v2, %v10432_v43  ;;  %v10451_v15 = vsel %vm9396_vm3, %v10033_v61, 0.0  ;;  %v10034_v4 = vmax.f32 %v9956_v35, 0.0  ;;  %v10037_v31 = vmax.f32 %v9971_v44, 0.0 }
0x1201   : > { %v10544_v60 = vmul.f32 0.125, %v10443_v18  ;;  %v10452_v34 = vrot.slane %v10451_v15, 4  ;;  %v10444_v50 = vsel %vm9396_vm3, %v10032_v20, 0.0  ;;  %v10465_v58 = vsel %vm9396_vm3, %v10035_v48, 0.0 }
0x1202   : > { %v10435_v55 = vrot.slane %v10434_v30, 1  ;;  %v10445_v46 = vrot.slane %v10444_v50, 4  ;;  %v10466_v33 = vrot.slane %v10465_v58, 4  ;;  %v10458_v41 = vsel %vm9396_vm3, %v10034_v4, 0.0 }
0x1203   : > { %v10453_v40 = vadd.f32 %v10452_v34, %v10451_v15  ;;  %v10459_v38 = vrot.slane %v10458_v41, 4  ;;  %v10479_v59 = vsel %vm9396_vm3, %v10037_v31, 0.0  ;;  %v9966_v63 = vadd.f32 %v21482_v0, %v21508_v3 }
0x1204   : > { %v10436_v62 = vadd.f32 %v10435_v55, %v10434_v30  ;;  %v10446_v21 = vadd.f32 %v10445_v46, %v10444_v50  ;;  %v10467_v14 = vadd.f32 %v10466_v33, %v10465_v58  ;;  %v10480_v26 = vrot.slane %v10479_v59, 4  ;;  %v11592_v50 = vld [vmem:[%s21623_s1 + $0x130] ss:$0 sm:$0xff] }
0x1205   : > { %v10454_v1 = vrot.slane %v10453_v40, 2  ;;  %v10460_v17 = vadd.f32 %v10459_v38, %v10458_v41  ;;  %v10036_v16 = vmax.f32 %v9966_v63, 0.0  ;;  %v10542_v39 = vmul.f32 0.125, %v10429_v22 }
0x1206   : > { %v10543_v54 = vmul.f32 0.125, %v10436_v62  ;;  %v10447_v29 = vrot.slane %v10446_v21, 2  ;;  %v10468_v25 = vrot.slane %v10467_v14, 2  ;;  %v10481_v53 = vadd.f32 %v10480_v26, %v10479_v59 }
0x1207   : > { %v10455_v19 = vadd.f32 %v10454_v1, %v10453_v40  ;;  %v10461_v23 = vrot.slane %v10460_v17, 2  ;;  %v10472_v12 = vsel %vm9396_vm3, %v10036_v16, 0.0  ;;  %v10676_v49 = vsel %vm10629_vm6, %v21563_v6, %v10675_v36 }
0x1208   : > { %v10681_v0 = vsel %vm10625_vm4, %v10544_v60, %v10543_v54  ;;  %v10448_v3 = vadd.f32 %v10447_v29, %v10446_v21  ;;  %v10469_v47 = vadd.f32 %v10468_v25, %v10467_v14  ;;  %v10482_v10 = vrot.slane %v10481_v53, 2 }
0x1209   : > { %v10456_v52 = vrot.slane %v10455_v19, 1  ;;  %v10462_v28 = vadd.f32 %v10461_v23, %v10460_v17  ;;  %v10473_v51 = vrot.slane %v10472_v12, 4  ;;  %v10677_v57 = vsel %vm10631_vm7, %v10539_v32, %v10676_v49 }
0x120a   : > { %v10449_v22 = vrot.slane %v10448_v3, 1  ;;  %v10470_v37 = vrot.slane %v10469_v47, 1  ;;  %v10483_v24 = vadd.f32 %v10482_v10, %v10481_v53  ;;  %v10678_v56 = vsel %vm10633_vm8, %v21570_v42, %v10677_v57 }
0x120b   : > { %v10457_v45 = vadd.f32 %v10456_v52, %v10455_v19  ;;  %v10463_v43 = vrot.slane %v10462_v28, 1  ;;  %v10474_v7 = vadd.f32 %v10473_v51, %v10472_v12  ;;  %v10679_v6 = vsel %vm10635_vm9, %v10541_v5, %v10678_v56 }
0x120c   : > { %v10450_v36 = vadd.f32 %v10449_v22, %v10448_v3  ;;  %v10680_v11 = vsel %vm10637_vm10, %v10542_v39, %v10679_v6  ;;  %v10471_v8 = vadd.f32 %v10470_v37, %v10469_v47  ;;  %v10484_v27 = vrot.slane %v10483_v24, 1 }
0x120d   : > { %v10464_v9 = vadd.f32 %v10463_v43, %v10462_v28  ;;  %v10475_v13 = vrot.slane %v10474_v7, 2  ;;  %14238 = vmatprep.mubr.msk.f32.mxu1 %vm9396_vm3, %v10680_v11  ;;  %v10546_v2 = vmul.f32 0.125, %v10457_v45 }
0x120e   : > { %v10545_v32 = vmul.f32 0.125, %v10450_v36  ;;  %v10548_v44 = vmul.f32 0.125, %v10471_v8  ;;  %v10485_v48 = vadd.f32 %v10484_v27, %v10483_v24 }
0x120f   : > { %v10547_v61 = vmul.f32 0.125, %v10464_v9  ;;  %v10476_v35 = vadd.f32 %v10475_v13, %v10474_v7 }
0x1210   : > { %v10682_v42 = vsel %vm10627_vm5, %v10545_v32, %v10681_v0  ;;  %v10550_v31 = vmul.f32 0.125, %v10485_v48 }
0x1211   : > { %v10683_v18 = vsel %vm10629_vm6, %v10546_v2, %v10682_v42  ;;  %v10477_v5 = vrot.slane %v10476_v35, 1 }
0x1212   : > { %v10684_v20 = vsel %vm10631_vm7, %v10547_v61, %v10683_v18 }
0x1213   : > { %v10478_v30 = vadd.f32 %v10477_v5, %v10476_v35  ;;  %v10685_v15 = vsel %vm10633_vm8, %v10548_v44, %v10684_v20 }
0x1215   : > { %v10549_v4 = vmul.f32 0.125, %v10478_v30 }
0x1217   : > { %v10686_v60 = vsel %vm10635_vm9, %v10549_v4, %v10685_v15 }
0x1218   : > { %v10687_v34 = vsel %vm10637_vm10, %v10550_v31, %v10686_v60 }
0x1219   : > { %14239 = vmatmul.mubr.msk.f32.gmra.mrb[4].mxu1 %vm9396_vm3, %v10687_v34 }
0x126a   : > { %v14231_v58 = vpop.f32.mrb[128].mxu0 }
0x126b   : > { %v10776_v55 = vadd.f32 %v14231_v58, %v11592_v50  ;;  %v10770_v46 = vpop.f32.mrb[129].mxu0 }
0x126c   : > { %v10771_v33 = vadd.f32 %v11592_v50, %v10770_v46 }
0x126d   : > { %10810 = vst [vmem:[%s145_s3 + $0x8] sm:$0xff] %v10776_v55 }
0x126e   : > { %10809 = vst [vmem:[%s145_s3] sm:$0xff] %v10771_v33 }
0x1295   : > { %v14234_v41 = vpop.f32.mrb[0].mxu1 }
0x1296   : > { %v10786_v40 = vadd.f32 %v14234_v41, %v11592_v50  ;;  %v10780_v38 = vpop.f32.mrb[1].mxu1 }
0x1297   : > { %v10781_v59 = vadd.f32 %v11592_v50, %v10780_v38 }
0x1298   : > { %10812 = vst [vmem:[%s145_s3 + $0x18] sm:$0xff] %v10786_v40 }
0x1299   : > { %10811 = vst [vmem:[%s145_s3 + $0x10] sm:$0xff] %v10781_v59 }
0x12d0   : > { %v14237_v63 = vpop.f32.mrb[2].mxu1 }
0x12d1   : > { %v10796_v62 = vadd.f32 %v14237_v63, %v11592_v50  ;;  %v10790_v21 = vpop.f32.mrb[3].mxu1 }
0x12d2   : > { %v10791_v14 = vadd.f32 %v11592_v50, %v10790_v21 }
0x12d3   : > { %10814 = vst [vmem:[%s145_s3 + $0x28] sm:$0xff] %v10796_v62 }
0x12d4   : > { %10813 = vst [vmem:[%s145_s3 + $0x20] sm:$0xff] %v10791_v14 }
0x12ec   : > { %v14240_v26 = vpop.f32.mrb[4].mxu1 }
0x12ed   : > { %v10806_v1 = vadd.f32 %v14240_v26, %v11592_v50  ;;  %v10800_v17 = vpop.f32.mrb[5].mxu1 }
0x12ee   : > { %v10801_v16 = vadd.f32 %v11592_v50, %v10800_v17 }
0x12ef   : > { %10816 = vst [vmem:[%s145_s3 + $0x38] sm:$0xff] %v10806_v1 }
0x12f0   : > { %10815 = vst [vmem:[%s145_s3 + $0x30] sm:$0xff] %v10801_v16 }
0x12f1 PF: > { %s12_s9 = sadd.s32 1, %s16198_s9  }
0x12f2   : > { %p9_p5 = scmp.ge.s32.totalorder %s12_s9, 6  }
0x12f4   :  { %11 = sbr.rel (!%p9_p5) target bundleno = 1 (0x1), region = 58 }

</bundles_post_ra>
